<compile_context>
chip_gen: v7x
topology: tpu7x:2x2x1
jax: 0.10.0
libtpu: 0.0.40
codegen_flags: <defaults>
</compile_context>

<pallas_src>
import math
from functools import partial

import jax
import jax.numpy as jnp
from jax.experimental import pallas as pl
from jax.experimental.pallas import tpu as pltpu

_NEG_INF = -1e30


# ------------------------------ tiling helpers -------------------------------

def _ceil_to(x, m):
    return -(-x // m) * m


def _tiling(dim, target):
    """Return (tile, padded_dim). tile == dim (single full block, always layout
    legal) when dim <= target, else an (8,128)-aligned `target` tile with the dim
    padded up so the tile divides it."""
    if dim <= target:
        return dim, dim
    return target, _ceil_to(dim, target)


def _pad2(a, rows, cols):
    if a.shape == (rows, cols):
        return a
    return jnp.pad(a, ((0, rows - a.shape[0]), (0, cols - a.shape[1])))


def _pad_last(a, n):
    if a.shape[-1] == n:
        return a
    pad = [(0, 0)] * (a.ndim - 1) + [(0, n - a.shape[-1])]
    return jnp.pad(a, pad)


# --------------------- tiled linear (+bias, optional relu) -------------------

def _linear_kernel(x_ref, w_ref, b_ref, o_ref, acc_ref, *, relu):
    @pl.when(pl.program_id(2) == 0)
    def _():
        acc_ref[...] = jnp.zeros_like(acc_ref)

    acc_ref[...] += jnp.dot(x_ref[...], w_ref[...],
                            preferred_element_type=jnp.float32)

    @pl.when(pl.program_id(2) == pl.num_programs(2) - 1)
    def _():
        y = acc_ref[...] + b_ref[...]
        if relu:
            y = jnp.maximum(y, 0.0)
        o_ref[...] = y.astype(o_ref.dtype)


def linear(x, w, b, relu=False, out_dtype=jnp.bfloat16, tm=512, tn=512, tk=512):
    """(M,K) bf16 @ (K,N) bf16 + b -> (M,N) out_dtype. K-tiled, f32 accumulator."""
    M, K = x.shape
    N = w.shape[1]
    tm, Mp = _tiling(M, tm)
    tn, Np = _tiling(N, tn)
    tk, Kp = _tiling(K, tk)
    x = _pad2(x.astype(jnp.bfloat16), Mp, Kp)
    w = _pad2(w, Kp, Np)
    b = _pad_last(b, Np).reshape(1, Np)
    out = pl.pallas_call(
        partial(_linear_kernel, relu=relu),
        out_shape=jax.ShapeDtypeStruct((Mp, Np), out_dtype),
        grid_spec=pltpu.PrefetchScalarGridSpec(
            num_scalar_prefetch=0,
            grid=(Mp // tm, Np // tn, Kp // tk),
            in_specs=[
                pl.BlockSpec((tm, tk), lambda i, j, k: (i, k)),
                pl.BlockSpec((tk, tn), lambda i, j, k: (k, j)),
                pl.BlockSpec((1, tn), lambda i, j, k: (0, j)),
            ],
            out_specs=pl.BlockSpec((tm, tn), lambda i, j, k: (i, j)),
            scratch_shapes=[pltpu.VMEM((tm, tn), jnp.float32)],
        ),
        compiler_params=pltpu.CompilerParams(
            dimension_semantics=("parallel", "parallel", "arbitrary")),
    )(x, w, b)
    if (Mp, Np) != (M, N):
        out = out[:M, :N]
    return out


# --------------- tiled linear + residual-add + LayerNorm epilogue ------------

def _linear_add_ln_kernel(x_ref, w_ref, b_ref, r_ref, g_ref, be_ref,
                          of_ref, ob_ref, acc_ref, *, eps):
    @pl.when(pl.program_id(1) == 0)
    def _():
        acc_ref[...] = jnp.zeros_like(acc_ref)

    acc_ref[...] += jnp.dot(x_ref[...], w_ref[...],
                            preferred_element_type=jnp.float32)

    @pl.when(pl.program_id(1) == pl.num_programs(1) - 1)
    def _():
        y = acc_ref[...] + b_ref[...] + r_ref[...]          # bias + residual (f32)
        mean = jnp.mean(y, axis=-1, keepdims=True)
        var = jnp.mean((y - mean) ** 2, axis=-1, keepdims=True)
        out = (y - mean) * jax.lax.rsqrt(var + eps) * g_ref[...] + be_ref[...]
        of_ref[...] = out                                    # f32 copy (next residual)
        ob_ref[...] = out.astype(jnp.bfloat16)               # bf16 copy (next matmul)


def linear_add_ln(x, w, b, res, gamma, beta, eps=1e-5, tm=512, tk=512):
    """LayerNorm(x @ w + b + res) -> (f32, bf16). x: (M,K) bf16, w: (K,N) bf16."""
    M, K = x.shape
    N = w.shape[1]
    tm, Mp = _tiling(M, tm)
    tk, Kp = _tiling(K, tk)
    x = _pad2(x.astype(jnp.bfloat16), Mp, Kp)
    w = _pad2(w, Kp, N)
    res = _pad2(res, Mp, N)
    y_f32, y_bf16 = pl.pallas_call(
        partial(_linear_add_ln_kernel, eps=eps),
        out_shape=(jax.ShapeDtypeStruct((Mp, N), jnp.float32),
                   jax.ShapeDtypeStruct((Mp, N), jnp.bfloat16)),
        grid_spec=pltpu.PrefetchScalarGridSpec(
            num_scalar_prefetch=0,
            grid=(Mp // tm, Kp // tk),
            in_specs=[
                pl.BlockSpec((tm, tk), lambda i, k: (i, k)),
                pl.BlockSpec((tk, N), lambda i, k: (k, 0)),
                pl.BlockSpec((1, N), lambda i, k: (0, 0)),
                pl.BlockSpec((tm, N), lambda i, k: (i, 0)),
                pl.BlockSpec((1, N), lambda i, k: (0, 0)),
                pl.BlockSpec((1, N), lambda i, k: (0, 0)),
            ],
            out_specs=(pl.BlockSpec((tm, N), lambda i, k: (i, 0)),
                       pl.BlockSpec((tm, N), lambda i, k: (i, 0))),
            scratch_shapes=[pltpu.VMEM((tm, N), jnp.float32)],
        ),
        compiler_params=pltpu.CompilerParams(
            dimension_semantics=("parallel", "arbitrary")),
    )(x, w, b.reshape(1, N), res, gamma.reshape(1, N), beta.reshape(1, N))
    if Mp != M:
        y_f32, y_bf16 = y_f32[:M], y_bf16[:M]
    return y_f32, y_bf16


# ------- fused FFN (w1 -> relu -> w2, hidden streamed) + add + LayerNorm -----

def _ffn_add_ln_kernel(x_ref, w1_ref, b1_ref, w2_ref, b2_ref, r_ref, g_ref, be_ref,
                       of_ref, ob_ref, acc_ref, *, eps):
    @pl.when(pl.program_id(1) == 0)
    def _():
        acc_ref[...] = jnp.zeros_like(acc_ref)

    # One hidden chunk: relu is elementwise over hidden, so chunked accumulation
    # of the second matmul is exact.
    h = jnp.dot(x_ref[...], w1_ref[...],
                preferred_element_type=jnp.float32) + b1_ref[...]
    h = jnp.maximum(h, 0.0)
    acc_ref[...] += jnp.dot(h.astype(jnp.bfloat16), w2_ref[...],
                            preferred_element_type=jnp.float32)

    @pl.when(pl.program_id(1) == pl.num_programs(1) - 1)
    def _():
        y = acc_ref[...] + b2_ref[...] + r_ref[...]
        mean = jnp.mean(y, axis=-1, keepdims=True)
        var = jnp.mean((y - mean) ** 2, axis=-1, keepdims=True)
        out = (y - mean) * jax.lax.rsqrt(var + eps) * g_ref[...] + be_ref[...]
        of_ref[...] = out
        ob_ref[...] = out.astype(jnp.bfloat16)


def ffn_add_ln(x, res, w1, b1, w2, b2, gamma, beta, eps=1e-5, tm=512, th=512):
    """LayerNorm(res + relu(x@w1 + b1)@w2 + b2) -> (f32, bf16); hidden dim streamed."""
    M, D = x.shape
    H = w1.shape[1]
    tm, Mp = _tiling(M, tm)
    th, Hp = _tiling(H, th)
    x = _pad2(x.astype(jnp.bfloat16), Mp, D)
    res = _pad2(res, Mp, D)
    w1 = _pad2(w1, D, Hp)
    b1 = _pad_last(b1, Hp).reshape(1, Hp)
    w2 = _pad2(w2, Hp, D)
    y_f32, y_bf16 = pl.pallas_call(
        partial(_ffn_add_ln_kernel, eps=eps),
        out_shape=(jax.ShapeDtypeStruct((Mp, D), jnp.float32),
                   jax.ShapeDtypeStruct((Mp, D), jnp.bfloat16)),
        grid_spec=pltpu.PrefetchScalarGridSpec(
            num_scalar_prefetch=0,
            grid=(Mp // tm, Hp // th),
            in_specs=[
                pl.BlockSpec((tm, D), lambda i, hc: (i, 0)),
                pl.BlockSpec((D, th), lambda i, hc: (0, hc)),
                pl.BlockSpec((1, th), lambda i, hc: (0, hc)),
                pl.BlockSpec((th, D), lambda i, hc: (hc, 0)),
                pl.BlockSpec((1, D), lambda i, hc: (0, 0)),
                pl.BlockSpec((tm, D), lambda i, hc: (i, 0)),
                pl.BlockSpec((1, D), lambda i, hc: (0, 0)),
                pl.BlockSpec((1, D), lambda i, hc: (0, 0)),
            ],
            out_specs=(pl.BlockSpec((tm, D), lambda i, hc: (i, 0)),
                       pl.BlockSpec((tm, D), lambda i, hc: (i, 0))),
            scratch_shapes=[pltpu.VMEM((tm, D), jnp.float32)],
        ),
        compiler_params=pltpu.CompilerParams(
            dimension_semantics=("parallel", "arbitrary")),
    )(x, w1, b1, w2, b2.reshape(1, D), res,
      gamma.reshape(1, D), beta.reshape(1, D))
    if Mp != M:
        y_f32, y_bf16 = y_f32[:M], y_bf16[:M]
    return y_f32, y_bf16


# ------------------ flash-style multi-head attention kernel ------------------

def _flash_mha_kernel(q_ref, k_ref, v_ref, mask_ref, o_ref, m_sc, l_sc, acc_sc,
                      *, n_heads, causal):
    # q_ref: (1, tq, D) bf16 lane-dense (heads = contiguous Dh column groups),
    # k/v_ref: (1, tk, D) bf16, mask_ref: (1, 1, tk) int32 pad-keep,
    # o_ref: (1, tq, D) bf16. Online softmax over the Tk grid axis.
    qi = pl.program_id(1)
    ki = pl.program_id(2)
    tq = q_ref.shape[1]
    tk = k_ref.shape[1]
    D = q_ref.shape[2]
    Dh = D // n_heads

    @pl.when(ki == 0)
    def _():
        m_sc[...] = jnp.full_like(m_sc, -jnp.inf)
        l_sc[...] = jnp.zeros_like(l_sc)
        acc_sc[...] = jnp.zeros_like(acc_sc)

    def compute():
        q = q_ref[0]                        # (tq, D); 1/sqrt(Dh) folded into weights
        k = k_ref[0]
        v = v_ref[0]
        keep = mask_ref[0] != 0             # (1, tk) pad-keep over keys
        if causal:
            row = qi * tq + jax.lax.broadcasted_iota(jnp.int32, (tq, tk), 0)
            col = ki * tk + jax.lax.broadcasted_iota(jnp.int32, (tq, tk), 1)
            keep = jnp.logical_and(keep, col <= row)         # (tq, tk)
        for h in range(n_heads):            # static unroll; in-kernel head slices
            qh = q[:, h * Dh:(h + 1) * Dh]                   # (tq, Dh)
            kh = k[:, h * Dh:(h + 1) * Dh]                   # (tk, Dh)
            vh = v[:, h * Dh:(h + 1) * Dh]                   # (tk, Dh)
            s = jax.lax.dot_general(qh, kh, (((1,), (1,)), ((), ())),
                                    preferred_element_type=jnp.float32)  # (tq, tk)
            s = jnp.where(keep, s, _NEG_INF)
            m_prev = m_sc[h]                                  # (tq, 1)
            m_new = jnp.maximum(m_prev, jnp.max(s, axis=-1, keepdims=True))
            alpha = jnp.exp(m_prev - m_new)
            p = jnp.exp(s - m_new)
            l_sc[h] = alpha * l_sc[h] + jnp.sum(p, axis=-1, keepdims=True)
            acc_sc[h] = alpha * acc_sc[h] + jnp.dot(
                p.astype(jnp.bfloat16), vh, preferred_element_type=jnp.float32)
            m_sc[h] = m_new

    if causal:
        # Skip key tiles entirely above the diagonal for this query tile.
        @pl.when(ki * tk <= qi * tq + tq - 1)
        def _():
            compute()
    else:
        compute()

    @pl.when(ki == pl.num_programs(2) - 1)
    def _():
        outs = [acc_sc[h] * pl.reciprocal(l_sc[h], approx=True)
                for h in range(n_heads)]
        # Single lane-dense (tq, D) store (no per-head masked stores).
        o_ref[0] = jnp.concatenate(outs, axis=-1).astype(o_ref.dtype)


def attention(q, k, v, pad_mask, *, n_heads, causal, tq=256, tk=256):
    """q: (B,Tq,D) bf16, k/v: (B,Tk,D) bf16, pad_mask: (B,1,Tk) int32 -> (B,Tq,D) bf16."""
    B, Tq, D = q.shape
    Tk = k.shape[1]
    assert D % n_heads == 0
    tq, Tqp = _tiling(Tq, tq)
    tk, Tkp = _tiling(Tk, tk)
    if Tqp != Tq:
        q = jnp.pad(q, ((0, 0), (0, Tqp - Tq), (0, 0)))
    if Tkp != Tk:
        k = jnp.pad(k, ((0, 0), (0, Tkp - Tk), (0, 0)))
        v = jnp.pad(v, ((0, 0), (0, Tkp - Tk), (0, 0)))
        pad_mask = jnp.pad(pad_mask, ((0, 0), (0, 0), (0, Tkp - Tk)))
    out = pl.pallas_call(
        partial(_flash_mha_kernel, n_heads=n_heads, causal=causal),
        out_shape=jax.ShapeDtypeStruct((B, Tqp, D), jnp.bfloat16),
        grid_spec=pltpu.PrefetchScalarGridSpec(
            num_scalar_prefetch=0,
            grid=(B, Tqp // tq, Tkp // tk),
            in_specs=[
                pl.BlockSpec((1, tq, D), lambda b, i, j: (b, i, 0)),
                pl.BlockSpec((1, tk, D), lambda b, i, j: (b, j, 0)),
                pl.BlockSpec((1, tk, D), lambda b, i, j: (b, j, 0)),
                pl.BlockSpec((1, 1, tk), lambda b, i, j: (b, 0, j)),
            ],
            out_specs=pl.BlockSpec((1, tq, D), lambda b, i, j: (b, i, 0)),
            scratch_shapes=[pltpu.VMEM((n_heads, tq, 1), jnp.float32),
                            pltpu.VMEM((n_heads, tq, 1), jnp.float32),
                            pltpu.VMEM((n_heads, tq, D // n_heads), jnp.float32)],
        ),
        compiler_params=pltpu.CompilerParams(
            dimension_semantics=("parallel", "parallel", "arbitrary")),
    )(q, k, v, pad_mask)
    if Tqp != Tq:
        out = out[:, :Tq]
    return out


# --------------------------- model glue (plain JAX) --------------------------

def encoder_layer(p, x_f32, x_bf16, src_pad, n_heads, B, S, D):
    qkv = linear(x_bf16, p["wqkv"], p["bqkv"]).reshape(B, S, 3 * D)   # fused QKV
    q, k, v = qkv[..., :D], qkv[..., D:2 * D], qkv[..., 2 * D:]        # lane slices
    a = attention(q, k, v, src_pad, n_heads=n_heads, causal=False)     # (B, S, D)
    x_f32, x_bf16 = linear_add_ln(a.reshape(B * S, D), p["wo"], p["bo"], x_f32,
                                  p["ln1_g"], p["ln1_b"])
    x_f32, x_bf16 = ffn_add_ln(x_bf16, x_f32, p["w1"], p["b1"], p["w2"], p["b2"],
                               p["ln2_g"], p["ln2_b"])
    return x_f32, x_bf16


def decoder_layer(p, x_f32, x_bf16, enc_bf16, tgt_pad, src_pad, n_heads, B, T, S, D):
    # masked self-attention
    qkv = linear(x_bf16, p["sa_wqkv"], p["sa_bqkv"]).reshape(B, T, 3 * D)
    q, k, v = qkv[..., :D], qkv[..., D:2 * D], qkv[..., 2 * D:]
    a = attention(q, k, v, tgt_pad, n_heads=n_heads, causal=True)
    x_f32, x_bf16 = linear_add_ln(a.reshape(B * T, D), p["sa_wo"], p["sa_bo"], x_f32,
                                  p["ln1_g"], p["ln1_b"])
    # cross-attention (fused K/V projection of encoder output)
    q = linear(x_bf16, p["ca_wq"], p["ca_bq"]).reshape(B, T, D)
    kv = linear(enc_bf16, p["ca_wkv"], p["ca_bkv"]).reshape(B, S, 2 * D)
    a2 = attention(q, kv[..., :D], kv[..., D:], src_pad, n_heads=n_heads, causal=False)
    x_f32, x_bf16 = linear_add_ln(a2.reshape(B * T, D), p["ca_wo"], p["ca_bo"], x_f32,
                                  p["ln2_g"], p["ln2_b"])
    # feed-forward
    x_f32, x_bf16 = ffn_add_ln(x_bf16, x_f32, p["w1"], p["b1"], p["w2"], p["b2"],
                               p["ln3_g"], p["ln3_b"])
    return x_f32, x_bf16


def sinusoidal_pe(max_len, d):
    pos = jnp.arange(max_len, dtype=jnp.float32)[:, None]
    i = jnp.arange(0, d, 2, dtype=jnp.float32)[None, :]
    angle = pos / jnp.power(10000.0, i / d)
    pe = jnp.zeros((max_len, d), jnp.float32)
    pe = pe.at[:, 0::2].set(jnp.sin(angle))
    pe = pe.at[:, 1::2].set(jnp.cos(angle))
    return pe


def transformer_forward(params, src, tgt, *, n_heads, embed_dim):
    B, S = src.shape
    _, T = tgt.shape
    D = embed_dim

    # pad-keep vectors over the key axis; causal part is built inside the kernel.
    src_pad = (src != 0).astype(jnp.int32)[:, None, :]   # (B, 1, S)
    tgt_pad = (tgt != 0).astype(jnp.int32)[:, None, :]   # (B, 1, T)

    # TODO(synk): dropout layers are identity (inference mode).
    # ---- encoder ----
    x = jnp.take(params["src_embed"], src, axis=0) * math.sqrt(D) + params["pe"][:S]
    x_f32 = x.reshape(B * S, D).astype(jnp.float32)
    x_bf16 = x_f32.astype(jnp.bfloat16)
    for lp in params["enc_layers"]:
        x_f32, x_bf16 = encoder_layer(lp, x_f32, x_bf16, src_pad, n_heads, B, S, D)
    enc_bf16 = x_bf16                                    # (B*S, D) bf16

    # ---- decoder ----
    y = jnp.take(params["tgt_embed"], tgt, axis=0) * math.sqrt(D) + params["pe"][:T]
    y_f32 = y.reshape(B * T, D).astype(jnp.float32)
    y_bf16 = y_f32.astype(jnp.bfloat16)
    for lp in params["dec_layers"]:
        y_f32, y_bf16 = decoder_layer(lp, y_f32, y_bf16, enc_bf16, tgt_pad, src_pad,
                                      n_heads, B, T, S, D)

    # TODO(synk): reference decoder head may apply a trailing softmax; returning logits.
    logits = linear(y_bf16, params["w_out"], params["b_out"], out_dtype=jnp.float32)
    return logits.reshape(B, T, -1)


# --------------------------- deterministic init ------------------------------

def _init_self_attn(key, d, n_heads):
    dh = d // n_heads
    q_scale = 1.0 / math.sqrt(dh)                        # folded into Q projection
    kq, ko = jax.random.split(key)
    wqkv = jax.random.normal(kq, (d, 3 * d), jnp.float32) * 0.02
    wqkv = wqkv.at[:, :d].multiply(q_scale)
    bqkv = jnp.zeros((3 * d,), jnp.float32).at[:d].multiply(q_scale)
    wo = (jax.random.normal(ko, (d, d), jnp.float32) * 0.02).astype(jnp.bfloat16)
    return {"wqkv": wqkv.astype(jnp.bfloat16), "bqkv": bqkv,
            "wo": wo, "bo": jnp.zeros((d,), jnp.float32)}


def _init_cross_attn(key, d, n_heads):
    dh = d // n_heads
    q_scale = 1.0 / math.sqrt(dh)
    kq, kkv, ko = jax.random.split(key, 3)
    wq = (jax.random.normal(kq, (d, d), jnp.float32) * 0.02 * q_scale)
    wkv = jax.random.normal(kkv, (d, 2 * d), jnp.float32) * 0.02
    wo = jax.random.normal(ko, (d, d), jnp.float32) * 0.02
    return {"wq": wq.astype(jnp.bfloat16), "bq": jnp.zeros((d,), jnp.float32) * q_scale,
            "wkv": wkv.astype(jnp.bfloat16), "bkv": jnp.zeros((2 * d,), jnp.float32),
            "wo": wo.astype(jnp.bfloat16), "bo": jnp.zeros((d,), jnp.float32)}


def _init_ffn(key, d, hidden):
    k1, k2 = jax.random.split(key)
    w1 = (jax.random.normal(k1, (d, hidden), jnp.float32) * 0.02).astype(jnp.bfloat16)
    w2 = (jax.random.normal(k2, (hidden, d), jnp.float32) * 0.02).astype(jnp.bfloat16)
    return {"w1": w1, "b1": jnp.zeros((hidden,), jnp.float32),
            "w2": w2, "b2": jnp.zeros((d,), jnp.float32)}


def _ln_pair(d):
    return jnp.ones((d,), jnp.float32), jnp.zeros((d,), jnp.float32)


def init_params(key, src_vocab, tgt_vocab, d, hidden, max_seq_len, num_layers, n_heads):
    keys = jax.random.split(key, 3 + 2 * num_layers)
    params = {
        "src_embed": jax.random.normal(keys[0], (src_vocab, d), jnp.float32) * 0.02,
        "tgt_embed": jax.random.normal(keys[1], (tgt_vocab, d), jnp.float32) * 0.02,
        "pe": sinusoidal_pe(max_seq_len, d),
        "enc_layers": [],
        "dec_layers": [],
    }
    for i in range(num_layers):
        ka, kf = jax.random.split(keys[2 + i])
        lp = _init_self_attn(ka, d, n_heads)
        lp.update(_init_ffn(kf, d, hidden))
        lp["ln1_g"], lp["ln1_b"] = _ln_pair(d)
        lp["ln2_g"], lp["ln2_b"] = _ln_pair(d)
        params["enc_layers"].append(lp)
    for i in range(num_layers):
        ks, kc, kf = jax.random.split(keys[2 + num_layers + i], 3)
        lp = {"sa_" + k: v for k, v in _init_self_attn(ks, d, n_heads).items()}
        lp.update({"ca_" + k: v for k, v in _init_cross_attn(kc, d, n_heads).items()})
        lp.update(_init_ffn(kf, d, hidden))
        lp["ln1_g"], lp["ln1_b"] = _ln_pair(d)
        lp["ln2_g"], lp["ln2_b"] = _ln_pair(d)
        lp["ln3_g"], lp["ln3_b"] = _ln_pair(d)
        params["dec_layers"].append(lp)
    params["w_out"] = (jax.random.normal(keys[2 + 2 * num_layers],
                                         (d, tgt_vocab), jnp.float32) * 0.02
                       ).astype(jnp.bfloat16)
    params["b_out"] = jnp.zeros((tgt_vocab,), jnp.float32)
    return params


# --------------------------- main --------------------------------------------

if __name__ == "__main__":
    # Small shapes consistent with the module's forward (scaled down from 512/2048/500).
    B = 2
    S_SRC = 16
    S_TGT = 12
    EMBED_DIM = 128
    HIDDEN_DIM = 256
    N_HEADS = 4
    NUM_LAYERS = 2
    MAX_SEQ_LEN = 32
    SRC_VOCAB = 50
    TGT_VOCAB = 48

    key = jax.random.PRNGKey(0)
    k_src, k_tgt, k_params = jax.random.split(key, 3)

    src = jax.random.randint(k_src, (B, S_SRC), 1, SRC_VOCAB, dtype=jnp.int32)
    tgt = jax.random.randint(k_tgt, (B, S_TGT), 1, TGT_VOCAB, dtype=jnp.int32)
    # introduce some padding (pad_idx = 0) so the masks are exercised
    src = src.at[:, -3:].set(0)
    tgt = tgt.at[:, -2:].set(0)

    params = init_params(k_params, SRC_VOCAB, TGT_VOCAB, EMBED_DIM, HIDDEN_DIM,
                         MAX_SEQ_LEN, NUM_LAYERS, N_HEADS)

    fwd = jax.jit(partial(transformer_forward, n_heads=N_HEADS, embed_dim=EMBED_DIM))
    out = fwd(params, src, tgt)
    out = jax.block_until_ready(out)

    assert out.shape == (B, S_TGT, TGT_VOCAB), out.shape
    assert jnp.all(jnp.isfinite(out))
    print("KERNEL_OK")
</pallas_src>

<mosaic_0001>
module attributes {stable_mosaic.version = 11 : i64} {
  func.func @_linear_kernel(%arg0: i32, %arg1: i32, %arg2: i32, %arg3: memref<32x128xbf16, #tpu.memory_space<vmem>>, %arg4: memref<128x384xbf16, #tpu.memory_space<vmem>>, %arg5: memref<1x384xf32, #tpu.memory_space<vmem>>, %arg6: memref<32x384xbf16, #tpu.memory_space<vmem>>, %arg7: memref<32x384xf32, #tpu.memory_space<vmem>>) attributes {dimension_semantics = [#tpu.dimension_semantics<parallel>, #tpu.dimension_semantics<parallel>, #tpu.dimension_semantics<arbitrary>], iteration_bounds = array<i64: 1, 1, 1>, scalar_prefetch = 0 : i64, scratch_operands = 1 : i64, tpu.core_type = #tpu.core_type<tc>, window_params = [{transform_indices = @transform_0, window_bounds = array<i64: 32, 128>}, {transform_indices = @transform_1, window_bounds = array<i64: 128, 384>}, {transform_indices = @transform_2, window_bounds = array<i64: 1, 384>}, {transform_indices = @transform_3, window_bounds = array<i64: 32, 384>}]} {
    %c0_i32 = arith.constant 0 : i32
    %0 = arith.cmpi eq, %arg2, %c0_i32 : i32
    %1 = arith.extui %0 : i1 to i32
    %c0_i32_0 = arith.constant 0 : i32
    %2 = arith.cmpi ne, %1, %c0_i32_0 : i32
    scf.if %2 {
      %cst_10 = arith.constant 0.000000e+00 : f32
      %12 = vector.broadcast %cst_10 : f32 to vector<32x384xf32>
      %c0_11 = arith.constant 0 : index
      %c0_12 = arith.constant 0 : index
      %13 = vector.load %arg7[%c0_11, %c0_12] : memref<32x384xf32, #tpu.memory_space<vmem>>, vector<32x384xf32>
      tpu.vector_store %arg7[%c0_11, %c0_12], %12 {strides = array<i32>} : memref<32x384xf32, #tpu.memory_space<vmem>>, vector<32x384xf32>,
    } else {
    }
    %c0 = arith.constant 0 : index
    %c0_1 = arith.constant 0 : index
    %3 = vector.load %arg7[%c0, %c0_1] : memref<32x384xf32, #tpu.memory_space<vmem>>, vector<32x384xf32>
    %c0_2 = arith.constant 0 : index
    %c0_3 = arith.constant 0 : index
    %4 = vector.load %arg3[%c0_2, %c0_3] : memref<32x128xbf16, #tpu.memory_space<vmem>>, vector<32x128xbf16>
    %c0_4 = arith.constant 0 : index
    %c0_5 = arith.constant 0 : index
    %5 = vector.load %arg4[%c0_4, %c0_5] : memref<128x384xbf16, #tpu.memory_space<vmem>>, vector<128x384xbf16>
    %cst = arith.constant dense<0.000000e+00> : vector<32x384xf32>
    %6 = tpu.matmul %4, %5, %cst {dimension_numbers = #tpu.dot_dimension_numbers<[1], [0], [0], [1], [0, 0, 1, 1], [], []>} : vector<32x128xbf16>, vector<128x384xbf16>, vector<32x384xf32> -> vector<32x384xf32>
    %7 = arith.addf %3, %6 : vector<32x384xf32>
    %c0_6 = arith.constant 0 : index
    %c0_7 = arith.constant 0 : index
    %8 = vector.load %arg7[%c0_6, %c0_7] : memref<32x384xf32, #tpu.memory_space<vmem>>, vector<32x384xf32>
    tpu.vector_store %arg7[%c0_6, %c0_7], %7 {strides = array<i32>} : memref<32x384xf32, #tpu.memory_space<vmem>>, vector<32x384xf32>,
    %c0_i32_8 = arith.constant 0 : i32
    %9 = arith.cmpi eq, %arg2, %c0_i32_8 : i32
    %10 = arith.extui %9 : i1 to i32
    %c0_i32_9 = arith.constant 0 : i32
    %11 = arith.cmpi ne, %10, %c0_i32_9 : i32
    scf.if %11 {
      %c0_10 = arith.constant 0 : index
      %c0_11 = arith.constant 0 : index
      %12 = vector.load %arg7[%c0_10, %c0_11] : memref<32x384xf32, #tpu.memory_space<vmem>>, vector<32x384xf32>
      %c0_12 = arith.constant 0 : index
      %c0_13 = arith.constant 0 : index
      %13 = vector.load %arg5[%c0_12, %c0_13] : memref<1x384xf32, #tpu.memory_space<vmem>>, vector<1x384xf32>
      %14 = vector.broadcast %13 : vector<1x384xf32> to vector<32x384xf32>
      %15 = arith.addf %12, %14 : vector<32x384xf32>
      %16 = arith.truncf %15 : vector<32x384xf32> to vector<32x384xbf16>
      %c0_14 = arith.constant 0 : index
      %c0_15 = arith.constant 0 : index
      %17 = vector.load %arg6[%c0_14, %c0_15] : memref<32x384xbf16, #tpu.memory_space<vmem>>, vector<32x384xbf16>
      tpu.vector_store %arg6[%c0_14, %c0_15], %16 {strides = array<i32>} : memref<32x384xbf16, #tpu.memory_space<vmem>>, vector<32x384xbf16>,
    } else {
    }
    return
  }
  func.func @transform_0(%arg0: i32, %arg1: i32, %arg2: i32) -> (i32, i32) {
    %c0_i32 = arith.constant 0 : i32
    return %arg0, %arg2 : i32, i32
  }
  func.func @transform_1(%arg0: i32, %arg1: i32, %arg2: i32) -> (i32, i32) {
    %c0_i32 = arith.constant 0 : i32
    return %arg2, %arg1 : i32, i32
  }
  func.func @transform_2(%arg0: i32, %arg1: i32, %arg2: i32) -> (i32, i32) {
    %c0_i32 = arith.constant 0 : i32
    %c0_i32_0 = arith.constant 0 : i32
    return %c0_i32, %arg1 : i32, i32
  }
  func.func @transform_3(%arg0: i32, %arg1: i32, %arg2: i32) -> (i32, i32) {
    %c0_i32 = arith.constant 0 : i32
    return %arg0, %arg1 : i32, i32
  }
}

module attributes {stable_mosaic.version = 11 : i64} {
  func.func @_ffn_add_ln_kernel(%arg0: i32, %arg1: i32, %arg2: memref<32x128xbf16, #tpu.memory_space<vmem>>, %arg3: memref<128x256xbf16, #tpu.memory_space<vmem>>, %arg4: memref<1x256xf32, #tpu.memory_space<vmem>>, %arg5: memref<256x128xbf16, #tpu.memory_space<vmem>>, %arg6: memref<1x128xf32, #tpu.memory_space<vmem>>, %arg7: memref<32x128xf32, #tpu.memory_space<vmem>>, %arg8: memref<1x128xf32, #tpu.memory_space<vmem>>, %arg9: memref<1x128xf32, #tpu.memory_space<vmem>>, %arg10: memref<32x128xf32, #tpu.memory_space<vmem>>, %arg11: memref<32x128xbf16, #tpu.memory_space<vmem>>, %arg12: memref<32x128xf32, #tpu.memory_space<vmem>>) attributes {dimension_semantics = [#tpu.dimension_semantics<parallel>, #tpu.dimension_semantics<arbitrary>], iteration_bounds = array<i64: 1, 1>, scalar_prefetch = 0 : i64, scratch_operands = 1 : i64, tpu.core_type = #tpu.core_type<tc>, window_params = [{transform_indices = @transform_0, window_bounds = array<i64: 32, 128>}, {transform_indices = @transform_1, window_bounds = array<i64: 128, 256>}, {transform_indices = @transform_2, window_bounds = array<i64: 1, 256>}, {transform_indices = @transform_3, window_bounds = array<i64: 256, 128>}, {pipeline_mode = #tpu.pipeline_mode<synchronous>, transform_indices = @transform_4, window_bounds = array<i64: 1, 128>}, {transform_indices = @transform_5, window_bounds = array<i64: 32, 128>}, {pipeline_mode = #tpu.pipeline_mode<synchronous>, transform_indices = @transform_6, window_bounds = array<i64: 1, 128>}, {pipeline_mode = #tpu.pipeline_mode<synchronous>, transform_indices = @transform_7, window_bounds = array<i64: 1, 128>}, {transform_indices = @transform_8, window_bounds = array<i64: 32, 128>}, {transform_indices = @transform_9, window_bounds = array<i64: 32, 128>}]} {
    %c0_i32 = arith.constant 0 : i32
    %0 = arith.cmpi eq, %arg1, %c0_i32 : i32
    %1 = arith.extui %0 : i1 to i32
    %c0_i32_0 = arith.constant 0 : i32
    %2 = arith.cmpi ne, %1, %c0_i32_0 : i32
    scf.if %2 {
      %cst_16 = arith.constant 0.000000e+00 : f32
      %20 = vector.broadcast %cst_16 : f32 to vector<32x128xf32>
      %c0_17 = arith.constant 0 : index
      %c0_18 = arith.constant 0 : index
      %21 = vector.load %arg12[%c0_17, %c0_18] : memref<32x128xf32, #tpu.memory_space<vmem>>, vector<32x128xf32>
      tpu.vector_store %arg12[%c0_17, %c0_18], %20 {strides = array<i32>} : memref<32x128xf32, #tpu.memory_space<vmem>>, vector<32x128xf32>,
    } else {
    }
    %c0 = arith.constant 0 : index
    %c0_1 = arith.constant 0 : index
    %3 = vector.load %arg2[%c0, %c0_1] : memref<32x128xbf16, #tpu.memory_space<vmem>>, vector<32x128xbf16>
    %c0_2 = arith.constant 0 : index
    %c0_3 = arith.constant 0 : index
    %4 = vector.load %arg3[%c0_2, %c0_3] : memref<128x256xbf16, #tpu.memory_space<vmem>>, vector<128x256xbf16>
    %cst = arith.constant dense<0.000000e+00> : vector<32x256xf32>
    %5 = tpu.matmul %3, %4, %cst {dimension_numbers = #tpu.dot_dimension_numbers<[1], [0], [0], [1], [0, 0, 1, 1], [], []>} : vector<32x128xbf16>, vector<128x256xbf16>, vector<32x256xf32> -> vector<32x256xf32>
    %c0_4 = arith.constant 0 : index
    %c0_5 = arith.constant 0 : index
    %6 = vector.load %arg4[%c0_4, %c0_5] : memref<1x256xf32, #tpu.memory_space<vmem>>, vector<1x256xf32>
    %7 = vector.broadcast %6 : vector<1x256xf32> to vector<32x256xf32>
    %8 = arith.addf %5, %7 : vector<32x256xf32>
    %cst_6 = arith.constant 0.000000e+00 : f32
    %9 = vector.broadcast %cst_6 : f32 to vector<32x256xf32>
    %10 = arith.maximumf %8, %9 : vector<32x256xf32>
    %c0_7 = arith.constant 0 : index
    %c0_8 = arith.constant 0 : index
    %11 = vector.load %arg12[%c0_7, %c0_8] : memref<32x128xf32, #tpu.memory_space<vmem>>, vector<32x128xf32>
    %12 = arith.truncf %10 : vector<32x256xf32> to vector<32x256xbf16>
    %c0_9 = arith.constant 0 : index
    %c0_10 = arith.constant 0 : index
    %13 = vector.load %arg5[%c0_9, %c0_10] : memref<256x128xbf16, #tpu.memory_space<vmem>>, vector<256x128xbf16>
    %cst_11 = arith.constant dense<0.000000e+00> : vector<32x128xf32>
    %14 = tpu.matmul %12, %13, %cst_11 {dimension_numbers = #tpu.dot_dimension_numbers<[1], [0], [0], [1], [0, 0, 1, 1], [], []>} : vector<32x256xbf16>, vector<256x128xbf16>, vector<32x128xf32> -> vector<32x128xf32>
    %15 = arith.addf %11, %14 : vector<32x128xf32>
    %c0_12 = arith.constant 0 : index
    %c0_13 = arith.constant 0 : index
    %16 = vector.load %arg12[%c0_12, %c0_13] : memref<32x128xf32, #tpu.memory_space<vmem>>, vector<32x128xf32>
    tpu.vector_store %arg12[%c0_12, %c0_13], %15 {strides = array<i32>} : memref<32x128xf32, #tpu.memory_space<vmem>>, vector<32x128xf32>,
    %c0_i32_14 = arith.constant 0 : i32
    %17 = arith.cmpi eq, %arg1, %c0_i32_14 : i32
    %18 = arith.extui %17 : i1 to i32
    %c0_i32_15 = arith.constant 0 : i32
    %19 = arith.cmpi ne, %18, %c0_i32_15 : i32
    scf.if %19 {
      %c0_16 = arith.constant 0 : index
      %c0_17 = arith.constant 0 : index
      %20 = vector.load %arg12[%c0_16, %c0_17] : memref<32x128xf32, #tpu.memory_space<vmem>>, vector<32x128xf32>
      %c0_18 = arith.constant 0 : index
      %c0_19 = arith.constant 0 : index
      %21 = vector.load %arg6[%c0_18, %c0_19] : memref<1x128xf32, #tpu.memory_space<vmem>>, vector<1x128xf32>
      %22 = vector.broadcast %21 : vector<1x128xf32> to vector<32x128xf32>
      %23 = arith.addf %20, %22 : vector<32x128xf32>
      %c0_20 = arith.constant 0 : index
      %c0_21 = arith.constant 0 : index
      %24 = vector.load %arg7[%c0_20, %c0_21] : memref<32x128xf32, #tpu.memory_space<vmem>>, vector<32x128xf32>
      %25 = arith.addf %23, %24 : vector<32x128xf32>
      %cst_22 = arith.constant dense<0.000000e+00> : vector<32xf32>
      %26 = vector.multi_reduction <add>, %25, %cst_22 [1] : vector<32x128xf32> to vector<32xf32>
      %27 = vector.shape_cast %26 : vector<32xf32> to vector<32x1xf32>
      %cst_23 = arith.constant 1.280000e+02 : f32
      %28 = vector.broadcast %cst_23 : f32 to vector<32x1xf32>
      %29 = arith.divf %27, %28 : vector<32x1xf32>
      %30 = vector.broadcast %29 : vector<32x1xf32> to vector<32x128xf32>
      %31 = arith.subf %25, %30 : vector<32x128xf32>
      %32 = arith.mulf %31, %31 : vector<32x128xf32>
      %cst_24 = arith.constant dense<0.000000e+00> : vector<32xf32>
      %33 = vector.multi_reduction <add>, %32, %cst_24 [1] : vector<32x128xf32> to vector<32xf32>
      %34 = vector.shape_cast %33 : vector<32xf32> to vector<32x1xf32>
      %cst_25 = arith.constant 1.280000e+02 : f32
      %35 = vector.broadcast %cst_25 : f32 to vector<32x1xf32>
      %36 = arith.divf %34, %35 : vector<32x1xf32>
      %37 = vector.broadcast %29 : vector<32x1xf32> to vector<32x128xf32>
      %38 = arith.subf %25, %37 : vector<32x128xf32>
      %cst_26 = arith.constant 9.99999974E-6 : f32
      %39 = vector.broadcast %cst_26 : f32 to vector<32x1xf32>
      %40 = arith.addf %36, %39 : vector<32x1xf32>
      %41 = math.rsqrt %40 : vector<32x1xf32>
      %42 = vector.broadcast %41 : vector<32x1xf32> to vector<32x128xf32>
      %43 = arith.mulf %38, %42 : vector<32x128xf32>
      %c0_27 = arith.constant 0 : index
      %c0_28 = arith.constant 0 : index
      %44 = vector.load %arg8[%c0_27, %c0_28] : memref<1x128xf32, #tpu.memory_space<vmem>>, vector<1x128xf32>
      %45 = vector.broadcast %44 : vector<1x128xf32> to vector<32x128xf32>
      %46 = arith.mulf %43, %45 : vector<32x128xf32>
      %c0_29 = arith.constant 0 : index
      %c0_30 = arith.constant 0 : index
      %47 = vector.load %arg9[%c0_29, %c0_30] : memref<1x128xf32, #tpu.memory_space<vmem>>, vector<1x128xf32>
      %48 = vector.broadcast %47 : vector<1x128xf32> to vector<32x128xf32>
      %49 = arith.addf %46, %48 : vector<32x128xf32>
      %c0_31 = arith.constant 0 : index
      %c0_32 = arith.constant 0 : index
      %50 = vector.load %arg10[%c0_31, %c0_32] : memref<32x128xf32, #tpu.memory_space<vmem>>, vector<32x128xf32>
      tpu.vector_store %arg10[%c0_31, %c0_32], %49 {strides = array<i32>} : memref<32x128xf32, #tpu.memory_space<vmem>>, vector<32x128xf32>,
      %51 = arith.truncf %49 : vector<32x128xf32> to vector<32x128xbf16>
      %c0_33 = arith.constant 0 : index
      %c0_34 = arith.constant 0 : index
      %52 = vector.load %arg11[%c0_33, %c0_34] : memref<32x128xbf16, #tpu.memory_space<vmem>>, vector<32x128xbf16>
      tpu.vector_store %arg11[%c0_33, %c0_34], %51 {strides = array<i32>} : memref<32x128xbf16, #tpu.memory_space<vmem>>, vector<32x128xbf16>,
    } else {
    }
    return
  }
  func.func @transform_0(%arg0: i32, %arg1: i32) -> (i32, i32) {
    %c0_i32 = arith.constant 0 : i32
    %c0_i32_0 = arith.constant 0 : i32
    return %arg0, %c0_i32 : i32, i32
  }
  func.func @transform_1(%arg0: i32, %arg1: i32) -> (i32, i32) {
    %c0_i32 = arith.constant 0 : i32
    %c0_i32_0 = arith.constant 0 : i32
    return %c0_i32, %arg1 : i32, i32
  }
  func.func @transform_2(%arg0: i32, %arg1: i32) -> (i32, i32) {
    %c0_i32 = arith.constant 0 : i32
    %c0_i32_0 = arith.constant 0 : i32
    return %c0_i32, %arg1 : i32, i32
  }
  func.func @transform_3(%arg0: i32, %arg1: i32) -> (i32, i32) {
    %c0_i32 = arith.constant 0 : i32
    %c0_i32_0 = arith.constant 0 : i32
    return %arg1, %c0_i32 : i32, i32
  }
  func.func @transform_4(%arg0: i32, %arg1: i32) -> (i32, i32) {
    %c0_i32 = arith.constant 0 : i32
    %c0_i32_0 = arith.constant 0 : i32
    %c0_i32_1 = arith.constant 0 : i32
    return %c0_i32, %c0_i32_0 : i32, i32
  }
  func.func @transform_5(%arg0: i32, %arg1: i32) -> (i32, i32) {
    %c0_i32 = arith.constant 0 : i32
    %c0_i32_0 = arith.constant 0 : i32
    return %arg0, %c0_i32 : i32, i32
  }
  func.func @transform_6(%arg0: i32, %arg1: i32) -> (i32, i32) {
    %c0_i32 = arith.constant 0 : i32
    %c0_i32_0 = arith.constant 0 : i32
    %c0_i32_1 = arith.constant 0 : i32
    return %c0_i32, %c0_i32_0 : i32, i32
  }
  func.func @transform_7(%arg0: i32, %arg1: i32) -> (i32, i32) {
    %c0_i32 = arith.constant 0 : i32
    %c0_i32_0 = arith.constant 0 : i32
    %c0_i32_1 = arith.constant 0 : i32
    return %c0_i32, %c0_i32_0 : i32, i32
  }
  func.func @transform_8(%arg0: i32, %arg1: i32) -> (i32, i32) {
    %c0_i32 = arith.constant 0 : i32
    %c0_i32_0 = arith.constant 0 : i32
    return %arg0, %c0_i32 : i32, i32
  }
  func.func @transform_9(%arg0: i32, %arg1: i32) -> (i32, i32) {
    %c0_i32 = arith.constant 0 : i32
    %c0_i32_0 = arith.constant 0 : i32
    return %arg0, %c0_i32 : i32, i32
  }
}

module attributes {stable_mosaic.version = 11 : i64} {
  func.func @_linear_add_ln_kernel(%arg0: i32, %arg1: i32, %arg2: memref<32x128xbf16, #tpu.memory_space<vmem>>, %arg3: memref<128x128xbf16, #tpu.memory_space<vmem>>, %arg4: memref<1x128xf32, #tpu.memory_space<vmem>>, %arg5: memref<32x128xf32, #tpu.memory_space<vmem>>, %arg6: memref<1x128xf32, #tpu.memory_space<vmem>>, %arg7: memref<1x128xf32, #tpu.memory_space<vmem>>, %arg8: memref<32x128xf32, #tpu.memory_space<vmem>>, %arg9: memref<32x128xbf16, #tpu.memory_space<vmem>>, %arg10: memref<32x128xf32, #tpu.memory_space<vmem>>) attributes {dimension_semantics = [#tpu.dimension_semantics<parallel>, #tpu.dimension_semantics<arbitrary>], iteration_bounds = array<i64: 1, 1>, scalar_prefetch = 0 : i64, scratch_operands = 1 : i64, tpu.core_type = #tpu.core_type<tc>, window_params = [{transform_indices = @transform_0, window_bounds = array<i64: 32, 128>}, {transform_indices = @transform_1, window_bounds = array<i64: 128, 128>}, {pipeline_mode = #tpu.pipeline_mode<synchronous>, transform_indices = @transform_2, window_bounds = array<i64: 1, 128>}, {transform_indices = @transform_3, window_bounds = array<i64: 32, 128>}, {pipeline_mode = #tpu.pipeline_mode<synchronous>, transform_indices = @transform_4, window_bounds = array<i64: 1, 128>}, {pipeline_mode = #tpu.pipeline_mode<synchronous>, transform_indices = @transform_5, window_bounds = array<i64: 1, 128>}, {transform_indices = @transform_6, window_bounds = array<i64: 32, 128>}, {transform_indices = @transform_7, window_bounds = array<i64: 32, 128>}]} {
    %c0_i32 = arith.constant 0 : i32
    %0 = arith.cmpi eq, %arg1, %c0_i32 : i32
    %1 = arith.extui %0 : i1 to i32
    %c0_i32_0 = arith.constant 0 : i32
    %2 = arith.cmpi ne, %1, %c0_i32_0 : i32
    scf.if %2 {
      %cst_10 = arith.constant 0.000000e+00 : f32
      %12 = vector.broadcast %cst_10 : f32 to vector<32x128xf32>
      %c0_11 = arith.constant 0 : index
      %c0_12 = arith.constant 0 : index
      %13 = vector.load %arg10[%c0_11, %c0_12] : memref<32x128xf32, #tpu.memory_space<vmem>>, vector<32x128xf32>
      tpu.vector_store %arg10[%c0_11, %c0_12], %12 {strides = array<i32>} : memref<32x128xf32, #tpu.memory_space<vmem>>, vector<32x128xf32>,
    } else {
    }
    %c0 = arith.constant 0 : index
    %c0_1 = arith.constant 0 : index
    %3 = vector.load %arg10[%c0, %c0_1] : memref<32x128xf32, #tpu.memory_space<vmem>>, vector<32x128xf32>
    %c0_2 = arith.constant 0 : index
    %c0_3 = arith.constant 0 : index
    %4 = vector.load %arg2[%c0_2, %c0_3] : memref<32x128xbf16, #tpu.memory_space<vmem>>, vector<32x128xbf16>
    %c0_4 = arith.constant 0 : index
    %c0_5 = arith.constant 0 : index
    %5 = vector.load %arg3[%c0_4, %c0_5] : memref<128x128xbf16, #tpu.memory_space<vmem>>, vector<128x128xbf16>
    %cst = arith.constant dense<0.000000e+00> : vector<32x128xf32>
    %6 = tpu.matmul %4, %5, %cst {dimension_numbers = #tpu.dot_dimension_numbers<[1], [0], [0], [1], [0, 0, 1, 1], [], []>} : vector<32x128xbf16>, vector<128x128xbf16>, vector<32x128xf32> -> vector<32x128xf32>
    %7 = arith.addf %3, %6 : vector<32x128xf32>
    %c0_6 = arith.constant 0 : index
    %c0_7 = arith.constant 0 : index
    %8 = vector.load %arg10[%c0_6, %c0_7] : memref<32x128xf32, #tpu.memory_space<vmem>>, vector<32x128xf32>
    tpu.vector_store %arg10[%c0_6, %c0_7], %7 {strides = array<i32>} : memref<32x128xf32, #tpu.memory_space<vmem>>, vector<32x128xf32>,
    %c0_i32_8 = arith.constant 0 : i32
    %9 = arith.cmpi eq, %arg1, %c0_i32_8 : i32
    %10 = arith.extui %9 : i1 to i32
    %c0_i32_9 = arith.constant 0 : i32
    %11 = arith.cmpi ne, %10, %c0_i32_9 : i32
    scf.if %11 {
      %c0_10 = arith.constant 0 : index
      %c0_11 = arith.constant 0 : index
      %12 = vector.load %arg10[%c0_10, %c0_11] : memref<32x128xf32, #tpu.memory_space<vmem>>, vector<32x128xf32>
      %c0_12 = arith.constant 0 : index
      %c0_13 = arith.constant 0 : index
      %13 = vector.load %arg4[%c0_12, %c0_13] : memref<1x128xf32, #tpu.memory_space<vmem>>, vector<1x128xf32>
      %14 = vector.broadcast %13 : vector<1x128xf32> to vector<32x128xf32>
      %15 = arith.addf %12, %14 : vector<32x128xf32>
      %c0_14 = arith.constant 0 : index
      %c0_15 = arith.constant 0 : index
      %16 = vector.load %arg5[%c0_14, %c0_15] : memref<32x128xf32, #tpu.memory_space<vmem>>, vector<32x128xf32>
      %17 = arith.addf %15, %16 : vector<32x128xf32>
      %cst_16 = arith.constant dense<0.000000e+00> : vector<32xf32>
      %18 = vector.multi_reduction <add>, %17, %cst_16 [1] : vector<32x128xf32> to vector<32xf32>
      %19 = vector.shape_cast %18 : vector<32xf32> to vector<32x1xf32>
      %cst_17 = arith.constant 1.280000e+02 : f32
      %20 = vector.broadcast %cst_17 : f32 to vector<32x1xf32>
      %21 = arith.divf %19, %20 : vector<32x1xf32>
      %22 = vector.broadcast %21 : vector<32x1xf32> to vector<32x128xf32>
      %23 = arith.subf %17, %22 : vector<32x128xf32>
      %24 = arith.mulf %23, %23 : vector<32x128xf32>
      %cst_18 = arith.constant dense<0.000000e+00> : vector<32xf32>
      %25 = vector.multi_reduction <add>, %24, %cst_18 [1] : vector<32x128xf32> to vector<32xf32>
      %26 = vector.shape_cast %25 : vector<32xf32> to vector<32x1xf32>
      %cst_19 = arith.constant 1.280000e+02 : f32
      %27 = vector.broadcast %cst_19 : f32 to vector<32x1xf32>
      %28 = arith.divf %26, %27 : vector<32x1xf32>
      %29 = vector.broadcast %21 : vector<32x1xf32> to vector<32x128xf32>
      %30 = arith.subf %17, %29 : vector<32x128xf32>
      %cst_20 = arith.constant 9.99999974E-6 : f32
      %31 = vector.broadcast %cst_20 : f32 to vector<32x1xf32>
      %32 = arith.addf %28, %31 : vector<32x1xf32>
      %33 = math.rsqrt %32 : vector<32x1xf32>
      %34 = vector.broadcast %33 : vector<32x1xf32> to vector<32x128xf32>
      %35 = arith.mulf %30, %34 : vector<32x128xf32>
      %c0_21 = arith.constant 0 : index
      %c0_22 = arith.constant 0 : index
      %36 = vector.load %arg6[%c0_21, %c0_22] : memref<1x128xf32, #tpu.memory_space<vmem>>, vector<1x128xf32>
      %37 = vector.broadcast %36 : vector<1x128xf32> to vector<32x128xf32>
      %38 = arith.mulf %35, %37 : vector<32x128xf32>
      %c0_23 = arith.constant 0 : index
      %c0_24 = arith.constant 0 : index
      %39 = vector.load %arg7[%c0_23, %c0_24] : memref<1x128xf32, #tpu.memory_space<vmem>>, vector<1x128xf32>
      %40 = vector.broadcast %39 : vector<1x128xf32> to vector<32x128xf32>
      %41 = arith.addf %38, %40 : vector<32x128xf32>
      %c0_25 = arith.constant 0 : index
      %c0_26 = arith.constant 0 : index
      %42 = vector.load %arg8[%c0_25, %c0_26] : memref<32x128xf32, #tpu.memory_space<vmem>>, vector<32x128xf32>
      tpu.vector_store %arg8[%c0_25, %c0_26], %41 {strides = array<i32>} : memref<32x128xf32, #tpu.memory_space<vmem>>, vector<32x128xf32>,
      %43 = arith.truncf %41 : vector<32x128xf32> to vector<32x128xbf16>
      %c0_27 = arith.constant 0 : index
      %c0_28 = arith.constant 0 : index
      %44 = vector.load %arg9[%c0_27, %c0_28] : memref<32x128xbf16, #tpu.memory_space<vmem>>, vector<32x128xbf16>
      tpu.vector_store %arg9[%c0_27, %c0_28], %43 {strides = array<i32>} : memref<32x128xbf16, #tpu.memory_space<vmem>>, vector<32x128xbf16>,
    } else {
    }
    return
  }
  func.func @transform_0(%arg0: i32, %arg1: i32) -> (i32, i32) {
    %c0_i32 = arith.constant 0 : i32
    return %arg0, %arg1 : i32, i32
  }
  func.func @transform_1(%arg0: i32, %arg1: i32) -> (i32, i32) {
    %c0_i32 = arith.constant 0 : i32
    %c0_i32_0 = arith.constant 0 : i32
    return %arg1, %c0_i32 : i32, i32
  }
  func.func @transform_2(%arg0: i32, %arg1: i32) -> (i32, i32) {
    %c0_i32 = arith.constant 0 : i32
    %c0_i32_0 = arith.constant 0 : i32
    %c0_i32_1 = arith.constant 0 : i32
    return %c0_i32, %c0_i32_0 : i32, i32
  }
  func.func @transform_3(%arg0: i32, %arg1: i32) -> (i32, i32) {
    %c0_i32 = arith.constant 0 : i32
    %c0_i32_0 = arith.constant 0 : i32
    return %arg0, %c0_i32 : i32, i32
  }
  func.func @transform_4(%arg0: i32, %arg1: i32) -> (i32, i32) {
    %c0_i32 = arith.constant 0 : i32
    %c0_i32_0 = arith.constant 0 : i32
    %c0_i32_1 = arith.constant 0 : i32
    return %c0_i32, %c0_i32_0 : i32, i32
  }
  func.func @transform_5(%arg0: i32, %arg1: i32) -> (i32, i32) {
    %c0_i32 = arith.constant 0 : i32
    %c0_i32_0 = arith.constant 0 : i32
    %c0_i32_1 = arith.constant 0 : i32
    return %c0_i32, %c0_i32_0 : i32, i32
  }
  func.func @transform_6(%arg0: i32, %arg1: i32) -> (i32, i32) {
    %c0_i32 = arith.constant 0 : i32
    %c0_i32_0 = arith.constant 0 : i32
    return %arg0, %c0_i32 : i32, i32
  }
  func.func @transform_7(%arg0: i32, %arg1: i32) -> (i32, i32) {
    %c0_i32 = arith.constant 0 : i32
    %c0_i32_0 = arith.constant 0 : i32
    return %arg0, %c0_i32 : i32, i32
  }
}

module attributes {stable_mosaic.version = 11 : i64} {
  func.func @_flash_mha_kernel(%arg0: i32, %arg1: i32, %arg2: i32, %arg3: memref<1x16x128xbf16, #tpu.memory_space<vmem>>, %arg4: memref<1x16x128xbf16, #tpu.memory_space<vmem>>, %arg5: memref<1x16x128xbf16, #tpu.memory_space<vmem>>, %arg6: memref<1x1x16xi32, #tpu.memory_space<vmem>>, %arg7: memref<1x16x128xbf16, #tpu.memory_space<vmem>>, %arg8: memref<4x16x1xf32, #tpu.memory_space<vmem>>, %arg9: memref<4x16x1xf32, #tpu.memory_space<vmem>>, %arg10: memref<4x16x32xf32, #tpu.memory_space<vmem>>) attributes {dimension_semantics = [#tpu.dimension_semantics<parallel>, #tpu.dimension_semantics<parallel>, #tpu.dimension_semantics<arbitrary>], iteration_bounds = array<i64: 2, 1, 1>, scalar_prefetch = 0 : i64, scratch_operands = 3 : i64, tpu.core_type = #tpu.core_type<tc>, window_params = [{transform_indices = @transform_0, window_bounds = array<i64: 1, 16, 128>}, {transform_indices = @transform_1, window_bounds = array<i64: 1, 16, 128>}, {transform_indices = @transform_2, window_bounds = array<i64: 1, 16, 128>}, {transform_indices = @transform_3, window_bounds = array<i64: 1, 1, 16>}, {transform_indices = @transform_4, window_bounds = array<i64: 1, 16, 128>}]} {
    %c0_i32 = arith.constant 0 : i32
    %0 = arith.cmpi eq, %arg2, %c0_i32 : i32
    %1 = arith.extui %0 : i1 to i32
    %c0_i32_0 = arith.constant 0 : i32
    %2 = arith.cmpi ne, %1, %c0_i32_0 : i32
    scf.if %2 {
      %cst_103 = arith.constant 0xFF800000 : f32
      %176 = vector.broadcast %cst_103 : f32 to vector<4x16x1xf32>
      %c0_104 = arith.constant 0 : index
      %c0_105 = arith.constant 0 : index
      %c0_106 = arith.constant 0 : index
      %177 = vector.load %arg8[%c0_104, %c0_105, %c0_106] : memref<4x16x1xf32, #tpu.memory_space<vmem>>, vector<4x16x1xf32>
      tpu.vector_store %arg8[%c0_104, %c0_105, %c0_106], %176 {strides = array<i32>} : memref<4x16x1xf32, #tpu.memory_space<vmem>>, vector<4x16x1xf32>,
      %cst_107 = arith.constant 0.000000e+00 : f32
      %178 = vector.broadcast %cst_107 : f32 to vector<4x16x1xf32>
      %c0_108 = arith.constant 0 : index
      %c0_109 = arith.constant 0 : index
      %c0_110 = arith.constant 0 : index
      %179 = vector.load %arg9[%c0_108, %c0_109, %c0_110] : memref<4x16x1xf32, #tpu.memory_space<vmem>>, vector<4x16x1xf32>
      tpu.vector_store %arg9[%c0_108, %c0_109, %c0_110], %178 {strides = array<i32>} : memref<4x16x1xf32, #tpu.memory_space<vmem>>, vector<4x16x1xf32>,
      %cst_111 = arith.constant 0.000000e+00 : f32
      %180 = vector.broadcast %cst_111 : f32 to vector<4x16x32xf32>
      %c0_112 = arith.constant 0 : index
      %c0_113 = arith.constant 0 : index
      %c0_114 = arith.constant 0 : index
      %181 = vector.load %arg10[%c0_112, %c0_113, %c0_114] : memref<4x16x32xf32, #tpu.memory_space<vmem>>, vector<4x16x32xf32>
      tpu.vector_store %arg10[%c0_112, %c0_113, %c0_114], %180 {strides = array<i32>} : memref<4x16x32xf32, #tpu.memory_space<vmem>>, vector<4x16x32xf32>,
    } else {
    }
    %c0 = arith.constant 0 : index
    %c0_1 = arith.constant 0 : index
    %c0_2 = arith.constant 0 : index
    %3 = vector.load %arg3[%c0, %c0_1, %c0_2] : memref<1x16x128xbf16, #tpu.memory_space<vmem>>, vector<1x16x128xbf16>
    %4 = vector.shape_cast %3 : vector<1x16x128xbf16> to vector<16x128xbf16>
    %c0_3 = arith.constant 0 : index
    %c0_4 = arith.constant 0 : index
    %c0_5 = arith.constant 0 : index
    %5 = vector.load %arg4[%c0_3, %c0_4, %c0_5] : memref<1x16x128xbf16, #tpu.memory_space<vmem>>, vector<1x16x128xbf16>
    %6 = vector.shape_cast %5 : vector<1x16x128xbf16> to vector<16x128xbf16>
    %c0_6 = arith.constant 0 : index
    %c0_7 = arith.constant 0 : index
    %c0_8 = arith.constant 0 : index
    %7 = vector.load %arg5[%c0_6, %c0_7, %c0_8] : memref<1x16x128xbf16, #tpu.memory_space<vmem>>, vector<1x16x128xbf16>
    %8 = vector.shape_cast %7 : vector<1x16x128xbf16> to vector<16x128xbf16>
    %c0_9 = arith.constant 0 : index
    %c0_10 = arith.constant 0 : index
    %c0_11 = arith.constant 0 : index
    %9 = vector.load %arg6[%c0_9, %c0_10, %c0_11] : memref<1x1x16xi32, #tpu.memory_space<vmem>>, vector<1x1x16xi32>
    %10 = vector.shape_cast %9 : vector<1x1x16xi32> to vector<1x16xi32>
    %c0_i32_12 = arith.constant 0 : i32
    %11 = vector.broadcast %c0_i32_12 : i32 to vector<1x16xi32>
    %12 = arith.cmpi ne, %10, %11 : vector<1x16xi32>
    %13 = vector.extract_strided_slice %4 {offsets = [0, 0], sizes = [16, 32], strides = [1, 1]} : vector<16x128xbf16> to vector<16x32xbf16>
    %14 = vector.extract_strided_slice %6 {offsets = [0, 0], sizes = [16, 32], strides = [1, 1]} : vector<16x128xbf16> to vector<16x32xbf16>
    %15 = vector.extract_strided_slice %8 {offsets = [0, 0], sizes = [16, 32], strides = [1, 1]} : vector<16x128xbf16> to vector<16x32xbf16>
    %cst = arith.constant dense<0.000000e+00> : vector<16x16xf32>
    %16 = tpu.matmul %13, %14, %cst {dimension_numbers = #tpu.dot_dimension_numbers<[1], [1], [0], [0], [0, 0, 1, 0], [], []>} : vector<16x32xbf16>, vector<16x32xbf16>, vector<16x16xf32> -> vector<16x16xf32>
    %cst_13 = arith.constant -1.000000e+30 : f32
    %17 = vector.shape_cast %12 : vector<1x16xi1> to vector<1x16xi1>
    %18 = vector.broadcast %17 : vector<1x16xi1> to vector<16x16xi1>
    %19 = vector.broadcast %cst_13 : f32 to vector<16x16xf32>
    %20 = arith.select %18, %16, %19 : vector<16x16xi1>, vector<16x16xf32>
    %c0_14 = arith.constant 0 : index
    %c0_15 = arith.constant 0 : index
    %c0_16 = arith.constant 0 : index
    %21 = vector.load %arg8[%c0_14, %c0_15, %c0_16] : memref<4x16x1xf32, #tpu.memory_space<vmem>>, vector<1x16x1xf32>
    %22 = vector.shape_cast %21 : vector<1x16x1xf32> to vector<16x1xf32>
    %cst_17 = arith.constant dense<0xFF800000> : vector<16xf32>
    %23 = vector.multi_reduction <maximumf>, %20, %cst_17 [1] : vector<16x16xf32> to vector<16xf32>
    %24 = vector.shape_cast %23 : vector<16xf32> to vector<16x1xf32>
    %25 = arith.maximumf %22, %24 : vector<16x1xf32>
    %26 = arith.subf %22, %25 : vector<16x1xf32>
    %27 = math.exp %26 : vector<16x1xf32>
    %28 = vector.broadcast %25 : vector<16x1xf32> to vector<16x16xf32>
    %29 = arith.subf %20, %28 : vector<16x16xf32>
    %30 = math.exp %29 : vector<16x16xf32>
    %c0_18 = arith.constant 0 : index
    %c0_19 = arith.constant 0 : index
    %c0_20 = arith.constant 0 : index
    %31 = vector.load %arg9[%c0_18, %c0_19, %c0_20] : memref<4x16x1xf32, #tpu.memory_space<vmem>>, vector<1x16x1xf32>
    %32 = vector.shape_cast %31 : vector<1x16x1xf32> to vector<16x1xf32>
    %33 = arith.mulf %27, %32 : vector<16x1xf32>
    %cst_21 = arith.constant dense<0.000000e+00> : vector<16xf32>
    %34 = vector.multi_reduction <add>, %30, %cst_21 [1] : vector<16x16xf32> to vector<16xf32>
    %35 = vector.shape_cast %34 : vector<16xf32> to vector<16x1xf32>
    %36 = arith.addf %33, %35 : vector<16x1xf32>
    %c0_22 = arith.constant 0 : index
    %c0_23 = arith.constant 0 : index
    %c0_24 = arith.constant 0 : index
    %37 = vector.load %arg9[%c0_22, %c0_23, %c0_24] : memref<4x16x1xf32, #tpu.memory_space<vmem>>, vector<1x16x1xf32>
    %38 = vector.shape_cast %37 : vector<1x16x1xf32> to vector<16x1xf32>
    %39 = vector.shape_cast %36 : vector<16x1xf32> to vector<1x16x1xf32>
    tpu.vector_store %arg9[%c0_22, %c0_23, %c0_24], %39 {strides = array<i32>} : memref<4x16x1xf32, #tpu.memory_space<vmem>>, vector<1x16x1xf32>,
    %c0_25 = arith.constant 0 : index
    %c0_26 = arith.constant 0 : index
    %c0_27 = arith.constant 0 : index
    %40 = vector.load %arg10[%c0_25, %c0_26, %c0_27] : memref<4x16x32xf32, #tpu.memory_space<vmem>>, vector<1x16x32xf32>
    %41 = vector.shape_cast %40 : vector<1x16x32xf32> to vector<16x32xf32>
    %42 = vector.broadcast %27 : vector<16x1xf32> to vector<16x32xf32>
    %43 = arith.mulf %42, %41 : vector<16x32xf32>
    %44 = arith.truncf %30 : vector<16x16xf32> to vector<16x16xbf16>
    %cst_28 = arith.constant dense<0.000000e+00> : vector<16x32xf32>
    %45 = tpu.matmul %44, %15, %cst_28 {dimension_numbers = #tpu.dot_dimension_numbers<[1], [0], [0], [1], [0, 0, 1, 1], [], []>} : vector<16x16xbf16>, vector<16x32xbf16>, vector<16x32xf32> -> vector<16x32xf32>
    %46 = arith.addf %43, %45 : vector<16x32xf32>
    %c0_29 = arith.constant 0 : index
    %c0_30 = arith.constant 0 : index
    %c0_31 = arith.constant 0 : index
    %47 = vector.load %arg10[%c0_29, %c0_30, %c0_31] : memref<4x16x32xf32, #tpu.memory_space<vmem>>, vector<1x16x32xf32>
    %48 = vector.shape_cast %47 : vector<1x16x32xf32> to vector<16x32xf32>
    %49 = vector.shape_cast %46 : vector<16x32xf32> to vector<1x16x32xf32>
    tpu.vector_store %arg10[%c0_29, %c0_30, %c0_31], %49 {strides = array<i32>} : memref<4x16x32xf32, #tpu.memory_space<vmem>>, vector<1x16x32xf32>,
    %c0_32 = arith.constant 0 : index
    %c0_33 = arith.constant 0 : index
    %c0_34 = arith.constant 0 : index
    %50 = vector.load %arg8[%c0_32, %c0_33, %c0_34] : memref<4x16x1xf32, #tpu.memory_space<vmem>>, vector<1x16x1xf32>
    %51 = vector.shape_cast %50 : vector<1x16x1xf32> to vector<16x1xf32>
    %52 = vector.shape_cast %25 : vector<16x1xf32> to vector<1x16x1xf32>
    tpu.vector_store %arg8[%c0_32, %c0_33, %c0_34], %52 {strides = array<i32>} : memref<4x16x1xf32, #tpu.memory_space<vmem>>, vector<1x16x1xf32>,
    %53 = vector.extract_strided_slice %4 {offsets = [0, 32], sizes = [16, 32], strides = [1, 1]} : vector<16x128xbf16> to vector<16x32xbf16>
    %54 = vector.extract_strided_slice %6 {offsets = [0, 32], sizes = [16, 32], strides = [1, 1]} : vector<16x128xbf16> to vector<16x32xbf16>
    %55 = vector.extract_strided_slice %8 {offsets = [0, 32], sizes = [16, 32], strides = [1, 1]} : vector<16x128xbf16> to vector<16x32xbf16>
    %cst_35 = arith.constant dense<0.000000e+00> : vector<16x16xf32>
    %56 = tpu.matmul %53, %54, %cst_35 {dimension_numbers = #tpu.dot_dimension_numbers<[1], [1], [0], [0], [0, 0, 1, 0], [], []>} : vector<16x32xbf16>, vector<16x32xbf16>, vector<16x16xf32> -> vector<16x16xf32>
    %cst_36 = arith.constant -1.000000e+30 : f32
    %57 = vector.shape_cast %12 : vector<1x16xi1> to vector<1x16xi1>
    %58 = vector.broadcast %57 : vector<1x16xi1> to vector<16x16xi1>
    %59 = vector.broadcast %cst_36 : f32 to vector<16x16xf32>
    %60 = arith.select %58, %56, %59 : vector<16x16xi1>, vector<16x16xf32>
    %c1 = arith.constant 1 : index
    %c0_37 = arith.constant 0 : index
    %c0_38 = arith.constant 0 : index
    %61 = vector.load %arg8[%c1, %c0_37, %c0_38] : memref<4x16x1xf32, #tpu.memory_space<vmem>>, vector<1x16x1xf32>
    %62 = vector.shape_cast %61 : vector<1x16x1xf32> to vector<16x1xf32>
    %cst_39 = arith.constant dense<0xFF800000> : vector<16xf32>
    %63 = vector.multi_reduction <maximumf>, %60, %cst_39 [1] : vector<16x16xf32> to vector<16xf32>
    %64 = vector.shape_cast %63 : vector<16xf32> to vector<16x1xf32>
    %65 = arith.maximumf %62, %64 : vector<16x1xf32>
    %66 = arith.subf %62, %65 : vector<16x1xf32>
    %67 = math.exp %66 : vector<16x1xf32>
    %68 = vector.broadcast %65 : vector<16x1xf32> to vector<16x16xf32>
    %69 = arith.subf %60, %68 : vector<16x16xf32>
    %70 = math.exp %69 : vector<16x16xf32>
    %c1_40 = arith.constant 1 : index
    %c0_41 = arith.constant 0 : index
    %c0_42 = arith.constant 0 : index
    %71 = vector.load %arg9[%c1_40, %c0_41, %c0_42] : memref<4x16x1xf32, #tpu.memory_space<vmem>>, vector<1x16x1xf32>
    %72 = vector.shape_cast %71 : vector<1x16x1xf32> to vector<16x1xf32>
    %73 = arith.mulf %67, %72 : vector<16x1xf32>
    %cst_43 = arith.constant dense<0.000000e+00> : vector<16xf32>
    %74 = vector.multi_reduction <add>, %70, %cst_43 [1] : vector<16x16xf32> to vector<16xf32>
    %75 = vector.shape_cast %74 : vector<16xf32> to vector<16x1xf32>
    %76 = arith.addf %73, %75 : vector<16x1xf32>
    %c1_44 = arith.constant 1 : index
    %c0_45 = arith.constant 0 : index
    %c0_46 = arith.constant 0 : index
    %77 = vector.load %arg9[%c1_44, %c0_45, %c0_46] : memref<4x16x1xf32, #tpu.memory_space<vmem>>, vector<1x16x1xf32>
    %78 = vector.shape_cast %77 : vector<1x16x1xf32> to vector<16x1xf32>
    %79 = vector.shape_cast %76 : vector<16x1xf32> to vector<1x16x1xf32>
    tpu.vector_store %arg9[%c1_44, %c0_45, %c0_46], %79 {strides = array<i32>} : memref<4x16x1xf32, #tpu.memory_space<vmem>>, vector<1x16x1xf32>,
    %c1_47 = arith.constant 1 : index
    %c0_48 = arith.constant 0 : index
    %c0_49 = arith.constant 0 : index
    %80 = vector.load %arg10[%c1_47, %c0_48, %c0_49] : memref<4x16x32xf32, #tpu.memory_space<vmem>>, vector<1x16x32xf32>
    %81 = vector.shape_cast %80 : vector<1x16x32xf32> to vector<16x32xf32>
    %82 = vector.broadcast %67 : vector<16x1xf32> to vector<16x32xf32>
    %83 = arith.mulf %82, %81 : vector<16x32xf32>
    %84 = arith.truncf %70 : vector<16x16xf32> to vector<16x16xbf16>
    %cst_50 = arith.constant dense<0.000000e+00> : vector<16x32xf32>
    %85 = tpu.matmul %84, %55, %cst_50 {dimension_numbers = #tpu.dot_dimension_numbers<[1], [0], [0], [1], [0, 0, 1, 1], [], []>} : vector<16x16xbf16>, vector<16x32xbf16>, vector<16x32xf32> -> vector<16x32xf32>
    %86 = arith.addf %83, %85 : vector<16x32xf32>
    %c1_51 = arith.constant 1 : index
    %c0_52 = arith.constant 0 : index
    %c0_53 = arith.constant 0 : index
    %87 = vector.load %arg10[%c1_51, %c0_52, %c0_53] : memref<4x16x32xf32, #tpu.memory_space<vmem>>, vector<1x16x32xf32>
    %88 = vector.shape_cast %87 : vector<1x16x32xf32> to vector<16x32xf32>
    %89 = vector.shape_cast %86 : vector<16x32xf32> to vector<1x16x32xf32>
    tpu.vector_store %arg10[%c1_51, %c0_52, %c0_53], %89 {strides = array<i32>} : memref<4x16x32xf32, #tpu.memory_space<vmem>>, vector<1x16x32xf32>,
    %c1_54 = arith.constant 1 : index
    %c0_55 = arith.constant 0 : index
    %c0_56 = arith.constant 0 : index
    %90 = vector.load %arg8[%c1_54, %c0_55, %c0_56] : memref<4x16x1xf32, #tpu.memory_space<vmem>>, vector<1x16x1xf32>
    %91 = vector.shape_cast %90 : vector<1x16x1xf32> to vector<16x1xf32>
    %92 = vector.shape_cast %65 : vector<16x1xf32> to vector<1x16x1xf32>
    tpu.vector_store %arg8[%c1_54, %c0_55, %c0_56], %92 {strides = array<i32>} : memref<4x16x1xf32, #tpu.memory_space<vmem>>, vector<1x16x1xf32>,
    %93 = vector.extract_strided_slice %4 {offsets = [0, 64], sizes = [16, 32], strides = [1, 1]} : vector<16x128xbf16> to vector<16x32xbf16>
    %94 = vector.extract_strided_slice %6 {offsets = [0, 64], sizes = [16, 32], strides = [1, 1]} : vector<16x128xbf16> to vector<16x32xbf16>
    %95 = vector.extract_strided_slice %8 {offsets = [0, 64], sizes = [16, 32], strides = [1, 1]} : vector<16x128xbf16> to vector<16x32xbf16>
    %cst_57 = arith.constant dense<0.000000e+00> : vector<16x16xf32>
    %96 = tpu.matmul %93, %94, %cst_57 {dimension_numbers = #tpu.dot_dimension_numbers<[1], [1], [0], [0], [0, 0, 1, 0], [], []>} : vector<16x32xbf16>, vector<16x32xbf16>, vector<16x16xf32> -> vector<16x16xf32>
    %cst_58 = arith.constant -1.000000e+30 : f32
    %97 = vector.shape_cast %12 : vector<1x16xi1> to vector<1x16xi1>
    %98 = vector.broadcast %97 : vector<1x16xi1> to vector<16x16xi1>
    %99 = vector.broadcast %cst_58 : f32 to vector<16x16xf32>
    %100 = arith.select %98, %96, %99 : vector<16x16xi1>, vector<16x16xf32>
    %c2 = arith.constant 2 : index
    %c0_59 = arith.constant 0 : index
    %c0_60 = arith.constant 0 : index
    %101 = vector.load %arg8[%c2, %c0_59, %c0_60] : memref<4x16x1xf32, #tpu.memory_space<vmem>>, vector<1x16x1xf32>
    %102 = vector.shape_cast %101 : vector<1x16x1xf32> to vector<16x1xf32>
    %cst_61 = arith.constant dense<0xFF800000> : vector<16xf32>
    %103 = vector.multi_reduction <maximumf>, %100, %cst_61 [1] : vector<16x16xf32> to vector<16xf32>
    %104 = vector.shape_cast %103 : vector<16xf32> to vector<16x1xf32>
    %105 = arith.maximumf %102, %104 : vector<16x1xf32>
    %106 = arith.subf %102, %105 : vector<16x1xf32>
    %107 = math.exp %106 : vector<16x1xf32>
    %108 = vector.broadcast %105 : vector<16x1xf32> to vector<16x16xf32>
    %109 = arith.subf %100, %108 : vector<16x16xf32>
    %110 = math.exp %109 : vector<16x16xf32>
    %c2_62 = arith.constant 2 : index
    %c0_63 = arith.constant 0 : index
    %c0_64 = arith.constant 0 : index
    %111 = vector.load %arg9[%c2_62, %c0_63, %c0_64] : memref<4x16x1xf32, #tpu.memory_space<vmem>>, vector<1x16x1xf32>
    %112 = vector.shape_cast %111 : vector<1x16x1xf32> to vector<16x1xf32>
    %113 = arith.mulf %107, %112 : vector<16x1xf32>
    %cst_65 = arith.constant dense<0.000000e+00> : vector<16xf32>
    %114 = vector.multi_reduction <add>, %110, %cst_65 [1] : vector<16x16xf32> to vector<16xf32>
    %115 = vector.shape_cast %114 : vector<16xf32> to vector<16x1xf32>
    %116 = arith.addf %113, %115 : vector<16x1xf32>
    %c2_66 = arith.constant 2 : index
    %c0_67 = arith.constant 0 : index
    %c0_68 = arith.constant 0 : index
    %117 = vector.load %arg9[%c2_66, %c0_67, %c0_68] : memref<4x16x1xf32, #tpu.memory_space<vmem>>, vector<1x16x1xf32>
    %118 = vector.shape_cast %117 : vector<1x16x1xf32> to vector<16x1xf32>
    %119 = vector.shape_cast %116 : vector<16x1xf32> to vector<1x16x1xf32>
    tpu.vector_store %arg9[%c2_66, %c0_67, %c0_68], %119 {strides = array<i32>} : memref<4x16x1xf32, #tpu.memory_space<vmem>>, vector<1x16x1xf32>,
    %c2_69 = arith.constant 2 : index
    %c0_70 = arith.constant 0 : index
    %c0_71 = arith.constant 0 : index
    %120 = vector.load %arg10[%c2_69, %c0_70, %c0_71] : memref<4x16x32xf32, #tpu.memory_space<vmem>>, vector<1x16x32xf32>
    %121 = vector.shape_cast %120 : vector<1x16x32xf32> to vector<16x32xf32>
    %122 = vector.broadcast %107 : vector<16x1xf32> to vector<16x32xf32>
    %123 = arith.mulf %122, %121 : vector<16x32xf32>
    %124 = arith.truncf %110 : vector<16x16xf32> to vector<16x16xbf16>
    %cst_72 = arith.constant dense<0.000000e+00> : vector<16x32xf32>
    %125 = tpu.matmul %124, %95, %cst_72 {dimension_numbers = #tpu.dot_dimension_numbers<[1], [0], [0], [1], [0, 0, 1, 1], [], []>} : vector<16x16xbf16>, vector<16x32xbf16>, vector<16x32xf32> -> vector<16x32xf32>
    %126 = arith.addf %123, %125 : vector<16x32xf32>
    %c2_73 = arith.constant 2 : index
    %c0_74 = arith.constant 0 : index
    %c0_75 = arith.constant 0 : index
    %127 = vector.load %arg10[%c2_73, %c0_74, %c0_75] : memref<4x16x32xf32, #tpu.memory_space<vmem>>, vector<1x16x32xf32>
    %128 = vector.shape_cast %127 : vector<1x16x32xf32> to vector<16x32xf32>
    %129 = vector.shape_cast %126 : vector<16x32xf32> to vector<1x16x32xf32>
    tpu.vector_store %arg10[%c2_73, %c0_74, %c0_75], %129 {strides = array<i32>} : memref<4x16x32xf32, #tpu.memory_space<vmem>>, vector<1x16x32xf32>,
    %c2_76 = arith.constant 2 : index
    %c0_77 = arith.constant 0 : index
    %c0_78 = arith.constant 0 : index
    %130 = vector.load %arg8[%c2_76, %c0_77, %c0_78] : memref<4x16x1xf32, #tpu.memory_space<vmem>>, vector<1x16x1xf32>
    %131 = vector.shape_cast %130 : vector<1x16x1xf32> to vector<16x1xf32>
    %132 = vector.shape_cast %105 : vector<16x1xf32> to vector<1x16x1xf32>
    tpu.vector_store %arg8[%c2_76, %c0_77, %c0_78], %132 {strides = array<i32>} : memref<4x16x1xf32, #tpu.memory_space<vmem>>, vector<1x16x1xf32>,
    %133 = vector.extract_strided_slice %4 {offsets = [0, 96], sizes = [16, 32], strides = [1, 1]} : vector<16x128xbf16> to vector<16x32xbf16>
    %134 = vector.extract_strided_slice %6 {offsets = [0, 96], sizes = [16, 32], strides = [1, 1]} : vector<16x128xbf16> to vector<16x32xbf16>
    %135 = vector.extract_strided_slice %8 {offsets = [0, 96], sizes = [16, 32], strides = [1, 1]} : vector<16x128xbf16> to vector<16x32xbf16>
    %cst_79 = arith.constant dense<0.000000e+00> : vector<16x16xf32>
    %136 = tpu.matmul %133, %134, %cst_79 {dimension_numbers = #tpu.dot_dimension_numbers<[1], [1], [0], [0], [0, 0, 1, 0], [], []>} : vector<16x32xbf16>, vector<16x32xbf16>, vector<16x16xf32> -> vector<16x16xf32>
    %cst_80 = arith.constant -1.000000e+30 : f32
    %137 = vector.shape_cast %12 : vector<1x16xi1> to vector<1x16xi1>
    %138 = vector.broadcast %137 : vector<1x16xi1> to vector<16x16xi1>
    %139 = vector.broadcast %cst_80 : f32 to vector<16x16xf32>
    %140 = arith.select %138, %136, %139 : vector<16x16xi1>, vector<16x16xf32>
    %c3 = arith.constant 3 : index
    %c0_81 = arith.constant 0 : index
    %c0_82 = arith.constant 0 : index
    %141 = vector.load %arg8[%c3, %c0_81, %c0_82] : memref<4x16x1xf32, #tpu.memory_space<vmem>>, vector<1x16x1xf32>
    %142 = vector.shape_cast %141 : vector<1x16x1xf32> to vector<16x1xf32>
    %cst_83 = arith.constant dense<0xFF800000> : vector<16xf32>
    %143 = vector.multi_reduction <maximumf>, %140, %cst_83 [1] : vector<16x16xf32> to vector<16xf32>
    %144 = vector.shape_cast %143 : vector<16xf32> to vector<16x1xf32>
    %145 = arith.maximumf %142, %144 : vector<16x1xf32>
    %146 = arith.subf %142, %145 : vector<16x1xf32>
    %147 = math.exp %146 : vector<16x1xf32>
    %148 = vector.broadcast %145 : vector<16x1xf32> to vector<16x16xf32>
    %149 = arith.subf %140, %148 : vector<16x16xf32>
    %150 = math.exp %149 : vector<16x16xf32>
    %c3_84 = arith.constant 3 : index
    %c0_85 = arith.constant 0 : index
    %c0_86 = arith.constant 0 : index
    %151 = vector.load %arg9[%c3_84, %c0_85, %c0_86] : memref<4x16x1xf32, #tpu.memory_space<vmem>>, vector<1x16x1xf32>
    %152 = vector.shape_cast %151 : vector<1x16x1xf32> to vector<16x1xf32>
    %153 = arith.mulf %147, %152 : vector<16x1xf32>
    %cst_87 = arith.constant dense<0.000000e+00> : vector<16xf32>
    %154 = vector.multi_reduction <add>, %150, %cst_87 [1] : vector<16x16xf32> to vector<16xf32>
    %155 = vector.shape_cast %154 : vector<16xf32> to vector<16x1xf32>
    %156 = arith.addf %153, %155 : vector<16x1xf32>
    %c3_88 = arith.constant 3 : index
    %c0_89 = arith.constant 0 : index
    %c0_90 = arith.constant 0 : index
    %157 = vector.load %arg9[%c3_88, %c0_89, %c0_90] : memref<4x16x1xf32, #tpu.memory_space<vmem>>, vector<1x16x1xf32>
    %158 = vector.shape_cast %157 : vector<1x16x1xf32> to vector<16x1xf32>
    %159 = vector.shape_cast %156 : vector<16x1xf32> to vector<1x16x1xf32>
    tpu.vector_store %arg9[%c3_88, %c0_89, %c0_90], %159 {strides = array<i32>} : memref<4x16x1xf32, #tpu.memory_space<vmem>>, vector<1x16x1xf32>,
    %c3_91 = arith.constant 3 : index
    %c0_92 = arith.constant 0 : index
    %c0_93 = arith.constant 0 : index
    %160 = vector.load %arg10[%c3_91, %c0_92, %c0_93] : memref<4x16x32xf32, #tpu.memory_space<vmem>>, vector<1x16x32xf32>
    %161 = vector.shape_cast %160 : vector<1x16x32xf32> to vector<16x32xf32>
    %162 = vector.broadcast %147 : vector<16x1xf32> to vector<16x32xf32>
    %163 = arith.mulf %162, %161 : vector<16x32xf32>
    %164 = arith.truncf %150 : vector<16x16xf32> to vector<16x16xbf16>
    %cst_94 = arith.constant dense<0.000000e+00> : vector<16x32xf32>
    %165 = tpu.matmul %164, %135, %cst_94 {dimension_numbers = #tpu.dot_dimension_numbers<[1], [0], [0], [1], [0, 0, 1, 1], [], []>} : vector<16x16xbf16>, vector<16x32xbf16>, vector<16x32xf32> -> vector<16x32xf32>
    %166 = arith.addf %163, %165 : vector<16x32xf32>
    %c3_95 = arith.constant 3 : index
    %c0_96 = arith.constant 0 : index
    %c0_97 = arith.constant 0 : index
    %167 = vector.load %arg10[%c3_95, %c0_96, %c0_97] : memref<4x16x32xf32, #tpu.memory_space<vmem>>, vector<1x16x32xf32>
    %168 = vector.shape_cast %167 : vector<1x16x32xf32> to vector<16x32xf32>
    %169 = vector.shape_cast %166 : vector<16x32xf32> to vector<1x16x32xf32>
    tpu.vector_store %arg10[%c3_95, %c0_96, %c0_97], %169 {strides = array<i32>} : memref<4x16x32xf32, #tpu.memory_space<vmem>>, vector<1x16x32xf32>,
    %c3_98 = arith.constant 3 : index
    %c0_99 = arith.constant 0 : index
    %c0_100 = arith.constant 0 : index
    %170 = vector.load %arg8[%c3_98, %c0_99, %c0_100] : memref<4x16x1xf32, #tpu.memory_space<vmem>>, vector<1x16x1xf32>
    %171 = vector.shape_cast %170 : vector<1x16x1xf32> to vector<16x1xf32>
    %172 = vector.shape_cast %145 : vector<16x1xf32> to vector<1x16x1xf32>
    tpu.vector_store %arg8[%c3_98, %c0_99, %c0_100], %172 {strides = array<i32>} : memref<4x16x1xf32, #tpu.memory_space<vmem>>, vector<1x16x1xf32>,
    %c0_i32_101 = arith.constant 0 : i32
    %173 = arith.cmpi eq, %arg2, %c0_i32_101 : i32
    %174 = arith.extui %173 : i1 to i32
    %c0_i32_102 = arith.constant 0 : i32
    %175 = arith.cmpi ne, %174, %c0_i32_102 : i32
    scf.if %175 {
      %c0_103 = arith.constant 0 : index
      %c0_104 = arith.constant 0 : index
      %c0_105 = arith.constant 0 : index
      %176 = vector.load %arg10[%c0_103, %c0_104, %c0_105] : memref<4x16x32xf32, #tpu.memory_space<vmem>>, vector<1x16x32xf32>
      %177 = vector.shape_cast %176 : vector<1x16x32xf32> to vector<16x32xf32>
      %c0_106 = arith.constant 0 : index
      %c0_107 = arith.constant 0 : index
      %c0_108 = arith.constant 0 : index
      %178 = vector.load %arg9[%c0_106, %c0_107, %c0_108] : memref<4x16x1xf32, #tpu.memory_space<vmem>>, vector<1x16x1xf32>
      %179 = vector.shape_cast %178 : vector<1x16x1xf32> to vector<16x1xf32>
      %180 = tpu.reciprocal %179 {approx = true} : vector<16x1xf32> -> vector<16x1xf32>
      %181 = vector.broadcast %180 : vector<16x1xf32> to vector<16x32xf32>
      %182 = arith.mulf %177, %181 : vector<16x32xf32>
      %c1_109 = arith.constant 1 : index
      %c0_110 = arith.constant 0 : index
      %c0_111 = arith.constant 0 : index
      %183 = vector.load %arg10[%c1_109, %c0_110, %c0_111] : memref<4x16x32xf32, #tpu.memory_space<vmem>>, vector<1x16x32xf32>
      %184 = vector.shape_cast %183 : vector<1x16x32xf32> to vector<16x32xf32>
      %c1_112 = arith.constant 1 : index
      %c0_113 = arith.constant 0 : index
      %c0_114 = arith.constant 0 : index
      %185 = vector.load %arg9[%c1_112, %c0_113, %c0_114] : memref<4x16x1xf32, #tpu.memory_space<vmem>>, vector<1x16x1xf32>
      %186 = vector.shape_cast %185 : vector<1x16x1xf32> to vector<16x1xf32>
      %187 = tpu.reciprocal %186 {approx = true} : vector<16x1xf32> -> vector<16x1xf32>
      %188 = vector.broadcast %187 : vector<16x1xf32> to vector<16x32xf32>
      %189 = arith.mulf %184, %188 : vector<16x32xf32>
      %c2_115 = arith.constant 2 : index
      %c0_116 = arith.constant 0 : index
      %c0_117 = arith.constant 0 : index
      %190 = vector.load %arg10[%c2_115, %c0_116, %c0_117] : memref<4x16x32xf32, #tpu.memory_space<vmem>>, vector<1x16x32xf32>
      %191 = vector.shape_cast %190 : vector<1x16x32xf32> to vector<16x32xf32>
      %c2_118 = arith.constant 2 : index
      %c0_119 = arith.constant 0 : index
      %c0_120 = arith.constant 0 : index
      %192 = vector.load %arg9[%c2_118, %c0_119, %c0_120] : memref<4x16x1xf32, #tpu.memory_space<vmem>>, vector<1x16x1xf32>
      %193 = vector.shape_cast %192 : vector<1x16x1xf32> to vector<16x1xf32>
      %194 = tpu.reciprocal %193 {approx = true} : vector<16x1xf32> -> vector<16x1xf32>
      %195 = vector.broadcast %194 : vector<16x1xf32> to vector<16x32xf32>
      %196 = arith.mulf %191, %195 : vector<16x32xf32>
      %c3_121 = arith.constant 3 : index
      %c0_122 = arith.constant 0 : index
      %c0_123 = arith.constant 0 : index
      %197 = vector.load %arg10[%c3_121, %c0_122, %c0_123] : memref<4x16x32xf32, #tpu.memory_space<vmem>>, vector<1x16x32xf32>
      %198 = vector.shape_cast %197 : vector<1x16x32xf32> to vector<16x32xf32>
      %c3_124 = arith.constant 3 : index
      %c0_125 = arith.constant 0 : index
      %c0_126 = arith.constant 0 : index
      %199 = vector.load %arg9[%c3_124, %c0_125, %c0_126] : memref<4x16x1xf32, #tpu.memory_space<vmem>>, vector<1x16x1xf32>
      %200 = vector.shape_cast %199 : vector<1x16x1xf32> to vector<16x1xf32>
      %201 = tpu.reciprocal %200 {approx = true} : vector<16x1xf32> -> vector<16x1xf32>
      %202 = vector.broadcast %201 : vector<16x1xf32> to vector<16x32xf32>
      %203 = arith.mulf %198, %202 : vector<16x32xf32>
      %204 = tpu.concatenate %182, %189, %196, %203 in 1 : vector<16x32xf32>, vector<16x32xf32>, vector<16x32xf32>, vector<16x32xf32> -> vector<16x128xf32>
      %205 = arith.truncf %204 : vector<16x128xf32> to vector<16x128xbf16>
      %c0_127 = arith.constant 0 : index
      %c0_128 = arith.constant 0 : index
      %c0_129 = arith.constant 0 : index
      %206 = vector.load %arg7[%c0_127, %c0_128, %c0_129] : memref<1x16x128xbf16, #tpu.memory_space<vmem>>, vector<1x16x128xbf16>
      %207 = vector.shape_cast %206 : vector<1x16x128xbf16> to vector<16x128xbf16>
      %208 = vector.shape_cast %205 : vector<16x128xbf16> to vector<1x16x128xbf16>
      tpu.vector_store %arg7[%c0_127, %c0_128, %c0_129], %208 {strides = array<i32>} : memref<1x16x128xbf16, #tpu.memory_space<vmem>>, vector<1x16x128xbf16>,
    } else {
    }
    return
  }
  func.func @transform_0(%arg0: i32, %arg1: i32, %arg2: i32) -> (i32, i32, i32) {
    %c0_i32 = arith.constant 0 : i32
    %c0_i32_0 = arith.constant 0 : i32
    return %arg0, %arg1, %c0_i32 : i32, i32, i32
  }
  func.func @transform_1(%arg0: i32, %arg1: i32, %arg2: i32) -> (i32, i32, i32) {
    %c0_i32 = arith.constant 0 : i32
    %c0_i32_0 = arith.constant 0 : i32
    return %arg0, %arg2, %c0_i32 : i32, i32, i32
  }
  func.func @transform_2(%arg0: i32, %arg1: i32, %arg2: i32) -> (i32, i32, i32) {
    %c0_i32 = arith.constant 0 : i32
    %c0_i32_0 = arith.constant 0 : i32
    return %arg0, %arg2, %c0_i32 : i32, i32, i32
  }
  func.func @transform_3(%arg0: i32, %arg1: i32, %arg2: i32) -> (i32, i32, i32) {
    %c0_i32 = arith.constant 0 : i32
    %c0_i32_0 = arith.constant 0 : i32
    return %arg0, %c0_i32, %arg2 : i32, i32, i32
  }
  func.func @transform_4(%arg0: i32, %arg1: i32, %arg2: i32) -> (i32, i32, i32) {
    %c0_i32 = arith.constant 0 : i32
    %c0_i32_0 = arith.constant 0 : i32
    return %arg0, %arg1, %c0_i32 : i32, i32, i32
  }
}

module attributes {stable_mosaic.version = 11 : i64} {
  func.func @_ffn_add_ln_kernel(%arg0: i32, %arg1: i32, %arg2: memref<32x128xbf16, #tpu.memory_space<vmem>>, %arg3: memref<128x256xbf16, #tpu.memory_space<vmem>>, %arg4: memref<1x256xf32, #tpu.memory_space<vmem>>, %arg5: memref<256x128xbf16, #tpu.memory_space<vmem>>, %arg6: memref<1x128xf32, #tpu.memory_space<vmem>>, %arg7: memref<32x128xf32, #tpu.memory_space<vmem>>, %arg8: memref<1x128xf32, #tpu.memory_space<vmem>>, %arg9: memref<1x128xf32, #tpu.memory_space<vmem>>, %arg10: memref<32x128xf32, #tpu.memory_space<vmem>>, %arg11: memref<32x128xbf16, #tpu.memory_space<vmem>>, %arg12: memref<32x128xf32, #tpu.memory_space<vmem>>) attributes {dimension_semantics = [#tpu.dimension_semantics<parallel>, #tpu.dimension_semantics<arbitrary>], iteration_bounds = array<i64: 1, 1>, scalar_prefetch = 0 : i64, scratch_operands = 1 : i64, tpu.core_type = #tpu.core_type<tc>, window_params = [{transform_indices = @transform_0, window_bounds = array<i64: 32, 128>}, {transform_indices = @transform_1, window_bounds = array<i64: 128, 256>}, {transform_indices = @transform_2, window_bounds = array<i64: 1, 256>}, {transform_indices = @transform_3, window_bounds = array<i64: 256, 128>}, {pipeline_mode = #tpu.pipeline_mode<synchronous>, transform_indices = @transform_4, window_bounds = array<i64: 1, 128>}, {transform_indices = @transform_5, window_bounds = array<i64: 32, 128>}, {pipeline_mode = #tpu.pipeline_mode<synchronous>, transform_indices = @transform_6, window_bounds = array<i64: 1, 128>}, {pipeline_mode = #tpu.pipeline_mode<synchronous>, transform_indices = @transform_7, window_bounds = array<i64: 1, 128>}, {transform_indices = @transform_8, window_bounds = array<i64: 32, 128>}, {transform_indices = @transform_9, window_bounds = array<i64: 32, 128>}]} {
    %c0_i32 = arith.constant 0 : i32
    %0 = arith.cmpi eq, %arg1, %c0_i32 : i32
    %1 = arith.extui %0 : i1 to i32
    %c0_i32_0 = arith.constant 0 : i32
    %2 = arith.cmpi ne, %1, %c0_i32_0 : i32
    scf.if %2 {
      %cst_16 = arith.constant 0.000000e+00 : f32
      %20 = vector.broadcast %cst_16 : f32 to vector<32x128xf32>
      %c0_17 = arith.constant 0 : index
      %c0_18 = arith.constant 0 : index
      %21 = vector.load %arg12[%c0_17, %c0_18] : memref<32x128xf32, #tpu.memory_space<vmem>>, vector<32x128xf32>
      tpu.vector_store %arg12[%c0_17, %c0_18], %20 {strides = array<i32>} : memref<32x128xf32, #tpu.memory_space<vmem>>, vector<32x128xf32>,
    } else {
    }
    %c0 = arith.constant 0 : index
    %c0_1 = arith.constant 0 : index
    %3 = vector.load %arg2[%c0, %c0_1] : memref<32x128xbf16, #tpu.memory_space<vmem>>, vector<32x128xbf16>
    %c0_2 = arith.constant 0 : index
    %c0_3 = arith.constant 0 : index
    %4 = vector.load %arg3[%c0_2, %c0_3] : memref<128x256xbf16, #tpu.memory_space<vmem>>, vector<128x256xbf16>
    %cst = arith.constant dense<0.000000e+00> : vector<32x256xf32>
    %5 = tpu.matmul %3, %4, %cst {dimension_numbers = #tpu.dot_dimension_numbers<[1], [0], [0], [1], [0, 0, 1, 1], [], []>} : vector<32x128xbf16>, vector<128x256xbf16>, vector<32x256xf32> -> vector<32x256xf32>
    %c0_4 = arith.constant 0 : index
    %c0_5 = arith.constant 0 : index
    %6 = vector.load %arg4[%c0_4, %c0_5] : memref<1x256xf32, #tpu.memory_space<vmem>>, vector<1x256xf32>
    %7 = vector.broadcast %6 : vector<1x256xf32> to vector<32x256xf32>
    %8 = arith.addf %5, %7 : vector<32x256xf32>
    %cst_6 = arith.constant 0.000000e+00 : f32
    %9 = vector.broadcast %cst_6 : f32 to vector<32x256xf32>
    %10 = arith.maximumf %8, %9 : vector<32x256xf32>
    %c0_7 = arith.constant 0 : index
    %c0_8 = arith.constant 0 : index
    %11 = vector.load %arg12[%c0_7, %c0_8] : memref<32x128xf32, #tpu.memory_space<vmem>>, vector<32x128xf32>
    %12 = arith.truncf %10 : vector<32x256xf32> to vector<32x256xbf16>
    %c0_9 = arith.constant 0 : index
    %c0_10 = arith.constant 0 : index
    %13 = vector.load %arg5[%c0_9, %c0_10] : memref<256x128xbf16, #tpu.memory_space<vmem>>, vector<256x128xbf16>
    %cst_11 = arith.constant dense<0.000000e+00> : vector<32x128xf32>
    %14 = tpu.matmul %12, %13, %cst_11 {dimension_numbers = #tpu.dot_dimension_numbers<[1], [0], [0], [1], [0, 0, 1, 1], [], []>} : vector<32x256xbf16>, vector<256x128xbf16>, vector<32x128xf32> -> vector<32x128xf32>
    %15 = arith.addf %11, %14 : vector<32x128xf32>
    %c0_12 = arith.constant 0 : index
    %c0_13 = arith.constant 0 : index
    %16 = vector.load %arg12[%c0_12, %c0_13] : memref<32x128xf32, #tpu.memory_space<vmem>>, vector<32x128xf32>
    tpu.vector_store %arg12[%c0_12, %c0_13], %15 {strides = array<i32>} : memref<32x128xf32, #tpu.memory_space<vmem>>, vector<32x128xf32>,
    %c0_i32_14 = arith.constant 0 : i32
    %17 = arith.cmpi eq, %arg1, %c0_i32_14 : i32
    %18 = arith.extui %17 : i1 to i32
    %c0_i32_15 = arith.constant 0 : i32
    %19 = arith.cmpi ne, %18, %c0_i32_15 : i32
    scf.if %19 {
      %c0_16 = arith.constant 0 : index
      %c0_17 = arith.constant 0 : index
      %20 = vector.load %arg12[%c0_16, %c0_17] : memref<32x128xf32, #tpu.memory_space<vmem>>, vector<32x128xf32>
      %c0_18 = arith.constant 0 : index
      %c0_19 = arith.constant 0 : index
      %21 = vector.load %arg6[%c0_18, %c0_19] : memref<1x128xf32, #tpu.memory_space<vmem>>, vector<1x128xf32>
      %22 = vector.broadcast %21 : vector<1x128xf32> to vector<32x128xf32>
      %23 = arith.addf %20, %22 : vector<32x128xf32>
      %c0_20 = arith.constant 0 : index
      %c0_21 = arith.constant 0 : index
      %24 = vector.load %arg7[%c0_20, %c0_21] : memref<32x128xf32, #tpu.memory_space<vmem>>, vector<32x128xf32>
      %25 = arith.addf %23, %24 : vector<32x128xf32>
      %cst_22 = arith.constant dense<0.000000e+00> : vector<32xf32>
      %26 = vector.multi_reduction <add>, %25, %cst_22 [1] : vector<32x128xf32> to vector<32xf32>
      %27 = vector.shape_cast %26 : vector<32xf32> to vector<32x1xf32>
      %cst_23 = arith.constant 1.280000e+02 : f32
      %28 = vector.broadcast %cst_23 : f32 to vector<32x1xf32>
      %29 = arith.divf %27, %28 : vector<32x1xf32>
      %30 = vector.broadcast %29 : vector<32x1xf32> to vector<32x128xf32>
      %31 = arith.subf %25, %30 : vector<32x128xf32>
      %32 = arith.mulf %31, %31 : vector<32x128xf32>
      %cst_24 = arith.constant dense<0.000000e+00> : vector<32xf32>
      %33 = vector.multi_reduction <add>, %32, %cst_24 [1] : vector<32x128xf32> to vector<32xf32>
      %34 = vector.shape_cast %33 : vector<32xf32> to vector<32x1xf32>
      %cst_25 = arith.constant 1.280000e+02 : f32
      %35 = vector.broadcast %cst_25 : f32 to vector<32x1xf32>
      %36 = arith.divf %34, %35 : vector<32x1xf32>
      %37 = vector.broadcast %29 : vector<32x1xf32> to vector<32x128xf32>
      %38 = arith.subf %25, %37 : vector<32x128xf32>
      %cst_26 = arith.constant 9.99999974E-6 : f32
      %39 = vector.broadcast %cst_26 : f32 to vector<32x1xf32>
      %40 = arith.addf %36, %39 : vector<32x1xf32>
      %41 = math.rsqrt %40 : vector<32x1xf32>
      %42 = vector.broadcast %41 : vector<32x1xf32> to vector<32x128xf32>
      %43 = arith.mulf %38, %42 : vector<32x128xf32>
      %c0_27 = arith.constant 0 : index
      %c0_28 = arith.constant 0 : index
      %44 = vector.load %arg8[%c0_27, %c0_28] : memref<1x128xf32, #tpu.memory_space<vmem>>, vector<1x128xf32>
      %45 = vector.broadcast %44 : vector<1x128xf32> to vector<32x128xf32>
      %46 = arith.mulf %43, %45 : vector<32x128xf32>
      %c0_29 = arith.constant 0 : index
      %c0_30 = arith.constant 0 : index
      %47 = vector.load %arg9[%c0_29, %c0_30] : memref<1x128xf32, #tpu.memory_space<vmem>>, vector<1x128xf32>
      %48 = vector.broadcast %47 : vector<1x128xf32> to vector<32x128xf32>
      %49 = arith.addf %46, %48 : vector<32x128xf32>
      %c0_31 = arith.constant 0 : index
      %c0_32 = arith.constant 0 : index
      %50 = vector.load %arg10[%c0_31, %c0_32] : memref<32x128xf32, #tpu.memory_space<vmem>>, vector<32x128xf32>
      tpu.vector_store %arg10[%c0_31, %c0_32], %49 {strides = array<i32>} : memref<32x128xf32, #tpu.memory_space<vmem>>, vector<32x128xf32>,
      %51 = arith.truncf %49 : vector<32x128xf32> to vector<32x128xbf16>
      %c0_33 = arith.constant 0 : index
      %c0_34 = arith.constant 0 : index
      %52 = vector.load %arg11[%c0_33, %c0_34] : memref<32x128xbf16, #tpu.memory_space<vmem>>, vector<32x128xbf16>
      tpu.vector_store %arg11[%c0_33, %c0_34], %51 {strides = array<i32>} : memref<32x128xbf16, #tpu.memory_space<vmem>>, vector<32x128xbf16>,
    } else {
    }
    return
  }
  func.func @transform_0(%arg0: i32, %arg1: i32) -> (i32, i32) {
    %c0_i32 = arith.constant 0 : i32
    %c0_i32_0 = arith.constant 0 : i32
    return %arg0, %c0_i32 : i32, i32
  }
  func.func @transform_1(%arg0: i32, %arg1: i32) -> (i32, i32) {
    %c0_i32 = arith.constant 0 : i32
    %c0_i32_0 = arith.constant 0 : i32
    return %c0_i32, %arg1 : i32, i32
  }
  func.func @transform_2(%arg0: i32, %arg1: i32) -> (i32, i32) {
    %c0_i32 = arith.constant 0 : i32
    %c0_i32_0 = arith.constant 0 : i32
    return %c0_i32, %arg1 : i32, i32
  }
  func.func @transform_3(%arg0: i32, %arg1: i32) -> (i32, i32) {
    %c0_i32 = arith.constant 0 : i32
    %c0_i32_0 = arith.constant 0 : i32
    return %arg1, %c0_i32 : i32, i32
  }
  func.func @transform_4(%arg0: i32, %arg1: i32) -> (i32, i32) {
    %c0_i32 = arith.constant 0 : i32
    %c0_i32_0 = arith.constant 0 : i32
    %c0_i32_1 = arith.constant 0 : i32
    return %c0_i32, %c0_i32_0 : i32, i32
  }
  func.func @transform_5(%arg0: i32, %arg1: i32) -> (i32, i32) {
    %c0_i32 = arith.constant 0 : i32
    %c0_i32_0 = arith.constant 0 : i32
    return %arg0, %c0_i32 : i32, i32
  }
  func.func @transform_6(%arg0: i32, %arg1: i32) -> (i32, i32) {
    %c0_i32 = arith.constant 0 : i32
    %c0_i32_0 = arith.constant 0 : i32
    %c0_i32_1 = arith.constant 0 : i32
    return %c0_i32, %c0_i32_0 : i32, i32
  }
  func.func @transform_7(%arg0: i32, %arg1: i32) -> (i32, i32) {
    %c0_i32 = arith.constant 0 : i32
    %c0_i32_0 = arith.constant 0 : i32
    %c0_i32_1 = arith.constant 0 : i32
    return %c0_i32, %c0_i32_0 : i32, i32
  }
  func.func @transform_8(%arg0: i32, %arg1: i32) -> (i32, i32) {
    %c0_i32 = arith.constant 0 : i32
    %c0_i32_0 = arith.constant 0 : i32
    return %arg0, %c0_i32 : i32, i32
  }
  func.func @transform_9(%arg0: i32, %arg1: i32) -> (i32, i32) {
    %c0_i32 = arith.constant 0 : i32
    %c0_i32_0 = arith.constant 0 : i32
    return %arg0, %c0_i32 : i32, i32
  }
}

module attributes {stable_mosaic.version = 11 : i64} {
  func.func @_linear_kernel(%arg0: i32, %arg1: i32, %arg2: i32, %arg3: memref<32x128xbf16, #tpu.memory_space<vmem>>, %arg4: memref<128x256xbf16, #tpu.memory_space<vmem>>, %arg5: memref<1x256xf32, #tpu.memory_space<vmem>>, %arg6: memref<32x256xbf16, #tpu.memory_space<vmem>>, %arg7: memref<32x256xf32, #tpu.memory_space<vmem>>) attributes {dimension_semantics = [#tpu.dimension_semantics<parallel>, #tpu.dimension_semantics<parallel>, #tpu.dimension_semantics<arbitrary>], iteration_bounds = array<i64: 1, 1, 1>, scalar_prefetch = 0 : i64, scratch_operands = 1 : i64, tpu.core_type = #tpu.core_type<tc>, window_params = [{transform_indices = @transform_0, window_bounds = array<i64: 32, 128>}, {transform_indices = @transform_1, window_bounds = array<i64: 128, 256>}, {transform_indices = @transform_2, window_bounds = array<i64: 1, 256>}, {transform_indices = @transform_3, window_bounds = array<i64: 32, 256>}]} {
    %c0_i32 = arith.constant 0 : i32
    %0 = arith.cmpi eq, %arg2, %c0_i32 : i32
    %1 = arith.extui %0 : i1 to i32
    %c0_i32_0 = arith.constant 0 : i32
    %2 = arith.cmpi ne, %1, %c0_i32_0 : i32
    scf.if %2 {
      %cst_10 = arith.constant 0.000000e+00 : f32
      %12 = vector.broadcast %cst_10 : f32 to vector<32x256xf32>
      %c0_11 = arith.constant 0 : index
      %c0_12 = arith.constant 0 : index
      %13 = vector.load %arg7[%c0_11, %c0_12] : memref<32x256xf32, #tpu.memory_space<vmem>>, vector<32x256xf32>
      tpu.vector_store %arg7[%c0_11, %c0_12], %12 {strides = array<i32>} : memref<32x256xf32, #tpu.memory_space<vmem>>, vector<32x256xf32>,
    } else {
    }
    %c0 = arith.constant 0 : index
    %c0_1 = arith.constant 0 : index
    %3 = vector.load %arg7[%c0, %c0_1] : memref<32x256xf32, #tpu.memory_space<vmem>>, vector<32x256xf32>
    %c0_2 = arith.constant 0 : index
    %c0_3 = arith.constant 0 : index
    %4 = vector.load %arg3[%c0_2, %c0_3] : memref<32x128xbf16, #tpu.memory_space<vmem>>, vector<32x128xbf16>
    %c0_4 = arith.constant 0 : index
    %c0_5 = arith.constant 0 : index
    %5 = vector.load %arg4[%c0_4, %c0_5] : memref<128x256xbf16, #tpu.memory_space<vmem>>, vector<128x256xbf16>
    %cst = arith.constant dense<0.000000e+00> : vector<32x256xf32>
    %6 = tpu.matmul %4, %5, %cst {dimension_numbers = #tpu.dot_dimension_numbers<[1], [0], [0], [1], [0, 0, 1, 1], [], []>} : vector<32x128xbf16>, vector<128x256xbf16>, vector<32x256xf32> -> vector<32x256xf32>
    %7 = arith.addf %3, %6 : vector<32x256xf32>
    %c0_6 = arith.constant 0 : index
    %c0_7 = arith.constant 0 : index
    %8 = vector.load %arg7[%c0_6, %c0_7] : memref<32x256xf32, #tpu.memory_space<vmem>>, vector<32x256xf32>
    tpu.vector_store %arg7[%c0_6, %c0_7], %7 {strides = array<i32>} : memref<32x256xf32, #tpu.memory_space<vmem>>, vector<32x256xf32>,
    %c0_i32_8 = arith.constant 0 : i32
    %9 = arith.cmpi eq, %arg2, %c0_i32_8 : i32
    %10 = arith.extui %9 : i1 to i32
    %c0_i32_9 = arith.constant 0 : i32
    %11 = arith.cmpi ne, %10, %c0_i32_9 : i32
    scf.if %11 {
      %c0_10 = arith.constant 0 : index
      %c0_11 = arith.constant 0 : index
      %12 = vector.load %arg7[%c0_10, %c0_11] : memref<32x256xf32, #tpu.memory_space<vmem>>, vector<32x256xf32>
      %c0_12 = arith.constant 0 : index
      %c0_13 = arith.constant 0 : index
      %13 = vector.load %arg5[%c0_12, %c0_13] : memref<1x256xf32, #tpu.memory_space<vmem>>, vector<1x256xf32>
      %14 = vector.broadcast %13 : vector<1x256xf32> to vector<32x256xf32>
      %15 = arith.addf %12, %14 : vector<32x256xf32>
      %16 = arith.truncf %15 : vector<32x256xf32> to vector<32x256xbf16>
      %c0_14 = arith.constant 0 : index
      %c0_15 = arith.constant 0 : index
      %17 = vector.load %arg6[%c0_14, %c0_15] : memref<32x256xbf16, #tpu.memory_space<vmem>>, vector<32x256xbf16>
      tpu.vector_store %arg6[%c0_14, %c0_15], %16 {strides = array<i32>} : memref<32x256xbf16, #tpu.memory_space<vmem>>, vector<32x256xbf16>,
    } else {
    }
    return
  }
  func.func @transform_0(%arg0: i32, %arg1: i32, %arg2: i32) -> (i32, i32) {
    %c0_i32 = arith.constant 0 : i32
    return %arg0, %arg2 : i32, i32
  }
  func.func @transform_1(%arg0: i32, %arg1: i32, %arg2: i32) -> (i32, i32) {
    %c0_i32 = arith.constant 0 : i32
    return %arg2, %arg1 : i32, i32
  }
  func.func @transform_2(%arg0: i32, %arg1: i32, %arg2: i32) -> (i32, i32) {
    %c0_i32 = arith.constant 0 : i32
    %c0_i32_0 = arith.constant 0 : i32
    return %c0_i32, %arg1 : i32, i32
  }
  func.func @transform_3(%arg0: i32, %arg1: i32, %arg2: i32) -> (i32, i32) {
    %c0_i32 = arith.constant 0 : i32
    return %arg0, %arg1 : i32, i32
  }
}

module attributes {stable_mosaic.version = 11 : i64} {
  func.func @_linear_kernel(%arg0: i32, %arg1: i32, %arg2: i32, %arg3: memref<24x128xbf16, #tpu.memory_space<vmem>>, %arg4: memref<128x384xbf16, #tpu.memory_space<vmem>>, %arg5: memref<1x384xf32, #tpu.memory_space<vmem>>, %arg6: memref<24x384xbf16, #tpu.memory_space<vmem>>, %arg7: memref<24x384xf32, #tpu.memory_space<vmem>>) attributes {dimension_semantics = [#tpu.dimension_semantics<parallel>, #tpu.dimension_semantics<parallel>, #tpu.dimension_semantics<arbitrary>], iteration_bounds = array<i64: 1, 1, 1>, scalar_prefetch = 0 : i64, scratch_operands = 1 : i64, tpu.core_type = #tpu.core_type<tc>, window_params = [{transform_indices = @transform_0, window_bounds = array<i64: 24, 128>}, {transform_indices = @transform_1, window_bounds = array<i64: 128, 384>}, {transform_indices = @transform_2, window_bounds = array<i64: 1, 384>}, {transform_indices = @transform_3, window_bounds = array<i64: 24, 384>}]} {
    %c0_i32 = arith.constant 0 : i32
    %0 = arith.cmpi eq, %arg2, %c0_i32 : i32
    %1 = arith.extui %0 : i1 to i32
    %c0_i32_0 = arith.constant 0 : i32
    %2 = arith.cmpi ne, %1, %c0_i32_0 : i32
    scf.if %2 {
      %cst_10 = arith.constant 0.000000e+00 : f32
      %12 = vector.broadcast %cst_10 : f32 to vector<24x384xf32>
      %c0_11 = arith.constant 0 : index
      %c0_12 = arith.constant 0 : index
      %13 = vector.load %arg7[%c0_11, %c0_12] : memref<24x384xf32, #tpu.memory_space<vmem>>, vector<24x384xf32>
      tpu.vector_store %arg7[%c0_11, %c0_12], %12 {strides = array<i32>} : memref<24x384xf32, #tpu.memory_space<vmem>>, vector<24x384xf32>,
    } else {
    }
    %c0 = arith.constant 0 : index
    %c0_1 = arith.constant 0 : index
    %3 = vector.load %arg7[%c0, %c0_1] : memref<24x384xf32, #tpu.memory_space<vmem>>, vector<24x384xf32>
    %c0_2 = arith.constant 0 : index
    %c0_3 = arith.constant 0 : index
    %4 = vector.load %arg3[%c0_2, %c0_3] : memref<24x128xbf16, #tpu.memory_space<vmem>>, vector<24x128xbf16>
    %c0_4 = arith.constant 0 : index
    %c0_5 = arith.constant 0 : index
    %5 = vector.load %arg4[%c0_4, %c0_5] : memref<128x384xbf16, #tpu.memory_space<vmem>>, vector<128x384xbf16>
    %cst = arith.constant dense<0.000000e+00> : vector<24x384xf32>
    %6 = tpu.matmul %4, %5, %cst {dimension_numbers = #tpu.dot_dimension_numbers<[1], [0], [0], [1], [0, 0, 1, 1], [], []>} : vector<24x128xbf16>, vector<128x384xbf16>, vector<24x384xf32> -> vector<24x384xf32>
    %7 = arith.addf %3, %6 : vector<24x384xf32>
    %c0_6 = arith.constant 0 : index
    %c0_7 = arith.constant 0 : index
    %8 = vector.load %arg7[%c0_6, %c0_7] : memref<24x384xf32, #tpu.memory_space<vmem>>, vector<24x384xf32>
    tpu.vector_store %arg7[%c0_6, %c0_7], %7 {strides = array<i32>} : memref<24x384xf32, #tpu.memory_space<vmem>>, vector<24x384xf32>,
    %c0_i32_8 = arith.constant 0 : i32
    %9 = arith.cmpi eq, %arg2, %c0_i32_8 : i32
    %10 = arith.extui %9 : i1 to i32
    %c0_i32_9 = arith.constant 0 : i32
    %11 = arith.cmpi ne, %10, %c0_i32_9 : i32
    scf.if %11 {
      %c0_10 = arith.constant 0 : index
      %c0_11 = arith.constant 0 : index
      %12 = vector.load %arg7[%c0_10, %c0_11] : memref<24x384xf32, #tpu.memory_space<vmem>>, vector<24x384xf32>
      %c0_12 = arith.constant 0 : index
      %c0_13 = arith.constant 0 : index
      %13 = vector.load %arg5[%c0_12, %c0_13] : memref<1x384xf32, #tpu.memory_space<vmem>>, vector<1x384xf32>
      %14 = vector.broadcast %13 : vector<1x384xf32> to vector<24x384xf32>
      %15 = arith.addf %12, %14 : vector<24x384xf32>
      %16 = arith.truncf %15 : vector<24x384xf32> to vector<24x384xbf16>
      %c0_14 = arith.constant 0 : index
      %c0_15 = arith.constant 0 : index
      %17 = vector.load %arg6[%c0_14, %c0_15] : memref<24x384xbf16, #tpu.memory_space<vmem>>, vector<24x384xbf16>
      tpu.vector_store %arg6[%c0_14, %c0_15], %16 {strides = array<i32>} : memref<24x384xbf16, #tpu.memory_space<vmem>>, vector<24x384xbf16>,
    } else {
    }
    return
  }
  func.func @transform_0(%arg0: i32, %arg1: i32, %arg2: i32) -> (i32, i32) {
    %c0_i32 = arith.constant 0 : i32
    return %arg0, %arg2 : i32, i32
  }
  func.func @transform_1(%arg0: i32, %arg1: i32, %arg2: i32) -> (i32, i32) {
    %c0_i32 = arith.constant 0 : i32
    return %arg2, %arg1 : i32, i32
  }
  func.func @transform_2(%arg0: i32, %arg1: i32, %arg2: i32) -> (i32, i32) {
    %c0_i32 = arith.constant 0 : i32
    %c0_i32_0 = arith.constant 0 : i32
    return %c0_i32, %arg1 : i32, i32
  }
  func.func @transform_3(%arg0: i32, %arg1: i32, %arg2: i32) -> (i32, i32) {
    %c0_i32 = arith.constant 0 : i32
    return %arg0, %arg1 : i32, i32
  }
}

module attributes {stable_mosaic.version = 11 : i64} {
  func.func @_flash_mha_kernel(%arg0: i32, %arg1: i32, %arg2: i32, %arg3: memref<1x12x128xbf16, #tpu.memory_space<vmem>>, %arg4: memref<1x12x128xbf16, #tpu.memory_space<vmem>>, %arg5: memref<1x12x128xbf16, #tpu.memory_space<vmem>>, %arg6: memref<1x1x12xi32, #tpu.memory_space<vmem>>, %arg7: memref<1x12x128xbf16, #tpu.memory_space<vmem>>, %arg8: memref<4x12x1xf32, #tpu.memory_space<vmem>>, %arg9: memref<4x12x1xf32, #tpu.memory_space<vmem>>, %arg10: memref<4x12x32xf32, #tpu.memory_space<vmem>>) attributes {dimension_semantics = [#tpu.dimension_semantics<parallel>, #tpu.dimension_semantics<parallel>, #tpu.dimension_semantics<arbitrary>], iteration_bounds = array<i64: 2, 1, 1>, scalar_prefetch = 0 : i64, scratch_operands = 3 : i64, tpu.core_type = #tpu.core_type<tc>, window_params = [{transform_indices = @transform_0, window_bounds = array<i64: 1, 12, 128>}, {transform_indices = @transform_1, window_bounds = array<i64: 1, 12, 128>}, {transform_indices = @transform_2, window_bounds = array<i64: 1, 12, 128>}, {transform_indices = @transform_3, window_bounds = array<i64: 1, 1, 12>}, {transform_indices = @transform_4, window_bounds = array<i64: 1, 12, 128>}]} {
    %c0_i32 = arith.constant 0 : i32
    %0 = arith.cmpi eq, %arg2, %c0_i32 : i32
    %1 = arith.extui %0 : i1 to i32
    %c0_i32_0 = arith.constant 0 : i32
    %2 = arith.cmpi ne, %1, %c0_i32_0 : i32
    scf.if %2 {
      %cst = arith.constant 0xFF800000 : f32
      %13 = vector.broadcast %cst : f32 to vector<4x12x1xf32>
      %c0 = arith.constant 0 : index
      %c0_6 = arith.constant 0 : index
      %c0_7 = arith.constant 0 : index
      %14 = vector.load %arg8[%c0, %c0_6, %c0_7] : memref<4x12x1xf32, #tpu.memory_space<vmem>>, vector<4x12x1xf32>
      tpu.vector_store %arg8[%c0, %c0_6, %c0_7], %13 {strides = array<i32>} : memref<4x12x1xf32, #tpu.memory_space<vmem>>, vector<4x12x1xf32>,
      %cst_8 = arith.constant 0.000000e+00 : f32
      %15 = vector.broadcast %cst_8 : f32 to vector<4x12x1xf32>
      %c0_9 = arith.constant 0 : index
      %c0_10 = arith.constant 0 : index
      %c0_11 = arith.constant 0 : index
      %16 = vector.load %arg9[%c0_9, %c0_10, %c0_11] : memref<4x12x1xf32, #tpu.memory_space<vmem>>, vector<4x12x1xf32>
      tpu.vector_store %arg9[%c0_9, %c0_10, %c0_11], %15 {strides = array<i32>} : memref<4x12x1xf32, #tpu.memory_space<vmem>>, vector<4x12x1xf32>,
      %cst_12 = arith.constant 0.000000e+00 : f32
      %17 = vector.broadcast %cst_12 : f32 to vector<4x12x32xf32>
      %c0_13 = arith.constant 0 : index
      %c0_14 = arith.constant 0 : index
      %c0_15 = arith.constant 0 : index
      %18 = vector.load %arg10[%c0_13, %c0_14, %c0_15] : memref<4x12x32xf32, #tpu.memory_space<vmem>>, vector<4x12x32xf32>
      tpu.vector_store %arg10[%c0_13, %c0_14, %c0_15], %17 {strides = array<i32>} : memref<4x12x32xf32, #tpu.memory_space<vmem>>, vector<4x12x32xf32>,
    } else {
    }
    %c12_i32 = arith.constant 12 : i32
    %3 = arith.muli %arg2, %c12_i32 : i32
    %c12_i32_1 = arith.constant 12 : i32
    %4 = arith.muli %arg1, %c12_i32_1 : i32
    %c12_i32_2 = arith.constant 12 : i32
    %5 = arith.addi %4, %c12_i32_2 : i32
    %c1_i32 = arith.constant 1 : i32
    %6 = arith.subi %5, %c1_i32 : i32
    %7 = arith.cmpi sle, %3, %6 : i32
    %8 = arith.extui %7 : i1 to i32
    %c0_i32_3 = arith.constant 0 : i32
    %9 = arith.cmpi ne, %8, %c0_i32_3 : i32
    scf.if %9 {
      %c0 = arith.constant 0 : index
      %c0_6 = arith.constant 0 : index
      %c0_7 = arith.constant 0 : index
      %13 = vector.load %arg3[%c0, %c0_6, %c0_7] : memref<1x12x128xbf16, #tpu.memory_space<vmem>>, vector<1x12x128xbf16>
      %14 = vector.shape_cast %13 : vector<1x12x128xbf16> to vector<12x128xbf16>
      %c0_8 = arith.constant 0 : index
      %c0_9 = arith.constant 0 : index
      %c0_10 = arith.constant 0 : index
      %15 = vector.load %arg4[%c0_8, %c0_9, %c0_10] : memref<1x12x128xbf16, #tpu.memory_space<vmem>>, vector<1x12x128xbf16>
      %16 = vector.shape_cast %15 : vector<1x12x128xbf16> to vector<12x128xbf16>
      %c0_11 = arith.constant 0 : index
      %c0_12 = arith.constant 0 : index
      %c0_13 = arith.constant 0 : index
      %17 = vector.load %arg5[%c0_11, %c0_12, %c0_13] : memref<1x12x128xbf16, #tpu.memory_space<vmem>>, vector<1x12x128xbf16>
      %18 = vector.shape_cast %17 : vector<1x12x128xbf16> to vector<12x128xbf16>
      %c0_14 = arith.constant 0 : index
      %c0_15 = arith.constant 0 : index
      %c0_16 = arith.constant 0 : index
      %19 = vector.load %arg6[%c0_14, %c0_15, %c0_16] : memref<1x1x12xi32, #tpu.memory_space<vmem>>, vector<1x1x12xi32>
      %20 = vector.shape_cast %19 : vector<1x1x12xi32> to vector<1x12xi32>
      %c0_i32_17 = arith.constant 0 : i32
      %21 = vector.broadcast %c0_i32_17 : i32 to vector<1x12xi32>
      %22 = arith.cmpi ne, %20, %21 : vector<1x12xi32>
      %c12_i32_18 = arith.constant 12 : i32
      %23 = arith.muli %arg1, %c12_i32_18 : i32
      %24 = tpu.iota {dimensions = array<i32: 0>} : vector<12x12xi32>
      %25 = vector.broadcast %23 : i32 to vector<12x12xi32>
      %26 = arith.addi %25, %24 : vector<12x12xi32>
      %c12_i32_19 = arith.constant 12 : i32
      %27 = arith.muli %arg2, %c12_i32_19 : i32
      %28 = tpu.iota {dimensions = array<i32: 1>} : vector<12x12xi32>
      %29 = vector.broadcast %27 : i32 to vector<12x12xi32>
      %30 = arith.addi %29, %28 : vector<12x12xi32>
      %31 = arith.cmpi sle, %30, %26 : vector<12x12xi32>
      %32 = vector.broadcast %22 : vector<1x12xi1> to vector<12x12xi1>
      %33 = arith.andi %32, %31 : vector<12x12xi1>
      %34 = vector.extract_strided_slice %14 {offsets = [0, 0], sizes = [12, 32], strides = [1, 1]} : vector<12x128xbf16> to vector<12x32xbf16>
      %35 = vector.extract_strided_slice %16 {offsets = [0, 0], sizes = [12, 32], strides = [1, 1]} : vector<12x128xbf16> to vector<12x32xbf16>
      %36 = vector.extract_strided_slice %18 {offsets = [0, 0], sizes = [12, 32], strides = [1, 1]} : vector<12x128xbf16> to vector<12x32xbf16>
      %cst = arith.constant dense<0.000000e+00> : vector<12x12xf32>
      %37 = tpu.matmul %34, %35, %cst {dimension_numbers = #tpu.dot_dimension_numbers<[1], [1], [0], [0], [0, 0, 1, 0], [], []>} : vector<12x32xbf16>, vector<12x32xbf16>, vector<12x12xf32> -> vector<12x12xf32>
      %cst_20 = arith.constant -1.000000e+30 : f32
      %38 = vector.broadcast %cst_20 : f32 to vector<12x12xf32>
      %39 = arith.select %33, %37, %38 : vector<12x12xi1>, vector<12x12xf32>
      %c0_21 = arith.constant 0 : index
      %c0_22 = arith.constant 0 : index
      %c0_23 = arith.constant 0 : index
      %40 = vector.load %arg8[%c0_21, %c0_22, %c0_23] : memref<4x12x1xf32, #tpu.memory_space<vmem>>, vector<1x12x1xf32>
      %41 = vector.shape_cast %40 : vector<1x12x1xf32> to vector<12x1xf32>
      %cst_24 = arith.constant dense<0xFF800000> : vector<12xf32>
      %42 = vector.multi_reduction <maximumf>, %39, %cst_24 [1] : vector<12x12xf32> to vector<12xf32>
      %43 = vector.shape_cast %42 : vector<12xf32> to vector<12x1xf32>
      %44 = arith.maximumf %41, %43 : vector<12x1xf32>
      %45 = arith.subf %41, %44 : vector<12x1xf32>
      %46 = math.exp %45 : vector<12x1xf32>
      %47 = vector.broadcast %44 : vector<12x1xf32> to vector<12x12xf32>
      %48 = arith.subf %39, %47 : vector<12x12xf32>
      %49 = math.exp %48 : vector<12x12xf32>
      %c0_25 = arith.constant 0 : index
      %c0_26 = arith.constant 0 : index
      %c0_27 = arith.constant 0 : index
      %50 = vector.load %arg9[%c0_25, %c0_26, %c0_27] : memref<4x12x1xf32, #tpu.memory_space<vmem>>, vector<1x12x1xf32>
      %51 = vector.shape_cast %50 : vector<1x12x1xf32> to vector<12x1xf32>
      %52 = arith.mulf %46, %51 : vector<12x1xf32>
      %cst_28 = arith.constant dense<0.000000e+00> : vector<12xf32>
      %53 = vector.multi_reduction <add>, %49, %cst_28 [1] : vector<12x12xf32> to vector<12xf32>
      %54 = vector.shape_cast %53 : vector<12xf32> to vector<12x1xf32>
      %55 = arith.addf %52, %54 : vector<12x1xf32>
      %c0_29 = arith.constant 0 : index
      %c0_30 = arith.constant 0 : index
      %c0_31 = arith.constant 0 : index
      %56 = vector.load %arg9[%c0_29, %c0_30, %c0_31] : memref<4x12x1xf32, #tpu.memory_space<vmem>>, vector<1x12x1xf32>
      %57 = vector.shape_cast %56 : vector<1x12x1xf32> to vector<12x1xf32>
      %58 = vector.shape_cast %55 : vector<12x1xf32> to vector<1x12x1xf32>
      tpu.vector_store %arg9[%c0_29, %c0_30, %c0_31], %58 {strides = array<i32>} : memref<4x12x1xf32, #tpu.memory_space<vmem>>, vector<1x12x1xf32>,
      %c0_32 = arith.constant 0 : index
      %c0_33 = arith.constant 0 : index
      %c0_34 = arith.constant 0 : index
      %59 = vector.load %arg10[%c0_32, %c0_33, %c0_34] : memref<4x12x32xf32, #tpu.memory_space<vmem>>, vector<1x12x32xf32>
      %60 = vector.shape_cast %59 : vector<1x12x32xf32> to vector<12x32xf32>
      %61 = vector.broadcast %46 : vector<12x1xf32> to vector<12x32xf32>
      %62 = arith.mulf %61, %60 : vector<12x32xf32>
      %63 = arith.truncf %49 : vector<12x12xf32> to vector<12x12xbf16>
      %cst_35 = arith.constant dense<0.000000e+00> : vector<12x32xf32>
      %64 = tpu.matmul %63, %36, %cst_35 {dimension_numbers = #tpu.dot_dimension_numbers<[1], [0], [0], [1], [0, 0, 1, 1], [], []>} : vector<12x12xbf16>, vector<12x32xbf16>, vector<12x32xf32> -> vector<12x32xf32>
      %65 = arith.addf %62, %64 : vector<12x32xf32>
      %c0_36 = arith.constant 0 : index
      %c0_37 = arith.constant 0 : index
      %c0_38 = arith.constant 0 : index
      %66 = vector.load %arg10[%c0_36, %c0_37, %c0_38] : memref<4x12x32xf32, #tpu.memory_space<vmem>>, vector<1x12x32xf32>
      %67 = vector.shape_cast %66 : vector<1x12x32xf32> to vector<12x32xf32>
      %68 = vector.shape_cast %65 : vector<12x32xf32> to vector<1x12x32xf32>
      tpu.vector_store %arg10[%c0_36, %c0_37, %c0_38], %68 {strides = array<i32>} : memref<4x12x32xf32, #tpu.memory_space<vmem>>, vector<1x12x32xf32>,
      %c0_39 = arith.constant 0 : index
      %c0_40 = arith.constant 0 : index
      %c0_41 = arith.constant 0 : index
      %69 = vector.load %arg8[%c0_39, %c0_40, %c0_41] : memref<4x12x1xf32, #tpu.memory_space<vmem>>, vector<1x12x1xf32>
      %70 = vector.shape_cast %69 : vector<1x12x1xf32> to vector<12x1xf32>
      %71 = vector.shape_cast %44 : vector<12x1xf32> to vector<1x12x1xf32>
      tpu.vector_store %arg8[%c0_39, %c0_40, %c0_41], %71 {strides = array<i32>} : memref<4x12x1xf32, #tpu.memory_space<vmem>>, vector<1x12x1xf32>,
      %72 = vector.extract_strided_slice %14 {offsets = [0, 32], sizes = [12, 32], strides = [1, 1]} : vector<12x128xbf16> to vector<12x32xbf16>
      %73 = vector.extract_strided_slice %16 {offsets = [0, 32], sizes = [12, 32], strides = [1, 1]} : vector<12x128xbf16> to vector<12x32xbf16>
      %74 = vector.extract_strided_slice %18 {offsets = [0, 32], sizes = [12, 32], strides = [1, 1]} : vector<12x128xbf16> to vector<12x32xbf16>
      %cst_42 = arith.constant dense<0.000000e+00> : vector<12x12xf32>
      %75 = tpu.matmul %72, %73, %cst_42 {dimension_numbers = #tpu.dot_dimension_numbers<[1], [1], [0], [0], [0, 0, 1, 0], [], []>} : vector<12x32xbf16>, vector<12x32xbf16>, vector<12x12xf32> -> vector<12x12xf32>
      %cst_43 = arith.constant -1.000000e+30 : f32
      %76 = vector.broadcast %cst_43 : f32 to vector<12x12xf32>
      %77 = arith.select %33, %75, %76 : vector<12x12xi1>, vector<12x12xf32>
      %c1 = arith.constant 1 : index
      %c0_44 = arith.constant 0 : index
      %c0_45 = arith.constant 0 : index
      %78 = vector.load %arg8[%c1, %c0_44, %c0_45] : memref<4x12x1xf32, #tpu.memory_space<vmem>>, vector<1x12x1xf32>
      %79 = vector.shape_cast %78 : vector<1x12x1xf32> to vector<12x1xf32>
      %cst_46 = arith.constant dense<0xFF800000> : vector<12xf32>
      %80 = vector.multi_reduction <maximumf>, %77, %cst_46 [1] : vector<12x12xf32> to vector<12xf32>
      %81 = vector.shape_cast %80 : vector<12xf32> to vector<12x1xf32>
      %82 = arith.maximumf %79, %81 : vector<12x1xf32>
      %83 = arith.subf %79, %82 : vector<12x1xf32>
      %84 = math.exp %83 : vector<12x1xf32>
      %85 = vector.broadcast %82 : vector<12x1xf32> to vector<12x12xf32>
      %86 = arith.subf %77, %85 : vector<12x12xf32>
      %87 = math.exp %86 : vector<12x12xf32>
      %c1_47 = arith.constant 1 : index
      %c0_48 = arith.constant 0 : index
      %c0_49 = arith.constant 0 : index
      %88 = vector.load %arg9[%c1_47, %c0_48, %c0_49] : memref<4x12x1xf32, #tpu.memory_space<vmem>>, vector<1x12x1xf32>
      %89 = vector.shape_cast %88 : vector<1x12x1xf32> to vector<12x1xf32>
      %90 = arith.mulf %84, %89 : vector<12x1xf32>
      %cst_50 = arith.constant dense<0.000000e+00> : vector<12xf32>
      %91 = vector.multi_reduction <add>, %87, %cst_50 [1] : vector<12x12xf32> to vector<12xf32>
      %92 = vector.shape_cast %91 : vector<12xf32> to vector<12x1xf32>
      %93 = arith.addf %90, %92 : vector<12x1xf32>
      %c1_51 = arith.constant 1 : index
      %c0_52 = arith.constant 0 : index
      %c0_53 = arith.constant 0 : index
      %94 = vector.load %arg9[%c1_51, %c0_52, %c0_53] : memref<4x12x1xf32, #tpu.memory_space<vmem>>, vector<1x12x1xf32>
      %95 = vector.shape_cast %94 : vector<1x12x1xf32> to vector<12x1xf32>
      %96 = vector.shape_cast %93 : vector<12x1xf32> to vector<1x12x1xf32>
      tpu.vector_store %arg9[%c1_51, %c0_52, %c0_53], %96 {strides = array<i32>} : memref<4x12x1xf32, #tpu.memory_space<vmem>>, vector<1x12x1xf32>,
      %c1_54 = arith.constant 1 : index
      %c0_55 = arith.constant 0 : index
      %c0_56 = arith.constant 0 : index
      %97 = vector.load %arg10[%c1_54, %c0_55, %c0_56] : memref<4x12x32xf32, #tpu.memory_space<vmem>>, vector<1x12x32xf32>
      %98 = vector.shape_cast %97 : vector<1x12x32xf32> to vector<12x32xf32>
      %99 = vector.broadcast %84 : vector<12x1xf32> to vector<12x32xf32>
      %100 = arith.mulf %99, %98 : vector<12x32xf32>
      %101 = arith.truncf %87 : vector<12x12xf32> to vector<12x12xbf16>
      %cst_57 = arith.constant dense<0.000000e+00> : vector<12x32xf32>
      %102 = tpu.matmul %101, %74, %cst_57 {dimension_numbers = #tpu.dot_dimension_numbers<[1], [0], [0], [1], [0, 0, 1, 1], [], []>} : vector<12x12xbf16>, vector<12x32xbf16>, vector<12x32xf32> -> vector<12x32xf32>
      %103 = arith.addf %100, %102 : vector<12x32xf32>
      %c1_58 = arith.constant 1 : index
      %c0_59 = arith.constant 0 : index
      %c0_60 = arith.constant 0 : index
      %104 = vector.load %arg10[%c1_58, %c0_59, %c0_60] : memref<4x12x32xf32, #tpu.memory_space<vmem>>, vector<1x12x32xf32>
      %105 = vector.shape_cast %104 : vector<1x12x32xf32> to vector<12x32xf32>
      %106 = vector.shape_cast %103 : vector<12x32xf32> to vector<1x12x32xf32>
      tpu.vector_store %arg10[%c1_58, %c0_59, %c0_60], %106 {strides = array<i32>} : memref<4x12x32xf32, #tpu.memory_space<vmem>>, vector<1x12x32xf32>,
      %c1_61 = arith.constant 1 : index
      %c0_62 = arith.constant 0 : index
      %c0_63 = arith.constant 0 : index
      %107 = vector.load %arg8[%c1_61, %c0_62, %c0_63] : memref<4x12x1xf32, #tpu.memory_space<vmem>>, vector<1x12x1xf32>
      %108 = vector.shape_cast %107 : vector<1x12x1xf32> to vector<12x1xf32>
      %109 = vector.shape_cast %82 : vector<12x1xf32> to vector<1x12x1xf32>
      tpu.vector_store %arg8[%c1_61, %c0_62, %c0_63], %109 {strides = array<i32>} : memref<4x12x1xf32, #tpu.memory_space<vmem>>, vector<1x12x1xf32>,
      %110 = vector.extract_strided_slice %14 {offsets = [0, 64], sizes = [12, 32], strides = [1, 1]} : vector<12x128xbf16> to vector<12x32xbf16>
      %111 = vector.extract_strided_slice %16 {offsets = [0, 64], sizes = [12, 32], strides = [1, 1]} : vector<12x128xbf16> to vector<12x32xbf16>
      %112 = vector.extract_strided_slice %18 {offsets = [0, 64], sizes = [12, 32], strides = [1, 1]} : vector<12x128xbf16> to vector<12x32xbf16>
      %cst_64 = arith.constant dense<0.000000e+00> : vector<12x12xf32>
      %113 = tpu.matmul %110, %111, %cst_64 {dimension_numbers = #tpu.dot_dimension_numbers<[1], [1], [0], [0], [0, 0, 1, 0], [], []>} : vector<12x32xbf16>, vector<12x32xbf16>, vector<12x12xf32> -> vector<12x12xf32>
      %cst_65 = arith.constant -1.000000e+30 : f32
      %114 = vector.broadcast %cst_65 : f32 to vector<12x12xf32>
      %115 = arith.select %33, %113, %114 : vector<12x12xi1>, vector<12x12xf32>
      %c2 = arith.constant 2 : index
      %c0_66 = arith.constant 0 : index
      %c0_67 = arith.constant 0 : index
      %116 = vector.load %arg8[%c2, %c0_66, %c0_67] : memref<4x12x1xf32, #tpu.memory_space<vmem>>, vector<1x12x1xf32>
      %117 = vector.shape_cast %116 : vector<1x12x1xf32> to vector<12x1xf32>
      %cst_68 = arith.constant dense<0xFF800000> : vector<12xf32>
      %118 = vector.multi_reduction <maximumf>, %115, %cst_68 [1] : vector<12x12xf32> to vector<12xf32>
      %119 = vector.shape_cast %118 : vector<12xf32> to vector<12x1xf32>
      %120 = arith.maximumf %117, %119 : vector<12x1xf32>
      %121 = arith.subf %117, %120 : vector<12x1xf32>
      %122 = math.exp %121 : vector<12x1xf32>
      %123 = vector.broadcast %120 : vector<12x1xf32> to vector<12x12xf32>
      %124 = arith.subf %115, %123 : vector<12x12xf32>
      %125 = math.exp %124 : vector<12x12xf32>
      %c2_69 = arith.constant 2 : index
      %c0_70 = arith.constant 0 : index
      %c0_71 = arith.constant 0 : index
      %126 = vector.load %arg9[%c2_69, %c0_70, %c0_71] : memref<4x12x1xf32, #tpu.memory_space<vmem>>, vector<1x12x1xf32>
      %127 = vector.shape_cast %126 : vector<1x12x1xf32> to vector<12x1xf32>
      %128 = arith.mulf %122, %127 : vector<12x1xf32>
      %cst_72 = arith.constant dense<0.000000e+00> : vector<12xf32>
      %129 = vector.multi_reduction <add>, %125, %cst_72 [1] : vector<12x12xf32> to vector<12xf32>
      %130 = vector.shape_cast %129 : vector<12xf32> to vector<12x1xf32>
      %131 = arith.addf %128, %130 : vector<12x1xf32>
      %c2_73 = arith.constant 2 : index
      %c0_74 = arith.constant 0 : index
      %c0_75 = arith.constant 0 : index
      %132 = vector.load %arg9[%c2_73, %c0_74, %c0_75] : memref<4x12x1xf32, #tpu.memory_space<vmem>>, vector<1x12x1xf32>
      %133 = vector.shape_cast %132 : vector<1x12x1xf32> to vector<12x1xf32>
      %134 = vector.shape_cast %131 : vector<12x1xf32> to vector<1x12x1xf32>
      tpu.vector_store %arg9[%c2_73, %c0_74, %c0_75], %134 {strides = array<i32>} : memref<4x12x1xf32, #tpu.memory_space<vmem>>, vector<1x12x1xf32>,
      %c2_76 = arith.constant 2 : index
      %c0_77 = arith.constant 0 : index
      %c0_78 = arith.constant 0 : index
      %135 = vector.load %arg10[%c2_76, %c0_77, %c0_78] : memref<4x12x32xf32, #tpu.memory_space<vmem>>, vector<1x12x32xf32>
      %136 = vector.shape_cast %135 : vector<1x12x32xf32> to vector<12x32xf32>
      %137 = vector.broadcast %122 : vector<12x1xf32> to vector<12x32xf32>
      %138 = arith.mulf %137, %136 : vector<12x32xf32>
      %139 = arith.truncf %125 : vector<12x12xf32> to vector<12x12xbf16>
      %cst_79 = arith.constant dense<0.000000e+00> : vector<12x32xf32>
      %140 = tpu.matmul %139, %112, %cst_79 {dimension_numbers = #tpu.dot_dimension_numbers<[1], [0], [0], [1], [0, 0, 1, 1], [], []>} : vector<12x12xbf16>, vector<12x32xbf16>, vector<12x32xf32> -> vector<12x32xf32>
      %141 = arith.addf %138, %140 : vector<12x32xf32>
      %c2_80 = arith.constant 2 : index
      %c0_81 = arith.constant 0 : index
      %c0_82 = arith.constant 0 : index
      %142 = vector.load %arg10[%c2_80, %c0_81, %c0_82] : memref<4x12x32xf32, #tpu.memory_space<vmem>>, vector<1x12x32xf32>
      %143 = vector.shape_cast %142 : vector<1x12x32xf32> to vector<12x32xf32>
      %144 = vector.shape_cast %141 : vector<12x32xf32> to vector<1x12x32xf32>
      tpu.vector_store %arg10[%c2_80, %c0_81, %c0_82], %144 {strides = array<i32>} : memref<4x12x32xf32, #tpu.memory_space<vmem>>, vector<1x12x32xf32>,
      %c2_83 = arith.constant 2 : index
      %c0_84 = arith.constant 0 : index
      %c0_85 = arith.constant 0 : index
      %145 = vector.load %arg8[%c2_83, %c0_84, %c0_85] : memref<4x12x1xf32, #tpu.memory_space<vmem>>, vector<1x12x1xf32>
      %146 = vector.shape_cast %145 : vector<1x12x1xf32> to vector<12x1xf32>
      %147 = vector.shape_cast %120 : vector<12x1xf32> to vector<1x12x1xf32>
      tpu.vector_store %arg8[%c2_83, %c0_84, %c0_85], %147 {strides = array<i32>} : memref<4x12x1xf32, #tpu.memory_space<vmem>>, vector<1x12x1xf32>,
      %148 = vector.extract_strided_slice %14 {offsets = [0, 96], sizes = [12, 32], strides = [1, 1]} : vector<12x128xbf16> to vector<12x32xbf16>
      %149 = vector.extract_strided_slice %16 {offsets = [0, 96], sizes = [12, 32], strides = [1, 1]} : vector<12x128xbf16> to vector<12x32xbf16>
      %150 = vector.extract_strided_slice %18 {offsets = [0, 96], sizes = [12, 32], strides = [1, 1]} : vector<12x128xbf16> to vector<12x32xbf16>
      %cst_86 = arith.constant dense<0.000000e+00> : vector<12x12xf32>
      %151 = tpu.matmul %148, %149, %cst_86 {dimension_numbers = #tpu.dot_dimension_numbers<[1], [1], [0], [0], [0, 0, 1, 0], [], []>} : vector<12x32xbf16>, vector<12x32xbf16>, vector<12x12xf32> -> vector<12x12xf32>
      %cst_87 = arith.constant -1.000000e+30 : f32
      %152 = vector.broadcast %cst_87 : f32 to vector<12x12xf32>
      %153 = arith.select %33, %151, %152 : vector<12x12xi1>, vector<12x12xf32>
      %c3 = arith.constant 3 : index
      %c0_88 = arith.constant 0 : index
      %c0_89 = arith.constant 0 : index
      %154 = vector.load %arg8[%c3, %c0_88, %c0_89] : memref<4x12x1xf32, #tpu.memory_space<vmem>>, vector<1x12x1xf32>
      %155 = vector.shape_cast %154 : vector<1x12x1xf32> to vector<12x1xf32>
      %cst_90 = arith.constant dense<0xFF800000> : vector<12xf32>
      %156 = vector.multi_reduction <maximumf>, %153, %cst_90 [1] : vector<12x12xf32> to vector<12xf32>
      %157 = vector.shape_cast %156 : vector<12xf32> to vector<12x1xf32>
      %158 = arith.maximumf %155, %157 : vector<12x1xf32>
      %159 = arith.subf %155, %158 : vector<12x1xf32>
      %160 = math.exp %159 : vector<12x1xf32>
      %161 = vector.broadcast %158 : vector<12x1xf32> to vector<12x12xf32>
      %162 = arith.subf %153, %161 : vector<12x12xf32>
      %163 = math.exp %162 : vector<12x12xf32>
      %c3_91 = arith.constant 3 : index
      %c0_92 = arith.constant 0 : index
      %c0_93 = arith.constant 0 : index
      %164 = vector.load %arg9[%c3_91, %c0_92, %c0_93] : memref<4x12x1xf32, #tpu.memory_space<vmem>>, vector<1x12x1xf32>
      %165 = vector.shape_cast %164 : vector<1x12x1xf32> to vector<12x1xf32>
      %166 = arith.mulf %160, %165 : vector<12x1xf32>
      %cst_94 = arith.constant dense<0.000000e+00> : vector<12xf32>
      %167 = vector.multi_reduction <add>, %163, %cst_94 [1] : vector<12x12xf32> to vector<12xf32>
      %168 = vector.shape_cast %167 : vector<12xf32> to vector<12x1xf32>
      %169 = arith.addf %166, %168 : vector<12x1xf32>
      %c3_95 = arith.constant 3 : index
      %c0_96 = arith.constant 0 : index
      %c0_97 = arith.constant 0 : index
      %170 = vector.load %arg9[%c3_95, %c0_96, %c0_97] : memref<4x12x1xf32, #tpu.memory_space<vmem>>, vector<1x12x1xf32>
      %171 = vector.shape_cast %170 : vector<1x12x1xf32> to vector<12x1xf32>
      %172 = vector.shape_cast %169 : vector<12x1xf32> to vector<1x12x1xf32>
      tpu.vector_store %arg9[%c3_95, %c0_96, %c0_97], %172 {strides = array<i32>} : memref<4x12x1xf32, #tpu.memory_space<vmem>>, vector<1x12x1xf32>,
      %c3_98 = arith.constant 3 : index
      %c0_99 = arith.constant 0 : index
      %c0_100 = arith.constant 0 : index
      %173 = vector.load %arg10[%c3_98, %c0_99, %c0_100] : memref<4x12x32xf32, #tpu.memory_space<vmem>>, vector<1x12x32xf32>
      %174 = vector.shape_cast %173 : vector<1x12x32xf32> to vector<12x32xf32>
      %175 = vector.broadcast %160 : vector<12x1xf32> to vector<12x32xf32>
      %176 = arith.mulf %175, %174 : vector<12x32xf32>
      %177 = arith.truncf %163 : vector<12x12xf32> to vector<12x12xbf16>
      %cst_101 = arith.constant dense<0.000000e+00> : vector<12x32xf32>
      %178 = tpu.matmul %177, %150, %cst_101 {dimension_numbers = #tpu.dot_dimension_numbers<[1], [0], [0], [1], [0, 0, 1, 1], [], []>} : vector<12x12xbf16>, vector<12x32xbf16>, vector<12x32xf32> -> vector<12x32xf32>
      %179 = arith.addf %176, %178 : vector<12x32xf32>
      %c3_102 = arith.constant 3 : index
      %c0_103 = arith.constant 0 : index
      %c0_104 = arith.constant 0 : index
      %180 = vector.load %arg10[%c3_102, %c0_103, %c0_104] : memref<4x12x32xf32, #tpu.memory_space<vmem>>, vector<1x12x32xf32>
      %181 = vector.shape_cast %180 : vector<1x12x32xf32> to vector<12x32xf32>
      %182 = vector.shape_cast %179 : vector<12x32xf32> to vector<1x12x32xf32>
      tpu.vector_store %arg10[%c3_102, %c0_103, %c0_104], %182 {strides = array<i32>} : memref<4x12x32xf32, #tpu.memory_space<vmem>>, vector<1x12x32xf32>,
      %c3_105 = arith.constant 3 : index
      %c0_106 = arith.constant 0 : index
      %c0_107 = arith.constant 0 : index
      %183 = vector.load %arg8[%c3_105, %c0_106, %c0_107] : memref<4x12x1xf32, #tpu.memory_space<vmem>>, vector<1x12x1xf32>
      %184 = vector.shape_cast %183 : vector<1x12x1xf32> to vector<12x1xf32>
      %185 = vector.shape_cast %158 : vector<12x1xf32> to vector<1x12x1xf32>
      tpu.vector_store %arg8[%c3_105, %c0_106, %c0_107], %185 {strides = array<i32>} : memref<4x12x1xf32, #tpu.memory_space<vmem>>, vector<1x12x1xf32>,
    } else {
    }
    %c0_i32_4 = arith.constant 0 : i32
    %10 = arith.cmpi eq, %arg2, %c0_i32_4 : i32
    %11 = arith.extui %10 : i1 to i32
    %c0_i32_5 = arith.constant 0 : i32
    %12 = arith.cmpi ne, %11, %c0_i32_5 : i32
    scf.if %12 {
      %c0 = arith.constant 0 : index
      %c0_6 = arith.constant 0 : index
      %c0_7 = arith.constant 0 : index
      %13 = vector.load %arg10[%c0, %c0_6, %c0_7] : memref<4x12x32xf32, #tpu.memory_space<vmem>>, vector<1x12x32xf32>
      %14 = vector.shape_cast %13 : vector<1x12x32xf32> to vector<12x32xf32>
      %c0_8 = arith.constant 0 : index
      %c0_9 = arith.constant 0 : index
      %c0_10 = arith.constant 0 : index
      %15 = vector.load %arg9[%c0_8, %c0_9, %c0_10] : memref<4x12x1xf32, #tpu.memory_space<vmem>>, vector<1x12x1xf32>
      %16 = vector.shape_cast %15 : vector<1x12x1xf32> to vector<12x1xf32>
      %17 = tpu.reciprocal %16 {approx = true} : vector<12x1xf32> -> vector<12x1xf32>
      %18 = vector.broadcast %17 : vector<12x1xf32> to vector<12x32xf32>
      %19 = arith.mulf %14, %18 : vector<12x32xf32>
      %c1 = arith.constant 1 : index
      %c0_11 = arith.constant 0 : index
      %c0_12 = arith.constant 0 : index
      %20 = vector.load %arg10[%c1, %c0_11, %c0_12] : memref<4x12x32xf32, #tpu.memory_space<vmem>>, vector<1x12x32xf32>
      %21 = vector.shape_cast %20 : vector<1x12x32xf32> to vector<12x32xf32>
      %c1_13 = arith.constant 1 : index
      %c0_14 = arith.constant 0 : index
      %c0_15 = arith.constant 0 : index
      %22 = vector.load %arg9[%c1_13, %c0_14, %c0_15] : memref<4x12x1xf32, #tpu.memory_space<vmem>>, vector<1x12x1xf32>
      %23 = vector.shape_cast %22 : vector<1x12x1xf32> to vector<12x1xf32>
      %24 = tpu.reciprocal %23 {approx = true} : vector<12x1xf32> -> vector<12x1xf32>
      %25 = vector.broadcast %24 : vector<12x1xf32> to vector<12x32xf32>
      %26 = arith.mulf %21, %25 : vector<12x32xf32>
      %c2 = arith.constant 2 : index
      %c0_16 = arith.constant 0 : index
      %c0_17 = arith.constant 0 : index
      %27 = vector.load %arg10[%c2, %c0_16, %c0_17] : memref<4x12x32xf32, #tpu.memory_space<vmem>>, vector<1x12x32xf32>
      %28 = vector.shape_cast %27 : vector<1x12x32xf32> to vector<12x32xf32>
      %c2_18 = arith.constant 2 : index
      %c0_19 = arith.constant 0 : index
      %c0_20 = arith.constant 0 : index
      %29 = vector.load %arg9[%c2_18, %c0_19, %c0_20] : memref<4x12x1xf32, #tpu.memory_space<vmem>>, vector<1x12x1xf32>
      %30 = vector.shape_cast %29 : vector<1x12x1xf32> to vector<12x1xf32>
      %31 = tpu.reciprocal %30 {approx = true} : vector<12x1xf32> -> vector<12x1xf32>
      %32 = vector.broadcast %31 : vector<12x1xf32> to vector<12x32xf32>
      %33 = arith.mulf %28, %32 : vector<12x32xf32>
      %c3 = arith.constant 3 : index
      %c0_21 = arith.constant 0 : index
      %c0_22 = arith.constant 0 : index
      %34 = vector.load %arg10[%c3, %c0_21, %c0_22] : memref<4x12x32xf32, #tpu.memory_space<vmem>>, vector<1x12x32xf32>
      %35 = vector.shape_cast %34 : vector<1x12x32xf32> to vector<12x32xf32>
      %c3_23 = arith.constant 3 : index
      %c0_24 = arith.constant 0 : index
      %c0_25 = arith.constant 0 : index
      %36 = vector.load %arg9[%c3_23, %c0_24, %c0_25] : memref<4x12x1xf32, #tpu.memory_space<vmem>>, vector<1x12x1xf32>
      %37 = vector.shape_cast %36 : vector<1x12x1xf32> to vector<12x1xf32>
      %38 = tpu.reciprocal %37 {approx = true} : vector<12x1xf32> -> vector<12x1xf32>
      %39 = vector.broadcast %38 : vector<12x1xf32> to vector<12x32xf32>
      %40 = arith.mulf %35, %39 : vector<12x32xf32>
      %41 = tpu.concatenate %19, %26, %33, %40 in 1 : vector<12x32xf32>, vector<12x32xf32>, vector<12x32xf32>, vector<12x32xf32> -> vector<12x128xf32>
      %42 = arith.truncf %41 : vector<12x128xf32> to vector<12x128xbf16>
      %c0_26 = arith.constant 0 : index
      %c0_27 = arith.constant 0 : index
      %c0_28 = arith.constant 0 : index
      %43 = vector.load %arg7[%c0_26, %c0_27, %c0_28] : memref<1x12x128xbf16, #tpu.memory_space<vmem>>, vector<1x12x128xbf16>
      %44 = vector.shape_cast %43 : vector<1x12x128xbf16> to vector<12x128xbf16>
      %45 = vector.shape_cast %42 : vector<12x128xbf16> to vector<1x12x128xbf16>
      tpu.vector_store %arg7[%c0_26, %c0_27, %c0_28], %45 {strides = array<i32>} : memref<1x12x128xbf16, #tpu.memory_space<vmem>>, vector<1x12x128xbf16>,
    } else {
    }
    return
  }
  func.func @transform_0(%arg0: i32, %arg1: i32, %arg2: i32) -> (i32, i32, i32) {
    %c0_i32 = arith.constant 0 : i32
    %c0_i32_0 = arith.constant 0 : i32
    return %arg0, %arg1, %c0_i32 : i32, i32, i32
  }
  func.func @transform_1(%arg0: i32, %arg1: i32, %arg2: i32) -> (i32, i32, i32) {
    %c0_i32 = arith.constant 0 : i32
    %c0_i32_0 = arith.constant 0 : i32
    return %arg0, %arg2, %c0_i32 : i32, i32, i32
  }
  func.func @transform_2(%arg0: i32, %arg1: i32, %arg2: i32) -> (i32, i32, i32) {
    %c0_i32 = arith.constant 0 : i32
    %c0_i32_0 = arith.constant 0 : i32
    return %arg0, %arg2, %c0_i32 : i32, i32, i32
  }
  func.func @transform_3(%arg0: i32, %arg1: i32, %arg2: i32) -> (i32, i32, i32) {
    %c0_i32 = arith.constant 0 : i32
    %c0_i32_0 = arith.constant 0 : i32
    return %arg0, %c0_i32, %arg2 : i32, i32, i32
  }
  func.func @transform_4(%arg0: i32, %arg1: i32, %arg2: i32) -> (i32, i32, i32) {
    %c0_i32 = arith.constant 0 : i32
    %c0_i32_0 = arith.constant 0 : i32
    return %arg0, %arg1, %c0_i32 : i32, i32, i32
  }
}

module attributes {stable_mosaic.version = 11 : i64} {
  func.func @_linear_kernel(%arg0: i32, %arg1: i32, %arg2: i32, %arg3: memref<24x128xbf16, #tpu.memory_space<vmem>>, %arg4: memref<128x128xbf16, #tpu.memory_space<vmem>>, %arg5: memref<1x128xf32, #tpu.memory_space<vmem>>, %arg6: memref<24x128xbf16, #tpu.memory_space<vmem>>, %arg7: memref<24x128xf32, #tpu.memory_space<vmem>>) attributes {dimension_semantics = [#tpu.dimension_semantics<parallel>, #tpu.dimension_semantics<parallel>, #tpu.dimension_semantics<arbitrary>], iteration_bounds = array<i64: 1, 1, 1>, scalar_prefetch = 0 : i64, scratch_operands = 1 : i64, tpu.core_type = #tpu.core_type<tc>, window_params = [{transform_indices = @transform_0, window_bounds = array<i64: 24, 128>}, {transform_indices = @transform_1, window_bounds = array<i64: 128, 128>}, {transform_indices = @transform_2, window_bounds = array<i64: 1, 128>}, {transform_indices = @transform_3, window_bounds = array<i64: 24, 128>}]} {
    %c0_i32 = arith.constant 0 : i32
    %0 = arith.cmpi eq, %arg2, %c0_i32 : i32
    %1 = arith.extui %0 : i1 to i32
    %c0_i32_0 = arith.constant 0 : i32
    %2 = arith.cmpi ne, %1, %c0_i32_0 : i32
    scf.if %2 {
      %cst_10 = arith.constant 0.000000e+00 : f32
      %12 = vector.broadcast %cst_10 : f32 to vector<24x128xf32>
      %c0_11 = arith.constant 0 : index
      %c0_12 = arith.constant 0 : index
      %13 = vector.load %arg7[%c0_11, %c0_12] : memref<24x128xf32, #tpu.memory_space<vmem>>, vector<24x128xf32>
      tpu.vector_store %arg7[%c0_11, %c0_12], %12 {strides = array<i32>} : memref<24x128xf32, #tpu.memory_space<vmem>>, vector<24x128xf32>,
    } else {
    }
    %c0 = arith.constant 0 : index
    %c0_1 = arith.constant 0 : index
    %3 = vector.load %arg7[%c0, %c0_1] : memref<24x128xf32, #tpu.memory_space<vmem>>, vector<24x128xf32>
    %c0_2 = arith.constant 0 : index
    %c0_3 = arith.constant 0 : index
    %4 = vector.load %arg3[%c0_2, %c0_3] : memref<24x128xbf16, #tpu.memory_space<vmem>>, vector<24x128xbf16>
    %c0_4 = arith.constant 0 : index
    %c0_5 = arith.constant 0 : index
    %5 = vector.load %arg4[%c0_4, %c0_5] : memref<128x128xbf16, #tpu.memory_space<vmem>>, vector<128x128xbf16>
    %cst = arith.constant dense<0.000000e+00> : vector<24x128xf32>
    %6 = tpu.matmul %4, %5, %cst {dimension_numbers = #tpu.dot_dimension_numbers<[1], [0], [0], [1], [0, 0, 1, 1], [], []>} : vector<24x128xbf16>, vector<128x128xbf16>, vector<24x128xf32> -> vector<24x128xf32>
    %7 = arith.addf %3, %6 : vector<24x128xf32>
    %c0_6 = arith.constant 0 : index
    %c0_7 = arith.constant 0 : index
    %8 = vector.load %arg7[%c0_6, %c0_7] : memref<24x128xf32, #tpu.memory_space<vmem>>, vector<24x128xf32>
    tpu.vector_store %arg7[%c0_6, %c0_7], %7 {strides = array<i32>} : memref<24x128xf32, #tpu.memory_space<vmem>>, vector<24x128xf32>,
    %c0_i32_8 = arith.constant 0 : i32
    %9 = arith.cmpi eq, %arg2, %c0_i32_8 : i32
    %10 = arith.extui %9 : i1 to i32
    %c0_i32_9 = arith.constant 0 : i32
    %11 = arith.cmpi ne, %10, %c0_i32_9 : i32
    scf.if %11 {
      %c0_10 = arith.constant 0 : index
      %c0_11 = arith.constant 0 : index
      %12 = vector.load %arg7[%c0_10, %c0_11] : memref<24x128xf32, #tpu.memory_space<vmem>>, vector<24x128xf32>
      %c0_12 = arith.constant 0 : index
      %c0_13 = arith.constant 0 : index
      %13 = vector.load %arg5[%c0_12, %c0_13] : memref<1x128xf32, #tpu.memory_space<vmem>>, vector<1x128xf32>
      %14 = vector.broadcast %13 : vector<1x128xf32> to vector<24x128xf32>
      %15 = arith.addf %12, %14 : vector<24x128xf32>
      %16 = arith.truncf %15 : vector<24x128xf32> to vector<24x128xbf16>
      %c0_14 = arith.constant 0 : index
      %c0_15 = arith.constant 0 : index
      %17 = vector.load %arg6[%c0_14, %c0_15] : memref<24x128xbf16, #tpu.memory_space<vmem>>, vector<24x128xbf16>
      tpu.vector_store %arg6[%c0_14, %c0_15], %16 {strides = array<i32>} : memref<24x128xbf16, #tpu.memory_space<vmem>>, vector<24x128xbf16>,
    } else {
    }
    return
  }
  func.func @transform_0(%arg0: i32, %arg1: i32, %arg2: i32) -> (i32, i32) {
    %c0_i32 = arith.constant 0 : i32
    return %arg0, %arg2 : i32, i32
  }
  func.func @transform_1(%arg0: i32, %arg1: i32, %arg2: i32) -> (i32, i32) {
    %c0_i32 = arith.constant 0 : i32
    return %arg2, %arg1 : i32, i32
  }
  func.func @transform_2(%arg0: i32, %arg1: i32, %arg2: i32) -> (i32, i32) {
    %c0_i32 = arith.constant 0 : i32
    %c0_i32_0 = arith.constant 0 : i32
    return %c0_i32, %arg1 : i32, i32
  }
  func.func @transform_3(%arg0: i32, %arg1: i32, %arg2: i32) -> (i32, i32) {
    %c0_i32 = arith.constant 0 : i32
    return %arg0, %arg1 : i32, i32
  }
}

module attributes {stable_mosaic.version = 11 : i64} {
  func.func @_linear_add_ln_kernel(%arg0: i32, %arg1: i32, %arg2: memref<24x128xbf16, #tpu.memory_space<vmem>>, %arg3: memref<128x128xbf16, #tpu.memory_space<vmem>>, %arg4: memref<1x128xf32, #tpu.memory_space<vmem>>, %arg5: memref<24x128xf32, #tpu.memory_space<vmem>>, %arg6: memref<1x128xf32, #tpu.memory_space<vmem>>, %arg7: memref<1x128xf32, #tpu.memory_space<vmem>>, %arg8: memref<24x128xf32, #tpu.memory_space<vmem>>, %arg9: memref<24x128xbf16, #tpu.memory_space<vmem>>, %arg10: memref<24x128xf32, #tpu.memory_space<vmem>>) attributes {dimension_semantics = [#tpu.dimension_semantics<parallel>, #tpu.dimension_semantics<arbitrary>], iteration_bounds = array<i64: 1, 1>, scalar_prefetch = 0 : i64, scratch_operands = 1 : i64, tpu.core_type = #tpu.core_type<tc>, window_params = [{transform_indices = @transform_0, window_bounds = array<i64: 24, 128>}, {transform_indices = @transform_1, window_bounds = array<i64: 128, 128>}, {pipeline_mode = #tpu.pipeline_mode<synchronous>, transform_indices = @transform_2, window_bounds = array<i64: 1, 128>}, {transform_indices = @transform_3, window_bounds = array<i64: 24, 128>}, {pipeline_mode = #tpu.pipeline_mode<synchronous>, transform_indices = @transform_4, window_bounds = array<i64: 1, 128>}, {pipeline_mode = #tpu.pipeline_mode<synchronous>, transform_indices = @transform_5, window_bounds = array<i64: 1, 128>}, {transform_indices = @transform_6, window_bounds = array<i64: 24, 128>}, {transform_indices = @transform_7, window_bounds = array<i64: 24, 128>}]} {
    %c0_i32 = arith.constant 0 : i32
    %0 = arith.cmpi eq, %arg1, %c0_i32 : i32
    %1 = arith.extui %0 : i1 to i32
    %c0_i32_0 = arith.constant 0 : i32
    %2 = arith.cmpi ne, %1, %c0_i32_0 : i32
    scf.if %2 {
      %cst_10 = arith.constant 0.000000e+00 : f32
      %12 = vector.broadcast %cst_10 : f32 to vector<24x128xf32>
      %c0_11 = arith.constant 0 : index
      %c0_12 = arith.constant 0 : index
      %13 = vector.load %arg10[%c0_11, %c0_12] : memref<24x128xf32, #tpu.memory_space<vmem>>, vector<24x128xf32>
      tpu.vector_store %arg10[%c0_11, %c0_12], %12 {strides = array<i32>} : memref<24x128xf32, #tpu.memory_space<vmem>>, vector<24x128xf32>,
    } else {
    }
    %c0 = arith.constant 0 : index
    %c0_1 = arith.constant 0 : index
    %3 = vector.load %arg10[%c0, %c0_1] : memref<24x128xf32, #tpu.memory_space<vmem>>, vector<24x128xf32>
    %c0_2 = arith.constant 0 : index
    %c0_3 = arith.constant 0 : index
    %4 = vector.load %arg2[%c0_2, %c0_3] : memref<24x128xbf16, #tpu.memory_space<vmem>>, vector<24x128xbf16>
    %c0_4 = arith.constant 0 : index
    %c0_5 = arith.constant 0 : index
    %5 = vector.load %arg3[%c0_4, %c0_5] : memref<128x128xbf16, #tpu.memory_space<vmem>>, vector<128x128xbf16>
    %cst = arith.constant dense<0.000000e+00> : vector<24x128xf32>
    %6 = tpu.matmul %4, %5, %cst {dimension_numbers = #tpu.dot_dimension_numbers<[1], [0], [0], [1], [0, 0, 1, 1], [], []>} : vector<24x128xbf16>, vector<128x128xbf16>, vector<24x128xf32> -> vector<24x128xf32>
    %7 = arith.addf %3, %6 : vector<24x128xf32>
    %c0_6 = arith.constant 0 : index
    %c0_7 = arith.constant 0 : index
    %8 = vector.load %arg10[%c0_6, %c0_7] : memref<24x128xf32, #tpu.memory_space<vmem>>, vector<24x128xf32>
    tpu.vector_store %arg10[%c0_6, %c0_7], %7 {strides = array<i32>} : memref<24x128xf32, #tpu.memory_space<vmem>>, vector<24x128xf32>,
    %c0_i32_8 = arith.constant 0 : i32
    %9 = arith.cmpi eq, %arg1, %c0_i32_8 : i32
    %10 = arith.extui %9 : i1 to i32
    %c0_i32_9 = arith.constant 0 : i32
    %11 = arith.cmpi ne, %10, %c0_i32_9 : i32
    scf.if %11 {
      %c0_10 = arith.constant 0 : index
      %c0_11 = arith.constant 0 : index
      %12 = vector.load %arg10[%c0_10, %c0_11] : memref<24x128xf32, #tpu.memory_space<vmem>>, vector<24x128xf32>
      %c0_12 = arith.constant 0 : index
      %c0_13 = arith.constant 0 : index
      %13 = vector.load %arg4[%c0_12, %c0_13] : memref<1x128xf32, #tpu.memory_space<vmem>>, vector<1x128xf32>
      %14 = vector.broadcast %13 : vector<1x128xf32> to vector<24x128xf32>
      %15 = arith.addf %12, %14 : vector<24x128xf32>
      %c0_14 = arith.constant 0 : index
      %c0_15 = arith.constant 0 : index
      %16 = vector.load %arg5[%c0_14, %c0_15] : memref<24x128xf32, #tpu.memory_space<vmem>>, vector<24x128xf32>
      %17 = arith.addf %15, %16 : vector<24x128xf32>
      %cst_16 = arith.constant dense<0.000000e+00> : vector<24xf32>
      %18 = vector.multi_reduction <add>, %17, %cst_16 [1] : vector<24x128xf32> to vector<24xf32>
      %19 = vector.shape_cast %18 : vector<24xf32> to vector<24x1xf32>
      %cst_17 = arith.constant 1.280000e+02 : f32
      %20 = vector.broadcast %cst_17 : f32 to vector<24x1xf32>
      %21 = arith.divf %19, %20 : vector<24x1xf32>
      %22 = vector.broadcast %21 : vector<24x1xf32> to vector<24x128xf32>
      %23 = arith.subf %17, %22 : vector<24x128xf32>
      %24 = arith.mulf %23, %23 : vector<24x128xf32>
      %cst_18 = arith.constant dense<0.000000e+00> : vector<24xf32>
      %25 = vector.multi_reduction <add>, %24, %cst_18 [1] : vector<24x128xf32> to vector<24xf32>
      %26 = vector.shape_cast %25 : vector<24xf32> to vector<24x1xf32>
      %cst_19 = arith.constant 1.280000e+02 : f32
      %27 = vector.broadcast %cst_19 : f32 to vector<24x1xf32>
      %28 = arith.divf %26, %27 : vector<24x1xf32>
      %29 = vector.broadcast %21 : vector<24x1xf32> to vector<24x128xf32>
      %30 = arith.subf %17, %29 : vector<24x128xf32>
      %cst_20 = arith.constant 9.99999974E-6 : f32
      %31 = vector.broadcast %cst_20 : f32 to vector<24x1xf32>
      %32 = arith.addf %28, %31 : vector<24x1xf32>
      %33 = math.rsqrt %32 : vector<24x1xf32>
      %34 = vector.broadcast %33 : vector<24x1xf32> to vector<24x128xf32>
      %35 = arith.mulf %30, %34 : vector<24x128xf32>
      %c0_21 = arith.constant 0 : index
      %c0_22 = arith.constant 0 : index
      %36 = vector.load %arg6[%c0_21, %c0_22] : memref<1x128xf32, #tpu.memory_space<vmem>>, vector<1x128xf32>
      %37 = vector.broadcast %36 : vector<1x128xf32> to vector<24x128xf32>
      %38 = arith.mulf %35, %37 : vector<24x128xf32>
      %c0_23 = arith.constant 0 : index
      %c0_24 = arith.constant 0 : index
      %39 = vector.load %arg7[%c0_23, %c0_24] : memref<1x128xf32, #tpu.memory_space<vmem>>, vector<1x128xf32>
      %40 = vector.broadcast %39 : vector<1x128xf32> to vector<24x128xf32>
      %41 = arith.addf %38, %40 : vector<24x128xf32>
      %c0_25 = arith.constant 0 : index
      %c0_26 = arith.constant 0 : index
      %42 = vector.load %arg8[%c0_25, %c0_26] : memref<24x128xf32, #tpu.memory_space<vmem>>, vector<24x128xf32>
      tpu.vector_store %arg8[%c0_25, %c0_26], %41 {strides = array<i32>} : memref<24x128xf32, #tpu.memory_space<vmem>>, vector<24x128xf32>,
      %43 = arith.truncf %41 : vector<24x128xf32> to vector<24x128xbf16>
      %c0_27 = arith.constant 0 : index
      %c0_28 = arith.constant 0 : index
      %44 = vector.load %arg9[%c0_27, %c0_28] : memref<24x128xbf16, #tpu.memory_space<vmem>>, vector<24x128xbf16>
      tpu.vector_store %arg9[%c0_27, %c0_28], %43 {strides = array<i32>} : memref<24x128xbf16, #tpu.memory_space<vmem>>, vector<24x128xbf16>,
    } else {
    }
    return
  }
  func.func @transform_0(%arg0: i32, %arg1: i32) -> (i32, i32) {
    %c0_i32 = arith.constant 0 : i32
    return %arg0, %arg1 : i32, i32
  }
  func.func @transform_1(%arg0: i32, %arg1: i32) -> (i32, i32) {
    %c0_i32 = arith.constant 0 : i32
    %c0_i32_0 = arith.constant 0 : i32
    return %arg1, %c0_i32 : i32, i32
  }
  func.func @transform_2(%arg0: i32, %arg1: i32) -> (i32, i32) {
    %c0_i32 = arith.constant 0 : i32
    %c0_i32_0 = arith.constant 0 : i32
    %c0_i32_1 = arith.constant 0 : i32
    return %c0_i32, %c0_i32_0 : i32, i32
  }
  func.func @transform_3(%arg0: i32, %arg1: i32) -> (i32, i32) {
    %c0_i32 = arith.constant 0 : i32
    %c0_i32_0 = arith.constant 0 : i32
    return %arg0, %c0_i32 : i32, i32
  }
  func.func @transform_4(%arg0: i32, %arg1: i32) -> (i32, i32) {
    %c0_i32 = arith.constant 0 : i32
    %c0_i32_0 = arith.constant 0 : i32
    %c0_i32_1 = arith.constant 0 : i32
    return %c0_i32, %c0_i32_0 : i32, i32
  }
  func.func @transform_5(%arg0: i32, %arg1: i32) -> (i32, i32) {
    %c0_i32 = arith.constant 0 : i32
    %c0_i32_0 = arith.constant 0 : i32
    %c0_i32_1 = arith.constant 0 : i32
    return %c0_i32, %c0_i32_0 : i32, i32
  }
  func.func @transform_6(%arg0: i32, %arg1: i32) -> (i32, i32) {
    %c0_i32 = arith.constant 0 : i32
    %c0_i32_0 = arith.constant 0 : i32
    return %arg0, %c0_i32 : i32, i32
  }
  func.func @transform_7(%arg0: i32, %arg1: i32) -> (i32, i32) {
    %c0_i32 = arith.constant 0 : i32
    %c0_i32_0 = arith.constant 0 : i32
    return %arg0, %c0_i32 : i32, i32
  }
}

module attributes {stable_mosaic.version = 11 : i64} {
  func.func @_flash_mha_kernel(%arg0: i32, %arg1: i32, %arg2: i32, %arg3: memref<1x12x128xbf16, #tpu.memory_space<vmem>>, %arg4: memref<1x16x128xbf16, #tpu.memory_space<vmem>>, %arg5: memref<1x16x128xbf16, #tpu.memory_space<vmem>>, %arg6: memref<1x1x16xi32, #tpu.memory_space<vmem>>, %arg7: memref<1x12x128xbf16, #tpu.memory_space<vmem>>, %arg8: memref<4x12x1xf32, #tpu.memory_space<vmem>>, %arg9: memref<4x12x1xf32, #tpu.memory_space<vmem>>, %arg10: memref<4x12x32xf32, #tpu.memory_space<vmem>>) attributes {dimension_semantics = [#tpu.dimension_semantics<parallel>, #tpu.dimension_semantics<parallel>, #tpu.dimension_semantics<arbitrary>], iteration_bounds = array<i64: 2, 1, 1>, scalar_prefetch = 0 : i64, scratch_operands = 3 : i64, tpu.core_type = #tpu.core_type<tc>, window_params = [{transform_indices = @transform_0, window_bounds = array<i64: 1, 12, 128>}, {transform_indices = @transform_1, window_bounds = array<i64: 1, 16, 128>}, {transform_indices = @transform_2, window_bounds = array<i64: 1, 16, 128>}, {transform_indices = @transform_3, window_bounds = array<i64: 1, 1, 16>}, {transform_indices = @transform_4, window_bounds = array<i64: 1, 12, 128>}]} {
    %c0_i32 = arith.constant 0 : i32
    %0 = arith.cmpi eq, %arg2, %c0_i32 : i32
    %1 = arith.extui %0 : i1 to i32
    %c0_i32_0 = arith.constant 0 : i32
    %2 = arith.cmpi ne, %1, %c0_i32_0 : i32
    scf.if %2 {
      %cst_103 = arith.constant 0xFF800000 : f32
      %176 = vector.broadcast %cst_103 : f32 to vector<4x12x1xf32>
      %c0_104 = arith.constant 0 : index
      %c0_105 = arith.constant 0 : index
      %c0_106 = arith.constant 0 : index
      %177 = vector.load %arg8[%c0_104, %c0_105, %c0_106] : memref<4x12x1xf32, #tpu.memory_space<vmem>>, vector<4x12x1xf32>
      tpu.vector_store %arg8[%c0_104, %c0_105, %c0_106], %176 {strides = array<i32>} : memref<4x12x1xf32, #tpu.memory_space<vmem>>, vector<4x12x1xf32>,
      %cst_107 = arith.constant 0.000000e+00 : f32
      %178 = vector.broadcast %cst_107 : f32 to vector<4x12x1xf32>
      %c0_108 = arith.constant 0 : index
      %c0_109 = arith.constant 0 : index
      %c0_110 = arith.constant 0 : index
      %179 = vector.load %arg9[%c0_108, %c0_109, %c0_110] : memref<4x12x1xf32, #tpu.memory_space<vmem>>, vector<4x12x1xf32>
      tpu.vector_store %arg9[%c0_108, %c0_109, %c0_110], %178 {strides = array<i32>} : memref<4x12x1xf32, #tpu.memory_space<vmem>>, vector<4x12x1xf32>,
      %cst_111 = arith.constant 0.000000e+00 : f32
      %180 = vector.broadcast %cst_111 : f32 to vector<4x12x32xf32>
      %c0_112 = arith.constant 0 : index
      %c0_113 = arith.constant 0 : index
      %c0_114 = arith.constant 0 : index
      %181 = vector.load %arg10[%c0_112, %c0_113, %c0_114] : memref<4x12x32xf32, #tpu.memory_space<vmem>>, vector<4x12x32xf32>
      tpu.vector_store %arg10[%c0_112, %c0_113, %c0_114], %180 {strides = array<i32>} : memref<4x12x32xf32, #tpu.memory_space<vmem>>, vector<4x12x32xf32>,
    } else {
    }
    %c0 = arith.constant 0 : index
    %c0_1 = arith.constant 0 : index
    %c0_2 = arith.constant 0 : index
    %3 = vector.load %arg3[%c0, %c0_1, %c0_2] : memref<1x12x128xbf16, #tpu.memory_space<vmem>>, vector<1x12x128xbf16>
    %4 = vector.shape_cast %3 : vector<1x12x128xbf16> to vector<12x128xbf16>
    %c0_3 = arith.constant 0 : index
    %c0_4 = arith.constant 0 : index
    %c0_5 = arith.constant 0 : index
    %5 = vector.load %arg4[%c0_3, %c0_4, %c0_5] : memref<1x16x128xbf16, #tpu.memory_space<vmem>>, vector<1x16x128xbf16>
    %6 = vector.shape_cast %5 : vector<1x16x128xbf16> to vector<16x128xbf16>
    %c0_6 = arith.constant 0 : index
    %c0_7 = arith.constant 0 : index
    %c0_8 = arith.constant 0 : index
    %7 = vector.load %arg5[%c0_6, %c0_7, %c0_8] : memref<1x16x128xbf16, #tpu.memory_space<vmem>>, vector<1x16x128xbf16>
    %8 = vector.shape_cast %7 : vector<1x16x128xbf16> to vector<16x128xbf16>
    %c0_9 = arith.constant 0 : index
    %c0_10 = arith.constant 0 : index
    %c0_11 = arith.constant 0 : index
    %9 = vector.load %arg6[%c0_9, %c0_10, %c0_11] : memref<1x1x16xi32, #tpu.memory_space<vmem>>, vector<1x1x16xi32>
    %10 = vector.shape_cast %9 : vector<1x1x16xi32> to vector<1x16xi32>
    %c0_i32_12 = arith.constant 0 : i32
    %11 = vector.broadcast %c0_i32_12 : i32 to vector<1x16xi32>
    %12 = arith.cmpi ne, %10, %11 : vector<1x16xi32>
    %13 = vector.extract_strided_slice %4 {offsets = [0, 0], sizes = [12, 32], strides = [1, 1]} : vector<12x128xbf16> to vector<12x32xbf16>
    %14 = vector.extract_strided_slice %6 {offsets = [0, 0], sizes = [16, 32], strides = [1, 1]} : vector<16x128xbf16> to vector<16x32xbf16>
    %15 = vector.extract_strided_slice %8 {offsets = [0, 0], sizes = [16, 32], strides = [1, 1]} : vector<16x128xbf16> to vector<16x32xbf16>
    %cst = arith.constant dense<0.000000e+00> : vector<12x16xf32>
    %16 = tpu.matmul %13, %14, %cst {dimension_numbers = #tpu.dot_dimension_numbers<[1], [1], [0], [0], [0, 0, 1, 0], [], []>} : vector<12x32xbf16>, vector<16x32xbf16>, vector<12x16xf32> -> vector<12x16xf32>
    %cst_13 = arith.constant -1.000000e+30 : f32
    %17 = vector.shape_cast %12 : vector<1x16xi1> to vector<1x16xi1>
    %18 = vector.broadcast %17 : vector<1x16xi1> to vector<12x16xi1>
    %19 = vector.broadcast %cst_13 : f32 to vector<12x16xf32>
    %20 = arith.select %18, %16, %19 : vector<12x16xi1>, vector<12x16xf32>
    %c0_14 = arith.constant 0 : index
    %c0_15 = arith.constant 0 : index
    %c0_16 = arith.constant 0 : index
    %21 = vector.load %arg8[%c0_14, %c0_15, %c0_16] : memref<4x12x1xf32, #tpu.memory_space<vmem>>, vector<1x12x1xf32>
    %22 = vector.shape_cast %21 : vector<1x12x1xf32> to vector<12x1xf32>
    %cst_17 = arith.constant dense<0xFF800000> : vector<12xf32>
    %23 = vector.multi_reduction <maximumf>, %20, %cst_17 [1] : vector<12x16xf32> to vector<12xf32>
    %24 = vector.shape_cast %23 : vector<12xf32> to vector<12x1xf32>
    %25 = arith.maximumf %22, %24 : vector<12x1xf32>
    %26 = arith.subf %22, %25 : vector<12x1xf32>
    %27 = math.exp %26 : vector<12x1xf32>
    %28 = vector.broadcast %25 : vector<12x1xf32> to vector<12x16xf32>
    %29 = arith.subf %20, %28 : vector<12x16xf32>
    %30 = math.exp %29 : vector<12x16xf32>
    %c0_18 = arith.constant 0 : index
    %c0_19 = arith.constant 0 : index
    %c0_20 = arith.constant 0 : index
    %31 = vector.load %arg9[%c0_18, %c0_19, %c0_20] : memref<4x12x1xf32, #tpu.memory_space<vmem>>, vector<1x12x1xf32>
    %32 = vector.shape_cast %31 : vector<1x12x1xf32> to vector<12x1xf32>
    %33 = arith.mulf %27, %32 : vector<12x1xf32>
    %cst_21 = arith.constant dense<0.000000e+00> : vector<12xf32>
    %34 = vector.multi_reduction <add>, %30, %cst_21 [1] : vector<12x16xf32> to vector<12xf32>
    %35 = vector.shape_cast %34 : vector<12xf32> to vector<12x1xf32>
    %36 = arith.addf %33, %35 : vector<12x1xf32>
    %c0_22 = arith.constant 0 : index
    %c0_23 = arith.constant 0 : index
    %c0_24 = arith.constant 0 : index
    %37 = vector.load %arg9[%c0_22, %c0_23, %c0_24] : memref<4x12x1xf32, #tpu.memory_space<vmem>>, vector<1x12x1xf32>
    %38 = vector.shape_cast %37 : vector<1x12x1xf32> to vector<12x1xf32>
    %39 = vector.shape_cast %36 : vector<12x1xf32> to vector<1x12x1xf32>
    tpu.vector_store %arg9[%c0_22, %c0_23, %c0_24], %39 {strides = array<i32>} : memref<4x12x1xf32, #tpu.memory_space<vmem>>, vector<1x12x1xf32>,
    %c0_25 = arith.constant 0 : index
    %c0_26 = arith.constant 0 : index
    %c0_27 = arith.constant 0 : index
    %40 = vector.load %arg10[%c0_25, %c0_26, %c0_27] : memref<4x12x32xf32, #tpu.memory_space<vmem>>, vector<1x12x32xf32>
    %41 = vector.shape_cast %40 : vector<1x12x32xf32> to vector<12x32xf32>
    %42 = vector.broadcast %27 : vector<12x1xf32> to vector<12x32xf32>
    %43 = arith.mulf %42, %41 : vector<12x32xf32>
    %44 = arith.truncf %30 : vector<12x16xf32> to vector<12x16xbf16>
    %cst_28 = arith.constant dense<0.000000e+00> : vector<12x32xf32>
    %45 = tpu.matmul %44, %15, %cst_28 {dimension_numbers = #tpu.dot_dimension_numbers<[1], [0], [0], [1], [0, 0, 1, 1], [], []>} : vector<12x16xbf16>, vector<16x32xbf16>, vector<12x32xf32> -> vector<12x32xf32>
    %46 = arith.addf %43, %45 : vector<12x32xf32>
    %c0_29 = arith.constant 0 : index
    %c0_30 = arith.constant 0 : index
    %c0_31 = arith.constant 0 : index
    %47 = vector.load %arg10[%c0_29, %c0_30, %c0_31] : memref<4x12x32xf32, #tpu.memory_space<vmem>>, vector<1x12x32xf32>
    %48 = vector.shape_cast %47 : vector<1x12x32xf32> to vector<12x32xf32>
    %49 = vector.shape_cast %46 : vector<12x32xf32> to vector<1x12x32xf32>
    tpu.vector_store %arg10[%c0_29, %c0_30, %c0_31], %49 {strides = array<i32>} : memref<4x12x32xf32, #tpu.memory_space<vmem>>, vector<1x12x32xf32>,
    %c0_32 = arith.constant 0 : index
    %c0_33 = arith.constant 0 : index
    %c0_34 = arith.constant 0 : index
    %50 = vector.load %arg8[%c0_32, %c0_33, %c0_34] : memref<4x12x1xf32, #tpu.memory_space<vmem>>, vector<1x12x1xf32>
    %51 = vector.shape_cast %50 : vector<1x12x1xf32> to vector<12x1xf32>
    %52 = vector.shape_cast %25 : vector<12x1xf32> to vector<1x12x1xf32>
    tpu.vector_store %arg8[%c0_32, %c0_33, %c0_34], %52 {strides = array<i32>} : memref<4x12x1xf32, #tpu.memory_space<vmem>>, vector<1x12x1xf32>,
    %53 = vector.extract_strided_slice %4 {offsets = [0, 32], sizes = [12, 32], strides = [1, 1]} : vector<12x128xbf16> to vector<12x32xbf16>
    %54 = vector.extract_strided_slice %6 {offsets = [0, 32], sizes = [16, 32], strides = [1, 1]} : vector<16x128xbf16> to vector<16x32xbf16>
    %55 = vector.extract_strided_slice %8 {offsets = [0, 32], sizes = [16, 32], strides = [1, 1]} : vector<16x128xbf16> to vector<16x32xbf16>
    %cst_35 = arith.constant dense<0.000000e+00> : vector<12x16xf32>
    %56 = tpu.matmul %53, %54, %cst_35 {dimension_numbers = #tpu.dot_dimension_numbers<[1], [1], [0], [0], [0, 0, 1, 0], [], []>} : vector<12x32xbf16>, vector<16x32xbf16>, vector<12x16xf32> -> vector<12x16xf32>
    %cst_36 = arith.constant -1.000000e+30 : f32
    %57 = vector.shape_cast %12 : vector<1x16xi1> to vector<1x16xi1>
    %58 = vector.broadcast %57 : vector<1x16xi1> to vector<12x16xi1>
    %59 = vector.broadcast %cst_36 : f32 to vector<12x16xf32>
    %60 = arith.select %58, %56, %59 : vector<12x16xi1>, vector<12x16xf32>
    %c1 = arith.constant 1 : index
    %c0_37 = arith.constant 0 : index
    %c0_38 = arith.constant 0 : index
    %61 = vector.load %arg8[%c1, %c0_37, %c0_38] : memref<4x12x1xf32, #tpu.memory_space<vmem>>, vector<1x12x1xf32>
    %62 = vector.shape_cast %61 : vector<1x12x1xf32> to vector<12x1xf32>
    %cst_39 = arith.constant dense<0xFF800000> : vector<12xf32>
    %63 = vector.multi_reduction <maximumf>, %60, %cst_39 [1] : vector<12x16xf32> to vector<12xf32>
    %64 = vector.shape_cast %63 : vector<12xf32> to vector<12x1xf32>
    %65 = arith.maximumf %62, %64 : vector<12x1xf32>
    %66 = arith.subf %62, %65 : vector<12x1xf32>
    %67 = math.exp %66 : vector<12x1xf32>
    %68 = vector.broadcast %65 : vector<12x1xf32> to vector<12x16xf32>
    %69 = arith.subf %60, %68 : vector<12x16xf32>
    %70 = math.exp %69 : vector<12x16xf32>
    %c1_40 = arith.constant 1 : index
    %c0_41 = arith.constant 0 : index
    %c0_42 = arith.constant 0 : index
    %71 = vector.load %arg9[%c1_40, %c0_41, %c0_42] : memref<4x12x1xf32, #tpu.memory_space<vmem>>, vector<1x12x1xf32>
    %72 = vector.shape_cast %71 : vector<1x12x1xf32> to vector<12x1xf32>
    %73 = arith.mulf %67, %72 : vector<12x1xf32>
    %cst_43 = arith.constant dense<0.000000e+00> : vector<12xf32>
    %74 = vector.multi_reduction <add>, %70, %cst_43 [1] : vector<12x16xf32> to vector<12xf32>
    %75 = vector.shape_cast %74 : vector<12xf32> to vector<12x1xf32>
    %76 = arith.addf %73, %75 : vector<12x1xf32>
    %c1_44 = arith.constant 1 : index
    %c0_45 = arith.constant 0 : index
    %c0_46 = arith.constant 0 : index
    %77 = vector.load %arg9[%c1_44, %c0_45, %c0_46] : memref<4x12x1xf32, #tpu.memory_space<vmem>>, vector<1x12x1xf32>
    %78 = vector.shape_cast %77 : vector<1x12x1xf32> to vector<12x1xf32>
    %79 = vector.shape_cast %76 : vector<12x1xf32> to vector<1x12x1xf32>
    tpu.vector_store %arg9[%c1_44, %c0_45, %c0_46], %79 {strides = array<i32>} : memref<4x12x1xf32, #tpu.memory_space<vmem>>, vector<1x12x1xf32>,
    %c1_47 = arith.constant 1 : index
    %c0_48 = arith.constant 0 : index
    %c0_49 = arith.constant 0 : index
    %80 = vector.load %arg10[%c1_47, %c0_48, %c0_49] : memref<4x12x32xf32, #tpu.memory_space<vmem>>, vector<1x12x32xf32>
    %81 = vector.shape_cast %80 : vector<1x12x32xf32> to vector<12x32xf32>
    %82 = vector.broadcast %67 : vector<12x1xf32> to vector<12x32xf32>
    %83 = arith.mulf %82, %81 : vector<12x32xf32>
    %84 = arith.truncf %70 : vector<12x16xf32> to vector<12x16xbf16>
    %cst_50 = arith.constant dense<0.000000e+00> : vector<12x32xf32>
    %85 = tpu.matmul %84, %55, %cst_50 {dimension_numbers = #tpu.dot_dimension_numbers<[1], [0], [0], [1], [0, 0, 1, 1], [], []>} : vector<12x16xbf16>, vector<16x32xbf16>, vector<12x32xf32> -> vector<12x32xf32>
    %86 = arith.addf %83, %85 : vector<12x32xf32>
    %c1_51 = arith.constant 1 : index
    %c0_52 = arith.constant 0 : index
    %c0_53 = arith.constant 0 : index
    %87 = vector.load %arg10[%c1_51, %c0_52, %c0_53] : memref<4x12x32xf32, #tpu.memory_space<vmem>>, vector<1x12x32xf32>
    %88 = vector.shape_cast %87 : vector<1x12x32xf32> to vector<12x32xf32>
    %89 = vector.shape_cast %86 : vector<12x32xf32> to vector<1x12x32xf32>
    tpu.vector_store %arg10[%c1_51, %c0_52, %c0_53], %89 {strides = array<i32>} : memref<4x12x32xf32, #tpu.memory_space<vmem>>, vector<1x12x32xf32>,
    %c1_54 = arith.constant 1 : index
    %c0_55 = arith.constant 0 : index
    %c0_56 = arith.constant 0 : index
    %90 = vector.load %arg8[%c1_54, %c0_55, %c0_56] : memref<4x12x1xf32, #tpu.memory_space<vmem>>, vector<1x12x1xf32>
    %91 = vector.shape_cast %90 : vector<1x12x1xf32> to vector<12x1xf32>
    %92 = vector.shape_cast %65 : vector<12x1xf32> to vector<1x12x1xf32>
    tpu.vector_store %arg8[%c1_54, %c0_55, %c0_56], %92 {strides = array<i32>} : memref<4x12x1xf32, #tpu.memory_space<vmem>>, vector<1x12x1xf32>,
    %93 = vector.extract_strided_slice %4 {offsets = [0, 64], sizes = [12, 32], strides = [1, 1]} : vector<12x128xbf16> to vector<12x32xbf16>
    %94 = vector.extract_strided_slice %6 {offsets = [0, 64], sizes = [16, 32], strides = [1, 1]} : vector<16x128xbf16> to vector<16x32xbf16>
    %95 = vector.extract_strided_slice %8 {offsets = [0, 64], sizes = [16, 32], strides = [1, 1]} : vector<16x128xbf16> to vector<16x32xbf16>
    %cst_57 = arith.constant dense<0.000000e+00> : vector<12x16xf32>
    %96 = tpu.matmul %93, %94, %cst_57 {dimension_numbers = #tpu.dot_dimension_numbers<[1], [1], [0], [0], [0, 0, 1, 0], [], []>} : vector<12x32xbf16>, vector<16x32xbf16>, vector<12x16xf32> -> vector<12x16xf32>
    %cst_58 = arith.constant -1.000000e+30 : f32
    %97 = vector.shape_cast %12 : vector<1x16xi1> to vector<1x16xi1>
    %98 = vector.broadcast %97 : vector<1x16xi1> to vector<12x16xi1>
    %99 = vector.broadcast %cst_58 : f32 to vector<12x16xf32>
    %100 = arith.select %98, %96, %99 : vector<12x16xi1>, vector<12x16xf32>
    %c2 = arith.constant 2 : index
    %c0_59 = arith.constant 0 : index
    %c0_60 = arith.constant 0 : index
    %101 = vector.load %arg8[%c2, %c0_59, %c0_60] : memref<4x12x1xf32, #tpu.memory_space<vmem>>, vector<1x12x1xf32>
    %102 = vector.shape_cast %101 : vector<1x12x1xf32> to vector<12x1xf32>
    %cst_61 = arith.constant dense<0xFF800000> : vector<12xf32>
    %103 = vector.multi_reduction <maximumf>, %100, %cst_61 [1] : vector<12x16xf32> to vector<12xf32>
    %104 = vector.shape_cast %103 : vector<12xf32> to vector<12x1xf32>
    %105 = arith.maximumf %102, %104 : vector<12x1xf32>
    %106 = arith.subf %102, %105 : vector<12x1xf32>
    %107 = math.exp %106 : vector<12x1xf32>
    %108 = vector.broadcast %105 : vector<12x1xf32> to vector<12x16xf32>
    %109 = arith.subf %100, %108 : vector<12x16xf32>
    %110 = math.exp %109 : vector<12x16xf32>
    %c2_62 = arith.constant 2 : index
    %c0_63 = arith.constant 0 : index
    %c0_64 = arith.constant 0 : index
    %111 = vector.load %arg9[%c2_62, %c0_63, %c0_64] : memref<4x12x1xf32, #tpu.memory_space<vmem>>, vector<1x12x1xf32>
    %112 = vector.shape_cast %111 : vector<1x12x1xf32> to vector<12x1xf32>
    %113 = arith.mulf %107, %112 : vector<12x1xf32>
    %cst_65 = arith.constant dense<0.000000e+00> : vector<12xf32>
    %114 = vector.multi_reduction <add>, %110, %cst_65 [1] : vector<12x16xf32> to vector<12xf32>
    %115 = vector.shape_cast %114 : vector<12xf32> to vector<12x1xf32>
    %116 = arith.addf %113, %115 : vector<12x1xf32>
    %c2_66 = arith.constant 2 : index
    %c0_67 = arith.constant 0 : index
    %c0_68 = arith.constant 0 : index
    %117 = vector.load %arg9[%c2_66, %c0_67, %c0_68] : memref<4x12x1xf32, #tpu.memory_space<vmem>>, vector<1x12x1xf32>
    %118 = vector.shape_cast %117 : vector<1x12x1xf32> to vector<12x1xf32>
    %119 = vector.shape_cast %116 : vector<12x1xf32> to vector<1x12x1xf32>
    tpu.vector_store %arg9[%c2_66, %c0_67, %c0_68], %119 {strides = array<i32>} : memref<4x12x1xf32, #tpu.memory_space<vmem>>, vector<1x12x1xf32>,
    %c2_69 = arith.constant 2 : index
    %c0_70 = arith.constant 0 : index
    %c0_71 = arith.constant 0 : index
    %120 = vector.load %arg10[%c2_69, %c0_70, %c0_71] : memref<4x12x32xf32, #tpu.memory_space<vmem>>, vector<1x12x32xf32>
    %121 = vector.shape_cast %120 : vector<1x12x32xf32> to vector<12x32xf32>
    %122 = vector.broadcast %107 : vector<12x1xf32> to vector<12x32xf32>
    %123 = arith.mulf %122, %121 : vector<12x32xf32>
    %124 = arith.truncf %110 : vector<12x16xf32> to vector<12x16xbf16>
    %cst_72 = arith.constant dense<0.000000e+00> : vector<12x32xf32>
    %125 = tpu.matmul %124, %95, %cst_72 {dimension_numbers = #tpu.dot_dimension_numbers<[1], [0], [0], [1], [0, 0, 1, 1], [], []>} : vector<12x16xbf16>, vector<16x32xbf16>, vector<12x32xf32> -> vector<12x32xf32>
    %126 = arith.addf %123, %125 : vector<12x32xf32>
    %c2_73 = arith.constant 2 : index
    %c0_74 = arith.constant 0 : index
    %c0_75 = arith.constant 0 : index
    %127 = vector.load %arg10[%c2_73, %c0_74, %c0_75] : memref<4x12x32xf32, #tpu.memory_space<vmem>>, vector<1x12x32xf32>
    %128 = vector.shape_cast %127 : vector<1x12x32xf32> to vector<12x32xf32>
    %129 = vector.shape_cast %126 : vector<12x32xf32> to vector<1x12x32xf32>
    tpu.vector_store %arg10[%c2_73, %c0_74, %c0_75], %129 {strides = array<i32>} : memref<4x12x32xf32, #tpu.memory_space<vmem>>, vector<1x12x32xf32>,
    %c2_76 = arith.constant 2 : index
    %c0_77 = arith.constant 0 : index
    %c0_78 = arith.constant 0 : index
    %130 = vector.load %arg8[%c2_76, %c0_77, %c0_78] : memref<4x12x1xf32, #tpu.memory_space<vmem>>, vector<1x12x1xf32>
    %131 = vector.shape_cast %130 : vector<1x12x1xf32> to vector<12x1xf32>
    %132 = vector.shape_cast %105 : vector<12x1xf32> to vector<1x12x1xf32>
    tpu.vector_store %arg8[%c2_76, %c0_77, %c0_78], %132 {strides = array<i32>} : memref<4x12x1xf32, #tpu.memory_space<vmem>>, vector<1x12x1xf32>,
    %133 = vector.extract_strided_slice %4 {offsets = [0, 96], sizes = [12, 32], strides = [1, 1]} : vector<12x128xbf16> to vector<12x32xbf16>
    %134 = vector.extract_strided_slice %6 {offsets = [0, 96], sizes = [16, 32], strides = [1, 1]} : vector<16x128xbf16> to vector<16x32xbf16>
    %135 = vector.extract_strided_slice %8 {offsets = [0, 96], sizes = [16, 32], strides = [1, 1]} : vector<16x128xbf16> to vector<16x32xbf16>
    %cst_79 = arith.constant dense<0.000000e+00> : vector<12x16xf32>
    %136 = tpu.matmul %133, %134, %cst_79 {dimension_numbers = #tpu.dot_dimension_numbers<[1], [1], [0], [0], [0, 0, 1, 0], [], []>} : vector<12x32xbf16>, vector<16x32xbf16>, vector<12x16xf32> -> vector<12x16xf32>
    %cst_80 = arith.constant -1.000000e+30 : f32
    %137 = vector.shape_cast %12 : vector<1x16xi1> to vector<1x16xi1>
    %138 = vector.broadcast %137 : vector<1x16xi1> to vector<12x16xi1>
    %139 = vector.broadcast %cst_80 : f32 to vector<12x16xf32>
    %140 = arith.select %138, %136, %139 : vector<12x16xi1>, vector<12x16xf32>
    %c3 = arith.constant 3 : index
    %c0_81 = arith.constant 0 : index
    %c0_82 = arith.constant 0 : index
    %141 = vector.load %arg8[%c3, %c0_81, %c0_82] : memref<4x12x1xf32, #tpu.memory_space<vmem>>, vector<1x12x1xf32>
    %142 = vector.shape_cast %141 : vector<1x12x1xf32> to vector<12x1xf32>
    %cst_83 = arith.constant dense<0xFF800000> : vector<12xf32>
    %143 = vector.multi_reduction <maximumf>, %140, %cst_83 [1] : vector<12x16xf32> to vector<12xf32>
    %144 = vector.shape_cast %143 : vector<12xf32> to vector<12x1xf32>
    %145 = arith.maximumf %142, %144 : vector<12x1xf32>
    %146 = arith.subf %142, %145 : vector<12x1xf32>
    %147 = math.exp %146 : vector<12x1xf32>
    %148 = vector.broadcast %145 : vector<12x1xf32> to vector<12x16xf32>
    %149 = arith.subf %140, %148 : vector<12x16xf32>
    %150 = math.exp %149 : vector<12x16xf32>
    %c3_84 = arith.constant 3 : index
    %c0_85 = arith.constant 0 : index
    %c0_86 = arith.constant 0 : index
    %151 = vector.load %arg9[%c3_84, %c0_85, %c0_86] : memref<4x12x1xf32, #tpu.memory_space<vmem>>, vector<1x12x1xf32>
    %152 = vector.shape_cast %151 : vector<1x12x1xf32> to vector<12x1xf32>
    %153 = arith.mulf %147, %152 : vector<12x1xf32>
    %cst_87 = arith.constant dense<0.000000e+00> : vector<12xf32>
    %154 = vector.multi_reduction <add>, %150, %cst_87 [1] : vector<12x16xf32> to vector<12xf32>
    %155 = vector.shape_cast %154 : vector<12xf32> to vector<12x1xf32>
    %156 = arith.addf %153, %155 : vector<12x1xf32>
    %c3_88 = arith.constant 3 : index
    %c0_89 = arith.constant 0 : index
    %c0_90 = arith.constant 0 : index
    %157 = vector.load %arg9[%c3_88, %c0_89, %c0_90] : memref<4x12x1xf32, #tpu.memory_space<vmem>>, vector<1x12x1xf32>
    %158 = vector.shape_cast %157 : vector<1x12x1xf32> to vector<12x1xf32>
    %159 = vector.shape_cast %156 : vector<12x1xf32> to vector<1x12x1xf32>
    tpu.vector_store %arg9[%c3_88, %c0_89, %c0_90], %159 {strides = array<i32>} : memref<4x12x1xf32, #tpu.memory_space<vmem>>, vector<1x12x1xf32>,
    %c3_91 = arith.constant 3 : index
    %c0_92 = arith.constant 0 : index
    %c0_93 = arith.constant 0 : index
    %160 = vector.load %arg10[%c3_91, %c0_92, %c0_93] : memref<4x12x32xf32, #tpu.memory_space<vmem>>, vector<1x12x32xf32>
    %161 = vector.shape_cast %160 : vector<1x12x32xf32> to vector<12x32xf32>
    %162 = vector.broadcast %147 : vector<12x1xf32> to vector<12x32xf32>
    %163 = arith.mulf %162, %161 : vector<12x32xf32>
    %164 = arith.truncf %150 : vector<12x16xf32> to vector<12x16xbf16>
    %cst_94 = arith.constant dense<0.000000e+00> : vector<12x32xf32>
    %165 = tpu.matmul %164, %135, %cst_94 {dimension_numbers = #tpu.dot_dimension_numbers<[1], [0], [0], [1], [0, 0, 1, 1], [], []>} : vector<12x16xbf16>, vector<16x32xbf16>, vector<12x32xf32> -> vector<12x32xf32>
    %166 = arith.addf %163, %165 : vector<12x32xf32>
    %c3_95 = arith.constant 3 : index
    %c0_96 = arith.constant 0 : index
    %c0_97 = arith.constant 0 : index
    %167 = vector.load %arg10[%c3_95, %c0_96, %c0_97] : memref<4x12x32xf32, #tpu.memory_space<vmem>>, vector<1x12x32xf32>
    %168 = vector.shape_cast %167 : vector<1x12x32xf32> to vector<12x32xf32>
    %169 = vector.shape_cast %166 : vector<12x32xf32> to vector<1x12x32xf32>
    tpu.vector_store %arg10[%c3_95, %c0_96, %c0_97], %169 {strides = array<i32>} : memref<4x12x32xf32, #tpu.memory_space<vmem>>, vector<1x12x32xf32>,
    %c3_98 = arith.constant 3 : index
    %c0_99 = arith.constant 0 : index
    %c0_100 = arith.constant 0 : index
    %170 = vector.load %arg8[%c3_98, %c0_99, %c0_100] : memref<4x12x1xf32, #tpu.memory_space<vmem>>, vector<1x12x1xf32>
    %171 = vector.shape_cast %170 : vector<1x12x1xf32> to vector<12x1xf32>
    %172 = vector.shape_cast %145 : vector<12x1xf32> to vector<1x12x1xf32>
    tpu.vector_store %arg8[%c3_98, %c0_99, %c0_100], %172 {strides = array<i32>} : memref<4x12x1xf32, #tpu.memory_space<vmem>>, vector<1x12x1xf32>,
    %c0_i32_101 = arith.constant 0 : i32
    %173 = arith.cmpi eq, %arg2, %c0_i32_101 : i32
    %174 = arith.extui %173 : i1 to i32
    %c0_i32_102 = arith.constant 0 : i32
    %175 = arith.cmpi ne, %174, %c0_i32_102 : i32
    scf.if %175 {
      %c0_103 = arith.constant 0 : index
      %c0_104 = arith.constant 0 : index
      %c0_105 = arith.constant 0 : index
      %176 = vector.load %arg10[%c0_103, %c0_104, %c0_105] : memref<4x12x32xf32, #tpu.memory_space<vmem>>, vector<1x12x32xf32>
      %177 = vector.shape_cast %176 : vector<1x12x32xf32> to vector<12x32xf32>
      %c0_106 = arith.constant 0 : index
      %c0_107 = arith.constant 0 : index
      %c0_108 = arith.constant 0 : index
      %178 = vector.load %arg9[%c0_106, %c0_107, %c0_108] : memref<4x12x1xf32, #tpu.memory_space<vmem>>, vector<1x12x1xf32>
      %179 = vector.shape_cast %178 : vector<1x12x1xf32> to vector<12x1xf32>
      %180 = tpu.reciprocal %179 {approx = true} : vector<12x1xf32> -> vector<12x1xf32>
      %181 = vector.broadcast %180 : vector<12x1xf32> to vector<12x32xf32>
      %182 = arith.mulf %177, %181 : vector<12x32xf32>
      %c1_109 = arith.constant 1 : index
      %c0_110 = arith.constant 0 : index
      %c0_111 = arith.constant 0 : index
      %183 = vector.load %arg10[%c1_109, %c0_110, %c0_111] : memref<4x12x32xf32, #tpu.memory_space<vmem>>, vector<1x12x32xf32>
      %184 = vector.shape_cast %183 : vector<1x12x32xf32> to vector<12x32xf32>
      %c1_112 = arith.constant 1 : index
      %c0_113 = arith.constant 0 : index
      %c0_114 = arith.constant 0 : index
      %185 = vector.load %arg9[%c1_112, %c0_113, %c0_114] : memref<4x12x1xf32, #tpu.memory_space<vmem>>, vector<1x12x1xf32>
      %186 = vector.shape_cast %185 : vector<1x12x1xf32> to vector<12x1xf32>
      %187 = tpu.reciprocal %186 {approx = true} : vector<12x1xf32> -> vector<12x1xf32>
      %188 = vector.broadcast %187 : vector<12x1xf32> to vector<12x32xf32>
      %189 = arith.mulf %184, %188 : vector<12x32xf32>
      %c2_115 = arith.constant 2 : index
      %c0_116 = arith.constant 0 : index
      %c0_117 = arith.constant 0 : index
      %190 = vector.load %arg10[%c2_115, %c0_116, %c0_117] : memref<4x12x32xf32, #tpu.memory_space<vmem>>, vector<1x12x32xf32>
      %191 = vector.shape_cast %190 : vector<1x12x32xf32> to vector<12x32xf32>
      %c2_118 = arith.constant 2 : index
      %c0_119 = arith.constant 0 : index
      %c0_120 = arith.constant 0 : index
      %192 = vector.load %arg9[%c2_118, %c0_119, %c0_120] : memref<4x12x1xf32, #tpu.memory_space<vmem>>, vector<1x12x1xf32>
      %193 = vector.shape_cast %192 : vector<1x12x1xf32> to vector<12x1xf32>
      %194 = tpu.reciprocal %193 {approx = true} : vector<12x1xf32> -> vector<12x1xf32>
      %195 = vector.broadcast %194 : vector<12x1xf32> to vector<12x32xf32>
      %196 = arith.mulf %191, %195 : vector<12x32xf32>
      %c3_121 = arith.constant 3 : index
      %c0_122 = arith.constant 0 : index
      %c0_123 = arith.constant 0 : index
      %197 = vector.load %arg10[%c3_121, %c0_122, %c0_123] : memref<4x12x32xf32, #tpu.memory_space<vmem>>, vector<1x12x32xf32>
      %198 = vector.shape_cast %197 : vector<1x12x32xf32> to vector<12x32xf32>
      %c3_124 = arith.constant 3 : index
      %c0_125 = arith.constant 0 : index
      %c0_126 = arith.constant 0 : index
      %199 = vector.load %arg9[%c3_124, %c0_125, %c0_126] : memref<4x12x1xf32, #tpu.memory_space<vmem>>, vector<1x12x1xf32>
      %200 = vector.shape_cast %199 : vector<1x12x1xf32> to vector<12x1xf32>
      %201 = tpu.reciprocal %200 {approx = true} : vector<12x1xf32> -> vector<12x1xf32>
      %202 = vector.broadcast %201 : vector<12x1xf32> to vector<12x32xf32>
      %203 = arith.mulf %198, %202 : vector<12x32xf32>
      %204 = tpu.concatenate %182, %189, %196, %203 in 1 : vector<12x32xf32>, vector<12x32xf32>, vector<12x32xf32>, vector<12x32xf32> -> vector<12x128xf32>
      %205 = arith.truncf %204 : vector<12x128xf32> to vector<12x128xbf16>
      %c0_127 = arith.constant 0 : index
      %c0_128 = arith.constant 0 : index
      %c0_129 = arith.constant 0 : index
      %206 = vector.load %arg7[%c0_127, %c0_128, %c0_129] : memref<1x12x128xbf16, #tpu.memory_space<vmem>>, vector<1x12x128xbf16>
      %207 = vector.shape_cast %206 : vector<1x12x128xbf16> to vector<12x128xbf16>
      %208 = vector.shape_cast %205 : vector<12x128xbf16> to vector<1x12x128xbf16>
      tpu.vector_store %arg7[%c0_127, %c0_128, %c0_129], %208 {strides = array<i32>} : memref<1x12x128xbf16, #tpu.memory_space<vmem>>, vector<1x12x128xbf16>,
    } else {
    }
    return
  }
  func.func @transform_0(%arg0: i32, %arg1: i32, %arg2: i32) -> (i32, i32, i32) {
    %c0_i32 = arith.constant 0 : i32
    %c0_i32_0 = arith.constant 0 : i32
    return %arg0, %arg1, %c0_i32 : i32, i32, i32
  }
  func.func @transform_1(%arg0: i32, %arg1: i32, %arg2: i32) -> (i32, i32, i32) {
    %c0_i32 = arith.constant 0 : i32
    %c0_i32_0 = arith.constant 0 : i32
    return %arg0, %arg2, %c0_i32 : i32, i32, i32
  }
  func.func @transform_2(%arg0: i32, %arg1: i32, %arg2: i32) -> (i32, i32, i32) {
    %c0_i32 = arith.constant 0 : i32
    %c0_i32_0 = arith.constant 0 : i32
    return %arg0, %arg2, %c0_i32 : i32, i32, i32
  }
  func.func @transform_3(%arg0: i32, %arg1: i32, %arg2: i32) -> (i32, i32, i32) {
    %c0_i32 = arith.constant 0 : i32
    %c0_i32_0 = arith.constant 0 : i32
    return %arg0, %c0_i32, %arg2 : i32, i32, i32
  }
  func.func @transform_4(%arg0: i32, %arg1: i32, %arg2: i32) -> (i32, i32, i32) {
    %c0_i32 = arith.constant 0 : i32
    %c0_i32_0 = arith.constant 0 : i32
    return %arg0, %arg1, %c0_i32 : i32, i32, i32
  }
}

module attributes {stable_mosaic.version = 11 : i64} {
  func.func @_ffn_add_ln_kernel(%arg0: i32, %arg1: i32, %arg2: memref<24x128xbf16, #tpu.memory_space<vmem>>, %arg3: memref<128x256xbf16, #tpu.memory_space<vmem>>, %arg4: memref<1x256xf32, #tpu.memory_space<vmem>>, %arg5: memref<256x128xbf16, #tpu.memory_space<vmem>>, %arg6: memref<1x128xf32, #tpu.memory_space<vmem>>, %arg7: memref<24x128xf32, #tpu.memory_space<vmem>>, %arg8: memref<1x128xf32, #tpu.memory_space<vmem>>, %arg9: memref<1x128xf32, #tpu.memory_space<vmem>>, %arg10: memref<24x128xf32, #tpu.memory_space<vmem>>, %arg11: memref<24x128xbf16, #tpu.memory_space<vmem>>, %arg12: memref<24x128xf32, #tpu.memory_space<vmem>>) attributes {dimension_semantics = [#tpu.dimension_semantics<parallel>, #tpu.dimension_semantics<arbitrary>], iteration_bounds = array<i64: 1, 1>, scalar_prefetch = 0 : i64, scratch_operands = 1 : i64, tpu.core_type = #tpu.core_type<tc>, window_params = [{transform_indices = @transform_0, window_bounds = array<i64: 24, 128>}, {transform_indices = @transform_1, window_bounds = array<i64: 128, 256>}, {transform_indices = @transform_2, window_bounds = array<i64: 1, 256>}, {transform_indices = @transform_3, window_bounds = array<i64: 256, 128>}, {pipeline_mode = #tpu.pipeline_mode<synchronous>, transform_indices = @transform_4, window_bounds = array<i64: 1, 128>}, {transform_indices = @transform_5, window_bounds = array<i64: 24, 128>}, {pipeline_mode = #tpu.pipeline_mode<synchronous>, transform_indices = @transform_6, window_bounds = array<i64: 1, 128>}, {pipeline_mode = #tpu.pipeline_mode<synchronous>, transform_indices = @transform_7, window_bounds = array<i64: 1, 128>}, {transform_indices = @transform_8, window_bounds = array<i64: 24, 128>}, {transform_indices = @transform_9, window_bounds = array<i64: 24, 128>}]} {
    %c0_i32 = arith.constant 0 : i32
    %0 = arith.cmpi eq, %arg1, %c0_i32 : i32
    %1 = arith.extui %0 : i1 to i32
    %c0_i32_0 = arith.constant 0 : i32
    %2 = arith.cmpi ne, %1, %c0_i32_0 : i32
    scf.if %2 {
      %cst_16 = arith.constant 0.000000e+00 : f32
      %20 = vector.broadcast %cst_16 : f32 to vector<24x128xf32>
      %c0_17 = arith.constant 0 : index
      %c0_18 = arith.constant 0 : index
      %21 = vector.load %arg12[%c0_17, %c0_18] : memref<24x128xf32, #tpu.memory_space<vmem>>, vector<24x128xf32>
      tpu.vector_store %arg12[%c0_17, %c0_18], %20 {strides = array<i32>} : memref<24x128xf32, #tpu.memory_space<vmem>>, vector<24x128xf32>,
    } else {
    }
    %c0 = arith.constant 0 : index
    %c0_1 = arith.constant 0 : index
    %3 = vector.load %arg2[%c0, %c0_1] : memref<24x128xbf16, #tpu.memory_space<vmem>>, vector<24x128xbf16>
    %c0_2 = arith.constant 0 : index
    %c0_3 = arith.constant 0 : index
    %4 = vector.load %arg3[%c0_2, %c0_3] : memref<128x256xbf16, #tpu.memory_space<vmem>>, vector<128x256xbf16>
    %cst = arith.constant dense<0.000000e+00> : vector<24x256xf32>
    %5 = tpu.matmul %3, %4, %cst {dimension_numbers = #tpu.dot_dimension_numbers<[1], [0], [0], [1], [0, 0, 1, 1], [], []>} : vector<24x128xbf16>, vector<128x256xbf16>, vector<24x256xf32> -> vector<24x256xf32>
    %c0_4 = arith.constant 0 : index
    %c0_5 = arith.constant 0 : index
    %6 = vector.load %arg4[%c0_4, %c0_5] : memref<1x256xf32, #tpu.memory_space<vmem>>, vector<1x256xf32>
    %7 = vector.broadcast %6 : vector<1x256xf32> to vector<24x256xf32>
    %8 = arith.addf %5, %7 : vector<24x256xf32>
    %cst_6 = arith.constant 0.000000e+00 : f32
    %9 = vector.broadcast %cst_6 : f32 to vector<24x256xf32>
    %10 = arith.maximumf %8, %9 : vector<24x256xf32>
    %c0_7 = arith.constant 0 : index
    %c0_8 = arith.constant 0 : index
    %11 = vector.load %arg12[%c0_7, %c0_8] : memref<24x128xf32, #tpu.memory_space<vmem>>, vector<24x128xf32>
    %12 = arith.truncf %10 : vector<24x256xf32> to vector<24x256xbf16>
    %c0_9 = arith.constant 0 : index
    %c0_10 = arith.constant 0 : index
    %13 = vector.load %arg5[%c0_9, %c0_10] : memref<256x128xbf16, #tpu.memory_space<vmem>>, vector<256x128xbf16>
    %cst_11 = arith.constant dense<0.000000e+00> : vector<24x128xf32>
    %14 = tpu.matmul %12, %13, %cst_11 {dimension_numbers = #tpu.dot_dimension_numbers<[1], [0], [0], [1], [0, 0, 1, 1], [], []>} : vector<24x256xbf16>, vector<256x128xbf16>, vector<24x128xf32> -> vector<24x128xf32>
    %15 = arith.addf %11, %14 : vector<24x128xf32>
    %c0_12 = arith.constant 0 : index
    %c0_13 = arith.constant 0 : index
    %16 = vector.load %arg12[%c0_12, %c0_13] : memref<24x128xf32, #tpu.memory_space<vmem>>, vector<24x128xf32>
    tpu.vector_store %arg12[%c0_12, %c0_13], %15 {strides = array<i32>} : memref<24x128xf32, #tpu.memory_space<vmem>>, vector<24x128xf32>,
    %c0_i32_14 = arith.constant 0 : i32
    %17 = arith.cmpi eq, %arg1, %c0_i32_14 : i32
    %18 = arith.extui %17 : i1 to i32
    %c0_i32_15 = arith.constant 0 : i32
    %19 = arith.cmpi ne, %18, %c0_i32_15 : i32
    scf.if %19 {
      %c0_16 = arith.constant 0 : index
      %c0_17 = arith.constant 0 : index
      %20 = vector.load %arg12[%c0_16, %c0_17] : memref<24x128xf32, #tpu.memory_space<vmem>>, vector<24x128xf32>
      %c0_18 = arith.constant 0 : index
      %c0_19 = arith.constant 0 : index
      %21 = vector.load %arg6[%c0_18, %c0_19] : memref<1x128xf32, #tpu.memory_space<vmem>>, vector<1x128xf32>
      %22 = vector.broadcast %21 : vector<1x128xf32> to vector<24x128xf32>
      %23 = arith.addf %20, %22 : vector<24x128xf32>
      %c0_20 = arith.constant 0 : index
      %c0_21 = arith.constant 0 : index
      %24 = vector.load %arg7[%c0_20, %c0_21] : memref<24x128xf32, #tpu.memory_space<vmem>>, vector<24x128xf32>
      %25 = arith.addf %23, %24 : vector<24x128xf32>
      %cst_22 = arith.constant dense<0.000000e+00> : vector<24xf32>
      %26 = vector.multi_reduction <add>, %25, %cst_22 [1] : vector<24x128xf32> to vector<24xf32>
      %27 = vector.shape_cast %26 : vector<24xf32> to vector<24x1xf32>
      %cst_23 = arith.constant 1.280000e+02 : f32
      %28 = vector.broadcast %cst_23 : f32 to vector<24x1xf32>
      %29 = arith.divf %27, %28 : vector<24x1xf32>
      %30 = vector.broadcast %29 : vector<24x1xf32> to vector<24x128xf32>
      %31 = arith.subf %25, %30 : vector<24x128xf32>
      %32 = arith.mulf %31, %31 : vector<24x128xf32>
      %cst_24 = arith.constant dense<0.000000e+00> : vector<24xf32>
      %33 = vector.multi_reduction <add>, %32, %cst_24 [1] : vector<24x128xf32> to vector<24xf32>
      %34 = vector.shape_cast %33 : vector<24xf32> to vector<24x1xf32>
      %cst_25 = arith.constant 1.280000e+02 : f32
      %35 = vector.broadcast %cst_25 : f32 to vector<24x1xf32>
      %36 = arith.divf %34, %35 : vector<24x1xf32>
      %37 = vector.broadcast %29 : vector<24x1xf32> to vector<24x128xf32>
      %38 = arith.subf %25, %37 : vector<24x128xf32>
      %cst_26 = arith.constant 9.99999974E-6 : f32
      %39 = vector.broadcast %cst_26 : f32 to vector<24x1xf32>
      %40 = arith.addf %36, %39 : vector<24x1xf32>
      %41 = math.rsqrt %40 : vector<24x1xf32>
      %42 = vector.broadcast %41 : vector<24x1xf32> to vector<24x128xf32>
      %43 = arith.mulf %38, %42 : vector<24x128xf32>
      %c0_27 = arith.constant 0 : index
      %c0_28 = arith.constant 0 : index
      %44 = vector.load %arg8[%c0_27, %c0_28] : memref<1x128xf32, #tpu.memory_space<vmem>>, vector<1x128xf32>
      %45 = vector.broadcast %44 : vector<1x128xf32> to vector<24x128xf32>
      %46 = arith.mulf %43, %45 : vector<24x128xf32>
      %c0_29 = arith.constant 0 : index
      %c0_30 = arith.constant 0 : index
      %47 = vector.load %arg9[%c0_29, %c0_30] : memref<1x128xf32, #tpu.memory_space<vmem>>, vector<1x128xf32>
      %48 = vector.broadcast %47 : vector<1x128xf32> to vector<24x128xf32>
      %49 = arith.addf %46, %48 : vector<24x128xf32>
      %c0_31 = arith.constant 0 : index
      %c0_32 = arith.constant 0 : index
      %50 = vector.load %arg10[%c0_31, %c0_32] : memref<24x128xf32, #tpu.memory_space<vmem>>, vector<24x128xf32>
      tpu.vector_store %arg10[%c0_31, %c0_32], %49 {strides = array<i32>} : memref<24x128xf32, #tpu.memory_space<vmem>>, vector<24x128xf32>,
      %51 = arith.truncf %49 : vector<24x128xf32> to vector<24x128xbf16>
      %c0_33 = arith.constant 0 : index
      %c0_34 = arith.constant 0 : index
      %52 = vector.load %arg11[%c0_33, %c0_34] : memref<24x128xbf16, #tpu.memory_space<vmem>>, vector<24x128xbf16>
      tpu.vector_store %arg11[%c0_33, %c0_34], %51 {strides = array<i32>} : memref<24x128xbf16, #tpu.memory_space<vmem>>, vector<24x128xbf16>,
    } else {
    }
    return
  }
  func.func @transform_0(%arg0: i32, %arg1: i32) -> (i32, i32) {
    %c0_i32 = arith.constant 0 : i32
    %c0_i32_0 = arith.constant 0 : i32
    return %arg0, %c0_i32 : i32, i32
  }
  func.func @transform_1(%arg0: i32, %arg1: i32) -> (i32, i32) {
    %c0_i32 = arith.constant 0 : i32
    %c0_i32_0 = arith.constant 0 : i32
    return %c0_i32, %arg1 : i32, i32
  }
  func.func @transform_2(%arg0: i32, %arg1: i32) -> (i32, i32) {
    %c0_i32 = arith.constant 0 : i32
    %c0_i32_0 = arith.constant 0 : i32
    return %c0_i32, %arg1 : i32, i32
  }
  func.func @transform_3(%arg0: i32, %arg1: i32) -> (i32, i32) {
    %c0_i32 = arith.constant 0 : i32
    %c0_i32_0 = arith.constant 0 : i32
    return %arg1, %c0_i32 : i32, i32
  }
  func.func @transform_4(%arg0: i32, %arg1: i32) -> (i32, i32) {
    %c0_i32 = arith.constant 0 : i32
    %c0_i32_0 = arith.constant 0 : i32
    %c0_i32_1 = arith.constant 0 : i32
    return %c0_i32, %c0_i32_0 : i32, i32
  }
  func.func @transform_5(%arg0: i32, %arg1: i32) -> (i32, i32) {
    %c0_i32 = arith.constant 0 : i32
    %c0_i32_0 = arith.constant 0 : i32
    return %arg0, %c0_i32 : i32, i32
  }
  func.func @transform_6(%arg0: i32, %arg1: i32) -> (i32, i32) {
    %c0_i32 = arith.constant 0 : i32
    %c0_i32_0 = arith.constant 0 : i32
    %c0_i32_1 = arith.constant 0 : i32
    return %c0_i32, %c0_i32_0 : i32, i32
  }
  func.func @transform_7(%arg0: i32, %arg1: i32) -> (i32, i32) {
    %c0_i32 = arith.constant 0 : i32
    %c0_i32_0 = arith.constant 0 : i32
    %c0_i32_1 = arith.constant 0 : i32
    return %c0_i32, %c0_i32_0 : i32, i32
  }
  func.func @transform_8(%arg0: i32, %arg1: i32) -> (i32, i32) {
    %c0_i32 = arith.constant 0 : i32
    %c0_i32_0 = arith.constant 0 : i32
    return %arg0, %c0_i32 : i32, i32
  }
  func.func @transform_9(%arg0: i32, %arg1: i32) -> (i32, i32) {
    %c0_i32 = arith.constant 0 : i32
    %c0_i32_0 = arith.constant 0 : i32
    return %arg0, %c0_i32 : i32, i32
  }
}

module attributes {stable_mosaic.version = 11 : i64} {
  func.func @_ffn_add_ln_kernel(%arg0: i32, %arg1: i32, %arg2: memref<24x128xbf16, #tpu.memory_space<vmem>>, %arg3: memref<128x256xbf16, #tpu.memory_space<vmem>>, %arg4: memref<1x256xf32, #tpu.memory_space<vmem>>, %arg5: memref<256x128xbf16, #tpu.memory_space<vmem>>, %arg6: memref<1x128xf32, #tpu.memory_space<vmem>>, %arg7: memref<24x128xf32, #tpu.memory_space<vmem>>, %arg8: memref<1x128xf32, #tpu.memory_space<vmem>>, %arg9: memref<1x128xf32, #tpu.memory_space<vmem>>, %arg10: memref<24x128xf32, #tpu.memory_space<vmem>>, %arg11: memref<24x128xbf16, #tpu.memory_space<vmem>>, %arg12: memref<24x128xf32, #tpu.memory_space<vmem>>) attributes {dimension_semantics = [#tpu.dimension_semantics<parallel>, #tpu.dimension_semantics<arbitrary>], iteration_bounds = array<i64: 1, 1>, scalar_prefetch = 0 : i64, scratch_operands = 1 : i64, tpu.core_type = #tpu.core_type<tc>, window_params = [{transform_indices = @transform_0, window_bounds = array<i64: 24, 128>}, {transform_indices = @transform_1, window_bounds = array<i64: 128, 256>}, {transform_indices = @transform_2, window_bounds = array<i64: 1, 256>}, {transform_indices = @transform_3, window_bounds = array<i64: 256, 128>}, {pipeline_mode = #tpu.pipeline_mode<synchronous>, transform_indices = @transform_4, window_bounds = array<i64: 1, 128>}, {transform_indices = @transform_5, window_bounds = array<i64: 24, 128>}, {pipeline_mode = #tpu.pipeline_mode<synchronous>, transform_indices = @transform_6, window_bounds = array<i64: 1, 128>}, {pipeline_mode = #tpu.pipeline_mode<synchronous>, transform_indices = @transform_7, window_bounds = array<i64: 1, 128>}, {transform_indices = @transform_8, window_bounds = array<i64: 24, 128>}, {transform_indices = @transform_9, window_bounds = array<i64: 24, 128>}]} {
    %c0_i32 = arith.constant 0 : i32
    %0 = arith.cmpi eq, %arg1, %c0_i32 : i32
    %1 = arith.extui %0 : i1 to i32
    %c0_i32_0 = arith.constant 0 : i32
    %2 = arith.cmpi ne, %1, %c0_i32_0 : i32
    scf.if %2 {
      %cst_16 = arith.constant 0.000000e+00 : f32
      %20 = vector.broadcast %cst_16 : f32 to vector<24x128xf32>
      %c0_17 = arith.constant 0 : index
      %c0_18 = arith.constant 0 : index
      %21 = vector.load %arg12[%c0_17, %c0_18] : memref<24x128xf32, #tpu.memory_space<vmem>>, vector<24x128xf32>
      tpu.vector_store %arg12[%c0_17, %c0_18], %20 {strides = array<i32>} : memref<24x128xf32, #tpu.memory_space<vmem>>, vector<24x128xf32>,
    } else {
    }
    %c0 = arith.constant 0 : index
    %c0_1 = arith.constant 0 : index
    %3 = vector.load %arg2[%c0, %c0_1] : memref<24x128xbf16, #tpu.memory_space<vmem>>, vector<24x128xbf16>
    %c0_2 = arith.constant 0 : index
    %c0_3 = arith.constant 0 : index
    %4 = vector.load %arg3[%c0_2, %c0_3] : memref<128x256xbf16, #tpu.memory_space<vmem>>, vector<128x256xbf16>
    %cst = arith.constant dense<0.000000e+00> : vector<24x256xf32>
    %5 = tpu.matmul %3, %4, %cst {dimension_numbers = #tpu.dot_dimension_numbers<[1], [0], [0], [1], [0, 0, 1, 1], [], []>} : vector<24x128xbf16>, vector<128x256xbf16>, vector<24x256xf32> -> vector<24x256xf32>
    %c0_4 = arith.constant 0 : index
    %c0_5 = arith.constant 0 : index
    %6 = vector.load %arg4[%c0_4, %c0_5] : memref<1x256xf32, #tpu.memory_space<vmem>>, vector<1x256xf32>
    %7 = vector.broadcast %6 : vector<1x256xf32> to vector<24x256xf32>
    %8 = arith.addf %5, %7 : vector<24x256xf32>
    %cst_6 = arith.constant 0.000000e+00 : f32
    %9 = vector.broadcast %cst_6 : f32 to vector<24x256xf32>
    %10 = arith.maximumf %8, %9 : vector<24x256xf32>
    %c0_7 = arith.constant 0 : index
    %c0_8 = arith.constant 0 : index
    %11 = vector.load %arg12[%c0_7, %c0_8] : memref<24x128xf32, #tpu.memory_space<vmem>>, vector<24x128xf32>
    %12 = arith.truncf %10 : vector<24x256xf32> to vector<24x256xbf16>
    %c0_9 = arith.constant 0 : index
    %c0_10 = arith.constant 0 : index
    %13 = vector.load %arg5[%c0_9, %c0_10] : memref<256x128xbf16, #tpu.memory_space<vmem>>, vector<256x128xbf16>
    %cst_11 = arith.constant dense<0.000000e+00> : vector<24x128xf32>
    %14 = tpu.matmul %12, %13, %cst_11 {dimension_numbers = #tpu.dot_dimension_numbers<[1], [0], [0], [1], [0, 0, 1, 1], [], []>} : vector<24x256xbf16>, vector<256x128xbf16>, vector<24x128xf32> -> vector<24x128xf32>
    %15 = arith.addf %11, %14 : vector<24x128xf32>
    %c0_12 = arith.constant 0 : index
    %c0_13 = arith.constant 0 : index
    %16 = vector.load %arg12[%c0_12, %c0_13] : memref<24x128xf32, #tpu.memory_space<vmem>>, vector<24x128xf32>
    tpu.vector_store %arg12[%c0_12, %c0_13], %15 {strides = array<i32>} : memref<24x128xf32, #tpu.memory_space<vmem>>, vector<24x128xf32>,
    %c0_i32_14 = arith.constant 0 : i32
    %17 = arith.cmpi eq, %arg1, %c0_i32_14 : i32
    %18 = arith.extui %17 : i1 to i32
    %c0_i32_15 = arith.constant 0 : i32
    %19 = arith.cmpi ne, %18, %c0_i32_15 : i32
    scf.if %19 {
      %c0_16 = arith.constant 0 : index
      %c0_17 = arith.constant 0 : index
      %20 = vector.load %arg12[%c0_16, %c0_17] : memref<24x128xf32, #tpu.memory_space<vmem>>, vector<24x128xf32>
      %c0_18 = arith.constant 0 : index
      %c0_19 = arith.constant 0 : index
      %21 = vector.load %arg6[%c0_18, %c0_19] : memref<1x128xf32, #tpu.memory_space<vmem>>, vector<1x128xf32>
      %22 = vector.broadcast %21 : vector<1x128xf32> to vector<24x128xf32>
      %23 = arith.addf %20, %22 : vector<24x128xf32>
      %c0_20 = arith.constant 0 : index
      %c0_21 = arith.constant 0 : index
      %24 = vector.load %arg7[%c0_20, %c0_21] : memref<24x128xf32, #tpu.memory_space<vmem>>, vector<24x128xf32>
      %25 = arith.addf %23, %24 : vector<24x128xf32>
      %cst_22 = arith.constant dense<0.000000e+00> : vector<24xf32>
      %26 = vector.multi_reduction <add>, %25, %cst_22 [1] : vector<24x128xf32> to vector<24xf32>
      %27 = vector.shape_cast %26 : vector<24xf32> to vector<24x1xf32>
      %cst_23 = arith.constant 1.280000e+02 : f32
      %28 = vector.broadcast %cst_23 : f32 to vector<24x1xf32>
      %29 = arith.divf %27, %28 : vector<24x1xf32>
      %30 = vector.broadcast %29 : vector<24x1xf32> to vector<24x128xf32>
      %31 = arith.subf %25, %30 : vector<24x128xf32>
      %32 = arith.mulf %31, %31 : vector<24x128xf32>
      %cst_24 = arith.constant dense<0.000000e+00> : vector<24xf32>
      %33 = vector.multi_reduction <add>, %32, %cst_24 [1] : vector<24x128xf32> to vector<24xf32>
      %34 = vector.shape_cast %33 : vector<24xf32> to vector<24x1xf32>
      %cst_25 = arith.constant 1.280000e+02 : f32
      %35 = vector.broadcast %cst_25 : f32 to vector<24x1xf32>
      %36 = arith.divf %34, %35 : vector<24x1xf32>
      %37 = vector.broadcast %29 : vector<24x1xf32> to vector<24x128xf32>
      %38 = arith.subf %25, %37 : vector<24x128xf32>
      %cst_26 = arith.constant 9.99999974E-6 : f32
      %39 = vector.broadcast %cst_26 : f32 to vector<24x1xf32>
      %40 = arith.addf %36, %39 : vector<24x1xf32>
      %41 = math.rsqrt %40 : vector<24x1xf32>
      %42 = vector.broadcast %41 : vector<24x1xf32> to vector<24x128xf32>
      %43 = arith.mulf %38, %42 : vector<24x128xf32>
      %c0_27 = arith.constant 0 : index
      %c0_28 = arith.constant 0 : index
      %44 = vector.load %arg8[%c0_27, %c0_28] : memref<1x128xf32, #tpu.memory_space<vmem>>, vector<1x128xf32>
      %45 = vector.broadcast %44 : vector<1x128xf32> to vector<24x128xf32>
      %46 = arith.mulf %43, %45 : vector<24x128xf32>
      %c0_29 = arith.constant 0 : index
      %c0_30 = arith.constant 0 : index
      %47 = vector.load %arg9[%c0_29, %c0_30] : memref<1x128xf32, #tpu.memory_space<vmem>>, vector<1x128xf32>
      %48 = vector.broadcast %47 : vector<1x128xf32> to vector<24x128xf32>
      %49 = arith.addf %46, %48 : vector<24x128xf32>
      %c0_31 = arith.constant 0 : index
      %c0_32 = arith.constant 0 : index
      %50 = vector.load %arg10[%c0_31, %c0_32] : memref<24x128xf32, #tpu.memory_space<vmem>>, vector<24x128xf32>
      tpu.vector_store %arg10[%c0_31, %c0_32], %49 {strides = array<i32>} : memref<24x128xf32, #tpu.memory_space<vmem>>, vector<24x128xf32>,
      %51 = arith.truncf %49 : vector<24x128xf32> to vector<24x128xbf16>
      %c0_33 = arith.constant 0 : index
      %c0_34 = arith.constant 0 : index
      %52 = vector.load %arg11[%c0_33, %c0_34] : memref<24x128xbf16, #tpu.memory_space<vmem>>, vector<24x128xbf16>
      tpu.vector_store %arg11[%c0_33, %c0_34], %51 {strides = array<i32>} : memref<24x128xbf16, #tpu.memory_space<vmem>>, vector<24x128xbf16>,
    } else {
    }
    return
  }
  func.func @transform_0(%arg0: i32, %arg1: i32) -> (i32, i32) {
    %c0_i32 = arith.constant 0 : i32
    %c0_i32_0 = arith.constant 0 : i32
    return %arg0, %c0_i32 : i32, i32
  }
  func.func @transform_1(%arg0: i32, %arg1: i32) -> (i32, i32) {
    %c0_i32 = arith.constant 0 : i32
    %c0_i32_0 = arith.constant 0 : i32
    return %c0_i32, %arg1 : i32, i32
  }
  func.func @transform_2(%arg0: i32, %arg1: i32) -> (i32, i32) {
    %c0_i32 = arith.constant 0 : i32
    %c0_i32_0 = arith.constant 0 : i32
    return %c0_i32, %arg1 : i32, i32
  }
  func.func @transform_3(%arg0: i32, %arg1: i32) -> (i32, i32) {
    %c0_i32 = arith.constant 0 : i32
    %c0_i32_0 = arith.constant 0 : i32
    return %arg1, %c0_i32 : i32, i32
  }
  func.func @transform_4(%arg0: i32, %arg1: i32) -> (i32, i32) {
    %c0_i32 = arith.constant 0 : i32
    %c0_i32_0 = arith.constant 0 : i32
    %c0_i32_1 = arith.constant 0 : i32
    return %c0_i32, %c0_i32_0 : i32, i32
  }
  func.func @transform_5(%arg0: i32, %arg1: i32) -> (i32, i32) {
    %c0_i32 = arith.constant 0 : i32
    %c0_i32_0 = arith.constant 0 : i32
    return %arg0, %c0_i32 : i32, i32
  }
  func.func @transform_6(%arg0: i32, %arg1: i32) -> (i32, i32) {
    %c0_i32 = arith.constant 0 : i32
    %c0_i32_0 = arith.constant 0 : i32
    %c0_i32_1 = arith.constant 0 : i32
    return %c0_i32, %c0_i32_0 : i32, i32
  }
  func.func @transform_7(%arg0: i32, %arg1: i32) -> (i32, i32) {
    %c0_i32 = arith.constant 0 : i32
    %c0_i32_0 = arith.constant 0 : i32
    %c0_i32_1 = arith.constant 0 : i32
    return %c0_i32, %c0_i32_0 : i32, i32
  }
  func.func @transform_8(%arg0: i32, %arg1: i32) -> (i32, i32) {
    %c0_i32 = arith.constant 0 : i32
    %c0_i32_0 = arith.constant 0 : i32
    return %arg0, %c0_i32 : i32, i32
  }
  func.func @transform_9(%arg0: i32, %arg1: i32) -> (i32, i32) {
    %c0_i32 = arith.constant 0 : i32
    %c0_i32_0 = arith.constant 0 : i32
    return %arg0, %c0_i32 : i32, i32
  }
}

module attributes {stable_mosaic.version = 11 : i64} {
  func.func @_linear_kernel(%arg0: i32, %arg1: i32, %arg2: i32, %arg3: memref<24x128xbf16, #tpu.memory_space<vmem>>, %arg4: memref<128x48xbf16, #tpu.memory_space<vmem>>, %arg5: memref<1x48xf32, #tpu.memory_space<vmem>>, %arg6: memref<24x48xf32, #tpu.memory_space<vmem>>, %arg7: memref<24x48xf32, #tpu.memory_space<vmem>>) attributes {dimension_semantics = [#tpu.dimension_semantics<parallel>, #tpu.dimension_semantics<parallel>, #tpu.dimension_semantics<arbitrary>], iteration_bounds = array<i64: 1, 1, 1>, scalar_prefetch = 0 : i64, scratch_operands = 1 : i64, tpu.core_type = #tpu.core_type<tc>, window_params = [{transform_indices = @transform_0, window_bounds = array<i64: 24, 128>}, {transform_indices = @transform_1, window_bounds = array<i64: 128, 48>}, {transform_indices = @transform_2, window_bounds = array<i64: 1, 48>}, {transform_indices = @transform_3, window_bounds = array<i64: 24, 48>}]} {
    %c0_i32 = arith.constant 0 : i32
    %0 = arith.cmpi eq, %arg2, %c0_i32 : i32
    %1 = arith.extui %0 : i1 to i32
    %c0_i32_0 = arith.constant 0 : i32
    %2 = arith.cmpi ne, %1, %c0_i32_0 : i32
    scf.if %2 {
      %cst_10 = arith.constant 0.000000e+00 : f32
      %12 = vector.broadcast %cst_10 : f32 to vector<24x48xf32>
      %c0_11 = arith.constant 0 : index
      %c0_12 = arith.constant 0 : index
      %13 = vector.load %arg7[%c0_11, %c0_12] : memref<24x48xf32, #tpu.memory_space<vmem>>, vector<24x48xf32>
      tpu.vector_store %arg7[%c0_11, %c0_12], %12 {strides = array<i32>} : memref<24x48xf32, #tpu.memory_space<vmem>>, vector<24x48xf32>,
    } else {
    }
    %c0 = arith.constant 0 : index
    %c0_1 = arith.constant 0 : index
    %3 = vector.load %arg7[%c0, %c0_1] : memref<24x48xf32, #tpu.memory_space<vmem>>, vector<24x48xf32>
    %c0_2 = arith.constant 0 : index
    %c0_3 = arith.constant 0 : index
    %4 = vector.load %arg3[%c0_2, %c0_3] : memref<24x128xbf16, #tpu.memory_space<vmem>>, vector<24x128xbf16>
    %c0_4 = arith.constant 0 : index
    %c0_5 = arith.constant 0 : index
    %5 = vector.load %arg4[%c0_4, %c0_5] : memref<128x48xbf16, #tpu.memory_space<vmem>>, vector<128x48xbf16>
    %cst = arith.constant dense<0.000000e+00> : vector<24x48xf32>
    %6 = tpu.matmul %4, %5, %cst {dimension_numbers = #tpu.dot_dimension_numbers<[1], [0], [0], [1], [0, 0, 1, 1], [], []>} : vector<24x128xbf16>, vector<128x48xbf16>, vector<24x48xf32> -> vector<24x48xf32>
    %7 = arith.addf %3, %6 : vector<24x48xf32>
    %c0_6 = arith.constant 0 : index
    %c0_7 = arith.constant 0 : index
    %8 = vector.load %arg7[%c0_6, %c0_7] : memref<24x48xf32, #tpu.memory_space<vmem>>, vector<24x48xf32>
    tpu.vector_store %arg7[%c0_6, %c0_7], %7 {strides = array<i32>} : memref<24x48xf32, #tpu.memory_space<vmem>>, vector<24x48xf32>,
    %c0_i32_8 = arith.constant 0 : i32
    %9 = arith.cmpi eq, %arg2, %c0_i32_8 : i32
    %10 = arith.extui %9 : i1 to i32
    %c0_i32_9 = arith.constant 0 : i32
    %11 = arith.cmpi ne, %10, %c0_i32_9 : i32
    scf.if %11 {
      %c0_10 = arith.constant 0 : index
      %c0_11 = arith.constant 0 : index
      %12 = vector.load %arg7[%c0_10, %c0_11] : memref<24x48xf32, #tpu.memory_space<vmem>>, vector<24x48xf32>
      %c0_12 = arith.constant 0 : index
      %c0_13 = arith.constant 0 : index
      %13 = vector.load %arg5[%c0_12, %c0_13] : memref<1x48xf32, #tpu.memory_space<vmem>>, vector<1x48xf32>
      %14 = vector.broadcast %13 : vector<1x48xf32> to vector<24x48xf32>
      %15 = arith.addf %12, %14 : vector<24x48xf32>
      %c0_14 = arith.constant 0 : index
      %c0_15 = arith.constant 0 : index
      %16 = vector.load %arg6[%c0_14, %c0_15] : memref<24x48xf32, #tpu.memory_space<vmem>>, vector<24x48xf32>
      tpu.vector_store %arg6[%c0_14, %c0_15], %15 {strides = array<i32>} : memref<24x48xf32, #tpu.memory_space<vmem>>, vector<24x48xf32>,
    } else {
    }
    return
  }
  func.func @transform_0(%arg0: i32, %arg1: i32, %arg2: i32) -> (i32, i32) {
    %c0_i32 = arith.constant 0 : i32
    return %arg0, %arg2 : i32, i32
  }
  func.func @transform_1(%arg0: i32, %arg1: i32, %arg2: i32) -> (i32, i32) {
    %c0_i32 = arith.constant 0 : i32
    return %arg2, %arg1 : i32, i32
  }
  func.func @transform_2(%arg0: i32, %arg1: i32, %arg2: i32) -> (i32, i32) {
    %c0_i32 = arith.constant 0 : i32
    %c0_i32_0 = arith.constant 0 : i32
    return %c0_i32, %arg1 : i32, i32
  }
  func.func @transform_3(%arg0: i32, %arg1: i32, %arg2: i32) -> (i32, i32) {
    %c0_i32 = arith.constant 0 : i32
    return %arg0, %arg1 : i32, i32
  }
}

</mosaic_0001>

<bundles_post_ra>
// kernel: transformer_forward.25
= control target key start
LH: loop header
LB: loop body
LE: loop exit
PB: predicated region body
PF: predicated region fallthrough
CT: control target
= control target key end

     0   :  { %v548_v1 = vmov 0   ;;  %v362_v27 = vlaneseq  ;;  %s674_s1 = inlined_call_operand.vmem [shape: bf16[128,384], index: 1, kind: input, shape index: {}]   ;;  %s675_s0 = inlined_call_operand.vmem [shape: bf16[32,128], index: 0, kind: input, shape index: {}]   ;;  %s676_s2 = inlined_call_operand.vmem [shape: f32[1,384], index: 2, kind: input, shape index: {}]   ;;  %s677_s3 = inlined_call_operand.vmem [shape: bf16[32,384], index: 3, kind: output, shape index: {}]  }
   0x1   :  { %v514_v0 = vld [vmem:[%s674_s1 + $0x4] ss:$12 sps:$4 sm:$0xff]   ;;  %251 = vmatprep.mubr.bf16.mxu0 %v548_v1  ;;  %v516_v2 = vld [vmem:[%s674_s1] ss:$12 sps:$4 sm:$0xff]   ;;  %v517_v3 = vld [vmem:[%s674_s1 + $0x1c] ss:$12 sps:$4 sm:$0xff]  }
   0x2   :  { %219 = vmatprep.subr.bf16.mxu0 %v514_v0  ;;  %v519_v4 = vld [vmem:[%s674_s1 + $0x18] ss:$12 sps:$4 sm:$0xff]   ;;  %v520_v5 = vld [vmem:[%s674_s1 + $0x8] ss:$12 sps:$4 sm:$0xff]   ;;  %v524_v7 = vld [vmem:[%s674_s1 + $0x20] ss:$12 sps:$4 sm:$0xff]  }
   0x3   :  { %220 = vmatpush1.bf16.msra.mxu0 %v516_v2  ;;  %v521_v6 = vld [vmem:[%s674_s1 + $0x34] ss:$12 sps:$4 sm:$0xff]   ;;  %493 = vmatprep.subr.bf16.mxu1 %v520_v5  ;;  %v523_v8 = vld [vmem:[%s674_s1 + $0x30] ss:$12 sps:$4 sm:$0xff]   ;;  %v525_v9 = vld [vmem:[%s674_s1 + $0x4c] ss:$12 sps:$4 sm:$0xff]  }
   0x4   :  { %221 = vmatprep.subr.bf16.mxu0 %v517_v3  ;;  %494 = vmatpush3.bf16.msra.mxu1 %v520_v5  ;;  %v528_v10 = vld [vmem:[%s674_s1 + $0x38] ss:$12 sps:$4 sm:$0xff]   ;;  %v527_v11 = vld [vmem:[%s674_s1 + $0x48] ss:$12 sps:$4 sm:$0xff]   ;;  %v532_v12 = vld [vmem:[%s674_s1 + $0x50] ss:$12 sps:$4 sm:$0xff]  }
   0x5   :  { %495 = vmatprep.subr.bf16.mxu1 %v524_v7  ;;  %v529_v13 = vld [vmem:[%s674_s1 + $0x64] ss:$12 sps:$4 sm:$0xff]   ;;  %v531_v14 = vld [vmem:[%s674_s1 + $0x60] ss:$12 sps:$4 sm:$0xff]   ;;  %v536_v15 = vld [vmem:[%s674_s1 + $0x68] ss:$12 sps:$4 sm:$0xff]  }
   0x6   :  { %v533_v16 = vld [vmem:[%s674_s1 + $0x7c] ss:$12 sps:$4 sm:$0xff]   ;;  %v535_v17 = vld [vmem:[%s674_s1 + $0x78] ss:$12 sps:$4 sm:$0xff]   ;;  %v540_v19 = vld [vmem:[%s674_s1 + $0x80] ss:$12 sps:$4 sm:$0xff]  }
   0x7   :  { %222 = vmatpush1.bf16.msra.mxu0 %v519_v4  ;;  %v545_v18 = vld [vmem:[%s675_s0] sm:$0xff]   ;;  %v539_v21 = vld [vmem:[%s674_s1 + $0x90] ss:$12 sps:$4 sm:$0xff]   ;;  %v541_v23 = vld [vmem:[%s674_s1 + $0xac] ss:$12 sps:$4 sm:$0xff]   ;;  %v363_v28 = vshrl.u32 %v362_v27, 7 }
   0x8   :  { %223 = vmatprep.subr.bf16.mxu0 %v521_v6  ;;  %496 = vmatpush3.bf16.msra.mxu1 %v524_v7  ;;  %v537_v20 = vld [vmem:[%s674_s1 + $0x94] ss:$12 sps:$4 sm:$0xff]   ;;  %v544_v22 = vld [vmem:[%s674_s1 + $0x98] ss:$12 sps:$4 sm:$0xff]   ;;  %v546_v25 = vld [vmem:[%s674_s1 + $0xb0] ss:$12 sps:$4 sm:$0xff]  }
   0x9   :  { %497 = vmatprep.subr.bf16.mxu1 %v528_v10  ;;  %509 = vmatprep.mubr.bf16.mxu1 %v545_v18  ;;  %v543_v24 = vld [vmem:[%s674_s1 + $0xa8] ss:$12 sps:$4 sm:$0xff]   ;;  %v364_v29 = vsub.s32 0, %v363_v28  ;;  %v360_v30 = vld [vmem:[%s676_s2] sm:$0x7]  ;;  %v368_v31 = vsub.s32 1, %v363_v28 }
   0xa   :  { %v547_v26 = vld [vmem:[%s675_s0 + $0x8] sm:$0xff]   ;;  %v372_v32 = vsub.s32 2, %v363_v28 }
   0xb   :  { %224 = vmatpush1.bf16.msra.mxu0 %v523_v8  ;;  %v365_v33 = vrot.slane %v360_v30, %v364_v29  ;;  %v369_v34 = vrot.slane %v360_v30, %v368_v31 }
   0xc   :  { %225 = vmatprep.subr.bf16.mxu0 %v525_v9  ;;  %498 = vmatpush3.bf16.msra.mxu1 %v528_v10  ;;  %v373_v36 = vrot.slane %v360_v30, %v372_v32 }
   0xd   :  { %499 = vmatprep.subr.bf16.mxu1 %v532_v12 }
   0xf   :  { %226 = vmatpush1.bf16.msra.mxu0 %v527_v11 }
  0x10   :  { %227 = vmatprep.subr.bf16.mxu0 %v529_v13  ;;  %500 = vmatpush3.bf16.msra.mxu1 %v532_v12 }
  0x11   :  { %501 = vmatprep.subr.bf16.mxu1 %v536_v15 }
  0x13   :  { %228 = vmatpush1.bf16.msra.mxu0 %v531_v14 }
  0x14   :  { %229 = vmatprep.subr.bf16.mxu0 %v533_v16  ;;  %502 = vmatpush3.bf16.msra.mxu1 %v536_v15 }
  0x15   :  { %503 = vmatprep.subr.bf16.mxu1 %v540_v19 }
  0x17   :  { %230 = vmatpush1.bf16.msra.mxu0 %v535_v17 }
  0x18   :  { %231 = vmatprep.subr.bf16.mxu0 %v537_v20  ;;  %504 = vmatpush3.bf16.msra.mxu1 %v540_v19 }
  0x19   :  { %505 = vmatprep.subr.bf16.mxu1 %v544_v22 }
  0x1b   :  { %232 = vmatpush1.bf16.msra.mxu0 %v539_v21 }
  0x1c   :  { %233 = vmatprep.subr.bf16.mxu0 %v541_v23  ;;  %506 = vmatpush3.bf16.msra.mxu1 %v544_v22 }
  0x1d   :  { %507 = vmatprep.subr.bf16.mxu1 %v546_v25 }
  0x1f   :  { %234 = vmatpush1.bf16.msra.mxu0 %v543_v24 }
  0x20   :  { %508 = vmatpush3.bf16.msra.mxu1 %v546_v25 }
  0x22   :  { %252 = vmatmul.mubr.bf16.vlgmr.msra.gmra.mrb[0].mxu0 %v545_v18 }
  0x23   :  { %261 = vmatprep.mubr.bf16.mxu0 %v548_v1  ;;  %510 = vmatmul.mubr.bf16.vlgmr.msra.gmra.mrb[0].mxu1 %v547_v26 }
  0x2a   :  { %262 = vmatmul.mubr.bf16.gmra.mrb[4].mxu0 %v547_v26 }
  0xf5   :  { %v253_v35 = vpop.f32.mrb[0].mxu0 }
  0xf6   :  { %v377_v37 = vadd.f32 %v365_v33, %v253_v35  ;;  %v255_v38 = vpop.f32.mrb[1].mxu0  ;;  %v511_v43 = vpop.f32.mrb[0].mxu1 }
  0xf7   :  { %v378_v39 = vadd.f32 %v369_v34, %v255_v38  ;;  %v257_v40 = vpop.f32.mrb[2].mxu0  ;;  %v385_v46 = vadd.f32 %v511_v43, %v373_v36  ;;  %v306_v47 = vpop.f32.mrb[1].mxu1 }
  0xf8   :  { %v380_v41 = vadd.f32 %v365_v33, %v257_v40  ;;  %v259_v42 = vpop.f32.mrb[3].mxu0  ;;  %v379_v48 = vadd.f32 %v373_v36, %v306_v47  ;;  %v512_v49 = vpop.f32.mrb[2].mxu1 }
  0xf9   :  { %v475_v44 = vpack.c.bf16 %v378_v39, %v377_v37  ;;  %v381_v45 = vadd.f32 %v369_v34, %v259_v42  ;;  %v480_v51 = vpack.c.bf16 %v385_v46, %v385_v46  ;;  %v388_v52 = vadd.f32 %v512_v49, %v373_v36  ;;  %v309_v53 = vpop.f32.mrb[3].mxu1 }
  0xfa   :  { %v476_v54 = vpack.c.bf16 %v379_v48, %v379_v48  ;;  %v382_v55 = vadd.f32 %v373_v36, %v309_v53 }
  0xfb   :  { %429 = vst [vmem:[%s677_s3] sm:$0xff] %v475_v44  ;;  %v477_v50 = vpack.c.bf16 %v381_v45, %v380_v41  ;;  %434 = vst [vmem:[%s677_s3 + $0x20] sm:$0xf] %v480_v51  ;;  %v482_v56 = vpack.c.bf16 %v388_v52, %v388_v52 }
  0xfc   :  { %430 = vst [vmem:[%s677_s3 + $0x8] sm:$0xf] %v476_v54  ;;  %v478_v59 = vpack.c.bf16 %v382_v55, %v382_v55 }
  0xfd   :  { %431 = vst [vmem:[%s677_s3 + $0xc] sm:$0xff] %v477_v50  ;;  %v263_v57 = vpop.f32.mrb[4].mxu0  ;;  %436 = vst [vmem:[%s677_s3 + $0x2c] sm:$0xf] %v482_v56 }
  0xfe   :  { %v383_v58 = vadd.f32 %v365_v33, %v263_v57  ;;  %v265_v60 = vpop.f32.mrb[5].mxu0  ;;  %432 = vst [vmem:[%s677_s3 + $0x14] sm:$0xf] %v478_v59 }
  0xff   :  { %v384_v61 = vadd.f32 %v369_v34, %v265_v60  ;;  %v267_v62 = vpop.f32.mrb[6].mxu0 }
 0x100   :  { %v386_v63 = vadd.f32 %v365_v33, %v267_v62  ;;  %v269_v0 = vpop.f32.mrb[7].mxu0 }
 0x101   :  { %v479_v1 = vpack.c.bf16 %v384_v61, %v383_v58  ;;  %v387_v2 = vadd.f32 %v369_v34, %v269_v0 }
 0x103   :  { %433 = vst [vmem:[%s677_s3 + $0x18] sm:$0xff] %v479_v1  ;;  %v481_v3 = vpack.c.bf16 %v387_v2, %v386_v63 }
 0x105   :  { %435 = vst [vmem:[%s677_s3 + $0x24] sm:$0xff] %v481_v3 }

// kernel: transformer_forward.27
= control target key start
LH: loop header
LB: loop body
LE: loop exit
PB: predicated region body
PF: predicated region fallthrough
CT: control target
= control target key end

     0   :  { %s489_s1 = inlined_call_operand.vmem [shape: bf16[128,128], index: 1, kind: input, shape index: {}]   ;;  %s490_s0 = inlined_call_operand.vmem [shape: bf16[32,128], index: 0, kind: input, shape index: {}]   ;;  %s491_s2 = inlined_call_operand.vmem [shape: f32[1,128], index: 2, kind: input, shape index: {}]   ;;  %s492_s3 = inlined_call_operand.vmem [shape: f32[32,128], index: 3, kind: input, shape index: {}]   ;;  %s493_s4 = inlined_call_operand.vmem [shape: f32[1,128], index: 4, kind: input, shape index: {}]   ;;  %s494_s5 = inlined_call_operand.vmem [shape: f32[1,128], index: 5, kind: input, shape index: {}]   ;;  %s495_s6 = inlined_call_operand.vmem [shape: f32[32,128], index: 6, kind: output, shape index: {0}]   ;;  %s496_s7 = inlined_call_operand.vmem [shape: bf16[32,128], index: 7, kind: output, shape index: {1}]  }
   0x1   :  { %v362_v0 = vld [vmem:[%s489_s1] sm:$0xff]   ;;  %v363_v1 = vld [vmem:[%s489_s1 + $0x8] sm:$0xff]   ;;  %v364_v2 = vld [vmem:[%s489_s1 + $0x10] sm:$0xff]  }
   0x2   :  { %342 = vmatprep.subr.bf16.mxu0 %v362_v0  ;;  %v365_v3 = vld [vmem:[%s489_s1 + $0x18] sm:$0xff]   ;;  %v370_v4 = vld [vmem:[%s490_s0] sm:$0xff]   ;;  %v367_v6 = vld [vmem:[%s489_s1 + $0x28] sm:$0xff]  }
   0x3   :  { %343 = vmatpush3.bf16.msra.mxu0 %v362_v0  ;;  %358 = vmatprep.mubr.bf16.mxu0 %v370_v4  ;;  %v366_v5 = vld [vmem:[%s489_s1 + $0x20] sm:$0xff]   ;;  %v368_v7 = vld [vmem:[%s489_s1 + $0x30] sm:$0xff]   ;;  %v369_v8 = vld [vmem:[%s489_s1 + $0x38] sm:$0xff]  }
   0x4   :  { %344 = vmatprep.subr.bf16.mxu0 %v363_v1  ;;  %v371_v9 = vld [vmem:[%s490_s0 + $0x8] sm:$0xff]   ;;  %v310_v10 = vld [vmem:[%s491_s2] ss:$0 sm:$0xff]  ;;  %v195_v12 = vld [vmem:[%s492_s3 + $0x10] sm:$0xff] }
   0x5   :  { %v193_v15 = vld [vmem:[%s492_s3] sm:$0xff]  ;;  %v196_v23 = vld [vmem:[%s492_s3 + $0x18] sm:$0xff]  ;;  %v194_v24 = vld [vmem:[%s492_s3 + $0x8] sm:$0xff] }
   0x6   :  { %v311_v56 = vld [vmem:[%s493_s4] ss:$0 sm:$0xff] }
   0x7   :  { %345 = vmatpush3.bf16.msra.mxu0 %v363_v1  ;;  %v312_v58 = vld [vmem:[%s494_s5] ss:$0 sm:$0xff] }
   0x8   :  { %346 = vmatprep.subr.bf16.mxu0 %v364_v2 }
   0xb   :  { %347 = vmatpush3.bf16.msra.mxu0 %v364_v2 }
   0xc   :  { %348 = vmatprep.subr.bf16.mxu0 %v365_v3 }
   0xf   :  { %349 = vmatpush3.bf16.msra.mxu0 %v365_v3 }
  0x10   :  { %350 = vmatprep.subr.bf16.mxu0 %v366_v5 }
  0x13   :  { %351 = vmatpush3.bf16.msra.mxu0 %v366_v5 }
  0x14   :  { %352 = vmatprep.subr.bf16.mxu0 %v367_v6 }
  0x17   :  { %353 = vmatpush3.bf16.msra.mxu0 %v367_v6 }
  0x18   :  { %354 = vmatprep.subr.bf16.mxu0 %v368_v7 }
  0x1b   :  { %355 = vmatpush3.bf16.msra.mxu0 %v368_v7 }
  0x1c   :  { %356 = vmatprep.subr.bf16.mxu0 %v369_v8 }
  0x1f   :  { %357 = vmatpush3.bf16.msra.mxu0 %v369_v8 }
  0x22   :  { %359 = vmatmul.mubr.bf16.vlgmr.msra.gmra.mrb[0].mxu0 %v371_v9 }
  0xf5   :  { %v360_v11 = vpop.f32.mrb[0].mxu0 }
  0xf6   :  { %v191_v13 = vadd.f32 %v360_v11, %v310_v10  ;;  %v152_v14 = vpop.f32.mrb[1].mxu0 }
  0xf7   :  { %v189_v16 = vadd.f32 %v310_v10, %v152_v14  ;;  %v361_v17 = vpop.f32.mrb[2].mxu0 }
  0xf8   :  { %v192_v18 = vadd.f32 %v361_v17, %v310_v10  ;;  %v155_v19 = vpop.f32.mrb[3].mxu0  ;;  %v199_v20 = vadd.f32 %v195_v12, %v191_v13 }
  0xf9   :  { %v190_v21 = vadd.f32 %v310_v10, %v155_v19  ;;  %v197_v22 = vadd.f32 %v193_v15, %v189_v16 }
  0xfa   :  { %205 = vadd.xlane.f32.xlu1 %v199_v20  ;;  %v200_v25 = vadd.f32 %v196_v23, %v192_v18 }
  0xfb   :  { %201 = vadd.xlane.f32.xlu0 %v197_v22  ;;  %v198_v26 = vadd.f32 %v194_v24, %v190_v21 }
  0xfe   :  { %207 = vadd.xlane.f32.xlu1 %v200_v25 }
  0xff   :  { %203 = vadd.xlane.f32.xlu0 %v198_v26 }
 0x187   :  { %v206_v27 = vpop.xlane.xlu1 %205 }
 0x188   :  { %v202_v28 = vpop.xlane.xlu0 %201  ;;  %v212_v29 = vmul.f32 0.0078125, %v206_v27 }
 0x189   :  { %v210_v30 = vmul.f32 0.0078125, %v202_v28 }
 0x18a   :  { %v216_v34 = vsub.f32 %v199_v20, %v212_v29 }
 0x18b   :  { %v214_v31 = vsub.f32 %v197_v22, %v210_v30  ;;  %v208_v32 = vpop.xlane.xlu1 %207 }
 0x18c   :  { %v204_v33 = vpop.xlane.xlu0 %203  ;;  %v213_v35 = vmul.f32 0.0078125, %v208_v32  ;;  %v220_v40 = vmul.f32 %v216_v34, %v216_v34 }
 0x18d   :  { %v211_v36 = vmul.f32 0.0078125, %v204_v33  ;;  %v218_v37 = vmul.f32 %v214_v31, %v214_v31 }
 0x18e   :  { %v217_v39 = vsub.f32 %v200_v25, %v213_v35 }
 0x18f   :  { %v215_v38 = vsub.f32 %v198_v26, %v211_v36  ;;  %222 = vadd.xlane.f32.xlu0 %v218_v37 }
 0x190   :  { %v221_v42 = vmul.f32 %v217_v39, %v217_v39 }
 0x191   :  { %v219_v41 = vmul.f32 %v215_v38, %v215_v38 }
 0x193   :  { %226 = vadd.xlane.f32.xlu0 %v220_v40  ;;  %224 = vadd.xlane.f32.xlu1 %v219_v41 }
 0x197   :  { %228 = vadd.xlane.f32.xlu1 %v221_v42 }
 0x21c   :  { %v223_v43 = vpop.xlane.xlu0 %222 }
 0x21d   :  { %v230_v44 = vmul.f32 0.0078125, %v223_v43 }
 0x21f   :  { %v234_v45 = vadd.f32 1e-05, %v230_v44 }
 0x220   :  { %v225_v46 = vpop.xlane.xlu1 %224  ;;  %v227_v47 = vpop.xlane.xlu0 %226 }
 0x221   :  { %372 = vrsqrt.f32 %v234_v45  ;;  %v231_v48 = vmul.f32 0.0078125, %v225_v46  ;;  %v232_v49 = vmul.f32 0.0078125, %v227_v47 }
 0x223   :  { %v235_v50 = vadd.f32 1e-05, %v231_v48  ;;  %v236_v51 = vadd.f32 1e-05, %v232_v49 }
 0x224   :  { %v229_v52 = vpop.xlane.xlu1 %228 }
 0x225   :  { %374 = vrsqrt.f32 %v235_v50  ;;  %v233_v53 = vmul.f32 0.0078125, %v229_v52 }
 0x226   :  { %376 = vrsqrt.f32 %v236_v51 }
 0x227   :  { %v237_v54 = vadd.f32 1e-05, %v233_v53 }
 0x229   :  { %378 = vrsqrt.f32 %v237_v54 }
 0x22b   :  { %v373_v55 = vpop.eup %372 }
 0x22c   :  { %v242_v57 = vmul.f32 %v373_v55, %v214_v31 }
 0x22e   :  { %v253_v59 = vmul.f32 %v311_v56, %v242_v57 }
 0x22f   :  { %v375_v60 = vpop.eup %374 }
 0x230   :  { %v377_v61 = vpop.eup %376  ;;  %v264_v62 = vadd.f32 %v312_v58, %v253_v59  ;;  %v243_v63 = vmul.f32 %v375_v60, %v215_v38 }
 0x231   :  { %v244_v0 = vmul.f32 %v377_v61, %v216_v34 }
 0x232   :  { %268 = vst [vmem:[%s495_s6] sm:$0xff] %v264_v62  ;;  %v254_v1 = vmul.f32 %v311_v56, %v243_v63 }
 0x233   :  { %v379_v2 = vpop.eup %378  ;;  %v255_v3 = vmul.f32 %v311_v56, %v244_v0 }
 0x234   :  { %v265_v4 = vadd.f32 %v312_v58, %v254_v1  ;;  %v245_v5 = vmul.f32 %v379_v2, %v217_v39 }
 0x235   :  { %v266_v6 = vadd.f32 %v312_v58, %v255_v3 }
 0x236   :  { %269 = vst [vmem:[%s495_s6 + $0x8] sm:$0xff] %v265_v4  ;;  %v324_v7 = vpack.c.bf16 %v265_v4, %v264_v62  ;;  %v256_v8 = vmul.f32 %v311_v56, %v245_v5 }
 0x237   :  { %270 = vst [vmem:[%s495_s6 + $0x10] sm:$0xff] %v266_v6 }
 0x238   :  { %325 = vst [vmem:[%s496_s7] sm:$0xff] %v324_v7   ;;  %v267_v9 = vadd.f32 %v312_v58, %v256_v8 }
 0x23a   :  { %271 = vst [vmem:[%s495_s6 + $0x18] sm:$0xff] %v267_v9  ;;  %v329_v10 = vpack.c.bf16 %v267_v9, %v266_v6 }
 0x23c   :  { %331 = vst [vmem:[%s496_s7 + $0x8] sm:$0xff] %v329_v10  }

// kernel: transformer_forward.28
= control target key start
LH: loop header
LB: loop body
LE: loop exit
PB: predicated region body
PF: predicated region fallthrough
CT: control target
= control target key end

     0   :  { %v678_v1 = vmov 0   ;;  %v62_v35 = vlaneseq  ;;  %s873_s1 = inlined_call_operand.vmem [shape: bf16[128,256], index: 1, kind: input, shape index: {}]   ;;  %s874_s0 = inlined_call_operand.vmem [shape: bf16[32,128], index: 0, kind: input, shape index: {}]   ;;  %s875_s3 = inlined_call_operand.vmem [shape: bf16[256,128], index: 3, kind: input, shape index: {}]   ;;  %s876_s2 = inlined_call_operand.vmem [shape: f32[1,256], index: 2, kind: input, shape index: {}]   ;;  %s877_s4 = inlined_call_operand.vmem [shape: f32[1,128], index: 4, kind: input, shape index: {}]   ;;  %s878_s5 = inlined_call_operand.vmem [shape: f32[32,128], index: 5, kind: input, shape index: {}]   ;;  %s879_s6 = inlined_call_operand.vmem [shape: f32[1,128], index: 6, kind: input, shape index: {}]   ;;  %s880_s7 = inlined_call_operand.vmem [shape: f32[1,128], index: 7, kind: input, shape index: {}]   ;;  %s881_s8 = inlined_call_operand.vmem [shape: f32[32,128], index: 8, kind: output, shape index: {0}]   ;;  %s882_s9 = inlined_call_operand.vmem [shape: bf16[32,128], index: 9, kind: output, shape index: {1}]  }
   0x1   :  { %v628_v0 = vld [vmem:[%s873_s1 + $0x4] ss:$8 sps:$4 sm:$0xff]   ;;  %196 = vmatprep.mubr.bf16.mxu0 %v678_v1  ;;  %v630_v2 = vld [vmem:[%s873_s1] ss:$8 sps:$4 sm:$0xff]   ;;  %v631_v3 = vld [vmem:[%s873_s1 + $0x14] ss:$8 sps:$4 sm:$0xff]  }
   0x2   :  { %164 = vmatprep.subr.bf16.mxu0 %v628_v0  ;;  %v633_v4 = vld [vmem:[%s873_s1 + $0x10] ss:$8 sps:$4 sm:$0xff]   ;;  %v634_v5 = vld [vmem:[%s873_s1 + $0x24] ss:$8 sps:$4 sm:$0xff]   ;;  %v636_v6 = vld [vmem:[%s873_s1 + $0x20] ss:$8 sps:$4 sm:$0xff]  }
   0x3   :  { %165 = vmatpush1.bf16.msra.mxu0 %v630_v2  ;;  %v637_v7 = vld [vmem:[%s873_s1 + $0x34] ss:$8 sps:$4 sm:$0xff]   ;;  %v639_v8 = vld [vmem:[%s873_s1 + $0x30] ss:$8 sps:$4 sm:$0xff]   ;;  %v640_v9 = vld [vmem:[%s873_s1 + $0x44] ss:$8 sps:$4 sm:$0xff]  }
   0x4   :  { %166 = vmatprep.subr.bf16.mxu0 %v631_v3  ;;  %v642_v10 = vld [vmem:[%s873_s1 + $0x40] ss:$8 sps:$4 sm:$0xff]   ;;  %v643_v12 = vld [vmem:[%s873_s1 + $0x54] ss:$8 sps:$4 sm:$0xff]   ;;  %v645_v17 = vld [vmem:[%s873_s1 + $0x50] ss:$8 sps:$4 sm:$0xff]  }
   0x5   :  { %v654_v11 = vld [vmem:[%s875_s3 + $0x40] sm:$0xff]   ;;  %v656_v14 = vld [vmem:[%s875_s3 + $0x48] sm:$0xff]   ;;  %v658_v16 = vld [vmem:[%s875_s3 + $0x50] sm:$0xff]   ;;  %v63_v36 = vshrl.u32 %v62_v35, 7 }
   0x6   :  { %v655_v13 = vld [vmem:[%s875_s3] sm:$0xff]   ;;  %599 = vmatprep.subr.bf16.mxu1 %v654_v11  ;;  %v657_v15 = vld [vmem:[%s875_s3 + $0x8] sm:$0xff]   ;;  %v659_v19 = vld [vmem:[%s875_s3 + $0x10] sm:$0xff]  }
   0x7   :  { %167 = vmatpush1.bf16.msra.mxu0 %v633_v4  ;;  %600 = vmatpush3.bf16.msra.mxu1 %v655_v13  ;;  %v646_v18 = vld [vmem:[%s873_s1 + $0x64] ss:$8 sps:$4 sm:$0xff]   ;;  %v648_v20 = vld [vmem:[%s873_s1 + $0x60] ss:$8 sps:$4 sm:$0xff]   ;;  %v660_v21 = vld [vmem:[%s875_s3 + $0x58] sm:$0xff]   ;;  %v64_v37 = vsub.s32 0, %v63_v36 }
   0x8   :  { %168 = vmatprep.subr.bf16.mxu0 %v634_v5  ;;  %601 = vmatprep.subr.bf16.mxu1 %v656_v14  ;;  %v649_v22 = vld [vmem:[%s873_s1 + $0x74] ss:$8 sps:$4 sm:$0xff]   ;;  %v662_v24 = vld [vmem:[%s875_s3 + $0x60] sm:$0xff]   ;;  %v651_v25 = vld [vmem:[%s873_s1 + $0x70] ss:$8 sps:$4 sm:$0xff]   ;;  %v68_v39 = vsub.s32 1, %v63_v36 }
   0x9   :  { %v661_v23 = vld [vmem:[%s875_s3 + $0x18] sm:$0xff]   ;;  %v663_v26 = vld [vmem:[%s875_s3 + $0x20] sm:$0xff]   ;;  %v664_v27 = vld [vmem:[%s875_s3 + $0x68] sm:$0xff]  }
   0xa   :  { %v652_v28 = vld [vmem:[%s874_s0] sm:$0xff]   ;;  %v653_v29 = vld [vmem:[%s874_s0 + $0x8] sm:$0xff]   ;;  %v666_v31 = vld [vmem:[%s875_s3 + $0x70] sm:$0xff]  }
   0xb   :  { %169 = vmatpush1.bf16.msra.mxu0 %v636_v6  ;;  %602 = vmatpush3.bf16.msra.mxu1 %v657_v15  ;;  %v665_v30 = vld [vmem:[%s875_s3 + $0x28] sm:$0xff]   ;;  %v667_v32 = vld [vmem:[%s875_s3 + $0x30] sm:$0xff]   ;;  %v668_v33 = vld [vmem:[%s875_s3 + $0x78] sm:$0xff]  }
   0xc   :  { %170 = vmatprep.subr.bf16.mxu0 %v637_v7  ;;  %603 = vmatprep.subr.bf16.mxu1 %v658_v16  ;;  %v669_v34 = vld [vmem:[%s875_s3 + $0x38] sm:$0xff]   ;;  %v60_v38 = vld [vmem:[%s876_s2] sm:$0x3] }
   0xd   :  { %v65_v40 = vrot.slane %v60_v38, %v64_v37  ;;  %v69_v41 = vrot.slane %v60_v38, %v68_v39 }
   0xf   :  { %171 = vmatpush1.bf16.msra.mxu0 %v639_v8  ;;  %604 = vmatpush3.bf16.msra.mxu1 %v659_v19  ;;  %v577_v8 = vld [vmem:[%s877_s4] ss:$0 sm:$0xff] }
  0x10   :  { %172 = vmatprep.subr.bf16.mxu0 %v640_v9  ;;  %605 = vmatprep.subr.bf16.mxu1 %v660_v21 }
  0x13   :  { %173 = vmatpush1.bf16.msra.mxu0 %v642_v10  ;;  %606 = vmatpush3.bf16.msra.mxu1 %v661_v23 }
  0x14   :  { %174 = vmatprep.subr.bf16.mxu0 %v643_v12  ;;  %607 = vmatprep.subr.bf16.mxu1 %v662_v24  ;;  %v436_v12 = vld [vmem:[%s878_s5] sm:$0xff]  ;;  %v438_v24 = vld [vmem:[%s878_s5 + $0x10] sm:$0xff] }
  0x17   :  { %175 = vmatpush1.bf16.msra.mxu0 %v645_v17  ;;  %608 = vmatpush3.bf16.msra.mxu1 %v663_v26  ;;  %v437_v17 = vld [vmem:[%s878_s5 + $0x8] sm:$0xff] }
  0x18   :  { %176 = vmatprep.subr.bf16.mxu0 %v646_v18  ;;  %609 = vmatprep.subr.bf16.mxu1 %v664_v27 }
  0x1b   :  { %177 = vmatpush1.bf16.msra.mxu0 %v648_v20  ;;  %610 = vmatpush3.bf16.msra.mxu1 %v665_v30 }
  0x1c   :  { %178 = vmatprep.subr.bf16.mxu0 %v649_v22  ;;  %611 = vmatprep.subr.bf16.mxu1 %v666_v31 }
  0x1f   :  { %179 = vmatpush1.bf16.msra.mxu0 %v651_v25  ;;  %612 = vmatpush3.bf16.msra.mxu1 %v667_v32 }
  0x20   :  { %613 = vmatprep.subr.bf16.mxu1 %v668_v33 }
  0x22   :  { %197 = vmatmul.mubr.bf16.vlgmr.msra.gmra.mrb[0].mxu0 %v652_v28 }
  0x23   :  { %206 = vmatprep.mubr.bf16.mxu0 %v678_v1  ;;  %614 = vmatpush3.bf16.msra.mxu1 %v669_v34 }
  0x2a   :  { %207 = vmatmul.mubr.bf16.gmra.mrb[4].mxu0 %v653_v29  ;;  %v439_v29 = vld [vmem:[%s878_s5 + $0x18] sm:$0xff] }
  0xf5   :  { %v198_v42 = vpop.f32.mrb[0].mxu0 }
  0xf6   :  { %v199_v43 = vadd.f32 %v198_v42, %v65_v40  ;;  %v200_v44 = vpop.f32.mrb[1].mxu0 }
  0xf7   :  { %v201_v45 = vadd.f32 %v200_v44, %v69_v41  ;;  %v202_v46 = vpop.f32.mrb[2].mxu0 }
  0xf8   :  { %v203_v47 = vadd.f32 %v202_v46, %v65_v40  ;;  %v204_v48 = vpop.f32.mrb[3].mxu0  ;;  %v217_v50 = vmax.f32 %v199_v43, 0.0 }
  0xf9   :  { %v205_v49 = vadd.f32 %v204_v48, %v69_v41  ;;  %v218_v52 = vmax.f32 %v201_v45, 0.0 }
  0xfa   :  { %v219_v51 = vmax.f32 %v203_v47, 0.0 }
  0xfb   :  { %v220_v53 = vmax.f32 %v205_v49, 0.0 }
  0xfc   :  { %v229_v54 = vpack.c.bf16 %v219_v51, %v217_v50 }
  0xfd   :  { %v208_v55 = vpop.f32.mrb[4].mxu0  ;;  %v230_v56 = vpack.c.bf16 %v220_v53, %v218_v52 }
  0xfe   :  { %v209_v57 = vadd.f32 %v208_v55, %v65_v40  ;;  %v210_v58 = vpop.f32.mrb[5].mxu0 }
  0xff   :  { %v211_v59 = vadd.f32 %v210_v58, %v69_v41  ;;  %v212_v60 = vpop.f32.mrb[6].mxu0  ;;  %393 = vmatprep.mubr.bf16.mxu1 %v230_v56 }
 0x100   :  { %v213_v61 = vadd.f32 %v212_v60, %v65_v40  ;;  %v214_v62 = vpop.f32.mrb[7].mxu0  ;;  %394 = vmatmul.mubr.bf16.vlgmr.msra.gmra.mrb[0].mxu1 %v229_v54  ;;  %v221_v0 = vmax.f32 %v209_v57, 0.0 }
 0x101   :  { %v215_v63 = vadd.f32 %v214_v62, %v69_v41  ;;  %v222_v2 = vmax.f32 %v211_v59, 0.0  ;;  %v578_v59 = vld [vmem:[%s879_s6] ss:$0 sm:$0xff] }
 0x102   :  { %v223_v1 = vmax.f32 %v213_v61, 0.0  ;;  %v579_v62 = vld [vmem:[%s880_s7] ss:$0 sm:$0xff] }
 0x103   :  { %v224_v3 = vmax.f32 %v215_v63, 0.0 }
 0x104   :  { %v231_v4 = vpack.c.bf16 %v223_v1, %v221_v0 }
 0x105   :  { %v232_v5 = vpack.c.bf16 %v224_v3, %v222_v2 }
 0x107   :  { %401 = vmatprep.mubr.bf16.mxu1 %v232_v5 }
 0x108   :  { %402 = vmatmul.mubr.bf16.gmra.mrb[4].mxu1 %v231_v4 }
 0x1d3   :  { %v615_v6 = vpop.f32.mrb[0].mxu1 }
 0x1d4   :  { %v616_v7 = vpop.f32.mrb[1].mxu1 }
 0x1d5   :  { %v617_v9 = vadd.f32 %v616_v7, %v615_v6  ;;  %v618_v10 = vpop.f32.mrb[2].mxu1 }
 0x1d6   :  { %v619_v11 = vpop.f32.mrb[3].mxu1 }
 0x1d7   :  { %v432_v13 = vadd.f32 %v617_v9, %v577_v8  ;;  %v620_v14 = vadd.f32 %v619_v11, %v618_v10 }
 0x1d9   :  { %v433_v15 = vadd.f32 %v620_v14, %v577_v8  ;;  %v440_v16 = vadd.f32 %v436_v12, %v432_v13 }
 0x1db   :  { %v621_v18 = vpop.f32.mrb[4].mxu1  ;;  %444 = vadd.xlane.f32.xlu0 %v440_v16  ;;  %v441_v22 = vadd.f32 %v437_v17, %v433_v15 }
 0x1dc   :  { %v622_v19 = vpop.f32.mrb[5].mxu1 }
 0x1dd   :  { %v623_v20 = vadd.f32 %v622_v19, %v621_v18  ;;  %v624_v21 = vpop.f32.mrb[6].mxu1 }
 0x1de   :  { %v625_v23 = vpop.f32.mrb[7].mxu1 }
 0x1df   :  { %v434_v25 = vadd.f32 %v623_v20, %v577_v8  ;;  %v626_v26 = vadd.f32 %v625_v23, %v624_v21  ;;  %446 = vadd.xlane.f32.xlu0 %v441_v22 }
 0x1e1   :  { %v435_v27 = vadd.f32 %v626_v26, %v577_v8  ;;  %v442_v28 = vadd.f32 %v438_v24, %v434_v25 }
 0x1e3   :  { %448 = vadd.xlane.f32.xlu1 %v442_v28  ;;  %v443_v30 = vadd.f32 %v439_v29, %v435_v27 }
 0x1e7   :  { %450 = vadd.xlane.f32.xlu1 %v443_v30 }
 0x268   :  { %v445_v31 = vpop.xlane.xlu0 %444 }
 0x269   :  { %v453_v32 = vmul.f32 0.0078125, %v445_v31 }
 0x26b   :  { %v457_v33 = vsub.f32 %v440_v16, %v453_v32 }
 0x26c   :  { %v447_v34 = vpop.xlane.xlu0 %446 }
 0x26d   :  { %v454_v35 = vmul.f32 0.0078125, %v447_v34  ;;  %v461_v36 = vmul.f32 %v457_v33, %v457_v33 }
 0x26f   :  { %v458_v37 = vsub.f32 %v441_v22, %v454_v35  ;;  %465 = vadd.xlane.f32.xlu0 %v461_v36 }
 0x270   :  { %v449_v38 = vpop.xlane.xlu1 %448 }
 0x271   :  { %v455_v39 = vmul.f32 0.0078125, %v449_v38  ;;  %v462_v40 = vmul.f32 %v458_v37, %v458_v37 }
 0x273   :  { %v459_v41 = vsub.f32 %v442_v28, %v455_v39  ;;  %467 = vadd.xlane.f32.xlu1 %v462_v40 }
 0x274   :  { %v451_v42 = vpop.xlane.xlu1 %450 }
 0x275   :  { %v456_v43 = vmul.f32 0.0078125, %v451_v42  ;;  %v463_v44 = vmul.f32 %v459_v41, %v459_v41 }
 0x277   :  { %v460_v45 = vsub.f32 %v443_v30, %v456_v43  ;;  %469 = vadd.xlane.f32.xlu0 %v463_v44 }
 0x279   :  { %v464_v46 = vmul.f32 %v460_v45, %v460_v45 }
 0x27b   :  { %471 = vadd.xlane.f32.xlu1 %v464_v46 }
 0x2fc   :  { %v466_v47 = vpop.xlane.xlu0 %465 }
 0x2fd   :  { %v473_v48 = vmul.f32 0.0078125, %v466_v47 }
 0x2ff   :  { %v477_v49 = vadd.f32 1e-05, %v473_v48 }
 0x300   :  { %v468_v50 = vpop.xlane.xlu1 %467 }
 0x301   :  { %670 = vrsqrt.f32 %v477_v49  ;;  %v474_v51 = vmul.f32 0.0078125, %v468_v50 }
 0x303   :  { %v478_v52 = vadd.f32 1e-05, %v474_v51 }
 0x304   :  { %v470_v53 = vpop.xlane.xlu0 %469 }
 0x305   :  { %672 = vrsqrt.f32 %v478_v52  ;;  %v475_v54 = vmul.f32 0.0078125, %v470_v53 }
 0x307   :  { %v479_v55 = vadd.f32 1e-05, %v475_v54 }
 0x308   :  { %v472_v56 = vpop.xlane.xlu1 %471 }
 0x309   :  { %674 = vrsqrt.f32 %v479_v55  ;;  %v476_v57 = vmul.f32 0.0078125, %v472_v56 }
 0x30b   :  { %v671_v58 = vpop.eup %670  ;;  %v480_v60 = vadd.f32 1e-05, %v476_v57 }
 0x30c   :  { %v485_v61 = vmul.f32 %v671_v58, %v457_v33 }
 0x30d   :  { %676 = vrsqrt.f32 %v480_v60 }
 0x30e   :  { %v496_v63 = vmul.f32 %v578_v59, %v485_v61 }
 0x30f   :  { %v673_v0 = vpop.eup %672 }
 0x310   :  { %v507_v1 = vadd.f32 %v579_v62, %v496_v63  ;;  %v486_v2 = vmul.f32 %v673_v0, %v458_v37 }
 0x312   :  { %511 = vst [vmem:[%s881_s8] sm:$0xff] %v507_v1  ;;  %v497_v3 = vmul.f32 %v578_v59, %v486_v2 }
 0x313   :  { %v675_v4 = vpop.eup %674 }
 0x314   :  { %v508_v5 = vadd.f32 %v579_v62, %v497_v3  ;;  %v487_v6 = vmul.f32 %v675_v4, %v459_v41 }
 0x316   :  { %512 = vst [vmem:[%s881_s8 + $0x8] sm:$0xff] %v508_v5  ;;  %v591_v7 = vpack.c.bf16 %v508_v5, %v507_v1  ;;  %v498_v8 = vmul.f32 %v578_v59, %v487_v6 }
 0x317   :  { %v677_v9 = vpop.eup %676 }
 0x318   :  { %592 = vst [vmem:[%s882_s9] sm:$0xff] %v591_v7   ;;  %v509_v10 = vadd.f32 %v579_v62, %v498_v8  ;;  %v488_v11 = vmul.f32 %v677_v9, %v460_v45 }
 0x31a   :  { %513 = vst [vmem:[%s881_s8 + $0x10] sm:$0xff] %v509_v10  ;;  %v499_v12 = vmul.f32 %v578_v59, %v488_v11 }
 0x31c   :  { %v510_v13 = vadd.f32 %v579_v62, %v499_v12 }
 0x31e   :  { %514 = vst [vmem:[%s881_s8 + $0x18] sm:$0xff] %v510_v13  ;;  %v596_v14 = vpack.c.bf16 %v510_v13, %v509_v10 }
 0x320   :  { %598 = vst [vmem:[%s882_s9 + $0x8] sm:$0xff] %v596_v14  }

// kernel: transformer_forward.26
= control target key start
LH: loop header
LB: loop body
LE: loop exit
PB: predicated region body
PF: predicated region fallthrough
CT: control target
= control target key end

     0   :  { %s1588_s15 = smov 0   ;;  %s1590_s16 = smov 0   ;;  %s1938_s0 = inlined_call_operand.vmem [shape: bf16[2,16,128], index: 0, kind: input, shape index: {}]   ;;  %s1939_s1 = inlined_call_operand.vmem [shape: bf16[2,16,128], index: 1, kind: input, shape index: {}]   ;;  %s1940_s2 = inlined_call_operand.vmem [shape: bf16[2,16,128], index: 2, kind: input, shape index: {}]   ;;  %s1941_s3 = inlined_call_operand.vmem [shape: s32[2,1,16], index: 3, kind: input, shape index: {}]   ;;  %s1942_s4 = inlined_call_operand.vmem [shape: bf16[2,16,128], index: 4, kind: output, shape index: {}]  }
   0x1   :  { %s1592_s17 = smov 0  }
   0x2 LB: > { %s33_s18 = sadd.s32 1, %s1550_s16  ;;  %p1334_p0 = scmp.ge.s32.totalorder %s1554_s17, 1  ;;  %s1554_s17 = sphi %s1592_s17, %s14_s17   ;;  %s1550_s16 = sphi %s1590_s16, %s1944_s16   ;;  %s1546_s15 = sphi %s1588_s15, %s1943_s15  }
   0x3   : > { %p35_p1 = scmp.ge.s32.totalorder %s33_s18, 2  ;;  %p237_p2 = scmp.lt.s32.totalorder %s1554_s17, 3 }
   0x5   : > { %s1946_s18 = smov (%p35_p1, %s33_s18), 0  ;;  %p238_p3 = pnand %p1334_p0, %p237_p2 }
   0x6   : > { %p296_p4 = scmp.lt.s32.totalorder (!%p238_p3), %s1546_s15, 1  ;;  %vm363_vm0 = vcmask (!%p238_p3), 261120   ;;  %v1556_v0 = vmov (!%p238_p3), 0.0   ;;  %vm1557_vm1 = vmmov (!%p238_p3), 0   ;;  %v1558_v5 = vmov (!%p238_p3), 0   ;;  %s1560_s29 = smov (!%p238_p3), 96  }
   0x7   : > { %241 = sbr.rel (%p238_p3) target bundleno = 1479 (0x5c7), region = 36  ;;  %1385 = vmatprep.subr.bf16.mxu0 (!%p238_p3), %v1556_v0  ;;  %364 = vst.msk [vmem:[#allocation4] sm:$0xff] (!%p238_p3), %vm363_vm0, %v1556_v0  ;;  %365 = vst.msk [vmem:[#allocation4 + $0x8] sm:$0xff] (!%p238_p3), %vm363_vm0, %v1556_v0  ;;  %1387 = vmatprep.mubr.msk.bf16.mxu0 (!%p238_p3), %vm1557_vm1, %v1556_v0  ;;  %vm346_vm3 = vcmask (!%p238_p3), 7168   ;;  %v1559_v7 = vmov (!%p238_p3), -inf   ;;  %v439_v8 = vlaneseq (!%p238_p3)  ;;  %vm448_vm5 = vcmask (!%p238_p3), 130048  }
   0x8   : > { %366 = vst.msk [vmem:[#allocation4 + $0x10] sm:$0xff] (!%p238_p3), %vm363_vm0, %v1556_v0  ;;  %367 = vst.msk [vmem:[#allocation4 + $0x18] sm:$0xff] (!%p238_p3), %vm363_vm0, %v1556_v0  ;;  %1391 = vmatprep.subr.bf16.mxu1 (!%p238_p3), %v1556_v0  ;;  %1393 = vmatprep.mubr.msk.bf16.mxu1 (!%p238_p3), %vm1557_vm1, %v1556_v0  ;;  %s1561_s7 = smov (!%p238_p3), 64   ;;  %s1562_s8 = smov (!%p238_p3), 32   ;;  %vm1176_vm6 = vcmask (!%p238_p3), 523264   ;;  %vm1179_vm7 = vcmask (!%p238_p3), 785408  }
   0x9   : > { %368 = vst.msk [vmem:[#allocation4 + $0x20] sm:$0xff] (!%p238_p3), %vm363_vm0, %v1556_v0  ;;  %369 = vst.msk [vmem:[#allocation4 + $0x28] sm:$0xff] (!%p238_p3), %vm363_vm0, %v1556_v0  ;;  %1464 = vset.pattern.permute.xlu1 (!%p238_p3), %v1558_v5  ;;  %1465 = vset.pattern.permute.xlu0 (!%p238_p3), %v1558_v5  ;;  %v440_v9 = vshrl.u32 (!%p238_p3), %v439_v8, 7 }
   0xa   : > { %370 = vst.msk [vmem:[#allocation4 + $0x30] sm:$0xff] (!%p238_p3), %vm363_vm0, %v1556_v0  ;;  %371 = vst.msk [vmem:[#allocation4 + $0x38] sm:$0xff] (!%p238_p3), %vm363_vm0, %v1556_v0 }
   0xb   : > { %347 = vst.msk [vmem:[#allocation2] sm:$0xff] (!%p238_p3), %vm346_vm3, %v1559_v7  ;;  %348 = vst.msk [vmem:[#allocation2 + $0x8] sm:$0xff] (!%p238_p3), %vm346_vm3, %v1559_v7  ;;  %v441_v10 = vsub.s32 (!%p238_p3), 0, %v440_v9 }
   0xc   : > { %349 = vst.msk [vmem:[#allocation2 + $0x10] sm:$0xff] (!%p238_p3), %vm346_vm3, %v1559_v7  ;;  %350 = vst.msk [vmem:[#allocation2 + $0x18] sm:$0xff] (!%p238_p3), %vm346_vm3, %v1559_v7 }
   0xd   : > { %351 = vst.msk [vmem:[#allocation2 + $0x20] sm:$0xff] (!%p238_p3), %vm346_vm3, %v1559_v7  ;;  %352 = vst.msk [vmem:[#allocation2 + $0x28] sm:$0xff] (!%p238_p3), %vm346_vm3, %v1559_v7 }
   0xe   : > { %s1948_s15 = smov (!%p296_p4, %s1546_s15), 1  ;;  %353 = vst.msk [vmem:[#allocation2 + $0x30] sm:$0xff] %vm346_vm3, %v1559_v7  ;;  %354 = vst.msk [vmem:[#allocation2 + $0x38] sm:$0xff] %vm346_vm3, %v1559_v7 }
   0xf   : > { %s1629_s19 = sshll.u32 %s1948_s15, 3  ;;  %s330_s28 = scalar_lea.vmem %s1941_s3, %s1948_s15  ;;  %355 = vst.msk [vmem:[#allocation3] sm:$0xff] %vm346_vm3, %v1556_v0  ;;  %356 = vst.msk [vmem:[#allocation3 + $0x8] sm:$0xff] %vm346_vm3, %v1556_v0 }
  0x10   : > { %s313_s22 = scalar_lea.vmem %s1939_s1, %s1629_s19  ;;  %s303_s25 = scalar_lea.vmem %s1938_s0, %s1629_s19  ;;  %v378_v4 = vld [vmem:[%s330_s28] sm:$0x1]  ;;  %357 = vst.msk [vmem:[#allocation3 + $0x10] sm:$0xff] %vm346_vm3, %v1556_v0  ;;  %358 = vst.msk [vmem:[#allocation3 + $0x18] sm:$0xff] %vm346_vm3, %v1556_v0 }
  0x11   : > { %v1635_v1 = vld [vmem:[%s313_s22] sm:$0xff]   ;;  %vm379_vm2 = vcmp.ne.s32.totalorder %v378_v4, 0  ;;  %359 = vst.msk [vmem:[#allocation3 + $0x20] sm:$0xff] %vm346_vm3, %v1556_v0  ;;  %360 = vst.msk [vmem:[#allocation3 + $0x28] sm:$0xff] %vm346_vm3, %v1556_v0  ;;  %s323_s6 = scalar_lea.vmem %s1940_s2, %s1629_s19  ;;  %s339_s11 = scalar_lea.vmem %s1942_s4, %s1629_s19 }
  0x12   : > { %v395_v2 = vsel %vm363_vm0, %v1635_v1, 0  ;;  %v1644_v3 = vld [vmem:[%s303_s25] sm:$0xff]   ;;  %v438_v6 = vsel %vm379_vm2, 1, %v1558_v5  ;;  %361 = vst.msk [vmem:[#allocation3 + $0x30] sm:$0xff] %vm346_vm3, %v1556_v0  ;;  %362 = vst.msk [vmem:[#allocation3 + $0x38] sm:$0xff] %vm346_vm3, %v1556_v0  ;;  %v1693_v23 = vld [vmem:[#allocation2 + $0x8] sm:$0xff] }
  0x13   : > { %1386 = vmatpush3.bf16.xpose.msra.mxu0 %v395_v2  ;;  %v1677_v11 = vrot.slane %v438_v6, %v441_v10  ;;  %v1688_v20 = vld [vmem:[#allocation2] sm:$0xff] }
  0x14   : > { %1403 = vmatprep.subr.bf16.mxu0 %v1556_v0  ;;  %v1714_v28 = vld [vmem:[%s323_s6] sm:$0xff]  }
  0x15   : > { %vm443_vm4 = vcmp.eq.s32.totalorder %v1677_v11, 1  ;;  %1392 = vmatpush3.bf16.msra.mxu1 %v1714_v28 }
  0x16   : > { %1397 = vmatprep.subr.bf16.mxu1 %v1556_v0 }
  0x1a   : > { %1388 = vmatmul.mubr.msk.bf16.vlgmr.msra.gmra.mrb[0].mxu0 %vm363_vm0, %v1644_v3 }
  0x1b   : > { %1405 = vmatprep.mubr.msk.bf16.mxu0 %vm1557_vm1, %v1556_v0 }
  0xed   : > { %v431_v12 = vpop.f32.mrb[0].mxu0 }
  0xee   : > { %v444_v13 = vsel %vm443_vm4, %v431_v12, -1e+30  ;;  %v1389_v14 = vpop.f32.mrb[1].mxu0 }
  0xef   : > { %v434_v15 = vpop.f32.mrb[2].mxu0  ;;  %v449_v16 = vsel %vm448_vm5, %v444_v13, -inf }
  0xf0   : > { %v445_v17 = vsel %vm443_vm4, %v434_v15, -1e+30  ;;  %450 = vmax.xlane.f32.xlu0 %v449_v16  ;;  %v1390_v18 = vpop.f32.mrb[3].mxu0  ;;  %v1789_v15 = vld [vmem:[#allocation2 + $0x18] sm:$0xff] }
  0xf1   : > { %v452_v19 = vsel %vm448_vm5, %v445_v17, -inf }
  0xf4   : > { %453 = vmax.xlane.f32.xlu0 %v452_v19 }
 0x10a   : > { %567 = vrot.lane.b32.xlu0 %v1635_v1, %s1560_s29 }
 0x17d   : > { %v451_v21 = vpop.xlane.xlu0 %450 }
 0x17e   : > { %v1691_v22 = vmax.f32 %v1688_v20, %v451_v21  ;;  %v1807_v21 = vld [vmem:[#allocation2 + $0x20] sm:$0xff] }
 0x180   : > { %v457_v24 = vsub.f32 %v1688_v20, %v1691_v22  ;;  %563 = vst.msk [vmem:[#allocation2] sm:$0xff] %vm346_vm3, %v1691_v22  ;;  %465 = vperm.xlu1 %1464, %v1691_v22  }
 0x181   : > { %v454_v25 = vpop.xlane.xlu0 %453 }
 0x182   : > { %v1701_v26 = vmax.f32 %v1693_v23, %v454_v25 }
 0x184   : > { %v458_v27 = vsub.f32 %v1693_v23, %v1701_v26  ;;  %564 = vst.msk [vmem:[#allocation2 + $0x8] sm:$0xff] %vm346_vm3, %v1701_v26  ;;  %470 = vperm.xlu1 %1464, %v1701_v26   ;;  %v459_v23 = vmul.f32 1.442695, %v457_v24 }
 0x185   : > { %v568_v36 = vpop.permute.xlu0 %567 }
 0x186   : > { %v573_v39 = vsel %vm363_vm0, %v568_v36, 0 }
 0x188   : > { %565 = vrot.lane.b32.xlu1 %v1644_v3, %s1560_s29 }
 0x18c   : > { %737 = vrot.lane.b32.xlu1 %v1635_v1, %s1561_s7 }
 0x190   : > { %735 = vrot.lane.b32.xlu1 %v1644_v3, %s1561_s7 }
 0x194   : > { %907 = vrot.lane.b32.xlu1 %v1635_v1, %s1562_s8 }
 0x198   : > { %905 = vrot.lane.b32.xlu1 %v1644_v3, %s1562_s8 }
 0x1ff   : > { %v466_v29 = vpop.permute.xlu1 %465 }
 0x200   : > { %v473_v30 = vsub.f32 %v444_v13, %v466_v29  ;;  %v1787_v13 = vld [vmem:[#allocation2 + $0x10] sm:$0xff]  ;;  %v1811_v29 = vld [vmem:[#allocation2 + $0x28] sm:$0xff] }
 0x202   : > { %v475_v31 = vmul.f32 1.442695, %v473_v30 }
 0x203   : > { %v471_v32 = vpop.permute.xlu1 %470 }
 0x204   : > { %v474_v33 = vsub.f32 %v445_v17, %v471_v32  ;;  %1484 = vpow2.f32 %v475_v31 }
 0x206   : > { %v477_v34 = vmul.f32 1.442695, %v474_v33 }
 0x207   : > { %v566_v35 = vpop.permute.xlu1 %565 }
 0x208   : > { %1486 = vpow2.f32 %v477_v34 }
 0x20b   : > { %v738_v41 = vpop.permute.xlu1 %737 }
 0x20c   : > { %v743_v43 = vsel %vm363_vm0, %v738_v41, 0 }
 0x20e   : > { %v1726_v37 = vpop.eup %1484 }
 0x20f   : > { %v736_v42 = vpop.permute.xlu1 %735 }
 0x212   : > { %v1728_v38 = vpop.eup %1486 }
 0x213   : > { %v508_v40 = vpack.c.bf16 %v1728_v38, %v1726_v37  ;;  %v908_v44 = vpop.permute.xlu1 %907 }
 0x214   : > { %v913_v45 = vsel %vm363_vm0, %v908_v44, 0 }
 0x215   : > { %1394 = vmatmul.mubr.msk.bf16.vlgmr.msra.gmra.mrb[0].mxu1 %vm448_vm5, %v508_v40 }
 0x216   : > { %1398 = vmatpush3.bf16.xpose.msra.mxu1 %v573_v39  ;;  %1399 = vmatprep.mubr.msk.bf16.mxu1 %vm1557_vm1, %v1556_v0  ;;  %v1831_v39 = vld [vmem:[#allocation2 + $0x38] sm:$0xff] }
 0x217   : > { %1409 = vmatprep.subr.bf16.mxu1 %v1556_v0  ;;  %v906_v46 = vpop.permute.xlu1 %905 }
 0x21d   : > { %1400 = vmatmul.mubr.msk.bf16.vlgmr.msra.gmra.mrb[4].mxu1 %vm363_vm0, %v566_v35  ;;  %v1828_v35 = vld [vmem:[#allocation2 + $0x30] sm:$0xff] }
 0x21e   : > { %1410 = vmatpush3.bf16.xpose.msra.mxu1 %v743_v43  ;;  %1411 = vmatprep.mubr.msk.bf16.mxu1 %vm1557_vm1, %v1556_v0 }
 0x21f   : > { %1421 = vmatprep.subr.bf16.mxu1 %v1556_v0 }
 0x225   : > { %1412 = vmatmul.mubr.msk.bf16.vlgmr.msra.gmra.mrb[8].mxu1 %vm363_vm0, %v736_v42 }
 0x226   : > { %1422 = vmatpush3.bf16.xpose.msra.mxu1 %v913_v45  ;;  %1423 = vmatprep.mubr.msk.bf16.mxu1 %vm1557_vm1, %v1556_v0  ;;  %v486_v45 = vsel %vm448_vm5, %v1728_v38, 0.0 }
 0x22d   : > { %1424 = vmatmul.mubr.msk.bf16.vlgmr.msra.gmra.mrb[12].mxu1 %vm363_vm0, %v906_v46  ;;  %v483_v46 = vsel %vm448_vm5, %v1726_v37, 0.0 }
 0x2e8   : > { %v1747_v47 = vpop.f32.mrb[0].mxu1 }
 0x2e9   : > { %v1395_v48 = vpop.f32.mrb[1].mxu1 }
 0x2ea   : > { %v1749_v49 = vpop.f32.mrb[2].mxu1 }
 0x2eb   : > { %v1396_v50 = vpop.f32.mrb[3].mxu1 }
 0x2f0   : > { %v609_v51 = vpop.f32.mrb[4].mxu1 }
 0x2f1   : > { %v1753_v52 = vsel %vm443_vm4, %v609_v51, -1e+30  ;;  %v1401_v53 = vpop.f32.mrb[5].mxu1 }
 0x2f2   : > { %v612_v54 = vpop.f32.mrb[6].mxu1  ;;  %v621_v55 = vsel %vm448_vm5, %v1753_v52, -inf }
 0x2f3   : > { %v1759_v56 = vsel %vm443_vm4, %v612_v54, -1e+30  ;;  %622 = vmax.xlane.f32.xlu1 %v621_v55  ;;  %v1402_v57 = vpop.f32.mrb[7].mxu1 }
 0x2f4   : > { %v624_v58 = vsel %vm448_vm5, %v1759_v56, -inf }
 0x2f5   : > { %625 = vmax.xlane.f32.xlu0 %v624_v58 }
 0x2f8   : > { %v779_v59 = vpop.f32.mrb[8].mxu1 }
 0x2f9   : > { %v1765_v60 = vsel %vm443_vm4, %v779_v59, -1e+30  ;;  %v1413_v61 = vpop.f32.mrb[9].mxu1 }
 0x2fa   : > { %v782_v62 = vpop.f32.mrb[10].mxu1  ;;  %v791_v63 = vsel %vm448_vm5, %v1765_v60, -inf }
 0x2fb   : > { %v1771_v1 = vsel %vm443_vm4, %v782_v62, -1e+30  ;;  %792 = vmax.xlane.f32.xlu0 %v791_v63  ;;  %v1414_v2 = vpop.f32.mrb[11].mxu1 }
 0x2fc   : > { %v794_v3 = vsel %vm448_vm5, %v1771_v1, -inf }
 0x2fd   : > { %795 = vmax.xlane.f32.xlu1 %v794_v3 }
 0x300   : > { %v949_v4 = vpop.f32.mrb[12].mxu1 }
 0x301   : > { %v1777_v5 = vsel %vm443_vm4, %v949_v4, -1e+30  ;;  %v1425_v6 = vpop.f32.mrb[13].mxu1 }
 0x302   : > { %v952_v7 = vpop.f32.mrb[14].mxu1  ;;  %v961_v8 = vsel %vm448_vm5, %v1777_v5, -inf }
 0x303   : > { %v1783_v9 = vsel %vm443_vm4, %v952_v7, -1e+30  ;;  %962 = vmax.xlane.f32.xlu0 %v961_v8  ;;  %v1426_v10 = vpop.f32.mrb[15].mxu1 }
 0x304   : > { %v964_v12 = vsel %vm448_vm5, %v1783_v9, -inf }
 0x305   : > { %965 = vmax.xlane.f32.xlu1 %v964_v12 }
 0x380   : > { %v623_v14 = vpop.xlane.xlu1 %622 }
 0x381   : > { %v1792_v16 = vmax.f32 %v1787_v13, %v623_v14 }
 0x382   : > { %v626_v17 = vpop.xlane.xlu0 %625 }
 0x383   : > { %v629_v11 = vsub.f32 %v1787_v13, %v1792_v16  ;;  %733 = vst.msk [vmem:[#allocation2 + $0x10] sm:$0xff] %vm346_vm3, %v1792_v16  ;;  %v1799_v18 = vmax.f32 %v1789_v15, %v626_v17  ;;  %637 = vperm.xlu0 %1465, %v1792_v16   ;;  %v461_v17 = vmul.f32 1.442695, %v458_v27 }
 0x385   : > { %v630_v19 = vsub.f32 %v1789_v15, %v1799_v18  ;;  %734 = vst.msk [vmem:[#allocation2 + $0x18] sm:$0xff] %vm346_vm3, %v1799_v18  ;;  %642 = vperm.xlu1 %1464, %v1799_v18  }
 0x387   : > { %1022 = vrot.lane.b32.xlu0 %v1714_v28, %s1562_s8  ;;  %v633_v27 = vmul.f32 1.442695, %v630_v19 }
 0x388   : > { %v793_v25 = vpop.xlane.xlu0 %792 }
 0x389   : > { %v1814_v30 = vmax.f32 %v1807_v21, %v793_v25 }
 0x38a   : > { %v796_v31 = vpop.xlane.xlu1 %795 }
 0x38b   : > { %v799_v32 = vsub.f32 %v1807_v21, %v1814_v30  ;;  %903 = vst.msk [vmem:[#allocation2 + $0x20] sm:$0xff] %vm346_vm3, %v1814_v30  ;;  %v1821_v33 = vmax.f32 %v1811_v29, %v796_v31  ;;  %807 = vperm.xlu1 %1464, %v1814_v30  }
 0x38d   : > { %v800_v34 = vsub.f32 %v1811_v29, %v1821_v33  ;;  %904 = vst.msk [vmem:[#allocation2 + $0x28] sm:$0xff] %vm346_vm3, %v1821_v33 }
 0x38f   : > { %812 = vperm.xlu1 %1464, %v1821_v33   ;;  %v803_v20 = vmul.f32 1.442695, %v800_v34 }
 0x390   : > { %v963_v36 = vpop.xlane.xlu0 %962 }
 0x391   : > { %v1834_v40 = vmax.f32 %v1828_v35, %v963_v36 }
 0x392   : > { %v966_v41 = vpop.xlane.xlu1 %965 }
 0x393   : > { %v969_v42 = vsub.f32 %v1828_v35, %v1834_v40  ;;  %1073 = vst.msk [vmem:[#allocation2 + $0x30] sm:$0xff] %vm346_vm3, %v1834_v40  ;;  %v1841_v43 = vmax.f32 %v1831_v39, %v966_v41  ;;  %977 = vperm.xlu1 %1464, %v1834_v40   ;;  %v479_v35 = vld [vmem:[#allocation3] sm:$0xff] }
 0x395   : > { %v970_v44 = vsub.f32 %v1831_v39, %v1841_v43  ;;  %1074 = vst.msk [vmem:[#allocation2 + $0x38] sm:$0xff] %vm346_vm3, %v1841_v43  ;;  %v971_v13 = vmul.f32 1.442695, %v969_v42 }
 0x397   : > { %982 = vperm.xlu1 %1464, %v1841_v43   ;;  %v973_v16 = vmul.f32 1.442695, %v970_v44 }
 0x39b   : > { %682 = vrot.lane.b32.xlu1 %v1714_v28, %s1560_s29 }
 0x39f   : > { %852 = vrot.lane.b32.xlu1 %v1714_v28, %s1561_s7 }
 0x3a6   : > { %487 = vadd.xlane.f32.xlu0 %v486_v45 }
 0x3c3   : > { %484 = vadd.xlane.f32.xlu1 %v483_v46  ;;  %v631_v46 = vmul.f32 1.442695, %v629_v11 }
 0x402   : > { %v638_v48 = vpop.permute.xlu0 %637 }
 0x403   : > { %v645_v50 = vsub.f32 %v1753_v52, %v638_v48 }
 0x404   : > { %v643_v51 = vpop.permute.xlu1 %642 }
 0x405   : > { %v647_v53 = vmul.f32 1.442695, %v645_v50  ;;  %v646_v54 = vsub.f32 %v1759_v56, %v643_v51  ;;  %v480_v50 = vld [vmem:[#allocation3 + $0x8] sm:$0xff]  ;;  %v652_v51 = vld [vmem:[#allocation3 + $0x10] sm:$0xff] }
 0x406   : > { %v1023_v36 = vpop.permute.xlu0 %1022 }
 0x407   : > { %1488 = vpow2.f32 %v647_v53  ;;  %v649_v55 = vmul.f32 1.442695, %v646_v54  ;;  %v653_v53 = vld [vmem:[#allocation3 + $0x18] sm:$0xff] }
 0x409   : > { %1490 = vpow2.f32 %v649_v55 }
 0x40a   : > { %v808_v57 = vpop.permute.xlu1 %807 }
 0x40b   : > { %v815_v28 = vsub.f32 %v1765_v60, %v808_v57 }
 0x40d   : > { %v817_v58 = vmul.f32 1.442695, %v815_v28 }
 0x40e   : > { %v813_v38 = vpop.permute.xlu1 %812 }
 0x40f   : > { %1492 = vpow2.f32 %v817_v58  ;;  %v816_v59 = vsub.f32 %v1771_v1, %v813_v38 }
 0x411   : > { %v1489_v37 = vpop.eup %1488  ;;  %v819_v61 = vmul.f32 1.442695, %v816_v59  ;;  %v822_v59 = vld [vmem:[#allocation3 + $0x20] sm:$0xff] }
 0x412   : > { %v978_v62 = vpop.permute.xlu1 %977  ;;  %v656_v52 = vsel %vm448_vm5, %v1489_v37, 0.0 }
 0x413   : > { %v1491_v63 = vpop.eup %1490  ;;  %1494 = vpow2.f32 %v819_v61  ;;  %v985_v56 = vsub.f32 %v1777_v5, %v978_v62  ;;  %657 = vadd.xlane.f32.xlu1 %v656_v52  ;;  %v823_v62 = vld [vmem:[#allocation3 + $0x28] sm:$0xff] }
 0x414   : > { %v659_v2 = vsel %vm448_vm5, %v1491_v63, 0.0  ;;  %v681_v10 = vpack.c.bf16 %v1491_v63, %v1489_v37 }
 0x415   : > { %v987_v3 = vmul.f32 1.442695, %v985_v56  ;;  %660 = vadd.xlane.f32.xlu0 %v659_v2 }
 0x416   : > { %v983_v60 = vpop.permute.xlu1 %982 }
 0x417   : > { %1496 = vpow2.f32 %v987_v3  ;;  %v986_v4 = vsub.f32 %v1783_v9, %v983_v60  ;;  %v992_v3 = vld [vmem:[#allocation3 + $0x30] sm:$0xff] }
 0x419   : > { %v1493_v6 = vpop.eup %1492  ;;  %v989_v1 = vmul.f32 1.442695, %v986_v4 }
 0x41a   : > { %v683_v7 = vpop.permute.xlu1 %682  ;;  %v826_v8 = vsel %vm448_vm5, %v1493_v6, 0.0 }
 0x41b   : > { %1498 = vpow2.f32 %v989_v1  ;;  %827 = vadd.xlane.f32.xlu0 %v826_v8  ;;  %1404 = vmatpush3.bf16.msra.mxu0 %v683_v7  ;;  %v993_v7 = vld [vmem:[#allocation3 + $0x38] sm:$0xff] }
 0x41c   : > { %1415 = vmatprep.subr.bf16.mxu0 %v1556_v0  ;;  %1500 = vpow2.f32 %v461_v17  ;;  %v494_v17 = vld [vmem:[#allocation4] sm:$0xff] }
 0x41d   : > { %v1495_v5 = vpop.eup %1494  ;;  %1502 = vpow2.f32 %v459_v23 }
 0x41e   : > { %1406 = vmatmul.mubr.msk.bf16.vlgmr.msra.gmra.mrb[4].mxu0 %vm448_vm5, %v681_v10  ;;  %v829_v12 = vsel %vm448_vm5, %v1495_v5, 0.0  ;;  %v853_v14 = vpop.permute.xlu1 %852  ;;  %v851_v31 = vpack.c.bf16 %v1495_v5, %v1493_v6  ;;  %1504 = vpow2.f32 %v633_v27 }
 0x41f   : > { %830 = vadd.xlane.f32.xlu1 %v829_v12  ;;  %1416 = vmatpush3.bf16.msra.mxu0 %v853_v14  ;;  %1506 = vpow2.f32 %v631_v46 }
 0x420   : > { %1417 = vmatprep.mubr.msk.bf16.mxu0 %vm1557_vm1, %v1556_v0  ;;  %1427 = vmatprep.subr.bf16.mxu0 %v1556_v0 }
 0x421   : > { %v1497_v9 = vpop.eup %1496 }
 0x422   : > { %v996_v25 = vsel %vm448_vm5, %v1497_v9, 0.0 }
 0x423   : > { %997 = vadd.xlane.f32.xlu0 %v996_v25  ;;  %v495_v25 = vld [vmem:[#allocation4 + $0x8] sm:$0xff] }
 0x425   : > { %v1499_v41 = vpop.eup %1498 }
 0x426   : > { %1418 = vmatmul.mubr.msk.bf16.vlgmr.msra.gmra.mrb[8].mxu0 %vm448_vm5, %v851_v31  ;;  %v999_v45 = vsel %vm448_vm5, %v1499_v41, 0.0  ;;  %v1021_v26 = vpack.c.bf16 %v1499_v41, %v1497_v9  ;;  %v1501_v48 = vpop.eup %1500 }
 0x427   : > { %1000 = vadd.xlane.f32.xlu1 %v999_v45  ;;  %1428 = vmatpush3.bf16.msra.mxu0 %v1023_v36  ;;  %v482_v22 = vmul.f32 %v1501_v48, %v480_v50  ;;  %v1503_v11 = vpop.eup %1502 }
 0x428   : > { %1429 = vmatprep.mubr.msk.bf16.mxu0 %vm1557_vm1, %v1556_v0  ;;  %v801_v0 = vmul.f32 1.442695, %v799_v32  ;;  %v1505_v18 = vpop.eup %1504  ;;  %v481_v39 = vmul.f32 %v1503_v11, %v479_v35  ;;  %v838_v35 = vld [vmem:[#allocation4 + $0x28] sm:$0xff] }
 0x429   : > { %v1507_v19 = vpop.eup %1506  ;;  %v655_v28 = vmul.f32 %v1505_v18, %v653_v53 }
 0x42a   : > { %1508 = vpow2.f32 %v801_v0  ;;  %v654_v54 = vmul.f32 %v1507_v19, %v652_v51 }
 0x42b   : > { %1510 = vpow2.f32 %v803_v20 }
 0x42c   : > { %1512 = vpow2.f32 %v971_v13 }
 0x42d   : > { %1514 = vpow2.f32 %v973_v16 }
 0x42e   : > { %1430 = vmatmul.mubr.msk.bf16.vlgmr.msra.gmra.mrb[12].mxu0 %vm448_vm5, %v1021_v26 }
 0x433   : > { %v488_v24 = vpop.xlane.xlu0 %487 }
 0x434   : > { %v490_v15 = vadd.f32 %v488_v24, %v482_v22  ;;  %v1509_v29 = vpop.eup %1508 }
 0x435   : > { %v1511_v30 = vpop.eup %1510  ;;  %v824_v37 = vmul.f32 %v1509_v29, %v822_v59 }
 0x436   : > { %493 = vst.msk [vmem:[#allocation3 + $0x8] sm:$0xff] %vm346_vm3, %v490_v15  ;;  %v1513_v32 = vpop.eup %1512  ;;  %v825_v56 = vmul.f32 %v1511_v30, %v823_v62  ;;  %v667_v15 = vld [vmem:[#allocation4 + $0x10] sm:$0xff] }
 0x437   : > { %v1515_v33 = vpop.eup %1514  ;;  %v994_v6 = vmul.f32 %v1513_v32, %v992_v3 }
 0x438   : > { %503 = vperm.xlu1 %1464, %v1501_v48   ;;  %v995_v5 = vmul.f32 %v1515_v33, %v993_v7 }
 0x439   : > { %498 = vperm.xlu0 %1465, %v1503_v11  }
 0x43c   : > { %676 = vperm.xlu1 %1464, %v1505_v18  }
 0x43d   : > { %671 = vperm.xlu0 %1465, %v1507_v19   ;;  %v1081_v21 = vld [vmem:[#allocation3 + $0x8] sm:$0xff] }
 0x43e   : > { %1516 = vrcp.f32 %v1081_v21 }
 0x440   : > { %841 = vperm.xlu1 %1464, %v1509_v29  }
 0x441   : > { %846 = vperm.xlu0 %1465, %v1511_v30  }
 0x444   : > { %1011 = vperm.xlu1 %1464, %v1513_v32  }
 0x445   : > { %1016 = vperm.xlu0 %1465, %v1515_v33   ;;  %v837_v33 = vld [vmem:[#allocation4 + $0x20] sm:$0xff] }
 0x448   : > { %v1517_v34 = vpop.eup %1516 }
 0x449   : > { %1091 = vperm.xlu0 %1465, %v1517_v34  }
 0x450   : > { %v485_v40 = vpop.xlane.xlu1 %484 }
 0x451   : > { %v489_v42 = vadd.f32 %v485_v40, %v481_v39 }
 0x453   : > { %492 = vst.msk [vmem:[#allocation3] sm:$0xff] %vm346_vm3, %v489_v42 }
 0x45a   : > { %v1080_v43 = vld [vmem:[#allocation3] sm:$0xff] }
 0x45b   : > { %1518 = vrcp.f32 %v1080_v43 }
 0x465   : > { %v1519_v44 = vpop.eup %1518 }
 0x466   : > { %1086 = vperm.xlu1 %1464, %v1519_v44  }
 0x4a0   : > { %v658_v55 = vpop.xlane.xlu1 %657 }
 0x4a1   : > { %v662_v57 = vadd.f32 %v658_v55, %v654_v54 }
 0x4a2   : > { %v661_v58 = vpop.xlane.xlu0 %660 }
 0x4a3   : > { %664 = vst.msk [vmem:[#allocation3 + $0x10] sm:$0xff] %vm346_vm3, %v662_v57  ;;  %v663_v38 = vadd.f32 %v661_v58, %v655_v28  ;;  %v1007_v57 = vld [vmem:[#allocation4 + $0x30] sm:$0xff]  ;;  %v1008_v58 = vld [vmem:[#allocation4 + $0x38] sm:$0xff] }
 0x4a5   : > { %665 = vst.msk [vmem:[#allocation3 + $0x18] sm:$0xff] %vm346_vm3, %v663_v38 }
 0x4a8   : > { %v828_v61 = vpop.xlane.xlu0 %827 }
 0x4a9   : > { %v832_v52 = vadd.f32 %v828_v61, %v824_v37 }
 0x4aa   : > { %v1098_v63 = vld [vmem:[#allocation3 + $0x10] sm:$0xff] }
 0x4ab   : > { %834 = vst.msk [vmem:[#allocation3 + $0x20] sm:$0xff] %vm346_vm3, %v832_v52  ;;  %1520 = vrcp.f32 %v1098_v63 }
 0x4ac   : > { %v831_v2 = vpop.xlane.xlu1 %830  ;;  %v1099_v60 = vld [vmem:[#allocation3 + $0x18] sm:$0xff] }
 0x4ad   : > { %v833_v4 = vadd.f32 %v831_v2, %v825_v56  ;;  %1522 = vrcp.f32 %v1099_v60 }
 0x4af   : > { %835 = vst.msk [vmem:[#allocation3 + $0x28] sm:$0xff] %vm346_vm3, %v833_v4 }
 0x4b0   : > { %v998_v1 = vpop.xlane.xlu0 %997 }
 0x4b1   : > { %v1002_v8 = vadd.f32 %v998_v1, %v994_v6 }
 0x4b2   : > { %v1116_v10 = vld [vmem:[#allocation3 + $0x20] sm:$0xff] }
 0x4b3   : > { %1004 = vst.msk [vmem:[#allocation3 + $0x30] sm:$0xff] %vm346_vm3, %v1002_v8  ;;  %1524 = vrcp.f32 %v1116_v10 }
 0x4b4   : > { %v1001_v12 = vpop.xlane.xlu1 %1000 }
 0x4b5   : > { %v1521_v14 = vpop.eup %1520  ;;  %v1003_v9 = vadd.f32 %v1001_v12, %v995_v5 }
 0x4b6   : > { %1104 = vperm.xlu1 %1464, %v1521_v14   ;;  %v1117_v31 = vld [vmem:[#allocation3 + $0x28] sm:$0xff] }
 0x4b7   : > { %v1523_v36 = vpop.eup %1522  ;;  %1005 = vst.msk [vmem:[#allocation3 + $0x38] sm:$0xff] %vm346_vm3, %v1003_v9  ;;  %1526 = vrcp.f32 %v1117_v31 }
 0x4b8   : > { %1109 = vperm.xlu0 %1465, %v1523_v36   ;;  %v499_v41 = vpop.permute.xlu0 %498  ;;  %v504_v45 = vpop.permute.xlu1 %503 }
 0x4b9   : > { %v506_v23 = vmul.f32 %v499_v41, %v494_v17  ;;  %v507_v26 = vmul.f32 %v504_v45, %v495_v25 }
 0x4ba   : > { %v1134_v27 = vld [vmem:[#allocation3 + $0x30] sm:$0xff] }
 0x4bb   : > { %v559_v46 = vadd.f32 %v1747_v47, %v506_v23  ;;  %v560_v48 = vadd.f32 %v1749_v49, %v507_v26  ;;  %1528 = vrcp.f32 %v1134_v27  ;;  %v668_v47 = vld [vmem:[#allocation4 + $0x18] sm:$0xff] }
 0x4bc   : > { %v672_v13 = vpop.permute.xlu0 %671  ;;  %v677_v16 = vpop.permute.xlu1 %676 }
 0x4bd   : > { %v1525_v50 = vpop.eup %1524  ;;  %561 = vst.msk [vmem:[#allocation4] sm:$0xff] %vm363_vm0, %v559_v46  ;;  %562 = vst.msk [vmem:[#allocation4 + $0x8] sm:$0xff] %vm363_vm0, %v560_v48  ;;  %v679_v49 = vmul.f32 %v672_v13, %v667_v15  ;;  %v680_v18 = vmul.f32 %v677_v16, %v668_v47 }
 0x4be   : > { %1122 = vperm.xlu1 %1464, %v1525_v50   ;;  %v1135_v0 = vld [vmem:[#allocation3 + $0x38] sm:$0xff] }
 0x4bf   : > { %1530 = vrcp.f32 %v1135_v0 }
 0x4c0   : > { %v842_v34 = vpop.permute.xlu1 %841  ;;  %v847_v39 = vpop.permute.xlu0 %846 }
 0x4c1   : > { %v1527_v20 = vpop.eup %1526  ;;  %v849_v40 = vmul.f32 %v842_v34, %v837_v33  ;;  %v850_v43 = vmul.f32 %v847_v39, %v838_v35 }
 0x4c2   : > { %1127 = vperm.xlu0 %1465, %v1527_v20  }
 0x4c4   : > { %v1012_v28 = vpop.permute.xlu1 %1011  ;;  %v1017_v38 = vpop.permute.xlu0 %1016  ;;  %v1078_v15 = vld [vmem:[#allocation4] sm:$0xff] }
 0x4c5   : > { %v1529_v22 = vpop.eup %1528  ;;  %v1019_v59 = vmul.f32 %v1012_v28, %v1007_v57  ;;  %v1020_v61 = vmul.f32 %v1017_v38, %v1008_v58 }
 0x4c6   : > { %1140 = vperm.xlu1 %1464, %v1529_v22  }
 0x4c8   : > { %v1092_v60 = vpop.permute.xlu0 %1091 }
 0x4c9   : > { %v1531_v24 = vpop.eup %1530 }
 0x4ca   : > { %1145 = vperm.xlu0 %1465, %v1531_v24   ;;  %v1079_v24 = vld [vmem:[#allocation4 + $0x8] sm:$0xff] }
 0x4cb   : > { %v1095_v16 = vmul.f32 %v1092_v60, %v1079_v24 }
 0x4e5   : > { %v1087_v3 = vpop.permute.xlu1 %1086 }
 0x4f1   : > { %v722_v11 = vpop.f32.mrb[4].mxu0 }
 0x4f2   : > { %v729_v19 = vadd.f32 %v722_v11, %v679_v49  ;;  %v1407_v21 = vpop.f32.mrb[5].mxu0  ;;  %v1094_v49 = vmul.f32 %v1087_v3, %v1078_v15 }
 0x4f3   : > { %v725_v29 = vpop.f32.mrb[6].mxu0 }
 0x4f4   : > { %731 = vst.msk [vmem:[#allocation4 + $0x10] sm:$0xff] %vm363_vm0, %v729_v19  ;;  %v730_v30 = vadd.f32 %v725_v29, %v680_v18  ;;  %v1408_v32 = vpop.f32.mrb[7].mxu0 }
 0x4f6   : > { %732 = vst.msk [vmem:[#allocation4 + $0x18] sm:$0xff] %vm363_vm0, %v730_v30 }
 0x4f9   : > { %v892_v42 = vpop.f32.mrb[8].mxu0 }
 0x4fa   : > { %v899_v44 = vadd.f32 %v892_v42, %v849_v40  ;;  %v1419_v51 = vpop.f32.mrb[9].mxu0 }
 0x4fb   : > { %v895_v53 = vpop.f32.mrb[10].mxu0  ;;  %v1096_v6 = vld [vmem:[#allocation4 + $0x10] sm:$0xff] }
 0x4fc   : > { %901 = vst.msk [vmem:[#allocation4 + $0x20] sm:$0xff] %vm363_vm0, %v899_v44  ;;  %v900_v54 = vadd.f32 %v895_v53, %v850_v43  ;;  %v1420_v55 = vpop.f32.mrb[11].mxu0 }
 0x4fd   : > { %v1097_v7 = vld [vmem:[#allocation4 + $0x18] sm:$0xff] }
 0x4fe   : > { %902 = vst.msk [vmem:[#allocation4 + $0x28] sm:$0xff] %vm363_vm0, %v900_v54 }
 0x501   : > { %v1062_v37 = vpop.f32.mrb[12].mxu0 }
 0x502   : > { %v1069_v62 = vadd.f32 %v1062_v37, %v1019_v59  ;;  %v1431_v52 = vpop.f32.mrb[13].mxu0 }
 0x503   : > { %v1065_v63 = vpop.f32.mrb[14].mxu0  ;;  %v1114_v14 = vld [vmem:[#allocation4 + $0x20] sm:$0xff] }
 0x504   : > { %1071 = vst.msk [vmem:[#allocation4 + $0x30] sm:$0xff] %vm363_vm0, %v1069_v62  ;;  %v1070_v56 = vadd.f32 %v1065_v63, %v1020_v61  ;;  %v1432_v2 = vpop.f32.mrb[15].mxu0 }
 0x505   : > { %v1115_v17 = vld [vmem:[#allocation4 + $0x28] sm:$0xff] }
 0x506   : > { %1072 = vst.msk [vmem:[#allocation4 + $0x38] sm:$0xff] %vm363_vm0, %v1070_v56 }
 0x50b   : > { %v1132_v45 = vld [vmem:[#allocation4 + $0x30] sm:$0xff] }
 0x50d   : > { %v1133_v26 = vld [vmem:[#allocation4 + $0x38] sm:$0xff] }
 0x535   : > { %v1105_v4 = vpop.permute.xlu1 %1104 }
 0x536   : > { %v1112_v8 = vmul.f32 %v1105_v4, %v1096_v6 }
 0x537   : > { %v1110_v1 = vpop.permute.xlu0 %1109 }
 0x538   : > { %v1113_v10 = vmul.f32 %v1110_v1, %v1097_v7 }
 0x53a   : > { %v1466_v5 = vpack.i.bf16 %v1113_v10, %v1112_v8 }
 0x53c   : > { %1467 = vrot.lane.b32.xlu1 %v1466_v5, %s1562_s8 }
 0x53d   : > { %v1123_v12 = vpop.permute.xlu1 %1122 }
 0x53e   : > { %v1130_v25 = vmul.f32 %v1123_v12, %v1114_v14 }
 0x541   : > { %v1128_v9 = vpop.permute.xlu0 %1127 }
 0x542   : > { %v1131_v31 = vmul.f32 %v1128_v9, %v1115_v17 }
 0x544   : > { %v1471_v36 = vpack.i.bf16 %v1131_v31, %v1130_v25 }
 0x545   : > { %v1141_v41 = vpop.permute.xlu1 %1140 }
 0x546   : > { %1472 = vrot.lane.b32.xlu0 %v1471_v36, %s1561_s7  ;;  %v1148_v27 = vmul.f32 %v1141_v41, %v1132_v45 }
 0x549   : > { %v1146_v23 = vpop.permute.xlu0 %1145 }
 0x54a   : > { %v1149_v46 = vmul.f32 %v1146_v23, %v1133_v26 }
 0x54c   : > { %v1476_v48 = vpack.i.bf16 %v1149_v46, %v1148_v27 }
 0x54e   : > { %1477 = vrot.lane.b32.xlu1 %v1476_v48, %s1560_s29 }
 0x5ae   : > { %v1468_v50 = vpop.permute.xlu1 %1467 }
 0x5af   : > { %v1470_v20 = vunpack.i.h.bf16 %v1468_v50  ;;  %v1469_v22 = vunpack.i.l.bf16 %v1468_v50 }
 0x5b1   : > { %v1175_v18 = vsel %vm363_vm0, %v1095_v16, %v1470_v20  ;;  %v1174_v19 = vsel %vm363_vm0, %v1094_v49, %v1469_v22 }
 0x5b8   : > { %v1473_v0 = vpop.permute.xlu0 %1472 }
 0x5b9   : > { %v1475_v13 = vunpack.i.h.bf16 %v1473_v0  ;;  %v1474_v47 = vunpack.i.l.bf16 %v1473_v0 }
 0x5bb   : > { %v1178_v30 = vsel %vm1176_vm6, %v1175_v18, %v1475_v13  ;;  %v1177_v32 = vsel %vm1176_vm6, %v1174_v19, %v1474_v47 }
 0x5c0   : > { %v1478_v11 = vpop.permute.xlu1 %1477 }
 0x5c1   : > { %v1480_v21 = vunpack.i.h.bf16 %v1478_v11  ;;  %v1479_v29 = vunpack.i.l.bf16 %v1478_v11 }
 0x5c3   : > { %v1181_v33 = vsel %vm1179_vm7, %v1178_v30, %v1480_v21  ;;  %v1180_v34 = vsel %vm1179_vm7, %v1177_v32, %v1479_v29 }
 0x5c4   : > { %v1367_v35 = vpack.c.bf16 %v1181_v33, %v1180_v34 }
 0x5c6   : > { %1368 = vst [vmem:[%s339_s11] sm:$0xff] %v1367_v35  }
 0x5c7 PF: > { %s14_s17 = sadd.s32 1, %s1554_s17   ;;  %s1943_s15 = smov %s1550_s16 }
 0x5c8   : > { %p11_p5 = scmp.ge.s32.totalorder %s14_s17, 4   ;;  %s1944_s16 = smov %s1946_s18 }
 0x5ca   :  { %13 = sbr.rel (!%p11_p5) target bundleno = 2 (0x2), region = 92 }

// kernel: transformer_forward.32
= control target key start
LH: loop header
LB: loop body
LE: loop exit
PB: predicated region body
PF: predicated region fallthrough
CT: control target
= control target key end

     0   :  { %v718_v2 = vmov 0   ;;  %s916_s0 = inlined_call_operand.vmem [shape: bf16[32,128], index: 0, kind: input, shape index: {}]   ;;  %s917_s1 = inlined_call_operand.vmem [shape: bf16[128,256], index: 1, kind: input, shape index: {}]   ;;  %s918_s2 = inlined_call_operand.vmem [shape: f32[1,256], index: 2, kind: input, shape index: {}]   ;;  %s919_s3 = inlined_call_operand.vmem [shape: bf16[256,128], index: 3, kind: input, shape index: {}]   ;;  %s920_s4 = inlined_call_operand.vmem [shape: f32[1,128], index: 4, kind: input, shape index: {}]   ;;  %s921_s5 = inlined_call_operand.vmem [shape: f32[32,128], index: 5, kind: input, shape index: {}]   ;;  %s922_s6 = inlined_call_operand.vmem [shape: f32[1,128], index: 6, kind: input, shape index: {}]   ;;  %s923_s7 = inlined_call_operand.vmem [shape: f32[1,128], index: 7, kind: input, shape index: {}]   ;;  %s924_s8 = inlined_call_operand.hbm [shape: f32[32,128], index: 8, kind: output, shape index: {0}]   ;;  %s925_s9 = inlined_call_operand.vmem [shape: bf16[32,128], index: 9, kind: output, shape index: {1}]  }
   0x1   :  { %v644_v0 = vld [vmem:[%s917_s1 + $0x4] ss:$8 sps:$4 sm:$0xff]   ;;  %v646_v1 = vld [vmem:[%s917_s1] ss:$8 sps:$4 sm:$0xff]   ;;  %197 = vmatprep.mubr.bf16.mxu0 %v718_v2  ;;  %v647_v3 = vld [vmem:[%s917_s1 + $0x14] ss:$8 sps:$4 sm:$0xff]  }
   0x2   :  { %165 = vmatprep.subr.bf16.mxu0 %v644_v0  ;;  %v649_v4 = vld [vmem:[%s917_s1 + $0x10] ss:$8 sps:$4 sm:$0xff]   ;;  %v650_v5 = vld [vmem:[%s917_s1 + $0x24] ss:$8 sps:$4 sm:$0xff]   ;;  %v652_v6 = vld [vmem:[%s917_s1 + $0x20] ss:$8 sps:$4 sm:$0xff]  }
   0x3   :  { %166 = vmatpush1.bf16.msra.mxu0 %v646_v1  ;;  %v653_v7 = vld [vmem:[%s917_s1 + $0x34] ss:$8 sps:$4 sm:$0xff]   ;;  %v655_v8 = vld [vmem:[%s917_s1 + $0x30] ss:$8 sps:$4 sm:$0xff]   ;;  %v656_v9 = vld [vmem:[%s917_s1 + $0x44] ss:$8 sps:$4 sm:$0xff]  }
   0x4   :  { %167 = vmatprep.subr.bf16.mxu0 %v647_v3  ;;  %v658_v10 = vld [vmem:[%s917_s1 + $0x40] ss:$8 sps:$4 sm:$0xff]   ;;  %v659_v12 = vld [vmem:[%s917_s1 + $0x54] ss:$8 sps:$4 sm:$0xff]   ;;  %v661_v17 = vld [vmem:[%s917_s1 + $0x50] ss:$8 sps:$4 sm:$0xff]  }
   0x5   :  { %v670_v11 = vld [vmem:[%s919_s3 + $0x40] sm:$0xff]   ;;  %v672_v14 = vld [vmem:[%s919_s3 + $0x48] sm:$0xff]   ;;  %v674_v16 = vld [vmem:[%s919_s3 + $0x50] sm:$0xff]  }
   0x6   :  { %v671_v13 = vld [vmem:[%s919_s3] sm:$0xff]   ;;  %612 = vmatprep.subr.bf16.mxu1 %v670_v11  ;;  %v673_v15 = vld [vmem:[%s919_s3 + $0x8] sm:$0xff]   ;;  %v675_v19 = vld [vmem:[%s919_s3 + $0x10] sm:$0xff]  }
   0x7   :  { %168 = vmatpush1.bf16.msra.mxu0 %v649_v4  ;;  %613 = vmatpush3.bf16.msra.mxu1 %v671_v13  ;;  %v662_v18 = vld [vmem:[%s917_s1 + $0x64] ss:$8 sps:$4 sm:$0xff]   ;;  %v664_v20 = vld [vmem:[%s917_s1 + $0x60] ss:$8 sps:$4 sm:$0xff]   ;;  %v676_v21 = vld [vmem:[%s919_s3 + $0x58] sm:$0xff]  }
   0x8   :  { %169 = vmatprep.subr.bf16.mxu0 %v650_v5  ;;  %614 = vmatprep.subr.bf16.mxu1 %v672_v14  ;;  %v665_v22 = vld [vmem:[%s917_s1 + $0x74] ss:$8 sps:$4 sm:$0xff]   ;;  %v678_v24 = vld [vmem:[%s919_s3 + $0x60] sm:$0xff]   ;;  %v667_v25 = vld [vmem:[%s917_s1 + $0x70] ss:$8 sps:$4 sm:$0xff]  }
   0x9   :  { %v677_v23 = vld [vmem:[%s919_s3 + $0x18] sm:$0xff]  }
   0xb   :  { %170 = vmatpush1.bf16.msra.mxu0 %v652_v6  ;;  %615 = vmatpush3.bf16.msra.mxu1 %v673_v15 }
   0xc   :  { %171 = vmatprep.subr.bf16.mxu0 %v653_v7  ;;  %616 = vmatprep.subr.bf16.mxu1 %v674_v16 }
   0xf   :  { %172 = vmatpush1.bf16.msra.mxu0 %v655_v8  ;;  %617 = vmatpush3.bf16.msra.mxu1 %v675_v19 }
  0x10   :  { %173 = vmatprep.subr.bf16.mxu0 %v656_v9  ;;  %618 = vmatprep.subr.bf16.mxu1 %v676_v21 }
  0x13   :  { %174 = vmatpush1.bf16.msra.mxu0 %v658_v10 }
  0x14   :  { %175 = vmatprep.subr.bf16.mxu0 %v659_v12 }
  0x17   :  { %176 = vmatpush1.bf16.msra.mxu0 %v661_v17 }
  0x18   :  { %177 = vmatprep.subr.bf16.mxu0 %v662_v18 }
  0x1b   :  { %178 = vmatpush1.bf16.msra.mxu0 %v664_v20 }
  0x1c   :  { %15 = vsyncpa [#allocation4], 0  ;;  %179 = vmatprep.subr.bf16.mxu0 %v665_v22  ;;  %619 = vmatpush3.bf16.msra.mxu1 %v677_v23  ;;  %v679_v26 = vld [vmem:[%s919_s3 + $0x20] sm:$0xff]   ;;  %v680_v27 = vld [vmem:[%s919_s3 + $0x68] sm:$0xff]   ;;  %v63_v35 = vlaneseq }
  0x1d   :  { %620 = vmatprep.subr.bf16.mxu1 %v678_v24  ;;  %v668_v28 = vld [vmem:[%s916_s0] sm:$0xff]   ;;  %v669_v29 = vld [vmem:[%s916_s0 + $0x8] sm:$0xff]   ;;  %v682_v31 = vld [vmem:[%s919_s3 + $0x70] sm:$0xff]  }
  0x1e   :  { %v681_v30 = vld [vmem:[%s919_s3 + $0x28] sm:$0xff]   ;;  %v683_v32 = vld [vmem:[%s919_s3 + $0x30] sm:$0xff]   ;;  %v684_v33 = vld [vmem:[%s919_s3 + $0x78] sm:$0xff]   ;;  %v64_v36 = vshrl.u32 %v63_v35, 7 }
  0x1f   :  { %180 = vmatpush1.bf16.msra.mxu0 %v667_v25  ;;  %v685_v34 = vld [vmem:[%s919_s3 + $0x38] sm:$0xff]   ;;  %v61_v38 = vld [vmem:[%s918_s2] sm:$0x3]  ;;  %v438_v17 = vld [vmem:[%s921_s5 + $0x8] sm:$0xff] }
  0x20   :  { %621 = vmatpush3.bf16.msra.mxu1 %v679_v26  ;;  %v65_v37 = vsub.s32 0, %v64_v36  ;;  %v69_v39 = vsub.s32 1, %v64_v36  ;;  %v590_v8 = vld [vmem:[%s920_s4] ss:$0 sm:$0xff]  ;;  %v439_v24 = vld [vmem:[%s921_s5 + $0x10] sm:$0xff] }
  0x21   :  { %622 = vmatprep.subr.bf16.mxu1 %v680_v27  ;;  %v437_v12 = vld [vmem:[%s921_s5] sm:$0xff] }
  0x22   :  { %198 = vmatmul.mubr.bf16.vlgmr.msra.gmra.mrb[0].mxu0 %v668_v28  ;;  %v66_v40 = vrot.slane %v61_v38, %v65_v37  ;;  %v70_v41 = vrot.slane %v61_v38, %v69_v39 }
  0x23   :  { %207 = vmatprep.mubr.bf16.mxu0 %v718_v2 }
  0x24   :  { %623 = vmatpush3.bf16.msra.mxu1 %v681_v30 }
  0x25   :  { %624 = vmatprep.subr.bf16.mxu1 %v682_v31 }
  0x28   :  { %625 = vmatpush3.bf16.msra.mxu1 %v683_v32 }
  0x29   :  { %626 = vmatprep.subr.bf16.mxu1 %v684_v33 }
  0x2a   :  { %208 = vmatmul.mubr.bf16.gmra.mrb[4].mxu0 %v669_v29  ;;  %v440_v29 = vld [vmem:[%s921_s5 + $0x18] sm:$0xff] }
  0x2c   :  { %627 = vmatpush3.bf16.msra.mxu1 %v685_v34 }
  0xf5   :  { %v199_v42 = vpop.f32.mrb[0].mxu0 }
  0xf6   :  { %v200_v43 = vadd.f32 %v199_v42, %v66_v40  ;;  %v201_v44 = vpop.f32.mrb[1].mxu0 }
  0xf7   :  { %v202_v45 = vadd.f32 %v201_v44, %v70_v41  ;;  %v203_v46 = vpop.f32.mrb[2].mxu0 }
  0xf8   :  { %v204_v47 = vadd.f32 %v203_v46, %v66_v40  ;;  %v205_v48 = vpop.f32.mrb[3].mxu0  ;;  %v218_v50 = vmax.f32 %v200_v43, 0.0 }
  0xf9   :  { %v206_v49 = vadd.f32 %v205_v48, %v70_v41  ;;  %v219_v52 = vmax.f32 %v202_v45, 0.0 }
  0xfa   :  { %v220_v51 = vmax.f32 %v204_v47, 0.0 }
  0xfb   :  { %v221_v53 = vmax.f32 %v206_v49, 0.0 }
  0xfc   :  { %v230_v54 = vpack.c.bf16 %v220_v51, %v218_v50 }
  0xfd   :  { %v209_v55 = vpop.f32.mrb[4].mxu0  ;;  %v231_v56 = vpack.c.bf16 %v221_v53, %v219_v52 }
  0xfe   :  { %v210_v57 = vadd.f32 %v209_v55, %v66_v40  ;;  %v211_v58 = vpop.f32.mrb[5].mxu0 }
  0xff   :  { %v212_v59 = vadd.f32 %v211_v58, %v70_v41  ;;  %v213_v60 = vpop.f32.mrb[6].mxu0  ;;  %394 = vmatprep.mubr.bf16.mxu1 %v231_v56 }
 0x100   :  { %v214_v61 = vadd.f32 %v213_v60, %v66_v40  ;;  %v215_v62 = vpop.f32.mrb[7].mxu0  ;;  %395 = vmatmul.mubr.bf16.vlgmr.msra.gmra.mrb[0].mxu1 %v230_v54  ;;  %v222_v0 = vmax.f32 %v210_v57, 0.0 }
 0x101   :  { %v216_v63 = vadd.f32 %v215_v62, %v70_v41  ;;  %v223_v2 = vmax.f32 %v212_v59, 0.0  ;;  %v591_v59 = vld [vmem:[%s922_s6] ss:$0 sm:$0xff] }
 0x102   :  { %v224_v1 = vmax.f32 %v214_v61, 0.0  ;;  %v592_v62 = vld [vmem:[%s923_s7] ss:$0 sm:$0xff]  ;;  %s719_s7 = smov [#allocation3]  }
 0x103   :  { %v225_v3 = vmax.f32 %v216_v63, 0.0  ;;  %s541_s24 = sshll.u32 %s719_s7, 4  ;;  %s542_s24 = int_to_ptr.vmem [resolvable:$true] %s541_s24 }
 0x104   :  { %v232_v4 = vpack.c.bf16 %v224_v1, %v222_v0  ;;  %s694_s25 = scalar_lea.vmem %s542_s24, 512  ;;  %p699_p1 = scmp.lt.s32.totalorder %s542_s24, %s542_s24 }
 0x105   :  { %v233_v5 = vpack.c.bf16 %v225_v3, %v223_v2  ;;  %p695_p0 = scmp.ne.s32.totalorder %s542_s24, %s694_s25  ;;  %p700_p2 = scmp.lt.s32.totalorder %s694_s25, %s694_s25 }
 0x107   :  { %402 = vmatprep.mubr.bf16.mxu1 %v233_v5  ;;  %p701_p3 = por %p700_p2, %p699_p1 }
 0x108   :  { %403 = vmatmul.mubr.bf16.gmra.mrb[4].mxu1 %v232_v4 }
 0x109   :  { %p702_p4 = pnand %p701_p3, %p695_p0 }
 0x1d3   :  { %v628_v6 = vpop.f32.mrb[0].mxu1 }
 0x1d4   :  { %v629_v7 = vpop.f32.mrb[1].mxu1 }
 0x1d5   :  { %v630_v9 = vadd.f32 %v629_v7, %v628_v6  ;;  %v631_v10 = vpop.f32.mrb[2].mxu1 }
 0x1d6   :  { %v632_v11 = vpop.f32.mrb[3].mxu1 }
 0x1d7   :  { %v433_v13 = vadd.f32 %v630_v9, %v590_v8  ;;  %v633_v14 = vadd.f32 %v632_v11, %v631_v10 }
 0x1d9   :  { %v434_v15 = vadd.f32 %v633_v14, %v590_v8  ;;  %v441_v16 = vadd.f32 %v437_v12, %v433_v13 }
 0x1db   :  { %v634_v18 = vpop.f32.mrb[4].mxu1  ;;  %445 = vadd.xlane.f32.xlu0 %v441_v16  ;;  %v442_v22 = vadd.f32 %v438_v17, %v434_v15 }
 0x1dc   :  { %v635_v19 = vpop.f32.mrb[5].mxu1 }
 0x1dd   :  { %v636_v20 = vadd.f32 %v635_v19, %v634_v18  ;;  %v637_v21 = vpop.f32.mrb[6].mxu1 }
 0x1de   :  { %v638_v23 = vpop.f32.mrb[7].mxu1 }
 0x1df   :  { %v435_v25 = vadd.f32 %v636_v20, %v590_v8  ;;  %v639_v26 = vadd.f32 %v638_v23, %v637_v21  ;;  %447 = vadd.xlane.f32.xlu0 %v442_v22 }
 0x1e1   :  { %v436_v27 = vadd.f32 %v639_v26, %v590_v8  ;;  %v443_v28 = vadd.f32 %v439_v24, %v435_v25 }
 0x1e3   :  { %449 = vadd.xlane.f32.xlu1 %v443_v28  ;;  %v444_v30 = vadd.f32 %v440_v29, %v436_v27 }
 0x1e7   :  { %451 = vadd.xlane.f32.xlu1 %v444_v30 }
 0x268   :  { %v446_v31 = vpop.xlane.xlu0 %445 }
 0x269   :  { %v454_v32 = vmul.f32 0.0078125, %v446_v31 }
 0x26b   :  { %v458_v33 = vsub.f32 %v441_v16, %v454_v32 }
 0x26c   :  { %v448_v34 = vpop.xlane.xlu0 %447 }
 0x26d   :  { %v455_v35 = vmul.f32 0.0078125, %v448_v34  ;;  %v462_v36 = vmul.f32 %v458_v33, %v458_v33 }
 0x26f   :  { %v459_v37 = vsub.f32 %v442_v22, %v455_v35  ;;  %466 = vadd.xlane.f32.xlu0 %v462_v36 }
 0x270   :  { %v450_v38 = vpop.xlane.xlu1 %449 }
 0x271   :  { %v456_v39 = vmul.f32 0.0078125, %v450_v38  ;;  %v463_v40 = vmul.f32 %v459_v37, %v459_v37 }
 0x273   :  { %v460_v41 = vsub.f32 %v443_v28, %v456_v39  ;;  %468 = vadd.xlane.f32.xlu1 %v463_v40 }
 0x274   :  { %v452_v42 = vpop.xlane.xlu1 %451 }
 0x275   :  { %v457_v43 = vmul.f32 0.0078125, %v452_v42  ;;  %v464_v44 = vmul.f32 %v460_v41, %v460_v41 }
 0x277   :  { %v461_v45 = vsub.f32 %v444_v30, %v457_v43  ;;  %470 = vadd.xlane.f32.xlu0 %v464_v44 }
 0x279   :  { %v465_v46 = vmul.f32 %v461_v45, %v461_v45 }
 0x27b   :  { %472 = vadd.xlane.f32.xlu1 %v465_v46 }
 0x2fc   :  { %v467_v47 = vpop.xlane.xlu0 %466 }
 0x2fd   :  { %v474_v48 = vmul.f32 0.0078125, %v467_v47 }
 0x2ff   :  { %v478_v49 = vadd.f32 1e-05, %v474_v48 }
 0x300   :  { %v469_v50 = vpop.xlane.xlu1 %468 }
 0x301   :  { %686 = vrsqrt.f32 %v478_v49  ;;  %v475_v51 = vmul.f32 0.0078125, %v469_v50 }
 0x303   :  { %v479_v52 = vadd.f32 1e-05, %v475_v51 }
 0x304   :  { %v471_v53 = vpop.xlane.xlu0 %470 }
 0x305   :  { %688 = vrsqrt.f32 %v479_v52  ;;  %v476_v54 = vmul.f32 0.0078125, %v471_v53 }
 0x307   :  { %v480_v55 = vadd.f32 1e-05, %v476_v54 }
 0x308   :  { %v473_v56 = vpop.xlane.xlu1 %472 }
 0x309   :  { %690 = vrsqrt.f32 %v480_v55  ;;  %v477_v57 = vmul.f32 0.0078125, %v473_v56 }
 0x30b   :  { %v687_v58 = vpop.eup %686  ;;  %v481_v60 = vadd.f32 1e-05, %v477_v57 }
 0x30c   :  { %v486_v61 = vmul.f32 %v687_v58, %v458_v33 }
 0x30d   :  { %692 = vrsqrt.f32 %v481_v60 }
 0x30e   :  { %v497_v63 = vmul.f32 %v591_v59, %v486_v61 }
 0x30f   :  { %v689_v0 = vpop.eup %688 }
 0x310   :  { %v508_v1 = vadd.f32 %v592_v62, %v497_v63  ;;  %v487_v2 = vmul.f32 %v689_v0, %v459_v37 }
 0x312   :  { %512 = vst [vmem:[#allocation3] sm:$0xff] %v508_v1  ;;  %v498_v3 = vmul.f32 %v591_v59, %v487_v2 }
 0x313   :  { %v691_v4 = vpop.eup %690 }
 0x314   :  { %v509_v5 = vadd.f32 %v592_v62, %v498_v3  ;;  %v488_v6 = vmul.f32 %v691_v4, %v460_v41 }
 0x316   :  { %v604_v7 = vpack.c.bf16 %v509_v5, %v508_v1  ;;  %513 = vst [vmem:[#allocation3 + $0x8] sm:$0xff] %v509_v5  ;;  %v499_v8 = vmul.f32 %v591_v59, %v488_v6 }
 0x317   :  { %v693_v9 = vpop.eup %692 }
 0x318   :  { %605 = vst [vmem:[%s925_s9] sm:$0xff] %v604_v7   ;;  %v510_v10 = vadd.f32 %v592_v62, %v499_v8  ;;  %v489_v11 = vmul.f32 %v693_v9, %v461_v45 }
 0x31a   :  { %514 = vst [vmem:[#allocation3 + $0x10] sm:$0xff] %v510_v10  ;;  %v500_v12 = vmul.f32 %v591_v59, %v489_v11 }
 0x31c   :  { %v511_v13 = vadd.f32 %v592_v62, %v500_v12 }
 0x31e   :  { %v609_v14 = vpack.c.bf16 %v511_v13, %v510_v10  ;;  %515 = vst [vmem:[#allocation3 + $0x18] sm:$0xff] %v511_v13 }
 0x31f   :  { %705 = shalt.err (!%p702_p4)
}
 0x320   :  { %s706_s28 = scalar_lea.hbm %s924_s8, 512 }
 0x321   :  { %p707_p5 = scmp.ne.s32.totalorder %s924_s8, %s706_s28  ;;  %p710_p6 = scmp.lt.u32.totalorder %s706_s28, %s924_s8 }
 0x323   :  { %p712_p7 = pnand %p710_p6, %p707_p5 }
 0x325   :  { %715 = shalt.err (!%p712_p7)
}
 0x326   :  { %s720_s11 = smov 128   ;;  %s721_s12 = smov 8   ;;  %611 = vst [vmem:[%s925_s9 + $0x8] sm:$0xff] %v609_v14  }
 0x327   :  { %547 = dma.vmem_to_hbm [thread:$0]  %s542_s24, 512, %s924_s8, [#allocation4], %s720_s11, %s720_s11, %s721_s12  }
 0x328   :  { %716 = dma.done.wait [#allocation4], 512  }
 0x329   :  { %717 = vsyncadd [#allocation4], 4294966784 }
 0x32a   :  { %555 = vsyncpa [#allocation4], 1 }

// kernel: transformer_forward.37
= control target key start
LH: loop header
LB: loop body
LE: loop exit
PB: predicated region body
PF: predicated region fallthrough
CT: control target
= control target key end

     0   :  { %v348_v1 = vmov 0   ;;  %v229_v19 = vlaneseq  ;;  %s438_s1 = inlined_call_operand.vmem [shape: bf16[128,256], index: 1, kind: input, shape index: {}]   ;;  %s439_s0 = inlined_call_operand.vmem [shape: bf16[32,128], index: 0, kind: input, shape index: {}]   ;;  %s440_s2 = inlined_call_operand.vmem [shape: f32[1,256], index: 2, kind: input, shape index: {}]   ;;  %s441_s3 = inlined_call_operand.vmem [shape: bf16[32,256], index: 3, kind: output, shape index: {}]  }
   0x1   :  { %v322_v0 = vld [vmem:[%s438_s1 + $0x4] ss:$8 sps:$4 sm:$0xff]   ;;  %179 = vmatprep.mubr.bf16.mxu0 %v348_v1  ;;  %189 = vmatprep.mubr.bf16.mxu1 %v348_v1  ;;  %v324_v2 = vld [vmem:[%s438_s1] ss:$8 sps:$4 sm:$0xff]   ;;  %v325_v3 = vld [vmem:[%s438_s1 + $0x14] ss:$8 sps:$4 sm:$0xff]  }
   0x2   :  { %147 = vmatprep.subr.bf16.mxu0 %v322_v0  ;;  %305 = vmatprep.subr.bf16.mxu1 %v322_v0  ;;  %v327_v4 = vld [vmem:[%s438_s1 + $0x10] ss:$8 sps:$4 sm:$0xff]   ;;  %v328_v5 = vld [vmem:[%s438_s1 + $0x24] ss:$8 sps:$4 sm:$0xff]   ;;  %v330_v6 = vld [vmem:[%s438_s1 + $0x20] ss:$8 sps:$4 sm:$0xff]  }
   0x3   :  { %148 = vmatpush1.bf16.msra.mxu0 %v324_v2  ;;  %313 = vmatpush1.bf16.msra.mxu1 %v324_v2  ;;  %v331_v7 = vld [vmem:[%s438_s1 + $0x34] ss:$8 sps:$4 sm:$0xff]   ;;  %v333_v8 = vld [vmem:[%s438_s1 + $0x30] ss:$8 sps:$4 sm:$0xff]   ;;  %v334_v9 = vld [vmem:[%s438_s1 + $0x44] ss:$8 sps:$4 sm:$0xff]  }
   0x4   :  { %149 = vmatprep.subr.bf16.mxu0 %v325_v3  ;;  %306 = vmatprep.subr.bf16.mxu1 %v325_v3  ;;  %v336_v10 = vld [vmem:[%s438_s1 + $0x40] ss:$8 sps:$4 sm:$0xff]   ;;  %v337_v11 = vld [vmem:[%s438_s1 + $0x54] ss:$8 sps:$4 sm:$0xff]   ;;  %v339_v12 = vld [vmem:[%s438_s1 + $0x50] ss:$8 sps:$4 sm:$0xff]  }
   0x5   :  { %v340_v13 = vld [vmem:[%s438_s1 + $0x64] ss:$8 sps:$4 sm:$0xff]   ;;  %v342_v14 = vld [vmem:[%s438_s1 + $0x60] ss:$8 sps:$4 sm:$0xff]   ;;  %v343_v15 = vld [vmem:[%s438_s1 + $0x74] ss:$8 sps:$4 sm:$0xff]  }
   0x6   :  { %v345_v16 = vld [vmem:[%s438_s1 + $0x70] ss:$8 sps:$4 sm:$0xff]   ;;  %v346_v17 = vld [vmem:[%s439_s0] sm:$0xff]   ;;  %v347_v18 = vld [vmem:[%s439_s0 + $0x8] sm:$0xff]   ;;  %v230_v20 = vshrl.u32 %v229_v19, 7 }
   0x7   :  { %150 = vmatpush1.bf16.msra.mxu0 %v327_v4  ;;  %314 = vmatpush1.bf16.msra.mxu1 %v327_v4  ;;  %v227_v22 = vld [vmem:[%s440_s2] sm:$0x3] }
   0x8   :  { %151 = vmatprep.subr.bf16.mxu0 %v328_v5  ;;  %307 = vmatprep.subr.bf16.mxu1 %v328_v5  ;;  %v231_v21 = vsub.s32 0, %v230_v20  ;;  %v235_v23 = vsub.s32 1, %v230_v20 }
   0xa   :  { %v232_v24 = vrot.slane %v227_v22, %v231_v21  ;;  %v236_v25 = vrot.slane %v227_v22, %v235_v23 }
   0xb   :  { %152 = vmatpush1.bf16.msra.mxu0 %v330_v6  ;;  %315 = vmatpush1.bf16.msra.mxu1 %v330_v6 }
   0xc   :  { %153 = vmatprep.subr.bf16.mxu0 %v331_v7  ;;  %308 = vmatprep.subr.bf16.mxu1 %v331_v7 }
   0xf   :  { %154 = vmatpush1.bf16.msra.mxu0 %v333_v8  ;;  %316 = vmatpush1.bf16.msra.mxu1 %v333_v8 }
  0x10   :  { %155 = vmatprep.subr.bf16.mxu0 %v334_v9  ;;  %309 = vmatprep.subr.bf16.mxu1 %v334_v9 }
  0x13   :  { %156 = vmatpush1.bf16.msra.mxu0 %v336_v10  ;;  %317 = vmatpush1.bf16.msra.mxu1 %v336_v10 }
  0x14   :  { %157 = vmatprep.subr.bf16.mxu0 %v337_v11  ;;  %310 = vmatprep.subr.bf16.mxu1 %v337_v11 }
  0x17   :  { %158 = vmatpush1.bf16.msra.mxu0 %v339_v12  ;;  %318 = vmatpush1.bf16.msra.mxu1 %v339_v12 }
  0x18   :  { %159 = vmatprep.subr.bf16.mxu0 %v340_v13  ;;  %311 = vmatprep.subr.bf16.mxu1 %v340_v13 }
  0x1b   :  { %160 = vmatpush1.bf16.msra.mxu0 %v342_v14  ;;  %319 = vmatpush1.bf16.msra.mxu1 %v342_v14 }
  0x1c   :  { %161 = vmatprep.subr.bf16.mxu0 %v343_v15  ;;  %312 = vmatprep.subr.bf16.mxu1 %v343_v15 }
  0x1f   :  { %162 = vmatpush1.bf16.msra.mxu0 %v345_v16  ;;  %320 = vmatpush1.bf16.msra.mxu1 %v345_v16 }
  0x22   :  { %180 = vmatmul.mubr.bf16.vlgmr.msra.gmra.mrb[0].mxu0 %v346_v17  ;;  %190 = vmatmul.mubr.bf16.vlgmr.msra.gmra.mrb[0].mxu1 %v347_v18 }
  0xf5   :  { %v181_v26 = vpop.f32.mrb[0].mxu0  ;;  %v191_v27 = vpop.f32.mrb[0].mxu1 }
  0xf6   :  { %v239_v28 = vadd.f32 %v232_v24, %v181_v26  ;;  %v243_v29 = vadd.f32 %v232_v24, %v191_v27  ;;  %v183_v30 = vpop.f32.mrb[1].mxu0  ;;  %v193_v31 = vpop.f32.mrb[1].mxu1 }
  0xf7   :  { %v240_v32 = vadd.f32 %v236_v25, %v183_v30  ;;  %v244_v33 = vadd.f32 %v236_v25, %v193_v31  ;;  %v185_v34 = vpop.f32.mrb[2].mxu0  ;;  %v195_v35 = vpop.f32.mrb[2].mxu1 }
  0xf8   :  { %v241_v36 = vadd.f32 %v232_v24, %v185_v34  ;;  %v245_v37 = vadd.f32 %v232_v24, %v195_v35  ;;  %v187_v38 = vpop.f32.mrb[3].mxu0  ;;  %v197_v39 = vpop.f32.mrb[3].mxu1 }
  0xf9   :  { %v301_v40 = vpack.c.bf16 %v240_v32, %v239_v28  ;;  %v303_v41 = vpack.c.bf16 %v244_v33, %v243_v29  ;;  %v242_v42 = vadd.f32 %v236_v25, %v187_v38  ;;  %v246_v43 = vadd.f32 %v236_v25, %v197_v39 }
  0xfb   :  { %271 = vst [vmem:[%s441_s3] sm:$0xff] %v301_v40  ;;  %273 = vst [vmem:[%s441_s3 + $0x10] sm:$0xff] %v303_v41  ;;  %v302_v44 = vpack.c.bf16 %v242_v42, %v241_v36  ;;  %v304_v45 = vpack.c.bf16 %v246_v43, %v245_v37 }
  0xfd   :  { %272 = vst [vmem:[%s441_s3 + $0x8] sm:$0xff] %v302_v44  ;;  %274 = vst [vmem:[%s441_s3 + $0x18] sm:$0xff] %v304_v45 }

// kernel: transformer_forward.33
= control target key start
LH: loop header
LB: loop body
LE: loop exit
PB: predicated region body
PF: predicated region fallthrough
CT: control target
= control target key end

     0   :  { %v511_v1 = vmov 0   ;;  %v341_v27 = vlaneseq  ;;  %s631_s1 = inlined_call_operand.vmem [shape: bf16[128,384], index: 1, kind: input, shape index: {}]   ;;  %s632_s0 = inlined_call_operand.vmem [shape: bf16[24,128], index: 0, kind: input, shape index: {}]   ;;  %s633_s2 = inlined_call_operand.vmem [shape: f32[1,384], index: 2, kind: input, shape index: {}]   ;;  %s634_s3 = inlined_call_operand.vmem [shape: bf16[24,384], index: 3, kind: output, shape index: {}]  }
   0x1   :  { %v477_v0 = vld [vmem:[%s631_s1 + $0x4] ss:$12 sps:$4 sm:$0xff]   ;;  %242 = vmatprep.mubr.bf16.mxu0 %v511_v1  ;;  %v479_v2 = vld [vmem:[%s631_s1] ss:$12 sps:$4 sm:$0xff]   ;;  %v480_v3 = vld [vmem:[%s631_s1 + $0x8] ss:$12 sps:$4 sm:$0xff]  }
   0x2   :  { %210 = vmatprep.subr.bf16.mxu0 %v477_v0  ;;  %v481_v4 = vld [vmem:[%s631_s1 + $0x1c] ss:$12 sps:$4 sm:$0xff]   ;;  %v483_v5 = vld [vmem:[%s631_s1 + $0x18] ss:$12 sps:$4 sm:$0xff]   ;;  %456 = vmatprep.subr.bf16.mxu1 %v480_v3  ;;  %v484_v6 = vld [vmem:[%s631_s1 + $0x20] ss:$12 sps:$4 sm:$0xff]  }
   0x3   :  { %211 = vmatpush1.bf16.msra.mxu0 %v479_v2  ;;  %457 = vmatpush3.bf16.msra.mxu1 %v480_v3  ;;  %v485_v7 = vld [vmem:[%s631_s1 + $0x34] ss:$12 sps:$4 sm:$0xff]   ;;  %v488_v8 = vld [vmem:[%s631_s1 + $0x38] ss:$12 sps:$4 sm:$0xff]   ;;  %v487_v9 = vld [vmem:[%s631_s1 + $0x30] ss:$12 sps:$4 sm:$0xff]  }
   0x4   :  { %212 = vmatprep.subr.bf16.mxu0 %v481_v4  ;;  %458 = vmatprep.subr.bf16.mxu1 %v484_v6  ;;  %v489_v10 = vld [vmem:[%s631_s1 + $0x4c] ss:$12 sps:$4 sm:$0xff]   ;;  %v492_v11 = vld [vmem:[%s631_s1 + $0x50] ss:$12 sps:$4 sm:$0xff]   ;;  %v491_v12 = vld [vmem:[%s631_s1 + $0x48] ss:$12 sps:$4 sm:$0xff]  }
   0x5   :  { %v493_v13 = vld [vmem:[%s631_s1 + $0x64] ss:$12 sps:$4 sm:$0xff]   ;;  %v496_v14 = vld [vmem:[%s631_s1 + $0x68] ss:$12 sps:$4 sm:$0xff]   ;;  %v495_v15 = vld [vmem:[%s631_s1 + $0x60] ss:$12 sps:$4 sm:$0xff]  }
   0x6   :  { %v497_v16 = vld [vmem:[%s631_s1 + $0x7c] ss:$12 sps:$4 sm:$0xff]   ;;  %v499_v17 = vld [vmem:[%s631_s1 + $0x78] ss:$12 sps:$4 sm:$0xff]   ;;  %v500_v18 = vld [vmem:[%s631_s1 + $0x80] ss:$12 sps:$4 sm:$0xff]  }
   0x7   :  { %213 = vmatpush1.bf16.msra.mxu0 %v483_v5  ;;  %459 = vmatpush3.bf16.msra.mxu1 %v484_v6  ;;  %v509_v19 = vld [vmem:[%s632_s0] sm:$0xff]   ;;  %v503_v22 = vld [vmem:[%s631_s1 + $0x90] ss:$12 sps:$4 sm:$0xff]   ;;  %v505_v23 = vld [vmem:[%s631_s1 + $0xac] ss:$12 sps:$4 sm:$0xff]   ;;  %v342_v28 = vshrl.u32 %v341_v27, 7 }
   0x8   :  { %214 = vmatprep.subr.bf16.mxu0 %v485_v7  ;;  %460 = vmatprep.subr.bf16.mxu1 %v488_v8  ;;  %v501_v20 = vld [vmem:[%s631_s1 + $0x94] ss:$12 sps:$4 sm:$0xff]   ;;  %v504_v21 = vld [vmem:[%s631_s1 + $0x98] ss:$12 sps:$4 sm:$0xff]   ;;  %v508_v24 = vld [vmem:[%s631_s1 + $0xb0] ss:$12 sps:$4 sm:$0xff]  }
   0x9   :  { %472 = vmatprep.mubr.bf16.mxu1 %v509_v19  ;;  %v507_v25 = vld [vmem:[%s631_s1 + $0xa8] ss:$12 sps:$4 sm:$0xff]   ;;  %v343_v29 = vsub.s32 0, %v342_v28  ;;  %v339_v30 = vld [vmem:[%s633_s2] sm:$0x7]  ;;  %v347_v31 = vsub.s32 1, %v342_v28 }
   0xa   :  { %v510_v26 = vld [vmem:[%s632_s0 + $0x8] ss:$0 sps:$4 sm:$0xff]   ;;  %v351_v32 = vsub.s32 2, %v342_v28 }
   0xb   :  { %215 = vmatpush1.bf16.msra.mxu0 %v487_v9  ;;  %461 = vmatpush3.bf16.msra.mxu1 %v488_v8  ;;  %v344_v33 = vrot.slane %v339_v30, %v343_v29  ;;  %v348_v34 = vrot.slane %v339_v30, %v347_v31 }
   0xc   :  { %216 = vmatprep.subr.bf16.mxu0 %v489_v10  ;;  %462 = vmatprep.subr.bf16.mxu1 %v492_v11  ;;  %v352_v35 = vrot.slane %v339_v30, %v351_v32 }
   0xf   :  { %217 = vmatpush1.bf16.msra.mxu0 %v491_v12  ;;  %463 = vmatpush3.bf16.msra.mxu1 %v492_v11 }
  0x10   :  { %218 = vmatprep.subr.bf16.mxu0 %v493_v13  ;;  %464 = vmatprep.subr.bf16.mxu1 %v496_v14 }
  0x13   :  { %219 = vmatpush1.bf16.msra.mxu0 %v495_v15  ;;  %465 = vmatpush3.bf16.msra.mxu1 %v496_v14 }
  0x14   :  { %220 = vmatprep.subr.bf16.mxu0 %v497_v16  ;;  %466 = vmatprep.subr.bf16.mxu1 %v500_v18 }
  0x17   :  { %221 = vmatpush1.bf16.msra.mxu0 %v499_v17  ;;  %467 = vmatpush3.bf16.msra.mxu1 %v500_v18 }
  0x18   :  { %222 = vmatprep.subr.bf16.mxu0 %v501_v20  ;;  %468 = vmatprep.subr.bf16.mxu1 %v504_v21 }
  0x1b   :  { %223 = vmatpush1.bf16.msra.mxu0 %v503_v22  ;;  %469 = vmatpush3.bf16.msra.mxu1 %v504_v21 }
  0x1c   :  { %224 = vmatprep.subr.bf16.mxu0 %v505_v23  ;;  %470 = vmatprep.subr.bf16.mxu1 %v508_v24 }
  0x1f   :  { %225 = vmatpush1.bf16.msra.mxu0 %v507_v25  ;;  %471 = vmatpush3.bf16.msra.mxu1 %v508_v24 }
  0x22   :  { %243 = vmatmul.mubr.bf16.vlgmr.msra.gmra.mrb[0].mxu0 %v509_v19  ;;  %473 = vmatmul.mubr.bf16.vlgmr.msra.gmra.mrb[0].mxu1 %v510_v26 }
  0x23   :  { %252 = vmatprep.mubr.bf16.mxu0 %v511_v1 }
  0x2a   :  { %253 = vmatmul.mubr.bf16.gmra.mrb[4].mxu0 %v510_v26 }
  0xf5   :  { %v244_v36 = vpop.f32.mrb[0].mxu0  ;;  %v474_v41 = vpop.f32.mrb[0].mxu1 }
  0xf6   :  { %v356_v37 = vadd.f32 %v344_v33, %v244_v36  ;;  %v246_v38 = vpop.f32.mrb[1].mxu0  ;;  %v364_v44 = vadd.f32 %v474_v41, %v352_v35  ;;  %v295_v45 = vpop.f32.mrb[1].mxu1 }
  0xf7   :  { %v357_v39 = vadd.f32 %v348_v34, %v246_v38  ;;  %v248_v40 = vpop.f32.mrb[2].mxu0  ;;  %v358_v48 = vadd.f32 %v352_v35, %v295_v45  ;;  %v475_v49 = vpop.f32.mrb[2].mxu1 }
  0xf8   :  { %v359_v42 = vadd.f32 %v344_v33, %v248_v40  ;;  %v250_v43 = vpop.f32.mrb[3].mxu0  ;;  %v445_v50 = vpack.c.bf16 %v364_v44, %v364_v44  ;;  %v298_v51 = vpop.f32.mrb[3].mxu1 }
  0xf9   :  { %v440_v46 = vpack.c.bf16 %v357_v39, %v356_v37  ;;  %v360_v47 = vadd.f32 %v348_v34, %v250_v43  ;;  %v441_v53 = vpack.c.bf16 %v358_v48, %v358_v48  ;;  %v361_v54 = vadd.f32 %v352_v35, %v298_v51 }
  0xfa   :  { %403 = vst [vmem:[%s634_s3 + $0x20] sm:$0xf] %v445_v50 }
  0xfb   :  { %398 = vst [vmem:[%s634_s3] sm:$0xff] %v440_v46  ;;  %v442_v52 = vpack.c.bf16 %v360_v47, %v359_v42  ;;  %399 = vst [vmem:[%s634_s3 + $0x8] sm:$0xf] %v441_v53  ;;  %v443_v55 = vpack.c.bf16 %v361_v54, %v361_v54 }
  0xfd   :  { %400 = vst [vmem:[%s634_s3 + $0xc] sm:$0xff] %v442_v52  ;;  %v254_v56 = vpop.f32.mrb[4].mxu0  ;;  %401 = vst [vmem:[%s634_s3 + $0x14] sm:$0xf] %v443_v55 }
  0xfe   :  { %v362_v57 = vadd.f32 %v344_v33, %v254_v56  ;;  %v256_v58 = vpop.f32.mrb[5].mxu0 }
  0xff   :  { %v363_v59 = vadd.f32 %v348_v34, %v256_v58  ;;  %v258_v60 = vpop.f32.mrb[6].mxu0 }
 0x100   :  { %v259_v61 = vpop.f32.mrb[7].mxu0 }
 0x101   :  { %v444_v62 = vpack.c.bf16 %v363_v59, %v362_v57 }
 0x103   :  { %402 = vst [vmem:[%s634_s3 + $0x18] sm:$0xff] %v444_v62 }

// kernel: transformer_forward.36
= control target key start
LH: loop header
LB: loop body
LE: loop exit
PB: predicated region body
PF: predicated region fallthrough
CT: control target
= control target key end

     0   :  { %s313_s1 = inlined_call_operand.vmem [shape: bf16[128,128], index: 1, kind: input, shape index: {}]   ;;  %s314_s0 = inlined_call_operand.vmem [shape: bf16[24,128], index: 0, kind: input, shape index: {}]   ;;  %s315_s2 = inlined_call_operand.vmem [shape: f32[1,128], index: 2, kind: input, shape index: {}]   ;;  %s316_s3 = inlined_call_operand.vmem [shape: bf16[24,128], index: 3, kind: output, shape index: {}]  }
   0x1   :  { %v244_v0 = vld [vmem:[%s313_s1] sm:$0xff]   ;;  %v245_v1 = vld [vmem:[%s313_s1 + $0x8] sm:$0xff]   ;;  %v246_v2 = vld [vmem:[%s313_s1 + $0x10] sm:$0xff]  }
   0x2   :  { %224 = vmatprep.subr.bf16.mxu0 %v244_v0  ;;  %v247_v3 = vld [vmem:[%s313_s1 + $0x18] sm:$0xff]   ;;  %v252_v4 = vld [vmem:[%s314_s0] sm:$0xff]   ;;  %v249_v6 = vld [vmem:[%s313_s1 + $0x28] sm:$0xff]  }
   0x3   :  { %225 = vmatpush3.bf16.msra.mxu0 %v244_v0  ;;  %240 = vmatprep.mubr.bf16.mxu0 %v252_v4  ;;  %v248_v5 = vld [vmem:[%s313_s1 + $0x20] sm:$0xff]   ;;  %v250_v7 = vld [vmem:[%s313_s1 + $0x30] sm:$0xff]   ;;  %v251_v8 = vld [vmem:[%s313_s1 + $0x38] sm:$0xff]  }
   0x4   :  { %226 = vmatprep.subr.bf16.mxu0 %v245_v1  ;;  %v253_v9 = vld [vmem:[%s314_s0 + $0x8] ss:$0 sps:$4 sm:$0xff]   ;;  %v202_v10 = vld [vmem:[%s315_s2] ss:$0 sm:$0xff] }
   0x7   :  { %227 = vmatpush3.bf16.msra.mxu0 %v245_v1 }
   0x8   :  { %228 = vmatprep.subr.bf16.mxu0 %v246_v2 }
   0xb   :  { %229 = vmatpush3.bf16.msra.mxu0 %v246_v2 }
   0xc   :  { %230 = vmatprep.subr.bf16.mxu0 %v247_v3 }
   0xf   :  { %231 = vmatpush3.bf16.msra.mxu0 %v247_v3 }
  0x10   :  { %232 = vmatprep.subr.bf16.mxu0 %v248_v5 }
  0x13   :  { %233 = vmatpush3.bf16.msra.mxu0 %v248_v5 }
  0x14   :  { %234 = vmatprep.subr.bf16.mxu0 %v249_v6 }
  0x17   :  { %235 = vmatpush3.bf16.msra.mxu0 %v249_v6 }
  0x18   :  { %236 = vmatprep.subr.bf16.mxu0 %v250_v7 }
  0x1b   :  { %237 = vmatpush3.bf16.msra.mxu0 %v250_v7 }
  0x1c   :  { %238 = vmatprep.subr.bf16.mxu0 %v251_v8 }
  0x1f   :  { %239 = vmatpush3.bf16.msra.mxu0 %v251_v8 }
  0x22   :  { %241 = vmatmul.mubr.bf16.vlgmr.msra.gmra.mrb[0].mxu0 %v253_v9 }
  0xf5   :  { %v242_v11 = vpop.f32.mrb[0].mxu0 }
  0xf6   :  { %v171_v12 = vadd.f32 %v242_v11, %v202_v10  ;;  %v136_v13 = vpop.f32.mrb[1].mxu0 }
  0xf7   :  { %v243_v14 = vpop.f32.mrb[2].mxu0  ;;  %v169_v17 = vadd.f32 %v202_v10, %v136_v13 }
  0xf8   :  { %v208_v15 = vpack.c.bf16 %v171_v12, %v171_v12  ;;  %v139_v16 = vpop.f32.mrb[3].mxu0 }
  0xf9   :  { %v170_v18 = vadd.f32 %v202_v10, %v139_v16 }
  0xfa   :  { %187 = vst [vmem:[%s316_s3 + $0x8] sm:$0xf] %v208_v15 }
  0xfb   :  { %v212_v19 = vpack.c.bf16 %v170_v18, %v169_v17 }
  0xfd   :  { %213 = vst [vmem:[%s316_s3] sm:$0xff] %v212_v19  }

// kernel: transformer_forward.35
= control target key start
LH: loop header
LB: loop body
LE: loop exit
PB: predicated region body
PF: predicated region fallthrough
CT: control target
= control target key end

     0   :  { %s443_s1 = inlined_call_operand.vmem [shape: bf16[128,128], index: 1, kind: input, shape index: {}]   ;;  %s444_s0 = inlined_call_operand.vmem [shape: bf16[24,128], index: 0, kind: input, shape index: {}]   ;;  %s445_s2 = inlined_call_operand.vmem [shape: f32[1,128], index: 2, kind: input, shape index: {}]   ;;  %s446_s3 = inlined_call_operand.vmem [shape: f32[24,128], index: 3, kind: input, shape index: {}]   ;;  %s447_s4 = inlined_call_operand.vmem [shape: f32[1,128], index: 4, kind: input, shape index: {}]   ;;  %s448_s5 = inlined_call_operand.vmem [shape: f32[1,128], index: 5, kind: input, shape index: {}]   ;;  %s449_s6 = inlined_call_operand.vmem [shape: f32[24,128], index: 6, kind: output, shape index: {0}]   ;;  %s450_s7 = inlined_call_operand.vmem [shape: bf16[24,128], index: 7, kind: output, shape index: {1}]  }
   0x1   :  { %v324_v0 = vld [vmem:[%s443_s1] sm:$0xff]   ;;  %v325_v1 = vld [vmem:[%s443_s1 + $0x8] sm:$0xff]   ;;  %v326_v2 = vld [vmem:[%s443_s1 + $0x10] sm:$0xff]  }
   0x2   :  { %304 = vmatprep.subr.bf16.mxu0 %v324_v0  ;;  %v327_v3 = vld [vmem:[%s443_s1 + $0x18] sm:$0xff]   ;;  %v332_v4 = vld [vmem:[%s444_s0] sm:$0xff]   ;;  %v329_v6 = vld [vmem:[%s443_s1 + $0x28] sm:$0xff]  }
   0x3   :  { %305 = vmatpush3.bf16.msra.mxu0 %v324_v0  ;;  %320 = vmatprep.mubr.bf16.mxu0 %v332_v4  ;;  %v328_v5 = vld [vmem:[%s443_s1 + $0x20] sm:$0xff]   ;;  %v330_v7 = vld [vmem:[%s443_s1 + $0x30] sm:$0xff]   ;;  %v331_v8 = vld [vmem:[%s443_s1 + $0x38] sm:$0xff]  }
   0x4   :  { %306 = vmatprep.subr.bf16.mxu0 %v325_v1  ;;  %v333_v9 = vld [vmem:[%s444_s0 + $0x8] ss:$0 sps:$4 sm:$0xff]   ;;  %v280_v10 = vld [vmem:[%s445_s2] ss:$0 sm:$0xff]  ;;  %v185_v12 = vld [vmem:[%s446_s3 + $0x10] sm:$0xff] }
   0x5   :  { %v183_v15 = vld [vmem:[%s446_s3] sm:$0xff]  ;;  %v184_v22 = vld [vmem:[%s446_s3 + $0x8] sm:$0xff] }
   0x6   :  { %v281_v46 = vld [vmem:[%s447_s4] ss:$0 sm:$0xff] }
   0x7   :  { %307 = vmatpush3.bf16.msra.mxu0 %v325_v1  ;;  %v282_v48 = vld [vmem:[%s448_s5] ss:$0 sm:$0xff] }
   0x8   :  { %308 = vmatprep.subr.bf16.mxu0 %v326_v2 }
   0xb   :  { %309 = vmatpush3.bf16.msra.mxu0 %v326_v2 }
   0xc   :  { %310 = vmatprep.subr.bf16.mxu0 %v327_v3 }
   0xf   :  { %311 = vmatpush3.bf16.msra.mxu0 %v327_v3 }
  0x10   :  { %312 = vmatprep.subr.bf16.mxu0 %v328_v5 }
  0x13   :  { %313 = vmatpush3.bf16.msra.mxu0 %v328_v5 }
  0x14   :  { %314 = vmatprep.subr.bf16.mxu0 %v329_v6 }
  0x17   :  { %315 = vmatpush3.bf16.msra.mxu0 %v329_v6 }
  0x18   :  { %316 = vmatprep.subr.bf16.mxu0 %v330_v7 }
  0x1b   :  { %317 = vmatpush3.bf16.msra.mxu0 %v330_v7 }
  0x1c   :  { %318 = vmatprep.subr.bf16.mxu0 %v331_v8 }
  0x1f   :  { %319 = vmatpush3.bf16.msra.mxu0 %v331_v8 }
  0x22   :  { %321 = vmatmul.mubr.bf16.vlgmr.msra.gmra.mrb[0].mxu0 %v333_v9 }
  0xf5   :  { %v322_v11 = vpop.f32.mrb[0].mxu0 }
  0xf6   :  { %v182_v13 = vadd.f32 %v322_v11, %v280_v10  ;;  %v147_v14 = vpop.f32.mrb[1].mxu0 }
  0xf7   :  { %v180_v16 = vadd.f32 %v280_v10, %v147_v14  ;;  %v323_v17 = vpop.f32.mrb[2].mxu0 }
  0xf8   :  { %v150_v18 = vpop.f32.mrb[3].mxu0  ;;  %v188_v19 = vadd.f32 %v185_v12, %v182_v13 }
  0xf9   :  { %v181_v20 = vadd.f32 %v280_v10, %v150_v18  ;;  %v186_v21 = vadd.f32 %v183_v15, %v180_v16 }
  0xfa   :  { %193 = vadd.xlane.f32.xlu1 %v188_v19 }
  0xfb   :  { %189 = vadd.xlane.f32.xlu0 %v186_v21  ;;  %v187_v23 = vadd.f32 %v184_v22, %v181_v20 }
  0xff   :  { %191 = vadd.xlane.f32.xlu0 %v187_v23 }
 0x187   :  { %v194_v24 = vpop.xlane.xlu1 %193 }
 0x188   :  { %v190_v25 = vpop.xlane.xlu0 %189  ;;  %v198_v26 = vmul.f32 0.0078125, %v194_v24 }
 0x189   :  { %v196_v27 = vmul.f32 0.0078125, %v190_v25 }
 0x18a   :  { %v201_v30 = vsub.f32 %v188_v19, %v198_v26 }
 0x18b   :  { %v199_v28 = vsub.f32 %v186_v21, %v196_v27 }
 0x18c   :  { %v192_v29 = vpop.xlane.xlu0 %191  ;;  %v204_v34 = vmul.f32 %v201_v30, %v201_v30 }
 0x18d   :  { %v197_v31 = vmul.f32 0.0078125, %v192_v29  ;;  %v202_v32 = vmul.f32 %v199_v28, %v199_v28 }
 0x18f   :  { %v200_v33 = vsub.f32 %v187_v23, %v197_v31  ;;  %205 = vadd.xlane.f32.xlu1 %v202_v32 }
 0x191   :  { %v203_v35 = vmul.f32 %v200_v33, %v200_v33 }
 0x193   :  { %209 = vadd.xlane.f32.xlu1 %v204_v34  ;;  %207 = vadd.xlane.f32.xlu0 %v203_v35 }
 0x21c   :  { %v206_v36 = vpop.xlane.xlu1 %205 }
 0x21d   :  { %v211_v37 = vmul.f32 0.0078125, %v206_v36 }
 0x21f   :  { %v214_v38 = vadd.f32 1e-05, %v211_v37 }
 0x220   :  { %v210_v39 = vpop.xlane.xlu1 %209  ;;  %v208_v40 = vpop.xlane.xlu0 %207 }
 0x221   :  { %334 = vrsqrt.f32 %v214_v38  ;;  %v213_v41 = vmul.f32 0.0078125, %v210_v39  ;;  %v212_v42 = vmul.f32 0.0078125, %v208_v40 }
 0x223   :  { %v216_v43 = vadd.f32 1e-05, %v213_v41  ;;  %v215_v44 = vadd.f32 1e-05, %v212_v42 }
 0x225   :  { %336 = vrsqrt.f32 %v216_v43 }
 0x226   :  { %338 = vrsqrt.f32 %v215_v44 }
 0x22b   :  { %v335_v45 = vpop.eup %334 }
 0x22c   :  { %v220_v47 = vmul.f32 %v335_v45, %v199_v28 }
 0x22e   :  { %v230_v49 = vmul.f32 %v281_v46, %v220_v47 }
 0x22f   :  { %v337_v50 = vpop.eup %336 }
 0x230   :  { %v339_v51 = vpop.eup %338  ;;  %v240_v52 = vadd.f32 %v282_v48, %v230_v49  ;;  %v222_v53 = vmul.f32 %v337_v50, %v201_v30 }
 0x231   :  { %v221_v54 = vmul.f32 %v339_v51, %v200_v33 }
 0x232   :  { %243 = vst [vmem:[%s449_s6] sm:$0xff] %v240_v52  ;;  %v232_v55 = vmul.f32 %v281_v46, %v222_v53 }
 0x233   :  { %v231_v56 = vmul.f32 %v281_v46, %v221_v54 }
 0x234   :  { %v242_v57 = vadd.f32 %v282_v48, %v232_v55 }
 0x235   :  { %v241_v58 = vadd.f32 %v282_v48, %v231_v56 }
 0x236   :  { %245 = vst [vmem:[%s449_s6 + $0x10] sm:$0xff] %v242_v57  ;;  %v288_v59 = vpack.c.bf16 %v242_v57, %v242_v57 }
 0x237   :  { %244 = vst [vmem:[%s449_s6 + $0x8] sm:$0xff] %v241_v58  ;;  %v292_v60 = vpack.c.bf16 %v241_v58, %v240_v52 }
 0x238   :  { %261 = vst [vmem:[%s450_s7 + $0x8] sm:$0xf] %v288_v59 }
 0x239   :  { %293 = vst [vmem:[%s450_s7] sm:$0xff] %v292_v60  }

// kernel: transformer_forward.34
= control target key start
LH: loop header
LB: loop body
LE: loop exit
PB: predicated region body
PF: predicated region fallthrough
CT: control target
= control target key end

     0   :  { %s1625_s15 = smov 0   ;;  %s1627_s16 = smov 0   ;;  %s1983_s0 = inlined_call_operand.vmem [shape: bf16[2,12,128], index: 0, kind: input, shape index: {}]   ;;  %s1984_s1 = inlined_call_operand.vmem [shape: bf16[2,12,128], index: 1, kind: input, shape index: {}]   ;;  %s1985_s2 = inlined_call_operand.vmem [shape: bf16[2,12,128], index: 2, kind: input, shape index: {}]   ;;  %s1986_s3 = inlined_call_operand.vmem [shape: s32[2,1,12], index: 3, kind: input, shape index: {}]   ;;  %s1987_s4 = inlined_call_operand.vmem [shape: bf16[2,12,128], index: 4, kind: output, shape index: {}]  }
   0x1   :  { %s1629_s17 = smov 0  }
   0x2 LB: > { %s33_s18 = sadd.s32 1, %s1587_s16  ;;  %p1376_p0 = scmp.ge.s32.totalorder %s1591_s17, 1  ;;  %s1591_s17 = sphi %s1629_s17, %s14_s17   ;;  %s1587_s16 = sphi %s1627_s16, %s1993_s16   ;;  %s1583_s15 = sphi %s1625_s15, %s1992_s15  }
   0x3   : > { %p35_p1 = scmp.ge.s32.totalorder %s33_s18, 2  ;;  %p237_p2 = scmp.lt.s32.totalorder %s1591_s17, 3 }
   0x5   : > { %s1995_s18 = smov (%p35_p1, %s33_s18), 0  ;;  %p238_p3 = pnand %p1376_p0, %p237_p2 }
   0x6   : > { %p296_p4 = scmp.lt.s32.totalorder (!%p238_p3), %s1583_s15, 1  ;;  %vm364_vm0 = vcmask (!%p238_p3), 261120   ;;  %v1593_v0 = vmov (!%p238_p3), 0.0   ;;  %vm1594_vm1 = vmmov (!%p238_p3), 0   ;;  %v1595_v1 = vmov (!%p238_p3), 0   ;;  %s1597_s29 = smov (!%p238_p3), 96  }
   0x7   : > { %241 = sbr.rel (%p238_p3) target bundleno = 1479 (0x5c7), region = 36  ;;  %1422 = vmatprep.subr.bf16.mxu0 (!%p238_p3), %v1593_v0  ;;  %365 = vst.msk [vmem:[#allocation4] sm:$0xff] (!%p238_p3), %vm364_vm0, %v1593_v0  ;;  %368 = vst.msk [vmem:[#allocation4 + $0x10] sm:$0xff] (!%p238_p3), %vm364_vm0, %v1593_v0  ;;  %1424 = vmatprep.mubr.msk.bf16.mxu0 (!%p238_p3), %vm1594_vm1, %v1593_v0  ;;  %vm346_vm3 = vcmask (!%p238_p3), 7168   ;;  %v1596_v7 = vmov (!%p238_p3), -inf   ;;  %v389_v8 = vlaneseq (!%p238_p3)  ;;  %vm471_vm8 = vcmask (!%p238_p3), 97280  }
   0x8   : > { %370 = vst.msk [vmem:[#allocation4 + $0x20] sm:$0xff] (!%p238_p3), %vm364_vm0, %v1593_v0  ;;  %372 = vst.msk [vmem:[#allocation4 + $0x30] sm:$0xff] (!%p238_p3), %vm364_vm0, %v1593_v0  ;;  %1501 = vset.pattern.permute.xlu1 (!%p238_p3), %v1595_v1  ;;  %1428 = vmatprep.subr.bf16.mxu1 (!%p238_p3), %v1593_v0  ;;  %vm475_vm10 = vcmask (!%p238_p3), 93184   ;;  %vm348_vm11 = vcmask (!%p238_p3), 3072   ;;  %vm542_vm12 = vcmask (!%p238_p3), 1045504   ;;  %s1598_s7 = smov (!%p238_p3), 64  }
   0x9   : > { %1430 = vmatprep.mubr.msk.bf16.mxu1 (!%p238_p3), %vm1594_vm1, %v1593_v0  ;;  %1502 = vset.pattern.permute.xlu0 (!%p238_p3), %v1595_v1  ;;  %347 = vst.msk [vmem:[#allocation2] sm:$0xff] (!%p238_p3), %vm346_vm3, %v1596_v7  ;;  %350 = vst.msk [vmem:[#allocation2 + $0x10] sm:$0xff] (!%p238_p3), %vm346_vm3, %v1596_v7  ;;  %v390_v9 = vshrl.u32 (!%p238_p3), %v389_v8, 7  ;;  %v396_v11 = vand.u32 (!%p238_p3), 127, %v389_v8  ;;  %s1599_s8 = smov (!%p238_p3), 32   ;;  %vm366_vm13 = vcmask (!%p238_p3), 257024  }
   0xa   : > { %352 = vst.msk [vmem:[#allocation2 + $0x20] sm:$0xff] (!%p238_p3), %vm346_vm3, %v1596_v7  ;;  %354 = vst.msk [vmem:[#allocation2 + $0x30] sm:$0xff] (!%p238_p3), %vm346_vm3, %v1596_v7  ;;  %vm1218_vm14 = vcmask (!%p238_p3), 523264   ;;  %vm1221_vm15 = vcmask (!%p238_p3), 785408  }
   0xb   : > { %356 = vst.msk [vmem:[#allocation3] sm:$0xff] (!%p238_p3), %vm346_vm3, %v1593_v0  ;;  %358 = vst.msk [vmem:[#allocation3 + $0x10] sm:$0xff] (!%p238_p3), %vm346_vm3, %v1593_v0  ;;  %v404_v10 = vsub.s32 (!%p238_p3), 0, %v390_v9  ;;  %v391_v13 = vadd.s32 (!%p238_p3), 8, %v390_v9  ;;  %vm399_vm4 = vcmp.le.s32.totalorder (!%p238_p3), %v396_v11, %v390_v9 }
   0xc   : > { %360 = vst.msk [vmem:[#allocation3 + $0x20] sm:$0xff] (!%p238_p3), %vm346_vm3, %v1593_v0  ;;  %362 = vst.msk [vmem:[#allocation3 + $0x30] sm:$0xff] (!%p238_p3), %vm346_vm3, %v1593_v0 }
   0xd   : > { %vm400_vm6 = vcmp.le.s32.totalorder (!%p238_p3), %v396_v11, %v391_v13  ;;  %349 = vst.msk [vmem:[#allocation2 + $0x8] sm:$0xf] (!%p238_p3), %vm348_vm11, %v1596_v7  ;;  %351 = vst.msk [vmem:[#allocation2 + $0x18] sm:$0xf] (!%p238_p3), %vm348_vm11, %v1596_v7 }
   0xe   : > { %s1997_s15 = smov (!%p296_p4, %s1583_s15), 1  ;;  %353 = vst.msk [vmem:[#allocation2 + $0x28] sm:$0xf] %vm348_vm11, %v1596_v7  ;;  %355 = vst.msk [vmem:[#allocation2 + $0x38] sm:$0xf] %vm348_vm11, %v1596_v7 }
   0xf   : > { %s1657_s19 = sshll.u32 %s1997_s15, 3  ;;  %s330_s22 = scalar_lea.vmem %s1986_s3, %s1997_s15  ;;  %357 = vst.msk [vmem:[#allocation3 + $0x8] sm:$0xf] %vm348_vm11, %v1593_v0  ;;  %359 = vst.msk [vmem:[#allocation3 + $0x18] sm:$0xf] %vm348_vm11, %v1593_v0 }
  0x10   : > { %s313_s25 = scalar_lea.vmem %s1984_s1, %s1657_s19  ;;  %v387_v2 = vld [vmem:[%s330_s22] sm:$0x1]  ;;  %s303_s28 = scalar_lea.vmem %s1983_s0, %s1657_s19  ;;  %361 = vst.msk [vmem:[#allocation3 + $0x28] sm:$0xf] %vm348_vm11, %v1593_v0  ;;  %363 = vst.msk [vmem:[#allocation3 + $0x38] sm:$0xf] %vm348_vm11, %v1593_v0 }
  0x11   : > { %v1666_v3 = vld [vmem:[%s313_s25] sm:$0x3f]   ;;  %vm388_vm2 = vcmp.ne.s32.totalorder %v387_v2, 0  ;;  %s323_s6 = scalar_lea.vmem %s1985_s2, %s1657_s19  ;;  %367 = vst.msk [vmem:[#allocation4 + $0x8] sm:$0xf] %vm366_vm13, %v1593_v0  ;;  %s339_s11 = scalar_lea.vmem %s1987_s4, %s1657_s19 }
  0x12   : > { %v424_v4 = vsel %vm364_vm0, %v1666_v3, 0  ;;  %v401_v5 = vsel %vm388_vm2, 1, %v1595_v1  ;;  %v1675_v6 = vld [vmem:[%s303_s28] sm:$0x3f]   ;;  %369 = vst.msk [vmem:[#allocation4 + $0x18] sm:$0xf] %vm366_vm13, %v1593_v0 }
  0x13   : > { %1423 = vmatpush3.bf16.xpose.msra.mxu0 %v424_v4  ;;  %v405_v12 = vrot.slane %v401_v5, %v404_v10  ;;  %v1721_v24 = vld [vmem:[#allocation2] sm:$0xff]  ;;  %371 = vst.msk [vmem:[#allocation4 + $0x28] sm:$0xf] %vm366_vm13, %v1593_v0  ;;  %373 = vst.msk [vmem:[#allocation4 + $0x38] sm:$0xf] %vm366_vm13, %v1593_v0 }
  0x14   : > { %1440 = vmatprep.subr.bf16.mxu0 %v1593_v0  ;;  %v1726_v27 = vld [vmem:[#allocation2 + $0x8] sm:$0xf]  ;;  %v1747_v32 = vld [vmem:[%s323_s6] sm:$0x3f]  }
  0x15   : > { %vm406_vm5 = vcmp.eq.s32.totalorder %v405_v12, 1  ;;  %v544_v33 = vsel %vm542_vm12, %v1747_v32, 0 }
  0x16   : > { %vm1693_vm7 = vmand %vm406_vm5, %vm399_vm4  ;;  %1429 = vmatpush3.bf16.msra.mxu1 %v544_v33 }
  0x17   : > { %vm1697_vm9 = vmand %vm406_vm5, %vm400_vm6  ;;  %1434 = vmatprep.subr.bf16.mxu1 %v1593_v0 }
  0x1a   : > { %1425 = vmatmul.mubr.msk.bf16.vlgmr.msra.gmra.mrb[0].mxu0 %vm364_vm0, %v1675_v6 }
  0x1b   : > { %1442 = vmatprep.mubr.msk.bf16.mxu0 %vm1594_vm1, %v1593_v0 }
  0xed   : > { %v460_v15 = vpop.f32.mrb[0].mxu0 }
  0xee   : > { %v467_v17 = vsel %vm1693_vm7, %v460_v15, -1e+30  ;;  %v1426_v18 = vpop.f32.mrb[1].mxu0 }
  0xef   : > { %v463_v19 = vpop.f32.mrb[2].mxu0  ;;  %v472_v20 = vsel %vm471_vm8, %v467_v17, -inf }
  0xf0   : > { %v468_v21 = vsel %vm1697_vm9, %v463_v19, -1e+30  ;;  %473 = vmax.xlane.f32.xlu0 %v472_v20  ;;  %v1427_v22 = vpop.f32.mrb[3].mxu0  ;;  %v1821_v19 = vld [vmem:[#allocation2 + $0x10] sm:$0xff]  ;;  %v1823_v20 = vld [vmem:[#allocation2 + $0x18] sm:$0xf] }
  0xf1   : > { %v476_v23 = vsel %vm475_vm10, %v468_v21, -inf }
  0xf4   : > { %477 = vmax.xlane.f32.xlu0 %v476_v23 }
 0x10a   : > { %596 = vrot.lane.b32.xlu0 %v1666_v3, %s1597_s29 }
 0x17d   : > { %v474_v25 = vpop.xlane.xlu0 %473 }
 0x17e   : > { %v1724_v26 = vmax.f32 %v1721_v24, %v474_v25 }
 0x180   : > { %v481_v28 = vsub.f32 %v1721_v24, %v1724_v26  ;;  %592 = vst.msk [vmem:[#allocation2] sm:$0xff] %vm346_vm3, %v1724_v26  ;;  %489 = vperm.xlu1 %1501, %v1724_v26  }
 0x181   : > { %v478_v29 = vpop.xlane.xlu0 %477 }
 0x182   : > { %v1734_v30 = vmax.f32 %v1726_v27, %v478_v29  ;;  %v1841_v29 = vld [vmem:[#allocation2 + $0x20] sm:$0xff] }
 0x184   : > { %v482_v31 = vsub.f32 %v1726_v27, %v1734_v30  ;;  %593 = vst.msk [vmem:[#allocation2 + $0x8] sm:$0xf] %vm348_vm11, %v1734_v30  ;;  %494 = vperm.xlu1 %1501, %v1734_v30   ;;  %v483_v27 = vmul.f32 1.442695, %v481_v28 }
 0x185   : > { %v597_v41 = vpop.permute.xlu0 %596 }
 0x186   : > { %v602_v44 = vsel %vm364_vm0, %v597_v41, 0 }
 0x188   : > { %594 = vrot.lane.b32.xlu1 %v1675_v6, %s1597_s29 }
 0x18c   : > { %768 = vrot.lane.b32.xlu1 %v1666_v3, %s1598_s7 }
 0x190   : > { %766 = vrot.lane.b32.xlu1 %v1675_v6, %s1598_s7 }
 0x194   : > { %940 = vrot.lane.b32.xlu1 %v1666_v3, %s1599_s8 }
 0x198   : > { %938 = vrot.lane.b32.xlu1 %v1675_v6, %s1599_s8 }
 0x1ff   : > { %v490_v34 = vpop.permute.xlu1 %489 }
 0x200   : > { %v497_v35 = vsub.f32 %v467_v17, %v490_v34  ;;  %v1845_v34 = vld [vmem:[#allocation2 + $0x28] sm:$0xf] }
 0x202   : > { %v499_v36 = vmul.f32 1.442695, %v497_v35 }
 0x203   : > { %v495_v37 = vpop.permute.xlu1 %494 }
 0x204   : > { %v498_v38 = vsub.f32 %v468_v21, %v495_v37  ;;  %1521 = vpow2.f32 %v499_v36 }
 0x206   : > { %v501_v39 = vmul.f32 1.442695, %v498_v38 }
 0x207   : > { %v595_v40 = vpop.permute.xlu1 %594 }
 0x208   : > { %1523 = vpow2.f32 %v501_v39 }
 0x20b   : > { %v769_v46 = vpop.permute.xlu1 %768 }
 0x20c   : > { %v774_v48 = vsel %vm364_vm0, %v769_v46, 0 }
 0x20e   : > { %v1760_v42 = vpop.eup %1521 }
 0x20f   : > { %v767_v47 = vpop.permute.xlu1 %766 }
 0x212   : > { %v1762_v43 = vpop.eup %1523 }
 0x213   : > { %v533_v45 = vpack.c.bf16 %v1762_v43, %v1760_v42  ;;  %v941_v49 = vpop.permute.xlu1 %940 }
 0x214   : > { %v946_v50 = vsel %vm364_vm0, %v941_v49, 0 }
 0x215   : > { %1431 = vmatmul.mubr.msk.bf16.vlgmr.msra.gmra.mrb[0].mxu1 %vm471_vm8, %v533_v45 }
 0x216   : > { %1435 = vmatpush3.bf16.xpose.msra.mxu1 %v602_v44  ;;  %1436 = vmatprep.mubr.msk.bf16.mxu1 %vm1594_vm1, %v1593_v0  ;;  %v1865_v44 = vld [vmem:[#allocation2 + $0x38] sm:$0xf] }
 0x217   : > { %1446 = vmatprep.subr.bf16.mxu1 %v1593_v0  ;;  %v939_v51 = vpop.permute.xlu1 %938 }
 0x21d   : > { %1437 = vmatmul.mubr.msk.bf16.vlgmr.msra.gmra.mrb[4].mxu1 %vm364_vm0, %v595_v40  ;;  %v1862_v40 = vld [vmem:[#allocation2 + $0x30] sm:$0xff] }
 0x21e   : > { %1447 = vmatpush3.bf16.xpose.msra.mxu1 %v774_v48  ;;  %1448 = vmatprep.mubr.msk.bf16.mxu1 %vm1594_vm1, %v1593_v0 }
 0x21f   : > { %1458 = vmatprep.subr.bf16.mxu1 %v1593_v0 }
 0x225   : > { %1449 = vmatmul.mubr.msk.bf16.vlgmr.msra.gmra.mrb[8].mxu1 %vm364_vm0, %v767_v47 }
 0x226   : > { %1459 = vmatpush3.bf16.xpose.msra.mxu1 %v946_v50  ;;  %1460 = vmatprep.mubr.msk.bf16.mxu1 %vm1594_vm1, %v1593_v0  ;;  %v510_v50 = vsel %vm475_vm10, %v1762_v43, 0.0 }
 0x22d   : > { %1461 = vmatmul.mubr.msk.bf16.vlgmr.msra.gmra.mrb[12].mxu1 %vm364_vm0, %v939_v51  ;;  %v507_v51 = vsel %vm471_vm8, %v1760_v42, 0.0 }
 0x2e8   : > { %v1781_v52 = vpop.f32.mrb[0].mxu1 }
 0x2e9   : > { %v1432_v53 = vpop.f32.mrb[1].mxu1 }
 0x2ea   : > { %v1783_v54 = vpop.f32.mrb[2].mxu1 }
 0x2eb   : > { %v1433_v55 = vpop.f32.mrb[3].mxu1 }
 0x2f0   : > { %v638_v56 = vpop.f32.mrb[4].mxu1 }
 0x2f1   : > { %v1787_v57 = vsel %vm1693_vm7, %v638_v56, -1e+30  ;;  %v1438_v58 = vpop.f32.mrb[5].mxu1 }
 0x2f2   : > { %v641_v59 = vpop.f32.mrb[6].mxu1  ;;  %v650_v60 = vsel %vm471_vm8, %v1787_v57, -inf }
 0x2f3   : > { %v1793_v61 = vsel %vm1697_vm9, %v641_v59, -1e+30  ;;  %651 = vmax.xlane.f32.xlu1 %v650_v60  ;;  %v1439_v62 = vpop.f32.mrb[7].mxu1 }
 0x2f4   : > { %v653_v63 = vsel %vm475_vm10, %v1793_v61, -inf }
 0x2f5   : > { %654 = vmax.xlane.f32.xlu0 %v653_v63 }
 0x2f8   : > { %v810_v1 = vpop.f32.mrb[8].mxu1 }
 0x2f9   : > { %v1799_v2 = vsel %vm1693_vm7, %v810_v1, -1e+30  ;;  %v1450_v3 = vpop.f32.mrb[9].mxu1 }
 0x2fa   : > { %v813_v4 = vpop.f32.mrb[10].mxu1  ;;  %v822_v5 = vsel %vm471_vm8, %v1799_v2, -inf }
 0x2fb   : > { %v1805_v6 = vsel %vm1697_vm9, %v813_v4, -1e+30  ;;  %823 = vmax.xlane.f32.xlu0 %v822_v5  ;;  %v1451_v7 = vpop.f32.mrb[11].mxu1 }
 0x2fc   : > { %v825_v8 = vsel %vm475_vm10, %v1805_v6, -inf }
 0x2fd   : > { %826 = vmax.xlane.f32.xlu1 %v825_v8 }
 0x300   : > { %v982_v9 = vpop.f32.mrb[12].mxu1 }
 0x301   : > { %v1811_v10 = vsel %vm1693_vm7, %v982_v9, -1e+30  ;;  %v1462_v11 = vpop.f32.mrb[13].mxu1 }
 0x302   : > { %v985_v12 = vpop.f32.mrb[14].mxu1  ;;  %v994_v13 = vsel %vm471_vm8, %v1811_v10, -inf }
 0x303   : > { %v1817_v15 = vsel %vm1697_vm9, %v985_v12, -1e+30  ;;  %995 = vmax.xlane.f32.xlu0 %v994_v13  ;;  %v1463_v17 = vpop.f32.mrb[15].mxu1 }
 0x304   : > { %v997_v18 = vsel %vm475_vm10, %v1817_v15, -inf }
 0x305   : > { %998 = vmax.xlane.f32.xlu1 %v997_v18 }
 0x380   : > { %v652_v14 = vpop.xlane.xlu1 %651 }
 0x381   : > { %v1826_v21 = vmax.f32 %v1821_v19, %v652_v14 }
 0x382   : > { %v655_v22 = vpop.xlane.xlu0 %654 }
 0x383   : > { %v658_v16 = vsub.f32 %v1821_v19, %v1826_v21  ;;  %764 = vst.msk [vmem:[#allocation2 + $0x10] sm:$0xff] %vm346_vm3, %v1826_v21  ;;  %v1833_v23 = vmax.f32 %v1823_v20, %v655_v22  ;;  %666 = vperm.xlu0 %1502, %v1826_v21  }
 0x385   : > { %v659_v25 = vsub.f32 %v1823_v20, %v1833_v23  ;;  %765 = vst.msk [vmem:[#allocation2 + $0x18] sm:$0xf] %vm348_vm11, %v1833_v23  ;;  %671 = vperm.xlu1 %1501, %v1833_v23  }
 0x387   : > { %1055 = vrot.lane.b32.xlu0 %v1747_v32, %s1599_s8  ;;  %v662_v30 = vmul.f32 1.442695, %v659_v25 }
 0x388   : > { %v824_v33 = vpop.xlane.xlu0 %823 }
 0x389   : > { %v1848_v35 = vmax.f32 %v1841_v29, %v824_v33 }
 0x38a   : > { %v827_v36 = vpop.xlane.xlu1 %826 }
 0x38b   : > { %v830_v37 = vsub.f32 %v1841_v29, %v1848_v35  ;;  %936 = vst.msk [vmem:[#allocation2 + $0x20] sm:$0xff] %vm346_vm3, %v1848_v35  ;;  %v1855_v38 = vmax.f32 %v1845_v34, %v827_v36  ;;  %838 = vperm.xlu1 %1501, %v1848_v35   ;;  %v485_v36 = vmul.f32 1.442695, %v482_v31 }
 0x38d   : > { %v831_v39 = vsub.f32 %v1845_v34, %v1855_v38  ;;  %937 = vst.msk [vmem:[#allocation2 + $0x28] sm:$0xf] %vm348_vm11, %v1855_v38  ;;  %v832_v24 = vmul.f32 1.442695, %v830_v37 }
 0x38f   : > { %843 = vperm.xlu1 %1501, %v1855_v38   ;;  %v834_v26 = vmul.f32 1.442695, %v831_v39 }
 0x390   : > { %v996_v41 = vpop.xlane.xlu0 %995 }
 0x391   : > { %v1868_v45 = vmax.f32 %v1862_v40, %v996_v41 }
 0x392   : > { %v999_v46 = vpop.xlane.xlu1 %998 }
 0x393   : > { %v1002_v47 = vsub.f32 %v1862_v40, %v1868_v45  ;;  %1108 = vst.msk [vmem:[#allocation2 + $0x30] sm:$0xff] %vm346_vm3, %v1868_v45  ;;  %v1875_v48 = vmax.f32 %v1865_v44, %v999_v46  ;;  %1010 = vperm.xlu1 %1501, %v1868_v45   ;;  %v503_v40 = vld [vmem:[#allocation3] sm:$0xff] }
 0x395   : > { %v1003_v49 = vsub.f32 %v1865_v44, %v1875_v48  ;;  %1109 = vst.msk [vmem:[#allocation2 + $0x38] sm:$0xf] %vm348_vm11, %v1875_v48  ;;  %v1004_v21 = vmul.f32 1.442695, %v1002_v47 }
 0x397   : > { %1015 = vperm.xlu1 %1501, %v1875_v48  }
 0x39b   : > { %711 = vrot.lane.b32.xlu1 %v1747_v32, %s1597_s29 }
 0x39f   : > { %883 = vrot.lane.b32.xlu1 %v1747_v32, %s1598_s7 }
 0x3a6   : > { %511 = vadd.xlane.f32.xlu0 %v510_v50 }
 0x3c3   : > { %508 = vadd.xlane.f32.xlu1 %v507_v51 }
 0x402   : > { %v667_v53 = vpop.permute.xlu0 %666 }
 0x403   : > { %v674_v55 = vsub.f32 %v1787_v57, %v667_v53 }
 0x404   : > { %v672_v56 = vpop.permute.xlu1 %671 }
 0x405   : > { %v676_v58 = vmul.f32 1.442695, %v674_v55  ;;  %v675_v59 = vsub.f32 %v1793_v61, %v672_v56  ;;  %v660_v56 = vmul.f32 1.442695, %v658_v16  ;;  %v1006_v16 = vmul.f32 1.442695, %v1003_v49 }
 0x406   : > { %v1056_v46 = vpop.permute.xlu0 %1055 }
 0x407   : > { %1525 = vpow2.f32 %v676_v58  ;;  %v678_v60 = vmul.f32 1.442695, %v675_v59  ;;  %v1061_v53 = vsel %vm542_vm12, %v1056_v46, 0  ;;  %v504_v59 = vld [vmem:[#allocation3 + $0x8] sm:$0xf] }
 0x408   : > { %v520_v46 = vld [vmem:[#allocation4 + $0x8] sm:$0xf] }
 0x409   : > { %1527 = vpow2.f32 %v678_v60  ;;  %v681_v60 = vld [vmem:[#allocation3 + $0x10] sm:$0xff] }
 0x40a   : > { %v839_v62 = vpop.permute.xlu1 %838 }
 0x40b   : > { %v846_v32 = vsub.f32 %v1799_v2, %v839_v62  ;;  %v682_v62 = vld [vmem:[#allocation3 + $0x18] sm:$0xf] }
 0x40d   : > { %v848_v63 = vmul.f32 1.442695, %v846_v32 }
 0x40e   : > { %v844_v43 = vpop.permute.xlu1 %843 }
 0x40f   : > { %1529 = vpow2.f32 %v848_v63  ;;  %v847_v1 = vsub.f32 %v1805_v6, %v844_v43 }
 0x411   : > { %v1526_v42 = vpop.eup %1525  ;;  %v850_v3 = vmul.f32 1.442695, %v847_v1 }
 0x412   : > { %v1011_v4 = vpop.permute.xlu1 %1010  ;;  %v685_v57 = vsel %vm471_vm8, %v1526_v42, 0.0 }
 0x413   : > { %v1528_v5 = vpop.eup %1527  ;;  %1531 = vpow2.f32 %v850_v3  ;;  %v1018_v61 = vsub.f32 %v1811_v10, %v1011_v4  ;;  %686 = vadd.xlane.f32.xlu1 %v685_v57  ;;  %v853_v4 = vld [vmem:[#allocation3 + $0x20] sm:$0xff] }
 0x414   : > { %v688_v7 = vsel %vm475_vm10, %v1528_v5, 0.0  ;;  %v710_v18 = vpack.c.bf16 %v1528_v5, %v1526_v42 }
 0x415   : > { %v1020_v8 = vmul.f32 1.442695, %v1018_v61  ;;  %689 = vadd.xlane.f32.xlu0 %v688_v7  ;;  %v854_v61 = vld [vmem:[#allocation3 + $0x28] sm:$0xf] }
 0x416   : > { %v1016_v2 = vpop.permute.xlu1 %1015 }
 0x417   : > { %1533 = vpow2.f32 %v1020_v8  ;;  %v1019_v9 = vsub.f32 %v1817_v15, %v1016_v2 }
 0x419   : > { %v1530_v11 = vpop.eup %1529  ;;  %v1022_v6 = vmul.f32 1.442695, %v1019_v9 }
 0x41a   : > { %v712_v12 = vpop.permute.xlu1 %711  ;;  %v857_v13 = vsel %vm471_vm8, %v1530_v11, 0.0 }
 0x41b   : > { %1535 = vpow2.f32 %v1022_v6  ;;  %v717_v17 = vsel %vm542_vm12, %v712_v12, 0  ;;  %858 = vadd.xlane.f32.xlu0 %v857_v13 }
 0x41c   : > { %1441 = vmatpush3.bf16.msra.mxu0 %v717_v17  ;;  %1537 = vpow2.f32 %v485_v36 }
 0x41d   : > { %v1532_v10 = vpop.eup %1531  ;;  %1452 = vmatprep.subr.bf16.mxu0 %v1593_v0  ;;  %1539 = vpow2.f32 %v483_v27 }
 0x41e   : > { %v860_v14 = vsel %vm475_vm10, %v1532_v10, 0.0  ;;  %v884_v22 = vpop.permute.xlu1 %883  ;;  %v882_v51 = vpack.c.bf16 %v1532_v10, %v1530_v11  ;;  %1541 = vpow2.f32 %v662_v30  ;;  %v1025_v11 = vld [vmem:[#allocation3 + $0x30] sm:$0xff]  ;;  %v1026_v10 = vld [vmem:[#allocation3 + $0x38] sm:$0xf] }
 0x41f   : > { %861 = vadd.xlane.f32.xlu1 %v860_v14  ;;  %1443 = vmatmul.mubr.msk.bf16.vlgmr.msra.gmra.mrb[4].mxu0 %vm471_vm8, %v710_v18  ;;  %v889_v15 = vsel %vm542_vm12, %v884_v22, 0  ;;  %1543 = vpow2.f32 %v660_v56 }
 0x420   : > { %1453 = vmatpush3.bf16.msra.mxu0 %v889_v15  ;;  %1454 = vmatprep.mubr.msk.bf16.mxu0 %vm1594_vm1, %v1593_v0  ;;  %1545 = vpow2.f32 %v832_v24 }
 0x421   : > { %v1534_v33 = vpop.eup %1533  ;;  %1464 = vmatprep.subr.bf16.mxu0 %v1593_v0  ;;  %1547 = vpow2.f32 %v834_v26 }
 0x422   : > { %v1029_v41 = vsel %vm471_vm8, %v1534_v33, 0.0  ;;  %1549 = vpow2.f32 %v1004_v21 }
 0x423   : > { %1030 = vadd.xlane.f32.xlu0 %v1029_v41  ;;  %1551 = vpow2.f32 %v1006_v16  ;;  %v519_v41 = vld [vmem:[#allocation4] sm:$0xff] }
 0x425   : > { %v1536_v50 = vpop.eup %1535 }
 0x426   : > { %v1032_v55 = vsel %vm475_vm10, %v1536_v50, 0.0  ;;  %v1054_v31 = vpack.c.bf16 %v1536_v50, %v1534_v33  ;;  %v1538_v58 = vpop.eup %1537 }
 0x427   : > { %1033 = vadd.xlane.f32.xlu1 %v1032_v55  ;;  %1455 = vmatmul.mubr.msk.bf16.vlgmr.msra.gmra.mrb[8].mxu0 %vm471_vm8, %v882_v51  ;;  %v506_v28 = vmul.f32 %v1538_v58, %v504_v59 }
 0x428   : > { %1465 = vmatpush3.bf16.msra.mxu0 %v1061_v53  ;;  %1466 = vmatprep.mubr.msk.bf16.mxu0 %vm1594_vm1, %v1593_v0  ;;  %v1540_v0 = vpop.eup %1539 }
 0x429   : > { %v1542_v23 = vpop.eup %1541  ;;  %v505_v44 = vmul.f32 %v1540_v0, %v503_v40  ;;  %v869_v40 = vld [vmem:[#allocation4 + $0x28] sm:$0xf] }
 0x42a   : > { %v1544_v25 = vpop.eup %1543  ;;  %v684_v1 = vmul.f32 %v1542_v23, %v682_v62 }
 0x42b   : > { %v1546_v34 = vpop.eup %1545  ;;  %v683_v32 = vmul.f32 %v1544_v25, %v681_v60 }
 0x42c   : > { %v1548_v35 = vpop.eup %1547  ;;  %v855_v57 = vmul.f32 %v1546_v34, %v853_v4 }
 0x42d   : > { %v1550_v37 = vpop.eup %1549  ;;  %v856_v2 = vmul.f32 %v1548_v35, %v854_v61 }
 0x42e   : > { %v1552_v38 = vpop.eup %1551  ;;  %v1027_v13 = vmul.f32 %v1550_v37, %v1025_v11 }
 0x42f   : > { %1467 = vmatmul.mubr.msk.bf16.vlgmr.msra.gmra.mrb[12].mxu0 %vm471_vm8, %v1054_v31  ;;  %v1028_v22 = vmul.f32 %v1552_v38, %v1026_v10 }
 0x433   : > { %v512_v19 = vpop.xlane.xlu0 %511 }
 0x434   : > { %v514_v20 = vadd.f32 %v512_v19, %v506_v28 }
 0x436   : > { %518 = vst.msk [vmem:[#allocation3 + $0x8] sm:$0xf] %vm348_vm11, %v514_v20  ;;  %v696_v20 = vld [vmem:[#allocation4 + $0x10] sm:$0xff] }
 0x438   : > { %528 = vperm.xlu1 %1501, %v1538_v58  }
 0x439   : > { %523 = vperm.xlu0 %1502, %v1540_v0  }
 0x43c   : > { %705 = vperm.xlu1 %1501, %v1542_v23  }
 0x43d   : > { %700 = vperm.xlu0 %1502, %v1544_v25   ;;  %v1116_v29 = vld [vmem:[#allocation3 + $0x8] sm:$0xf] }
 0x43e   : > { %1553 = vrcp.f32 %v1116_v29 }
 0x440   : > { %872 = vperm.xlu1 %1501, %v1546_v34  }
 0x441   : > { %877 = vperm.xlu0 %1502, %v1548_v35  }
 0x444   : > { %1044 = vperm.xlu1 %1501, %v1550_v37  }
 0x445   : > { %1049 = vperm.xlu0 %1502, %v1552_v38   ;;  %v868_v38 = vld [vmem:[#allocation4 + $0x20] sm:$0xff] }
 0x448   : > { %v1554_v39 = vpop.eup %1553 }
 0x449   : > { %1126 = vperm.xlu0 %1502, %v1554_v39  }
 0x450   : > { %v509_v45 = vpop.xlane.xlu1 %508 }
 0x451   : > { %v513_v47 = vadd.f32 %v509_v45, %v505_v44 }
 0x453   : > { %516 = vst.msk [vmem:[#allocation3] sm:$0xff] %vm346_vm3, %v513_v47 }
 0x45a   : > { %v1115_v48 = vld [vmem:[#allocation3] sm:$0xff] }
 0x45b   : > { %1555 = vrcp.f32 %v1115_v48 }
 0x465   : > { %v1556_v49 = vpop.eup %1555 }
 0x466   : > { %1121 = vperm.xlu1 %1501, %v1556_v49  }
 0x4a0   : > { %v687_v63 = vpop.xlane.xlu1 %686 }
 0x4a1   : > { %v691_v43 = vadd.f32 %v687_v63, %v683_v32 }
 0x4a2   : > { %v690_v42 = vpop.xlane.xlu0 %689 }
 0x4a3   : > { %693 = vst.msk [vmem:[#allocation3 + $0x10] sm:$0xff] %vm346_vm3, %v691_v43  ;;  %v692_v3 = vadd.f32 %v690_v42, %v684_v1  ;;  %v1040_v43 = vld [vmem:[#allocation4 + $0x30] sm:$0xff]  ;;  %v1041_v42 = vld [vmem:[#allocation4 + $0x38] sm:$0xf] }
 0x4a5   : > { %694 = vst.msk [vmem:[#allocation3 + $0x18] sm:$0xf] %vm348_vm11, %v692_v3 }
 0x4a8   : > { %v859_v5 = vpop.xlane.xlu0 %858 }
 0x4a9   : > { %v863_v7 = vadd.f32 %v859_v5, %v855_v57 }
 0x4aa   : > { %v1135_v8 = vld [vmem:[#allocation3 + $0x10] sm:$0xff] }
 0x4ab   : > { %865 = vst.msk [vmem:[#allocation3 + $0x20] sm:$0xff] %vm346_vm3, %v863_v7  ;;  %1557 = vrcp.f32 %v1135_v8 }
 0x4ac   : > { %v862_v9 = vpop.xlane.xlu1 %861  ;;  %v1136_v6 = vld [vmem:[#allocation3 + $0x18] sm:$0xf] }
 0x4ad   : > { %v864_v12 = vadd.f32 %v862_v9, %v856_v2  ;;  %1559 = vrcp.f32 %v1136_v6 }
 0x4af   : > { %866 = vst.msk [vmem:[#allocation3 + $0x28] sm:$0xf] %vm348_vm11, %v864_v12 }
 0x4b0   : > { %v1031_v17 = vpop.xlane.xlu0 %1030 }
 0x4b1   : > { %v1035_v18 = vadd.f32 %v1031_v17, %v1027_v13 }
 0x4b2   : > { %v1155_v14 = vld [vmem:[#allocation3 + $0x20] sm:$0xff] }
 0x4b3   : > { %1037 = vst.msk [vmem:[#allocation3 + $0x30] sm:$0xff] %vm346_vm3, %v1035_v18  ;;  %1561 = vrcp.f32 %v1155_v14 }
 0x4b4   : > { %v1034_v15 = vpop.xlane.xlu1 %1033 }
 0x4b5   : > { %v1558_v33 = vpop.eup %1557  ;;  %v1036_v36 = vadd.f32 %v1034_v15, %v1028_v22 }
 0x4b6   : > { %1141 = vperm.xlu1 %1501, %v1558_v33   ;;  %v1156_v50 = vld [vmem:[#allocation3 + $0x28] sm:$0xf] }
 0x4b7   : > { %v1560_v51 = vpop.eup %1559  ;;  %1038 = vst.msk [vmem:[#allocation3 + $0x38] sm:$0xf] %vm348_vm11, %v1036_v36  ;;  %1563 = vrcp.f32 %v1156_v50 }
 0x4b8   : > { %1146 = vperm.xlu0 %1502, %v1560_v51   ;;  %v524_v53 = vpop.permute.xlu0 %523  ;;  %v529_v55 = vpop.permute.xlu1 %528 }
 0x4b9   : > { %v531_v27 = vmul.f32 %v524_v53, %v519_v41  ;;  %v532_v30 = vmul.f32 %v529_v55, %v520_v46 }
 0x4ba   : > { %v1175_v31 = vld [vmem:[#allocation3 + $0x30] sm:$0xff] }
 0x4bb   : > { %v587_v56 = vadd.f32 %v1781_v52, %v531_v27  ;;  %v588_v58 = vadd.f32 %v1783_v54, %v532_v30  ;;  %1565 = vrcp.f32 %v1175_v31  ;;  %v697_v52 = vld [vmem:[#allocation4 + $0x18] sm:$0xf] }
 0x4bc   : > { %v701_v21 = vpop.permute.xlu0 %700  ;;  %v706_v16 = vpop.permute.xlu1 %705 }
 0x4bd   : > { %v1562_v59 = vpop.eup %1561  ;;  %589 = vst.msk [vmem:[#allocation4] sm:$0xff] %vm364_vm0, %v587_v56  ;;  %v708_v54 = vmul.f32 %v701_v21, %v696_v20  ;;  %v709_v23 = vmul.f32 %v706_v16, %v697_v52 }
 0x4be   : > { %591 = vst.msk [vmem:[#allocation4 + $0x8] sm:$0xf] %vm366_vm13, %v588_v58  ;;  %1161 = vperm.xlu1 %1501, %v1562_v59   ;;  %v1176_v24 = vld [vmem:[#allocation3 + $0x38] sm:$0xf] }
 0x4bf   : > { %1567 = vrcp.f32 %v1176_v24 }
 0x4c0   : > { %v873_v39 = vpop.permute.xlu1 %872  ;;  %v878_v44 = vpop.permute.xlu0 %877 }
 0x4c1   : > { %v1564_v26 = vpop.eup %1563  ;;  %v880_v45 = vmul.f32 %v873_v39, %v868_v38  ;;  %v881_v48 = vmul.f32 %v878_v44, %v869_v40 }
 0x4c2   : > { %1166 = vperm.xlu0 %1502, %v1564_v26  }
 0x4c4   : > { %v1045_v1 = vpop.permute.xlu1 %1044  ;;  %v1050_v3 = vpop.permute.xlu0 %1049  ;;  %v1113_v20 = vld [vmem:[#allocation4] sm:$0xff] }
 0x4c5   : > { %v1566_v28 = vpop.eup %1565  ;;  %v1052_v4 = vmul.f32 %v1045_v1, %v1040_v43  ;;  %v1053_v5 = vmul.f32 %v1050_v3, %v1041_v42 }
 0x4c6   : > { %1181 = vperm.xlu1 %1501, %v1566_v28  }
 0x4c8   : > { %v1127_v6 = vpop.permute.xlu0 %1126 }
 0x4c9   : > { %v1568_v19 = vpop.eup %1567 }
 0x4ca   : > { %1186 = vperm.xlu0 %1502, %v1568_v19   ;;  %v1114_v19 = vld [vmem:[#allocation4 + $0x8] sm:$0xf] }
 0x4cb   : > { %v1130_v16 = vmul.f32 %v1127_v6, %v1114_v19 }
 0x4e5   : > { %v1122_v11 = vpop.permute.xlu1 %1121 }
 0x4f2   : > { %v753_v0 = vpop.f32.mrb[4].mxu0 }
 0x4f3   : > { %v760_v25 = vadd.f32 %v753_v0, %v708_v54  ;;  %v1444_v29 = vpop.f32.mrb[5].mxu0  ;;  %v1129_v54 = vmul.f32 %v1122_v11, %v1113_v20 }
 0x4f4   : > { %v756_v34 = vpop.f32.mrb[6].mxu0 }
 0x4f5   : > { %762 = vst.msk [vmem:[#allocation4 + $0x10] sm:$0xff] %vm364_vm0, %v760_v25  ;;  %v761_v35 = vadd.f32 %v756_v34, %v709_v23  ;;  %v1445_v37 = vpop.f32.mrb[7].mxu0 }
 0x4f7   : > { %763 = vst.msk [vmem:[#allocation4 + $0x18] sm:$0xf] %vm366_vm13, %v761_v35 }
 0x4fa   : > { %v925_v47 = vpop.f32.mrb[8].mxu0 }
 0x4fb   : > { %v932_v49 = vadd.f32 %v925_v47, %v880_v45  ;;  %v1456_v60 = vpop.f32.mrb[9].mxu0 }
 0x4fc   : > { %v928_v62 = vpop.f32.mrb[10].mxu0  ;;  %v1132_v13 = vld [vmem:[#allocation4 + $0x10] sm:$0xff] }
 0x4fd   : > { %934 = vst.msk [vmem:[#allocation4 + $0x20] sm:$0xff] %vm364_vm0, %v932_v49  ;;  %v933_v32 = vadd.f32 %v928_v62, %v881_v48  ;;  %v1457_v63 = vpop.f32.mrb[11].mxu0 }
 0x4fe   : > { %v1133_v10 = vld [vmem:[#allocation4 + $0x18] sm:$0xf] }
 0x4ff   : > { %935 = vst.msk [vmem:[#allocation4 + $0x28] sm:$0xf] %vm366_vm13, %v933_v32 }
 0x502   : > { %v1097_v57 = vpop.f32.mrb[12].mxu0 }
 0x503   : > { %v1104_v61 = vadd.f32 %v1097_v57, %v1052_v4  ;;  %v1468_v7 = vpop.f32.mrb[13].mxu0 }
 0x504   : > { %v1100_v8 = vpop.f32.mrb[14].mxu0  ;;  %v1152_v33 = vld [vmem:[#allocation4 + $0x20] sm:$0xff] }
 0x505   : > { %1106 = vst.msk [vmem:[#allocation4 + $0x30] sm:$0xff] %vm364_vm0, %v1104_v61  ;;  %v1105_v2 = vadd.f32 %v1100_v8, %v1053_v5  ;;  %v1469_v9 = vpop.f32.mrb[15].mxu0 }
 0x506   : > { %v1153_v41 = vld [vmem:[#allocation4 + $0x28] sm:$0xf] }
 0x507   : > { %1107 = vst.msk [vmem:[#allocation4 + $0x38] sm:$0xf] %vm366_vm13, %v1105_v2 }
 0x50c   : > { %v1172_v55 = vld [vmem:[#allocation4 + $0x30] sm:$0xff] }
 0x50e   : > { %v1173_v30 = vld [vmem:[#allocation4 + $0x38] sm:$0xf] }
 0x535   : > { %v1142_v12 = vpop.permute.xlu1 %1141 }
 0x536   : > { %v1149_v18 = vmul.f32 %v1142_v12, %v1132_v13 }
 0x537   : > { %v1147_v17 = vpop.permute.xlu0 %1146 }
 0x538   : > { %v1150_v14 = vmul.f32 %v1147_v17, %v1133_v10 }
 0x53a   : > { %v1503_v22 = vpack.i.bf16 %v1150_v14, %v1149_v18 }
 0x53c   : > { %1504 = vrot.lane.b32.xlu1 %v1503_v22, %s1599_s8 }
 0x53d   : > { %v1162_v15 = vpop.permute.xlu1 %1161 }
 0x53e   : > { %v1169_v46 = vmul.f32 %v1162_v15, %v1152_v33 }
 0x541   : > { %v1167_v36 = vpop.permute.xlu0 %1166 }
 0x542   : > { %v1170_v50 = vmul.f32 %v1167_v36, %v1153_v41 }
 0x544   : > { %v1508_v51 = vpack.i.bf16 %v1170_v50, %v1169_v46 }
 0x545   : > { %v1182_v53 = vpop.permute.xlu1 %1181 }
 0x546   : > { %1509 = vrot.lane.b32.xlu0 %v1508_v51, %s1598_s7  ;;  %v1189_v31 = vmul.f32 %v1182_v53, %v1172_v55 }
 0x549   : > { %v1187_v27 = vpop.permute.xlu0 %1186 }
 0x54a   : > { %v1190_v56 = vmul.f32 %v1187_v27, %v1173_v30 }
 0x54c   : > { %v1513_v58 = vpack.i.bf16 %v1190_v56, %v1189_v31 }
 0x54e   : > { %1514 = vrot.lane.b32.xlu1 %v1513_v58, %s1597_s29 }
 0x5ae   : > { %v1505_v59 = vpop.permute.xlu1 %1504 }
 0x5af   : > { %v1507_v26 = vunpack.i.h.bf16 %v1505_v59  ;;  %v1506_v28 = vunpack.i.l.bf16 %v1505_v59 }
 0x5b1   : > { %v1217_v23 = vsel %vm364_vm0, %v1130_v16, %v1507_v26  ;;  %v1216_v25 = vsel %vm364_vm0, %v1129_v54, %v1506_v28 }
 0x5b8   : > { %v1510_v24 = vpop.permute.xlu0 %1509 }
 0x5b9   : > { %v1512_v21 = vunpack.i.h.bf16 %v1510_v24  ;;  %v1511_v52 = vunpack.i.l.bf16 %v1510_v24 }
 0x5bb   : > { %v1220_v35 = vsel %vm1218_vm14, %v1217_v23, %v1512_v21  ;;  %v1219_v37 = vsel %vm1218_vm14, %v1216_v25, %v1511_v52 }
 0x5c0   : > { %v1515_v0 = vpop.permute.xlu1 %1514 }
 0x5c1   : > { %v1517_v29 = vunpack.i.h.bf16 %v1515_v0  ;;  %v1516_v34 = vunpack.i.l.bf16 %v1515_v0 }
 0x5c3   : > { %v1223_v38 = vsel %vm1221_vm15, %v1220_v35, %v1517_v29  ;;  %v1222_v39 = vsel %vm1221_vm15, %v1219_v37, %v1516_v34 }
 0x5c4   : > { %v1405_v40 = vpack.c.bf16 %v1223_v38, %v1223_v38  ;;  %v1404_v44 = vpack.c.bf16 %v1222_v39, %v1222_v39 }
 0x5c6   : > { %1233 = vst [vmem:[%s339_s11 + $0x4] sm:$0x3] %v1405_v40  ;;  %1232 = vst [vmem:[%s339_s11] sm:$0xf] %v1404_v44 }
 0x5c7 PF: > { %s14_s17 = sadd.s32 1, %s1591_s17   ;;  %s1992_s15 = smov %s1587_s16 }
 0x5c8   : > { %p11_p5 = scmp.ge.s32.totalorder %s14_s17, 4   ;;  %s1993_s16 = smov %s1995_s18 }
 0x5ca   :  { %13 = sbr.rel (!%p11_p5) target bundleno = 2 (0x2), region = 102 }

// kernel: transformer_forward.38
= control target key start
LH: loop header
LB: loop body
LE: loop exit
PB: predicated region body
PF: predicated region fallthrough
CT: control target
= control target key end

     0   :  { %s1588_s15 = smov 0   ;;  %s1590_s16 = smov 0   ;;  %s1937_s0 = inlined_call_operand.vmem [shape: bf16[2,12,128], index: 0, kind: input, shape index: {}]   ;;  %s1938_s1 = inlined_call_operand.vmem [shape: bf16[2,16,128], index: 1, kind: input, shape index: {}]   ;;  %s1939_s2 = inlined_call_operand.vmem [shape: bf16[2,16,128], index: 2, kind: input, shape index: {}]   ;;  %s1940_s3 = inlined_call_operand.vmem [shape: s32[2,1,16], index: 3, kind: input, shape index: {}]   ;;  %s1941_s4 = inlined_call_operand.vmem [shape: bf16[2,12,128], index: 4, kind: output, shape index: {}]  }
   0x1   :  { %s1592_s17 = smov 0  }
   0x2 LB: > { %s33_s18 = sadd.s32 1, %s1550_s16  ;;  %p1339_p0 = scmp.ge.s32.totalorder %s1554_s17, 1  ;;  %s1554_s17 = sphi %s1592_s17, %s14_s17   ;;  %s1550_s16 = sphi %s1590_s16, %s1943_s16   ;;  %s1546_s15 = sphi %s1588_s15, %s1942_s15  }
   0x3   : > { %p35_p1 = scmp.ge.s32.totalorder %s33_s18, 2  ;;  %p237_p2 = scmp.lt.s32.totalorder %s1554_s17, 3 }
   0x5   : > { %s1945_s18 = smov (%p35_p1, %s33_s18), 0  ;;  %p238_p3 = pnand %p1339_p0, %p237_p2 }
   0x6   : > { %p296_p4 = scmp.lt.s32.totalorder (!%p238_p3), %s1546_s15, 1  ;;  %vm364_vm0 = vcmask (!%p238_p3), 261120   ;;  %v1556_v0 = vmov (!%p238_p3), 0.0   ;;  %vm1557_vm1 = vmmov (!%p238_p3), 0   ;;  %v1558_v5 = vmov (!%p238_p3), 0   ;;  %s1560_s29 = smov (!%p238_p3), 96  }
   0x7   : > { %241 = sbr.rel (%p238_p3) target bundleno = 1479 (0x5c7), region = 36  ;;  %1385 = vmatprep.subr.bf16.mxu0 (!%p238_p3), %v1556_v0  ;;  %365 = vst.msk [vmem:[#allocation4] sm:$0xff] (!%p238_p3), %vm364_vm0, %v1556_v0  ;;  %368 = vst.msk [vmem:[#allocation4 + $0x10] sm:$0xff] (!%p238_p3), %vm364_vm0, %v1556_v0  ;;  %1387 = vmatprep.mubr.msk.bf16.mxu0 (!%p238_p3), %vm1557_vm1, %v1556_v0  ;;  %vm346_vm3 = vcmask (!%p238_p3), 7168   ;;  %v1559_v7 = vmov (!%p238_p3), -inf   ;;  %v441_v8 = vlaneseq (!%p238_p3)  ;;  %vm450_vm5 = vcmask (!%p238_p3), 130048  }
   0x8   : > { %370 = vst.msk [vmem:[#allocation4 + $0x20] sm:$0xff] (!%p238_p3), %vm364_vm0, %v1556_v0  ;;  %372 = vst.msk [vmem:[#allocation4 + $0x30] sm:$0xff] (!%p238_p3), %vm364_vm0, %v1556_v0  ;;  %1391 = vmatprep.subr.bf16.mxu1 (!%p238_p3), %v1556_v0  ;;  %1393 = vmatprep.mubr.msk.bf16.mxu1 (!%p238_p3), %vm1557_vm1, %v1556_v0  ;;  %vm454_vm6 = vcmask (!%p238_p3), 125952   ;;  %vm348_vm7 = vcmask (!%p238_p3), 3072   ;;  %s1561_s7 = smov (!%p238_p3), 64   ;;  %s1562_s8 = smov (!%p238_p3), 32  }
   0x9   : > { %1464 = vset.pattern.permute.xlu1 (!%p238_p3), %v1558_v5  ;;  %1465 = vset.pattern.permute.xlu0 (!%p238_p3), %v1558_v5  ;;  %347 = vst.msk [vmem:[#allocation2] sm:$0xff] (!%p238_p3), %vm346_vm3, %v1559_v7  ;;  %350 = vst.msk [vmem:[#allocation2 + $0x10] sm:$0xff] (!%p238_p3), %vm346_vm3, %v1559_v7  ;;  %v442_v9 = vshrl.u32 (!%p238_p3), %v441_v8, 7  ;;  %vm366_vm8 = vcmask (!%p238_p3), 257024   ;;  %vm1181_vm9 = vcmask (!%p238_p3), 523264   ;;  %vm1184_vm10 = vcmask (!%p238_p3), 785408  }
   0xa   : > { %352 = vst.msk [vmem:[#allocation2 + $0x20] sm:$0xff] (!%p238_p3), %vm346_vm3, %v1559_v7  ;;  %354 = vst.msk [vmem:[#allocation2 + $0x30] sm:$0xff] (!%p238_p3), %vm346_vm3, %v1559_v7 }
   0xb   : > { %356 = vst.msk [vmem:[#allocation3] sm:$0xff] (!%p238_p3), %vm346_vm3, %v1556_v0  ;;  %358 = vst.msk [vmem:[#allocation3 + $0x10] sm:$0xff] (!%p238_p3), %vm346_vm3, %v1556_v0  ;;  %v443_v10 = vsub.s32 (!%p238_p3), 0, %v442_v9 }
   0xc   : > { %360 = vst.msk [vmem:[#allocation3 + $0x20] sm:$0xff] (!%p238_p3), %vm346_vm3, %v1556_v0  ;;  %362 = vst.msk [vmem:[#allocation3 + $0x30] sm:$0xff] (!%p238_p3), %vm346_vm3, %v1556_v0 }
   0xd   : > { %349 = vst.msk [vmem:[#allocation2 + $0x8] sm:$0xf] (!%p238_p3), %vm348_vm7, %v1559_v7  ;;  %351 = vst.msk [vmem:[#allocation2 + $0x18] sm:$0xf] (!%p238_p3), %vm348_vm7, %v1559_v7 }
   0xe   : > { %s1947_s15 = smov (!%p296_p4, %s1546_s15), 1  ;;  %353 = vst.msk [vmem:[#allocation2 + $0x28] sm:$0xf] %vm348_vm7, %v1559_v7  ;;  %355 = vst.msk [vmem:[#allocation2 + $0x38] sm:$0xf] %vm348_vm7, %v1559_v7 }
   0xf   : > { %s1620_s19 = sshll.u32 %s1947_s15, 3  ;;  %s330_s28 = scalar_lea.vmem %s1940_s3, %s1947_s15  ;;  %357 = vst.msk [vmem:[#allocation3 + $0x8] sm:$0xf] %vm348_vm7, %v1556_v0  ;;  %359 = vst.msk [vmem:[#allocation3 + $0x18] sm:$0xf] %vm348_vm7, %v1556_v0 }
  0x10   : > { %s313_s22 = scalar_lea.vmem %s1938_s1, %s1620_s19  ;;  %s303_s25 = scalar_lea.vmem %s1937_s0, %s1620_s19  ;;  %v380_v4 = vld [vmem:[%s330_s28] sm:$0x1]  ;;  %361 = vst.msk [vmem:[#allocation3 + $0x28] sm:$0xf] %vm348_vm7, %v1556_v0  ;;  %363 = vst.msk [vmem:[#allocation3 + $0x38] sm:$0xf] %vm348_vm7, %v1556_v0 }
  0x11   : > { %v1626_v1 = vld [vmem:[%s313_s22] sm:$0xff]   ;;  %vm381_vm2 = vcmp.ne.s32.totalorder %v380_v4, 0  ;;  %s323_s6 = scalar_lea.vmem %s1939_s2, %s1620_s19  ;;  %367 = vst.msk [vmem:[#allocation4 + $0x8] sm:$0xf] %vm366_vm8, %v1556_v0  ;;  %369 = vst.msk [vmem:[#allocation4 + $0x18] sm:$0xf] %vm366_vm8, %v1556_v0  ;;  %s339_s11 = scalar_lea.vmem %s1941_s4, %s1620_s19 }
  0x12   : > { %v397_v2 = vsel %vm364_vm0, %v1626_v1, 0  ;;  %v1635_v3 = vld [vmem:[%s303_s25] sm:$0x3f]   ;;  %v440_v6 = vsel %vm381_vm2, 1, %v1558_v5  ;;  %371 = vst.msk [vmem:[#allocation4 + $0x28] sm:$0xf] %vm366_vm8, %v1556_v0 }
  0x13   : > { %1386 = vmatpush3.bf16.xpose.msra.mxu0 %v397_v2  ;;  %v1656_v11 = vrot.slane %v440_v6, %v443_v10  ;;  %v1679_v20 = vld [vmem:[#allocation2] sm:$0xff]  ;;  %373 = vst.msk [vmem:[#allocation4 + $0x38] sm:$0xf] %vm366_vm8, %v1556_v0 }
  0x14   : > { %1403 = vmatprep.subr.bf16.mxu0 %v1556_v0  ;;  %v1684_v23 = vld [vmem:[#allocation2 + $0x8] sm:$0xf]  ;;  %v1705_v28 = vld [vmem:[%s323_s6] sm:$0xff]  }
  0x15   : > { %vm445_vm4 = vcmp.eq.s32.totalorder %v1656_v11, 1  ;;  %1392 = vmatpush3.bf16.msra.mxu1 %v1705_v28 }
  0x16   : > { %1397 = vmatprep.subr.bf16.mxu1 %v1556_v0 }
  0x1a   : > { %1388 = vmatmul.mubr.msk.bf16.vlgmr.msra.gmra.mrb[0].mxu0 %vm364_vm0, %v1635_v3 }
  0x1b   : > { %1405 = vmatprep.mubr.msk.bf16.mxu0 %vm1557_vm1, %v1556_v0 }
  0xed   : > { %v433_v12 = vpop.f32.mrb[0].mxu0 }
  0xee   : > { %v446_v13 = vsel %vm445_vm4, %v433_v12, -1e+30  ;;  %v1389_v14 = vpop.f32.mrb[1].mxu0 }
  0xef   : > { %v436_v15 = vpop.f32.mrb[2].mxu0  ;;  %v451_v16 = vsel %vm450_vm5, %v446_v13, -inf }
  0xf0   : > { %v447_v17 = vsel %vm445_vm4, %v436_v15, -1e+30  ;;  %452 = vmax.xlane.f32.xlu0 %v451_v16  ;;  %v1390_v18 = vpop.f32.mrb[3].mxu0  ;;  %v1780_v15 = vld [vmem:[#allocation2 + $0x18] sm:$0xf] }
  0xf1   : > { %v455_v19 = vsel %vm454_vm6, %v447_v17, -inf }
  0xf4   : > { %456 = vmax.xlane.f32.xlu0 %v455_v19 }
 0x10a   : > { %572 = vrot.lane.b32.xlu0 %v1626_v1, %s1560_s29 }
 0x17d   : > { %v453_v21 = vpop.xlane.xlu0 %452 }
 0x17e   : > { %v1682_v22 = vmax.f32 %v1679_v20, %v453_v21  ;;  %v1798_v21 = vld [vmem:[#allocation2 + $0x20] sm:$0xff] }
 0x180   : > { %v460_v24 = vsub.f32 %v1679_v20, %v1682_v22  ;;  %568 = vst.msk [vmem:[#allocation2] sm:$0xff] %vm346_vm3, %v1682_v22  ;;  %468 = vperm.xlu1 %1464, %v1682_v22  }
 0x181   : > { %v457_v25 = vpop.xlane.xlu0 %456 }
 0x182   : > { %v1692_v26 = vmax.f32 %v1684_v23, %v457_v25 }
 0x184   : > { %v461_v27 = vsub.f32 %v1684_v23, %v1692_v26  ;;  %569 = vst.msk [vmem:[#allocation2 + $0x8] sm:$0xf] %vm348_vm7, %v1692_v26  ;;  %473 = vperm.xlu1 %1464, %v1692_v26   ;;  %v462_v23 = vmul.f32 1.442695, %v460_v24 }
 0x185   : > { %v573_v36 = vpop.permute.xlu0 %572 }
 0x186   : > { %v578_v39 = vsel %vm364_vm0, %v573_v36, 0 }
 0x188   : > { %570 = vrot.lane.b32.xlu1 %v1635_v3, %s1560_s29 }
 0x18c   : > { %742 = vrot.lane.b32.xlu1 %v1626_v1, %s1561_s7 }
 0x190   : > { %740 = vrot.lane.b32.xlu1 %v1635_v3, %s1561_s7 }
 0x194   : > { %912 = vrot.lane.b32.xlu1 %v1626_v1, %s1562_s8 }
 0x198   : > { %910 = vrot.lane.b32.xlu1 %v1635_v3, %s1562_s8 }
 0x1ff   : > { %v469_v29 = vpop.permute.xlu1 %468 }
 0x200   : > { %v476_v30 = vsub.f32 %v446_v13, %v469_v29  ;;  %v1778_v13 = vld [vmem:[#allocation2 + $0x10] sm:$0xff]  ;;  %v1802_v29 = vld [vmem:[#allocation2 + $0x28] sm:$0xf] }
 0x202   : > { %v478_v31 = vmul.f32 1.442695, %v476_v30 }
 0x203   : > { %v474_v32 = vpop.permute.xlu1 %473 }
 0x204   : > { %v477_v33 = vsub.f32 %v447_v17, %v474_v32  ;;  %1484 = vpow2.f32 %v478_v31 }
 0x206   : > { %v480_v34 = vmul.f32 1.442695, %v477_v33 }
 0x207   : > { %v571_v35 = vpop.permute.xlu1 %570 }
 0x208   : > { %1486 = vpow2.f32 %v480_v34 }
 0x20b   : > { %v743_v41 = vpop.permute.xlu1 %742 }
 0x20c   : > { %v748_v43 = vsel %vm364_vm0, %v743_v41, 0 }
 0x20e   : > { %v1717_v37 = vpop.eup %1484 }
 0x20f   : > { %v741_v42 = vpop.permute.xlu1 %740 }
 0x212   : > { %v1719_v38 = vpop.eup %1486 }
 0x213   : > { %v512_v40 = vpack.c.bf16 %v1719_v38, %v1717_v37  ;;  %v913_v44 = vpop.permute.xlu1 %912 }
 0x214   : > { %v918_v45 = vsel %vm364_vm0, %v913_v44, 0 }
 0x215   : > { %1394 = vmatmul.mubr.msk.bf16.vlgmr.msra.gmra.mrb[0].mxu1 %vm450_vm5, %v512_v40 }
 0x216   : > { %1398 = vmatpush3.bf16.xpose.msra.mxu1 %v578_v39  ;;  %1399 = vmatprep.mubr.msk.bf16.mxu1 %vm1557_vm1, %v1556_v0  ;;  %v1822_v39 = vld [vmem:[#allocation2 + $0x38] sm:$0xf] }
 0x217   : > { %1409 = vmatprep.subr.bf16.mxu1 %v1556_v0  ;;  %v911_v46 = vpop.permute.xlu1 %910 }
 0x21d   : > { %1400 = vmatmul.mubr.msk.bf16.vlgmr.msra.gmra.mrb[4].mxu1 %vm364_vm0, %v571_v35  ;;  %v1819_v35 = vld [vmem:[#allocation2 + $0x30] sm:$0xff] }
 0x21e   : > { %1410 = vmatpush3.bf16.xpose.msra.mxu1 %v748_v43  ;;  %1411 = vmatprep.mubr.msk.bf16.mxu1 %vm1557_vm1, %v1556_v0 }
 0x21f   : > { %1421 = vmatprep.subr.bf16.mxu1 %v1556_v0 }
 0x225   : > { %1412 = vmatmul.mubr.msk.bf16.vlgmr.msra.gmra.mrb[8].mxu1 %vm364_vm0, %v741_v42 }
 0x226   : > { %1422 = vmatpush3.bf16.xpose.msra.mxu1 %v918_v45  ;;  %1423 = vmatprep.mubr.msk.bf16.mxu1 %vm1557_vm1, %v1556_v0  ;;  %v489_v45 = vsel %vm454_vm6, %v1719_v38, 0.0 }
 0x22d   : > { %1424 = vmatmul.mubr.msk.bf16.vlgmr.msra.gmra.mrb[12].mxu1 %vm364_vm0, %v911_v46  ;;  %v486_v46 = vsel %vm450_vm5, %v1717_v37, 0.0 }
 0x2e8   : > { %v1738_v47 = vpop.f32.mrb[0].mxu1 }
 0x2e9   : > { %v1395_v48 = vpop.f32.mrb[1].mxu1 }
 0x2ea   : > { %v1740_v49 = vpop.f32.mrb[2].mxu1 }
 0x2eb   : > { %v1396_v50 = vpop.f32.mrb[3].mxu1 }
 0x2f0   : > { %v614_v51 = vpop.f32.mrb[4].mxu1 }
 0x2f1   : > { %v1744_v52 = vsel %vm445_vm4, %v614_v51, -1e+30  ;;  %v1401_v53 = vpop.f32.mrb[5].mxu1 }
 0x2f2   : > { %v617_v54 = vpop.f32.mrb[6].mxu1  ;;  %v626_v55 = vsel %vm450_vm5, %v1744_v52, -inf }
 0x2f3   : > { %v1750_v56 = vsel %vm445_vm4, %v617_v54, -1e+30  ;;  %627 = vmax.xlane.f32.xlu1 %v626_v55  ;;  %v1402_v57 = vpop.f32.mrb[7].mxu1 }
 0x2f4   : > { %v629_v58 = vsel %vm454_vm6, %v1750_v56, -inf }
 0x2f5   : > { %630 = vmax.xlane.f32.xlu0 %v629_v58 }
 0x2f8   : > { %v784_v59 = vpop.f32.mrb[8].mxu1 }
 0x2f9   : > { %v1756_v60 = vsel %vm445_vm4, %v784_v59, -1e+30  ;;  %v1413_v61 = vpop.f32.mrb[9].mxu1 }
 0x2fa   : > { %v787_v62 = vpop.f32.mrb[10].mxu1  ;;  %v796_v63 = vsel %vm450_vm5, %v1756_v60, -inf }
 0x2fb   : > { %v1762_v1 = vsel %vm445_vm4, %v787_v62, -1e+30  ;;  %797 = vmax.xlane.f32.xlu0 %v796_v63  ;;  %v1414_v2 = vpop.f32.mrb[11].mxu1 }
 0x2fc   : > { %v799_v3 = vsel %vm454_vm6, %v1762_v1, -inf }
 0x2fd   : > { %800 = vmax.xlane.f32.xlu1 %v799_v3 }
 0x300   : > { %v954_v4 = vpop.f32.mrb[12].mxu1 }
 0x301   : > { %v1768_v5 = vsel %vm445_vm4, %v954_v4, -1e+30  ;;  %v1425_v6 = vpop.f32.mrb[13].mxu1 }
 0x302   : > { %v957_v7 = vpop.f32.mrb[14].mxu1  ;;  %v966_v8 = vsel %vm450_vm5, %v1768_v5, -inf }
 0x303   : > { %v1774_v9 = vsel %vm445_vm4, %v957_v7, -1e+30  ;;  %967 = vmax.xlane.f32.xlu0 %v966_v8  ;;  %v1426_v10 = vpop.f32.mrb[15].mxu1 }
 0x304   : > { %v969_v12 = vsel %vm454_vm6, %v1774_v9, -inf }
 0x305   : > { %970 = vmax.xlane.f32.xlu1 %v969_v12 }
 0x380   : > { %v628_v14 = vpop.xlane.xlu1 %627 }
 0x381   : > { %v1783_v16 = vmax.f32 %v1778_v13, %v628_v14 }
 0x382   : > { %v631_v17 = vpop.xlane.xlu0 %630 }
 0x383   : > { %v634_v11 = vsub.f32 %v1778_v13, %v1783_v16  ;;  %738 = vst.msk [vmem:[#allocation2 + $0x10] sm:$0xff] %vm346_vm3, %v1783_v16  ;;  %v1790_v18 = vmax.f32 %v1780_v15, %v631_v17  ;;  %642 = vperm.xlu0 %1465, %v1783_v16   ;;  %v464_v17 = vmul.f32 1.442695, %v461_v27 }
 0x385   : > { %v635_v19 = vsub.f32 %v1780_v15, %v1790_v18  ;;  %739 = vst.msk [vmem:[#allocation2 + $0x18] sm:$0xf] %vm348_vm7, %v1790_v18  ;;  %647 = vperm.xlu1 %1464, %v1790_v18  }
 0x387   : > { %1027 = vrot.lane.b32.xlu0 %v1705_v28, %s1562_s8  ;;  %v638_v27 = vmul.f32 1.442695, %v635_v19 }
 0x388   : > { %v798_v25 = vpop.xlane.xlu0 %797 }
 0x389   : > { %v1805_v30 = vmax.f32 %v1798_v21, %v798_v25 }
 0x38a   : > { %v801_v31 = vpop.xlane.xlu1 %800 }
 0x38b   : > { %v804_v32 = vsub.f32 %v1798_v21, %v1805_v30  ;;  %908 = vst.msk [vmem:[#allocation2 + $0x20] sm:$0xff] %vm346_vm3, %v1805_v30  ;;  %v1812_v33 = vmax.f32 %v1802_v29, %v801_v31  ;;  %812 = vperm.xlu1 %1464, %v1805_v30  }
 0x38d   : > { %v805_v34 = vsub.f32 %v1802_v29, %v1812_v33  ;;  %909 = vst.msk [vmem:[#allocation2 + $0x28] sm:$0xf] %vm348_vm7, %v1812_v33  ;;  %v806_v20 = vmul.f32 1.442695, %v804_v32 }
 0x38f   : > { %817 = vperm.xlu1 %1464, %v1812_v33   ;;  %v808_v22 = vmul.f32 1.442695, %v805_v34 }
 0x390   : > { %v968_v36 = vpop.xlane.xlu0 %967 }
 0x391   : > { %v1825_v40 = vmax.f32 %v1819_v35, %v968_v36 }
 0x392   : > { %v971_v41 = vpop.xlane.xlu1 %970 }
 0x393   : > { %v974_v42 = vsub.f32 %v1819_v35, %v1825_v40  ;;  %1078 = vst.msk [vmem:[#allocation2 + $0x30] sm:$0xff] %vm346_vm3, %v1825_v40  ;;  %v1832_v43 = vmax.f32 %v1822_v39, %v971_v41  ;;  %982 = vperm.xlu1 %1464, %v1825_v40   ;;  %v482_v35 = vld [vmem:[#allocation3] sm:$0xff] }
 0x395   : > { %v975_v44 = vsub.f32 %v1822_v39, %v1832_v43  ;;  %1079 = vst.msk [vmem:[#allocation2 + $0x38] sm:$0xf] %vm348_vm7, %v1832_v43  ;;  %v976_v16 = vmul.f32 1.442695, %v974_v42 }
 0x397   : > { %987 = vperm.xlu1 %1464, %v1832_v43  }
 0x39b   : > { %687 = vrot.lane.b32.xlu1 %v1705_v28, %s1560_s29 }
 0x39f   : > { %857 = vrot.lane.b32.xlu1 %v1705_v28, %s1561_s7 }
 0x3a6   : > { %490 = vadd.xlane.f32.xlu0 %v489_v45 }
 0x3c3   : > { %487 = vadd.xlane.f32.xlu1 %v486_v46  ;;  %v636_v46 = vmul.f32 1.442695, %v634_v11  ;;  %v978_v11 = vmul.f32 1.442695, %v975_v44 }
 0x402   : > { %v643_v48 = vpop.permute.xlu0 %642 }
 0x403   : > { %v650_v50 = vsub.f32 %v1744_v52, %v643_v48 }
 0x404   : > { %v648_v51 = vpop.permute.xlu1 %647 }
 0x405   : > { %v652_v53 = vmul.f32 1.442695, %v650_v50  ;;  %v651_v54 = vsub.f32 %v1750_v56, %v648_v51  ;;  %v483_v50 = vld [vmem:[#allocation3 + $0x8] sm:$0xf]  ;;  %v657_v51 = vld [vmem:[#allocation3 + $0x10] sm:$0xff] }
 0x406   : > { %v1028_v36 = vpop.permute.xlu0 %1027 }
 0x407   : > { %1488 = vpow2.f32 %v652_v53  ;;  %v654_v55 = vmul.f32 1.442695, %v651_v54  ;;  %v658_v53 = vld [vmem:[#allocation3 + $0x18] sm:$0xf] }
 0x409   : > { %1490 = vpow2.f32 %v654_v55 }
 0x40a   : > { %v813_v57 = vpop.permute.xlu1 %812 }
 0x40b   : > { %v820_v28 = vsub.f32 %v1756_v60, %v813_v57 }
 0x40d   : > { %v822_v58 = vmul.f32 1.442695, %v820_v28 }
 0x40e   : > { %v818_v38 = vpop.permute.xlu1 %817 }
 0x40f   : > { %1492 = vpow2.f32 %v822_v58  ;;  %v821_v59 = vsub.f32 %v1762_v1, %v818_v38 }
 0x411   : > { %v1489_v37 = vpop.eup %1488  ;;  %v824_v61 = vmul.f32 1.442695, %v821_v59  ;;  %v827_v59 = vld [vmem:[#allocation3 + $0x20] sm:$0xff] }
 0x412   : > { %v983_v62 = vpop.permute.xlu1 %982  ;;  %v661_v52 = vsel %vm450_vm5, %v1489_v37, 0.0 }
 0x413   : > { %v1491_v63 = vpop.eup %1490  ;;  %1494 = vpow2.f32 %v824_v61  ;;  %v990_v56 = vsub.f32 %v1768_v5, %v983_v62  ;;  %662 = vadd.xlane.f32.xlu1 %v661_v52  ;;  %v828_v62 = vld [vmem:[#allocation3 + $0x28] sm:$0xf] }
 0x414   : > { %v664_v2 = vsel %vm454_vm6, %v1491_v63, 0.0  ;;  %v686_v10 = vpack.c.bf16 %v1491_v63, %v1489_v37 }
 0x415   : > { %v992_v3 = vmul.f32 1.442695, %v990_v56  ;;  %665 = vadd.xlane.f32.xlu0 %v664_v2 }
 0x416   : > { %v988_v60 = vpop.permute.xlu1 %987 }
 0x417   : > { %1496 = vpow2.f32 %v992_v3  ;;  %v991_v4 = vsub.f32 %v1774_v9, %v988_v60  ;;  %v997_v3 = vld [vmem:[#allocation3 + $0x30] sm:$0xff] }
 0x419   : > { %v1493_v6 = vpop.eup %1492  ;;  %v994_v1 = vmul.f32 1.442695, %v991_v4 }
 0x41a   : > { %v688_v7 = vpop.permute.xlu1 %687  ;;  %v831_v8 = vsel %vm450_vm5, %v1493_v6, 0.0 }
 0x41b   : > { %1498 = vpow2.f32 %v994_v1  ;;  %832 = vadd.xlane.f32.xlu0 %v831_v8  ;;  %1404 = vmatpush3.bf16.msra.mxu0 %v688_v7  ;;  %v998_v7 = vld [vmem:[#allocation3 + $0x38] sm:$0xf] }
 0x41c   : > { %1415 = vmatprep.subr.bf16.mxu0 %v1556_v0  ;;  %1500 = vpow2.f32 %v464_v17  ;;  %v498_v17 = vld [vmem:[#allocation4] sm:$0xff] }
 0x41d   : > { %v1495_v5 = vpop.eup %1494  ;;  %1502 = vpow2.f32 %v462_v23 }
 0x41e   : > { %1406 = vmatmul.mubr.msk.bf16.vlgmr.msra.gmra.mrb[4].mxu0 %vm450_vm5, %v686_v10  ;;  %v834_v12 = vsel %vm454_vm6, %v1495_v5, 0.0  ;;  %v858_v14 = vpop.permute.xlu1 %857  ;;  %v856_v31 = vpack.c.bf16 %v1495_v5, %v1493_v6  ;;  %1504 = vpow2.f32 %v638_v27 }
 0x41f   : > { %835 = vadd.xlane.f32.xlu1 %v834_v12  ;;  %1416 = vmatpush3.bf16.msra.mxu0 %v858_v14  ;;  %1506 = vpow2.f32 %v636_v46 }
 0x420   : > { %1417 = vmatprep.mubr.msk.bf16.mxu0 %vm1557_vm1, %v1556_v0  ;;  %1427 = vmatprep.subr.bf16.mxu0 %v1556_v0  ;;  %1508 = vpow2.f32 %v806_v20 }
 0x421   : > { %v1497_v9 = vpop.eup %1496  ;;  %1510 = vpow2.f32 %v808_v22 }
 0x422   : > { %v1001_v25 = vsel %vm450_vm5, %v1497_v9, 0.0  ;;  %1512 = vpow2.f32 %v976_v16 }
 0x423   : > { %1002 = vadd.xlane.f32.xlu0 %v1001_v25  ;;  %1514 = vpow2.f32 %v978_v11  ;;  %v499_v25 = vld [vmem:[#allocation4 + $0x8] sm:$0xf] }
 0x425   : > { %v1499_v41 = vpop.eup %1498 }
 0x426   : > { %1418 = vmatmul.mubr.msk.bf16.vlgmr.msra.gmra.mrb[8].mxu0 %vm450_vm5, %v856_v31  ;;  %v1004_v45 = vsel %vm454_vm6, %v1499_v41, 0.0  ;;  %v1026_v26 = vpack.c.bf16 %v1499_v41, %v1497_v9  ;;  %v1501_v48 = vpop.eup %1500 }
 0x427   : > { %1005 = vadd.xlane.f32.xlu1 %v1004_v45  ;;  %1428 = vmatpush3.bf16.msra.mxu0 %v1028_v36  ;;  %v485_v24 = vmul.f32 %v1501_v48, %v483_v50 }
 0x428   : > { %1429 = vmatprep.mubr.msk.bf16.mxu0 %vm1557_vm1, %v1556_v0  ;;  %v1503_v0 = vpop.eup %1502 }
 0x429   : > { %v1505_v18 = vpop.eup %1504  ;;  %v484_v39 = vmul.f32 %v1503_v0, %v482_v35  ;;  %v843_v35 = vld [vmem:[#allocation4 + $0x28] sm:$0xf] }
 0x42a   : > { %v1507_v19 = vpop.eup %1506  ;;  %v660_v28 = vmul.f32 %v1505_v18, %v658_v53 }
 0x42b   : > { %v1509_v29 = vpop.eup %1508  ;;  %v659_v54 = vmul.f32 %v1507_v19, %v657_v51 }
 0x42c   : > { %v1511_v30 = vpop.eup %1510  ;;  %v829_v37 = vmul.f32 %v1509_v29, %v827_v59 }
 0x42d   : > { %v1513_v32 = vpop.eup %1512  ;;  %v830_v56 = vmul.f32 %v1511_v30, %v828_v62 }
 0x42e   : > { %1430 = vmatmul.mubr.msk.bf16.vlgmr.msra.gmra.mrb[12].mxu0 %vm450_vm5, %v1026_v26  ;;  %v1515_v33 = vpop.eup %1514  ;;  %v999_v6 = vmul.f32 %v1513_v32, %v997_v3 }
 0x42f   : > { %v1000_v5 = vmul.f32 %v1515_v33, %v998_v7 }
 0x433   : > { %v491_v13 = vpop.xlane.xlu0 %490 }
 0x434   : > { %v493_v15 = vadd.f32 %v491_v13, %v485_v24 }
 0x436   : > { %497 = vst.msk [vmem:[#allocation3 + $0x8] sm:$0xf] %vm348_vm7, %v493_v15  ;;  %v672_v15 = vld [vmem:[#allocation4 + $0x10] sm:$0xff] }
 0x438   : > { %507 = vperm.xlu1 %1464, %v1501_v48  }
 0x439   : > { %502 = vperm.xlu0 %1465, %v1503_v0  }
 0x43c   : > { %681 = vperm.xlu1 %1464, %v1505_v18  }
 0x43d   : > { %676 = vperm.xlu0 %1465, %v1507_v19   ;;  %v1086_v21 = vld [vmem:[#allocation3 + $0x8] sm:$0xf] }
 0x43e   : > { %1516 = vrcp.f32 %v1086_v21 }
 0x440   : > { %846 = vperm.xlu1 %1464, %v1509_v29  }
 0x441   : > { %851 = vperm.xlu0 %1465, %v1511_v30  }
 0x444   : > { %1016 = vperm.xlu1 %1464, %v1513_v32  }
 0x445   : > { %1021 = vperm.xlu0 %1465, %v1515_v33   ;;  %v842_v33 = vld [vmem:[#allocation4 + $0x20] sm:$0xff] }
 0x448   : > { %v1517_v34 = vpop.eup %1516 }
 0x449   : > { %1096 = vperm.xlu0 %1465, %v1517_v34  }
 0x450   : > { %v488_v40 = vpop.xlane.xlu1 %487 }
 0x451   : > { %v492_v42 = vadd.f32 %v488_v40, %v484_v39 }
 0x453   : > { %495 = vst.msk [vmem:[#allocation3] sm:$0xff] %vm346_vm3, %v492_v42 }
 0x45a   : > { %v1085_v43 = vld [vmem:[#allocation3] sm:$0xff] }
 0x45b   : > { %1518 = vrcp.f32 %v1085_v43 }
 0x465   : > { %v1519_v44 = vpop.eup %1518 }
 0x466   : > { %1091 = vperm.xlu1 %1464, %v1519_v44  }
 0x4a0   : > { %v663_v55 = vpop.xlane.xlu1 %662 }
 0x4a1   : > { %v667_v57 = vadd.f32 %v663_v55, %v659_v54 }
 0x4a2   : > { %v666_v58 = vpop.xlane.xlu0 %665 }
 0x4a3   : > { %669 = vst.msk [vmem:[#allocation3 + $0x10] sm:$0xff] %vm346_vm3, %v667_v57  ;;  %v668_v38 = vadd.f32 %v666_v58, %v660_v28  ;;  %v1012_v57 = vld [vmem:[#allocation4 + $0x30] sm:$0xff]  ;;  %v1013_v58 = vld [vmem:[#allocation4 + $0x38] sm:$0xf] }
 0x4a5   : > { %670 = vst.msk [vmem:[#allocation3 + $0x18] sm:$0xf] %vm348_vm7, %v668_v38 }
 0x4a8   : > { %v833_v61 = vpop.xlane.xlu0 %832 }
 0x4a9   : > { %v837_v52 = vadd.f32 %v833_v61, %v829_v37 }
 0x4aa   : > { %v1103_v63 = vld [vmem:[#allocation3 + $0x10] sm:$0xff] }
 0x4ab   : > { %839 = vst.msk [vmem:[#allocation3 + $0x20] sm:$0xff] %vm346_vm3, %v837_v52  ;;  %1520 = vrcp.f32 %v1103_v63 }
 0x4ac   : > { %v836_v2 = vpop.xlane.xlu1 %835  ;;  %v1104_v60 = vld [vmem:[#allocation3 + $0x18] sm:$0xf] }
 0x4ad   : > { %v838_v4 = vadd.f32 %v836_v2, %v830_v56  ;;  %1522 = vrcp.f32 %v1104_v60 }
 0x4af   : > { %840 = vst.msk [vmem:[#allocation3 + $0x28] sm:$0xf] %vm348_vm7, %v838_v4 }
 0x4b0   : > { %v1003_v1 = vpop.xlane.xlu0 %1002 }
 0x4b1   : > { %v1007_v8 = vadd.f32 %v1003_v1, %v999_v6 }
 0x4b2   : > { %v1121_v10 = vld [vmem:[#allocation3 + $0x20] sm:$0xff] }
 0x4b3   : > { %1009 = vst.msk [vmem:[#allocation3 + $0x30] sm:$0xff] %vm346_vm3, %v1007_v8  ;;  %1524 = vrcp.f32 %v1121_v10 }
 0x4b4   : > { %v1006_v12 = vpop.xlane.xlu1 %1005 }
 0x4b5   : > { %v1521_v14 = vpop.eup %1520  ;;  %v1008_v9 = vadd.f32 %v1006_v12, %v1000_v5 }
 0x4b6   : > { %1109 = vperm.xlu1 %1464, %v1521_v14   ;;  %v1122_v31 = vld [vmem:[#allocation3 + $0x28] sm:$0xf] }
 0x4b7   : > { %v1523_v36 = vpop.eup %1522  ;;  %1010 = vst.msk [vmem:[#allocation3 + $0x38] sm:$0xf] %vm348_vm7, %v1008_v9  ;;  %1526 = vrcp.f32 %v1122_v31 }
 0x4b8   : > { %1114 = vperm.xlu0 %1465, %v1523_v36   ;;  %v503_v41 = vpop.permute.xlu0 %502  ;;  %v508_v45 = vpop.permute.xlu1 %507 }
 0x4b9   : > { %v510_v23 = vmul.f32 %v503_v41, %v498_v17  ;;  %v511_v26 = vmul.f32 %v508_v45, %v499_v25 }
 0x4ba   : > { %v1139_v27 = vld [vmem:[#allocation3 + $0x30] sm:$0xff] }
 0x4bb   : > { %v563_v46 = vadd.f32 %v1738_v47, %v510_v23  ;;  %v564_v48 = vadd.f32 %v1740_v49, %v511_v26  ;;  %1528 = vrcp.f32 %v1139_v27  ;;  %v673_v47 = vld [vmem:[#allocation4 + $0x18] sm:$0xf] }
 0x4bc   : > { %v677_v16 = vpop.permute.xlu0 %676  ;;  %v682_v11 = vpop.permute.xlu1 %681 }
 0x4bd   : > { %v1525_v50 = vpop.eup %1524  ;;  %565 = vst.msk [vmem:[#allocation4] sm:$0xff] %vm364_vm0, %v563_v46  ;;  %v684_v49 = vmul.f32 %v677_v16, %v672_v15  ;;  %v685_v18 = vmul.f32 %v682_v11, %v673_v47 }
 0x4be   : > { %567 = vst.msk [vmem:[#allocation4 + $0x8] sm:$0xf] %vm366_vm8, %v564_v48  ;;  %1127 = vperm.xlu1 %1464, %v1525_v50   ;;  %v1140_v20 = vld [vmem:[#allocation3 + $0x38] sm:$0xf] }
 0x4bf   : > { %1530 = vrcp.f32 %v1140_v20 }
 0x4c0   : > { %v847_v34 = vpop.permute.xlu1 %846  ;;  %v852_v39 = vpop.permute.xlu0 %851 }
 0x4c1   : > { %v1527_v22 = vpop.eup %1526  ;;  %v854_v40 = vmul.f32 %v847_v34, %v842_v33  ;;  %v855_v43 = vmul.f32 %v852_v39, %v843_v35 }
 0x4c2   : > { %1132 = vperm.xlu0 %1465, %v1527_v22  }
 0x4c4   : > { %v1017_v28 = vpop.permute.xlu1 %1016  ;;  %v1022_v38 = vpop.permute.xlu0 %1021  ;;  %v1083_v15 = vld [vmem:[#allocation4] sm:$0xff] }
 0x4c5   : > { %v1529_v24 = vpop.eup %1528  ;;  %v1024_v59 = vmul.f32 %v1017_v28, %v1012_v57  ;;  %v1025_v61 = vmul.f32 %v1022_v38, %v1013_v58 }
 0x4c6   : > { %1145 = vperm.xlu1 %1464, %v1529_v24  }
 0x4c8   : > { %v1097_v60 = vpop.permute.xlu0 %1096 }
 0x4c9   : > { %v1531_v13 = vpop.eup %1530 }
 0x4ca   : > { %1150 = vperm.xlu0 %1465, %v1531_v13   ;;  %v1084_v13 = vld [vmem:[#allocation4 + $0x8] sm:$0xf] }
 0x4cb   : > { %v1100_v11 = vmul.f32 %v1097_v60, %v1084_v13 }
 0x4e5   : > { %v1092_v3 = vpop.permute.xlu1 %1091 }
 0x4f1   : > { %v727_v0 = vpop.f32.mrb[4].mxu0 }
 0x4f2   : > { %v734_v19 = vadd.f32 %v727_v0, %v684_v49  ;;  %v1407_v21 = vpop.f32.mrb[5].mxu0  ;;  %v1099_v49 = vmul.f32 %v1092_v3, %v1083_v15 }
 0x4f3   : > { %v730_v29 = vpop.f32.mrb[6].mxu0 }
 0x4f4   : > { %736 = vst.msk [vmem:[#allocation4 + $0x10] sm:$0xff] %vm364_vm0, %v734_v19  ;;  %v735_v30 = vadd.f32 %v730_v29, %v685_v18  ;;  %v1408_v32 = vpop.f32.mrb[7].mxu0 }
 0x4f6   : > { %737 = vst.msk [vmem:[#allocation4 + $0x18] sm:$0xf] %vm366_vm8, %v735_v30 }
 0x4f9   : > { %v897_v42 = vpop.f32.mrb[8].mxu0 }
 0x4fa   : > { %v904_v44 = vadd.f32 %v897_v42, %v854_v40  ;;  %v1419_v51 = vpop.f32.mrb[9].mxu0 }
 0x4fb   : > { %v900_v53 = vpop.f32.mrb[10].mxu0  ;;  %v1101_v6 = vld [vmem:[#allocation4 + $0x10] sm:$0xff] }
 0x4fc   : > { %906 = vst.msk [vmem:[#allocation4 + $0x20] sm:$0xff] %vm364_vm0, %v904_v44  ;;  %v905_v54 = vadd.f32 %v900_v53, %v855_v43  ;;  %v1420_v55 = vpop.f32.mrb[11].mxu0 }
 0x4fd   : > { %v1102_v7 = vld [vmem:[#allocation4 + $0x18] sm:$0xf] }
 0x4fe   : > { %907 = vst.msk [vmem:[#allocation4 + $0x28] sm:$0xf] %vm366_vm8, %v905_v54 }
 0x501   : > { %v1067_v37 = vpop.f32.mrb[12].mxu0 }
 0x502   : > { %v1074_v62 = vadd.f32 %v1067_v37, %v1024_v59  ;;  %v1431_v52 = vpop.f32.mrb[13].mxu0 }
 0x503   : > { %v1070_v63 = vpop.f32.mrb[14].mxu0  ;;  %v1119_v14 = vld [vmem:[#allocation4 + $0x20] sm:$0xff] }
 0x504   : > { %1076 = vst.msk [vmem:[#allocation4 + $0x30] sm:$0xff] %vm364_vm0, %v1074_v62  ;;  %v1075_v56 = vadd.f32 %v1070_v63, %v1025_v61  ;;  %v1432_v2 = vpop.f32.mrb[15].mxu0 }
 0x505   : > { %v1120_v17 = vld [vmem:[#allocation4 + $0x28] sm:$0xf] }
 0x506   : > { %1077 = vst.msk [vmem:[#allocation4 + $0x38] sm:$0xf] %vm366_vm8, %v1075_v56 }
 0x50b   : > { %v1137_v45 = vld [vmem:[#allocation4 + $0x30] sm:$0xff] }
 0x50d   : > { %v1138_v26 = vld [vmem:[#allocation4 + $0x38] sm:$0xf] }
 0x535   : > { %v1110_v4 = vpop.permute.xlu1 %1109 }
 0x536   : > { %v1117_v8 = vmul.f32 %v1110_v4, %v1101_v6 }
 0x537   : > { %v1115_v1 = vpop.permute.xlu0 %1114 }
 0x538   : > { %v1118_v10 = vmul.f32 %v1115_v1, %v1102_v7 }
 0x53a   : > { %v1466_v5 = vpack.i.bf16 %v1118_v10, %v1117_v8 }
 0x53c   : > { %1467 = vrot.lane.b32.xlu1 %v1466_v5, %s1562_s8 }
 0x53d   : > { %v1128_v12 = vpop.permute.xlu1 %1127 }
 0x53e   : > { %v1135_v25 = vmul.f32 %v1128_v12, %v1119_v14 }
 0x541   : > { %v1133_v9 = vpop.permute.xlu0 %1132 }
 0x542   : > { %v1136_v31 = vmul.f32 %v1133_v9, %v1120_v17 }
 0x544   : > { %v1471_v36 = vpack.i.bf16 %v1136_v31, %v1135_v25 }
 0x545   : > { %v1146_v41 = vpop.permute.xlu1 %1145 }
 0x546   : > { %1472 = vrot.lane.b32.xlu0 %v1471_v36, %s1561_s7  ;;  %v1153_v27 = vmul.f32 %v1146_v41, %v1137_v45 }
 0x549   : > { %v1151_v23 = vpop.permute.xlu0 %1150 }
 0x54a   : > { %v1154_v46 = vmul.f32 %v1151_v23, %v1138_v26 }
 0x54c   : > { %v1476_v48 = vpack.i.bf16 %v1154_v46, %v1153_v27 }
 0x54e   : > { %1477 = vrot.lane.b32.xlu1 %v1476_v48, %s1560_s29 }
 0x5ae   : > { %v1468_v50 = vpop.permute.xlu1 %1467 }
 0x5af   : > { %v1470_v22 = vunpack.i.h.bf16 %v1468_v50  ;;  %v1469_v24 = vunpack.i.l.bf16 %v1468_v50 }
 0x5b1   : > { %v1180_v18 = vsel %vm364_vm0, %v1100_v11, %v1470_v22  ;;  %v1179_v19 = vsel %vm364_vm0, %v1099_v49, %v1469_v24 }
 0x5b8   : > { %v1473_v20 = vpop.permute.xlu0 %1472 }
 0x5b9   : > { %v1475_v16 = vunpack.i.h.bf16 %v1473_v20  ;;  %v1474_v47 = vunpack.i.l.bf16 %v1473_v20 }
 0x5bb   : > { %v1183_v30 = vsel %vm1181_vm9, %v1180_v18, %v1475_v16  ;;  %v1182_v32 = vsel %vm1181_vm9, %v1179_v19, %v1474_v47 }
 0x5c0   : > { %v1478_v0 = vpop.permute.xlu1 %1477 }
 0x5c1   : > { %v1480_v21 = vunpack.i.h.bf16 %v1478_v0  ;;  %v1479_v29 = vunpack.i.l.bf16 %v1478_v0 }
 0x5c3   : > { %v1186_v33 = vsel %vm1184_vm10, %v1183_v30, %v1480_v21  ;;  %v1185_v34 = vsel %vm1184_vm10, %v1182_v32, %v1479_v29 }
 0x5c4   : > { %v1368_v35 = vpack.c.bf16 %v1186_v33, %v1186_v33  ;;  %v1367_v39 = vpack.c.bf16 %v1185_v34, %v1185_v34 }
 0x5c6   : > { %1196 = vst [vmem:[%s339_s11 + $0x4] sm:$0x3] %v1368_v35  ;;  %1195 = vst [vmem:[%s339_s11] sm:$0xf] %v1367_v39 }
 0x5c7 PF: > { %s14_s17 = sadd.s32 1, %s1554_s17   ;;  %s1942_s15 = smov %s1550_s16 }
 0x5c8   : > { %p11_p5 = scmp.ge.s32.totalorder %s14_s17, 4   ;;  %s1943_s16 = smov %s1945_s18 }
 0x5ca   :  { %13 = sbr.rel (!%p11_p5) target bundleno = 2 (0x2), region = 92 }

// kernel: transformer_forward.40
= control target key start
LH: loop header
LB: loop body
LE: loop exit
PB: predicated region body
PF: predicated region fallthrough
CT: control target
= control target key end

     0   :  { %v634_v1 = vmov 0   ;;  %v60_v35 = vlaneseq  ;;  %s823_s1 = inlined_call_operand.vmem [shape: bf16[128,256], index: 1, kind: input, shape index: {}]   ;;  %s824_s0 = inlined_call_operand.vmem [shape: bf16[24,128], index: 0, kind: input, shape index: {}]   ;;  %s825_s3 = inlined_call_operand.vmem [shape: bf16[256,128], index: 3, kind: input, shape index: {}]   ;;  %s826_s2 = inlined_call_operand.vmem [shape: f32[1,256], index: 2, kind: input, shape index: {}]   ;;  %s827_s4 = inlined_call_operand.vmem [shape: f32[1,128], index: 4, kind: input, shape index: {}]   ;;  %s828_s5 = inlined_call_operand.vmem [shape: f32[24,128], index: 5, kind: input, shape index: {}]   ;;  %s829_s6 = inlined_call_operand.vmem [shape: f32[1,128], index: 6, kind: input, shape index: {}]   ;;  %s830_s7 = inlined_call_operand.vmem [shape: f32[1,128], index: 7, kind: input, shape index: {}]   ;;  %s831_s8 = inlined_call_operand.vmem [shape: f32[24,128], index: 8, kind: output, shape index: {0}]   ;;  %s832_s9 = inlined_call_operand.vmem [shape: bf16[24,128], index: 9, kind: output, shape index: {1}]  }
   0x1   :  { %v586_v0 = vld [vmem:[%s823_s1 + $0x4] ss:$8 sps:$4 sm:$0xff]   ;;  %192 = vmatprep.mubr.bf16.mxu0 %v634_v1  ;;  %v588_v2 = vld [vmem:[%s823_s1] ss:$8 sps:$4 sm:$0xff]   ;;  %v589_v3 = vld [vmem:[%s823_s1 + $0x14] ss:$8 sps:$4 sm:$0xff]  }
   0x2   :  { %160 = vmatprep.subr.bf16.mxu0 %v586_v0  ;;  %v591_v4 = vld [vmem:[%s823_s1 + $0x10] ss:$8 sps:$4 sm:$0xff]   ;;  %v592_v5 = vld [vmem:[%s823_s1 + $0x24] ss:$8 sps:$4 sm:$0xff]   ;;  %v594_v6 = vld [vmem:[%s823_s1 + $0x20] ss:$8 sps:$4 sm:$0xff]  }
   0x3   :  { %161 = vmatpush1.bf16.msra.mxu0 %v588_v2  ;;  %v595_v7 = vld [vmem:[%s823_s1 + $0x34] ss:$8 sps:$4 sm:$0xff]   ;;  %v597_v8 = vld [vmem:[%s823_s1 + $0x30] ss:$8 sps:$4 sm:$0xff]   ;;  %v598_v9 = vld [vmem:[%s823_s1 + $0x44] ss:$8 sps:$4 sm:$0xff]  }
   0x4   :  { %162 = vmatprep.subr.bf16.mxu0 %v589_v3  ;;  %v600_v10 = vld [vmem:[%s823_s1 + $0x40] ss:$8 sps:$4 sm:$0xff]   ;;  %v601_v12 = vld [vmem:[%s823_s1 + $0x54] ss:$8 sps:$4 sm:$0xff]   ;;  %v603_v17 = vld [vmem:[%s823_s1 + $0x50] ss:$8 sps:$4 sm:$0xff]  }
   0x5   :  { %v612_v11 = vld [vmem:[%s825_s3 + $0x40] sm:$0xff]   ;;  %v614_v14 = vld [vmem:[%s825_s3 + $0x48] sm:$0xff]   ;;  %v616_v16 = vld [vmem:[%s825_s3 + $0x50] sm:$0xff]   ;;  %v61_v36 = vshrl.u32 %v60_v35, 7 }
   0x6   :  { %v613_v13 = vld [vmem:[%s825_s3] sm:$0xff]   ;;  %557 = vmatprep.subr.bf16.mxu1 %v612_v11  ;;  %v615_v15 = vld [vmem:[%s825_s3 + $0x8] sm:$0xff]   ;;  %v617_v19 = vld [vmem:[%s825_s3 + $0x10] sm:$0xff]  }
   0x7   :  { %163 = vmatpush1.bf16.msra.mxu0 %v591_v4  ;;  %558 = vmatpush3.bf16.msra.mxu1 %v613_v13  ;;  %v604_v18 = vld [vmem:[%s823_s1 + $0x64] ss:$8 sps:$4 sm:$0xff]   ;;  %v606_v20 = vld [vmem:[%s823_s1 + $0x60] ss:$8 sps:$4 sm:$0xff]   ;;  %v618_v21 = vld [vmem:[%s825_s3 + $0x58] sm:$0xff]   ;;  %v62_v37 = vsub.s32 0, %v61_v36 }
   0x8   :  { %164 = vmatprep.subr.bf16.mxu0 %v592_v5  ;;  %559 = vmatprep.subr.bf16.mxu1 %v614_v14  ;;  %v607_v22 = vld [vmem:[%s823_s1 + $0x74] ss:$8 sps:$4 sm:$0xff]   ;;  %v620_v24 = vld [vmem:[%s825_s3 + $0x60] sm:$0xff]   ;;  %v609_v25 = vld [vmem:[%s823_s1 + $0x70] ss:$8 sps:$4 sm:$0xff]   ;;  %v66_v39 = vsub.s32 1, %v61_v36 }
   0x9   :  { %v619_v23 = vld [vmem:[%s825_s3 + $0x18] sm:$0xff]   ;;  %v621_v26 = vld [vmem:[%s825_s3 + $0x20] sm:$0xff]   ;;  %v622_v27 = vld [vmem:[%s825_s3 + $0x68] sm:$0xff]  }
   0xa   :  { %v610_v28 = vld [vmem:[%s824_s0] sm:$0xff]   ;;  %v611_v29 = vld [vmem:[%s824_s0 + $0x8] ss:$0 sps:$4 sm:$0xff]   ;;  %v624_v31 = vld [vmem:[%s825_s3 + $0x70] sm:$0xff]  }
   0xb   :  { %165 = vmatpush1.bf16.msra.mxu0 %v594_v6  ;;  %560 = vmatpush3.bf16.msra.mxu1 %v615_v15  ;;  %v623_v30 = vld [vmem:[%s825_s3 + $0x28] sm:$0xff]   ;;  %v625_v32 = vld [vmem:[%s825_s3 + $0x30] sm:$0xff]   ;;  %v626_v33 = vld [vmem:[%s825_s3 + $0x78] sm:$0xff]  }
   0xc   :  { %166 = vmatprep.subr.bf16.mxu0 %v595_v7  ;;  %561 = vmatprep.subr.bf16.mxu1 %v616_v16  ;;  %v627_v34 = vld [vmem:[%s825_s3 + $0x38] sm:$0xff]   ;;  %v58_v38 = vld [vmem:[%s826_s2] sm:$0x3]  ;;  %v423_v13 = vld [vmem:[%s828_s5 + $0x8] sm:$0xff] }
   0xd   :  { %v63_v40 = vrot.slane %v58_v38, %v62_v37  ;;  %v67_v41 = vrot.slane %v58_v38, %v66_v39  ;;  %v543_v4 = vld [vmem:[%s827_s4] ss:$0 sm:$0xff] }
   0xf   :  { %167 = vmatpush1.bf16.msra.mxu0 %v597_v8  ;;  %562 = vmatpush3.bf16.msra.mxu1 %v617_v19  ;;  %v422_v8 = vld [vmem:[%s828_s5] sm:$0xff] }
  0x10   :  { %168 = vmatprep.subr.bf16.mxu0 %v598_v9  ;;  %563 = vmatprep.subr.bf16.mxu1 %v618_v21 }
  0x13   :  { %169 = vmatpush1.bf16.msra.mxu0 %v600_v10  ;;  %564 = vmatpush3.bf16.msra.mxu1 %v619_v23 }
  0x14   :  { %170 = vmatprep.subr.bf16.mxu0 %v601_v12  ;;  %565 = vmatprep.subr.bf16.mxu1 %v620_v24 }
  0x17   :  { %171 = vmatpush1.bf16.msra.mxu0 %v603_v17  ;;  %566 = vmatpush3.bf16.msra.mxu1 %v621_v26 }
  0x18   :  { %172 = vmatprep.subr.bf16.mxu0 %v604_v18  ;;  %567 = vmatprep.subr.bf16.mxu1 %v622_v27 }
  0x1b   :  { %173 = vmatpush1.bf16.msra.mxu0 %v606_v20  ;;  %568 = vmatpush3.bf16.msra.mxu1 %v623_v30  ;;  %v424_v20 = vld [vmem:[%s828_s5 + $0x10] sm:$0xff] }
  0x1c   :  { %174 = vmatprep.subr.bf16.mxu0 %v607_v22  ;;  %569 = vmatprep.subr.bf16.mxu1 %v624_v31 }
  0x1f   :  { %175 = vmatpush1.bf16.msra.mxu0 %v609_v25  ;;  %570 = vmatpush3.bf16.msra.mxu1 %v625_v32 }
  0x20   :  { %571 = vmatprep.subr.bf16.mxu1 %v626_v33 }
  0x22   :  { %193 = vmatmul.mubr.bf16.vlgmr.msra.gmra.mrb[0].mxu0 %v610_v28 }
  0x23   :  { %202 = vmatprep.mubr.bf16.mxu0 %v634_v1  ;;  %572 = vmatpush3.bf16.msra.mxu1 %v627_v34 }
  0x2a   :  { %203 = vmatmul.mubr.bf16.gmra.mrb[4].mxu0 %v611_v29 }
  0xf5   :  { %v194_v42 = vpop.f32.mrb[0].mxu0 }
  0xf6   :  { %v195_v43 = vadd.f32 %v194_v42, %v63_v40  ;;  %v196_v44 = vpop.f32.mrb[1].mxu0 }
  0xf7   :  { %v197_v45 = vadd.f32 %v196_v44, %v67_v41  ;;  %v198_v46 = vpop.f32.mrb[2].mxu0 }
  0xf8   :  { %v199_v47 = vadd.f32 %v198_v46, %v63_v40  ;;  %v200_v48 = vpop.f32.mrb[3].mxu0  ;;  %v211_v50 = vmax.f32 %v195_v43, 0.0 }
  0xf9   :  { %v201_v49 = vadd.f32 %v200_v48, %v67_v41  ;;  %v212_v52 = vmax.f32 %v197_v45, 0.0  ;;  %v544_v45 = vld [vmem:[%s829_s6] ss:$0 sm:$0xff] }
  0xfa   :  { %v213_v51 = vmax.f32 %v199_v47, 0.0  ;;  %v545_v47 = vld [vmem:[%s830_s7] ss:$0 sm:$0xff] }
  0xfb   :  { %v214_v53 = vmax.f32 %v201_v49, 0.0 }
  0xfc   :  { %v220_v54 = vpack.c.bf16 %v213_v51, %v211_v50 }
  0xfd   :  { %v204_v55 = vpop.f32.mrb[4].mxu0  ;;  %v221_v56 = vpack.c.bf16 %v214_v53, %v212_v52 }
  0xfe   :  { %v205_v57 = vadd.f32 %v204_v55, %v63_v40  ;;  %v206_v58 = vpop.f32.mrb[5].mxu0 }
  0xff   :  { %v207_v59 = vadd.f32 %v206_v58, %v67_v41  ;;  %v208_v60 = vpop.f32.mrb[6].mxu0  ;;  %384 = vmatprep.mubr.bf16.mxu1 %v221_v56 }
 0x100   :  { %v209_v61 = vpop.f32.mrb[7].mxu0  ;;  %385 = vmatmul.mubr.bf16.vlgmr.msra.gmra.mrb[0].mxu1 %v220_v54  ;;  %v215_v63 = vmax.f32 %v205_v57, 0.0 }
 0x101   :  { %v216_v62 = vmax.f32 %v207_v59, 0.0 }
 0x102   :  { %v222_v1 = vpack.c.bf16 %v215_v63, %v215_v63 }
 0x103   :  { %v223_v0 = vpack.c.bf16 %v216_v62, %v216_v62 }
 0x105   :  { %392 = vmatprep.mubr.bf16.mxu1 %v223_v0 }
 0x108   :  { %393 = vmatmul.mubr.bf16.gmra.mrb[4].mxu1 %v222_v1 }
 0x1d3   :  { %v573_v2 = vpop.f32.mrb[0].mxu1 }
 0x1d4   :  { %v574_v3 = vpop.f32.mrb[1].mxu1 }
 0x1d5   :  { %v575_v5 = vadd.f32 %v574_v3, %v573_v2  ;;  %v576_v6 = vpop.f32.mrb[2].mxu1 }
 0x1d6   :  { %v577_v7 = vpop.f32.mrb[3].mxu1 }
 0x1d7   :  { %v419_v9 = vadd.f32 %v575_v5, %v543_v4  ;;  %v578_v10 = vadd.f32 %v577_v7, %v576_v6 }
 0x1d9   :  { %v420_v11 = vadd.f32 %v578_v10, %v543_v4  ;;  %v425_v12 = vadd.f32 %v422_v8, %v419_v9 }
 0x1db   :  { %v579_v14 = vpop.f32.mrb[4].mxu1  ;;  %428 = vadd.xlane.f32.xlu0 %v425_v12  ;;  %v426_v18 = vadd.f32 %v423_v13, %v420_v11 }
 0x1dc   :  { %v580_v15 = vpop.f32.mrb[5].mxu1 }
 0x1dd   :  { %v581_v16 = vadd.f32 %v580_v15, %v579_v14  ;;  %v582_v17 = vpop.f32.mrb[6].mxu1 }
 0x1de   :  { %v583_v19 = vpop.f32.mrb[7].mxu1 }
 0x1df   :  { %v421_v21 = vadd.f32 %v581_v16, %v543_v4  ;;  %430 = vadd.xlane.f32.xlu0 %v426_v18 }
 0x1e1   :  { %v427_v22 = vadd.f32 %v424_v20, %v421_v21 }
 0x1e3   :  { %432 = vadd.xlane.f32.xlu1 %v427_v22 }
 0x268   :  { %v429_v23 = vpop.xlane.xlu0 %428 }
 0x269   :  { %v435_v24 = vmul.f32 0.0078125, %v429_v23 }
 0x26b   :  { %v438_v25 = vsub.f32 %v425_v12, %v435_v24 }
 0x26c   :  { %v431_v26 = vpop.xlane.xlu0 %430 }
 0x26d   :  { %v436_v27 = vmul.f32 0.0078125, %v431_v26  ;;  %v441_v28 = vmul.f32 %v438_v25, %v438_v25 }
 0x26f   :  { %v439_v29 = vsub.f32 %v426_v18, %v436_v27  ;;  %444 = vadd.xlane.f32.xlu1 %v441_v28 }
 0x270   :  { %v433_v30 = vpop.xlane.xlu1 %432 }
 0x271   :  { %v437_v31 = vmul.f32 0.0078125, %v433_v30  ;;  %v442_v32 = vmul.f32 %v439_v29, %v439_v29 }
 0x273   :  { %v440_v33 = vsub.f32 %v427_v22, %v437_v31  ;;  %446 = vadd.xlane.f32.xlu0 %v442_v32 }
 0x275   :  { %v443_v34 = vmul.f32 %v440_v33, %v440_v33 }
 0x277   :  { %448 = vadd.xlane.f32.xlu1 %v443_v34 }
 0x2fc   :  { %v445_v35 = vpop.xlane.xlu1 %444 }
 0x2fd   :  { %v450_v36 = vmul.f32 0.0078125, %v445_v35 }
 0x2ff   :  { %v453_v37 = vadd.f32 1e-05, %v450_v36 }
 0x300   :  { %v447_v38 = vpop.xlane.xlu0 %446 }
 0x301   :  { %628 = vrsqrt.f32 %v453_v37  ;;  %v451_v39 = vmul.f32 0.0078125, %v447_v38 }
 0x303   :  { %v454_v40 = vadd.f32 1e-05, %v451_v39 }
 0x304   :  { %v449_v41 = vpop.xlane.xlu1 %448 }
 0x305   :  { %630 = vrsqrt.f32 %v454_v40  ;;  %v452_v42 = vmul.f32 0.0078125, %v449_v41 }
 0x307   :  { %v455_v43 = vadd.f32 1e-05, %v452_v42 }
 0x309   :  { %632 = vrsqrt.f32 %v455_v43 }
 0x30b   :  { %v629_v44 = vpop.eup %628 }
 0x30c   :  { %v459_v46 = vmul.f32 %v629_v44, %v438_v25 }
 0x30e   :  { %v469_v48 = vmul.f32 %v544_v45, %v459_v46 }
 0x30f   :  { %v631_v49 = vpop.eup %630 }
 0x310   :  { %v479_v50 = vadd.f32 %v545_v47, %v469_v48  ;;  %v460_v51 = vmul.f32 %v631_v49, %v439_v29 }
 0x312   :  { %482 = vst [vmem:[%s831_s8] sm:$0xff] %v479_v50  ;;  %v470_v52 = vmul.f32 %v544_v45, %v460_v51 }
 0x313   :  { %v633_v53 = vpop.eup %632 }
 0x314   :  { %v480_v54 = vadd.f32 %v545_v47, %v470_v52  ;;  %v461_v55 = vmul.f32 %v633_v53, %v440_v33 }
 0x316   :  { %483 = vst [vmem:[%s831_s8 + $0x8] sm:$0xff] %v480_v54  ;;  %v555_v56 = vpack.c.bf16 %v480_v54, %v479_v50  ;;  %v471_v57 = vmul.f32 %v544_v45, %v461_v55 }
 0x318   :  { %556 = vst [vmem:[%s832_s9] sm:$0xff] %v555_v56   ;;  %v481_v58 = vadd.f32 %v545_v47, %v471_v57 }
 0x31a   :  { %484 = vst [vmem:[%s831_s8 + $0x10] sm:$0xff] %v481_v58  ;;  %v551_v59 = vpack.c.bf16 %v481_v58, %v481_v58 }
 0x31c   :  { %500 = vst [vmem:[%s832_s9 + $0x8] sm:$0xf] %v551_v59 }

// kernel: transformer_forward.48
= control target key start
LH: loop header
LB: loop body
LE: loop exit
PB: predicated region body
PF: predicated region fallthrough
CT: control target
= control target key end

     0   :  { %v674_v2 = vmov 0   ;;  %s869_s0 = inlined_call_operand.vmem [shape: bf16[24,128], index: 0, kind: input, shape index: {}]   ;;  %s870_s1 = inlined_call_operand.vmem [shape: bf16[128,256], index: 1, kind: input, shape index: {}]   ;;  %s871_s2 = inlined_call_operand.vmem [shape: f32[1,256], index: 2, kind: input, shape index: {}]   ;;  %s872_s3 = inlined_call_operand.vmem [shape: bf16[256,128], index: 3, kind: input, shape index: {}]   ;;  %s873_s4 = inlined_call_operand.vmem [shape: f32[1,128], index: 4, kind: input, shape index: {}]   ;;  %s874_s5 = inlined_call_operand.vmem [shape: f32[24,128], index: 5, kind: input, shape index: {}]   ;;  %s875_s6 = inlined_call_operand.vmem [shape: f32[1,128], index: 6, kind: input, shape index: {}]   ;;  %s876_s7 = inlined_call_operand.vmem [shape: f32[1,128], index: 7, kind: input, shape index: {}]   ;;  %s877_s8 = inlined_call_operand.hbm [shape: f32[24,128], index: 8, kind: output, shape index: {0}]   ;;  %s878_s9 = inlined_call_operand.vmem [shape: bf16[24,128], index: 9, kind: output, shape index: {1}]  }
   0x1   :  { %v602_v0 = vld [vmem:[%s870_s1 + $0x4] ss:$8 sps:$4 sm:$0xff]   ;;  %v604_v1 = vld [vmem:[%s870_s1] ss:$8 sps:$4 sm:$0xff]   ;;  %193 = vmatprep.mubr.bf16.mxu0 %v674_v2  ;;  %v605_v3 = vld [vmem:[%s870_s1 + $0x14] ss:$8 sps:$4 sm:$0xff]  }
   0x2   :  { %161 = vmatprep.subr.bf16.mxu0 %v602_v0  ;;  %v607_v4 = vld [vmem:[%s870_s1 + $0x10] ss:$8 sps:$4 sm:$0xff]   ;;  %v608_v5 = vld [vmem:[%s870_s1 + $0x24] ss:$8 sps:$4 sm:$0xff]   ;;  %v610_v6 = vld [vmem:[%s870_s1 + $0x20] ss:$8 sps:$4 sm:$0xff]  }
   0x3   :  { %162 = vmatpush1.bf16.msra.mxu0 %v604_v1  ;;  %v611_v7 = vld [vmem:[%s870_s1 + $0x34] ss:$8 sps:$4 sm:$0xff]   ;;  %v613_v8 = vld [vmem:[%s870_s1 + $0x30] ss:$8 sps:$4 sm:$0xff]   ;;  %v614_v9 = vld [vmem:[%s870_s1 + $0x44] ss:$8 sps:$4 sm:$0xff]  }
   0x4   :  { %163 = vmatprep.subr.bf16.mxu0 %v605_v3  ;;  %v616_v10 = vld [vmem:[%s870_s1 + $0x40] ss:$8 sps:$4 sm:$0xff]   ;;  %v617_v12 = vld [vmem:[%s870_s1 + $0x54] ss:$8 sps:$4 sm:$0xff]   ;;  %v619_v17 = vld [vmem:[%s870_s1 + $0x50] ss:$8 sps:$4 sm:$0xff]  }
   0x5   :  { %v628_v11 = vld [vmem:[%s872_s3 + $0x40] sm:$0xff]   ;;  %v630_v14 = vld [vmem:[%s872_s3 + $0x48] sm:$0xff]   ;;  %v632_v16 = vld [vmem:[%s872_s3 + $0x50] sm:$0xff]  }
   0x6   :  { %v629_v13 = vld [vmem:[%s872_s3] sm:$0xff]   ;;  %570 = vmatprep.subr.bf16.mxu1 %v628_v11  ;;  %v631_v15 = vld [vmem:[%s872_s3 + $0x8] sm:$0xff]   ;;  %v633_v19 = vld [vmem:[%s872_s3 + $0x10] sm:$0xff]  }
   0x7   :  { %164 = vmatpush1.bf16.msra.mxu0 %v607_v4  ;;  %571 = vmatpush3.bf16.msra.mxu1 %v629_v13  ;;  %v620_v18 = vld [vmem:[%s870_s1 + $0x64] ss:$8 sps:$4 sm:$0xff]   ;;  %v622_v20 = vld [vmem:[%s870_s1 + $0x60] ss:$8 sps:$4 sm:$0xff]   ;;  %v634_v21 = vld [vmem:[%s872_s3 + $0x58] sm:$0xff]  }
   0x8   :  { %165 = vmatprep.subr.bf16.mxu0 %v608_v5  ;;  %572 = vmatprep.subr.bf16.mxu1 %v630_v14  ;;  %v623_v22 = vld [vmem:[%s870_s1 + $0x74] ss:$8 sps:$4 sm:$0xff]   ;;  %v636_v24 = vld [vmem:[%s872_s3 + $0x60] sm:$0xff]   ;;  %v625_v25 = vld [vmem:[%s870_s1 + $0x70] ss:$8 sps:$4 sm:$0xff]  }
   0x9   :  { %v635_v23 = vld [vmem:[%s872_s3 + $0x18] sm:$0xff]  }
   0xb   :  { %166 = vmatpush1.bf16.msra.mxu0 %v610_v6  ;;  %573 = vmatpush3.bf16.msra.mxu1 %v631_v15 }
   0xc   :  { %167 = vmatprep.subr.bf16.mxu0 %v611_v7  ;;  %574 = vmatprep.subr.bf16.mxu1 %v632_v16 }
   0xf   :  { %168 = vmatpush1.bf16.msra.mxu0 %v613_v8  ;;  %575 = vmatpush3.bf16.msra.mxu1 %v633_v19 }
  0x10   :  { %169 = vmatprep.subr.bf16.mxu0 %v614_v9  ;;  %576 = vmatprep.subr.bf16.mxu1 %v634_v21 }
  0x13   :  { %170 = vmatpush1.bf16.msra.mxu0 %v616_v10 }
  0x14   :  { %171 = vmatprep.subr.bf16.mxu0 %v617_v12 }
  0x17   :  { %172 = vmatpush1.bf16.msra.mxu0 %v619_v17 }
  0x18   :  { %173 = vmatprep.subr.bf16.mxu0 %v620_v18 }
  0x1b   :  { %174 = vmatpush1.bf16.msra.mxu0 %v622_v20 }
  0x1c   :  { %15 = vsyncpa [#allocation4], 0  ;;  %175 = vmatprep.subr.bf16.mxu0 %v623_v22  ;;  %577 = vmatpush3.bf16.msra.mxu1 %v635_v23  ;;  %v637_v26 = vld [vmem:[%s872_s3 + $0x20] sm:$0xff]   ;;  %v638_v27 = vld [vmem:[%s872_s3 + $0x68] sm:$0xff]   ;;  %v61_v35 = vlaneseq  ;;  %s675_s22 = smov [#allocation3]  }
  0x1d   :  { %578 = vmatprep.subr.bf16.mxu1 %v636_v24  ;;  %v626_v28 = vld [vmem:[%s869_s0] sm:$0xff]   ;;  %v627_v29 = vld [vmem:[%s869_s0 + $0x8] ss:$0 sps:$4 sm:$0xff]   ;;  %v640_v31 = vld [vmem:[%s872_s3 + $0x70] sm:$0xff]   ;;  %s507_s1 = sshll.u32 %s675_s22, 4  ;;  %s508_s1 = int_to_ptr.vmem [resolvable:$true] %s507_s1 }
  0x1e   :  { %v639_v30 = vld [vmem:[%s872_s3 + $0x28] sm:$0xff]   ;;  %v641_v32 = vld [vmem:[%s872_s3 + $0x30] sm:$0xff]   ;;  %v642_v33 = vld [vmem:[%s872_s3 + $0x78] sm:$0xff]   ;;  %v62_v36 = vshrl.u32 %v61_v35, 7  ;;  %p655_p1 = scmp.lt.s32.totalorder %s508_s1, %s508_s1 }
  0x1f   :  { %176 = vmatpush1.bf16.msra.mxu0 %v625_v25  ;;  %v643_v34 = vld [vmem:[%s872_s3 + $0x38] sm:$0xff]   ;;  %v59_v38 = vld [vmem:[%s871_s2] sm:$0x3]  ;;  %v424_v13 = vld [vmem:[%s874_s5 + $0x8] sm:$0xff] }
  0x20   :  { %579 = vmatpush3.bf16.msra.mxu1 %v637_v26  ;;  %v63_v37 = vsub.s32 0, %v62_v36  ;;  %v67_v39 = vsub.s32 1, %v62_v36  ;;  %v556_v4 = vld [vmem:[%s873_s4] ss:$0 sm:$0xff]  ;;  %v425_v20 = vld [vmem:[%s874_s5 + $0x10] sm:$0xff] }
  0x21   :  { %580 = vmatprep.subr.bf16.mxu1 %v638_v27  ;;  %v423_v8 = vld [vmem:[%s874_s5] sm:$0xff] }
  0x22   :  { %194 = vmatmul.mubr.bf16.vlgmr.msra.gmra.mrb[0].mxu0 %v626_v28  ;;  %v64_v40 = vrot.slane %v59_v38, %v63_v37  ;;  %v68_v41 = vrot.slane %v59_v38, %v67_v39 }
  0x23   :  { %203 = vmatprep.mubr.bf16.mxu0 %v674_v2 }
  0x24   :  { %581 = vmatpush3.bf16.msra.mxu1 %v639_v30 }
  0x25   :  { %582 = vmatprep.subr.bf16.mxu1 %v640_v31 }
  0x28   :  { %583 = vmatpush3.bf16.msra.mxu1 %v641_v32 }
  0x29   :  { %584 = vmatprep.subr.bf16.mxu1 %v642_v33 }
  0x2a   :  { %204 = vmatmul.mubr.bf16.gmra.mrb[4].mxu0 %v627_v29 }
  0x2c   :  { %585 = vmatpush3.bf16.msra.mxu1 %v643_v34 }
  0xf5   :  { %v195_v42 = vpop.f32.mrb[0].mxu0 }
  0xf6   :  { %v196_v43 = vadd.f32 %v195_v42, %v64_v40  ;;  %v197_v44 = vpop.f32.mrb[1].mxu0 }
  0xf7   :  { %v198_v45 = vadd.f32 %v197_v44, %v68_v41  ;;  %v199_v46 = vpop.f32.mrb[2].mxu0 }
  0xf8   :  { %v200_v47 = vadd.f32 %v199_v46, %v64_v40  ;;  %v201_v48 = vpop.f32.mrb[3].mxu0  ;;  %v212_v50 = vmax.f32 %v196_v43, 0.0 }
  0xf9   :  { %v202_v49 = vadd.f32 %v201_v48, %v68_v41  ;;  %v213_v52 = vmax.f32 %v198_v45, 0.0  ;;  %v557_v45 = vld [vmem:[%s875_s6] ss:$0 sm:$0xff] }
  0xfa   :  { %v214_v51 = vmax.f32 %v200_v47, 0.0  ;;  %v558_v47 = vld [vmem:[%s876_s7] ss:$0 sm:$0xff]  ;;  %s650_s7 = scalar_lea.vmem %s508_s1, 384 }
  0xfb   :  { %v215_v53 = vmax.f32 %v202_v49, 0.0  ;;  %p651_p0 = scmp.ne.s32.totalorder %s508_s1, %s650_s7  ;;  %p656_p2 = scmp.lt.s32.totalorder %s650_s7, %s650_s7 }
  0xfc   :  { %v221_v54 = vpack.c.bf16 %v214_v51, %v212_v50 }
  0xfd   :  { %v205_v55 = vpop.f32.mrb[4].mxu0  ;;  %v222_v56 = vpack.c.bf16 %v215_v53, %v213_v52  ;;  %p657_p3 = por %p656_p2, %p655_p1 }
  0xfe   :  { %v206_v57 = vadd.f32 %v205_v55, %v64_v40  ;;  %v207_v58 = vpop.f32.mrb[5].mxu0 }
  0xff   :  { %v208_v59 = vadd.f32 %v207_v58, %v68_v41  ;;  %v209_v60 = vpop.f32.mrb[6].mxu0  ;;  %385 = vmatprep.mubr.bf16.mxu1 %v222_v56  ;;  %p658_p4 = pnand %p657_p3, %p651_p0 }
 0x100   :  { %v210_v61 = vpop.f32.mrb[7].mxu0  ;;  %386 = vmatmul.mubr.bf16.vlgmr.msra.gmra.mrb[0].mxu1 %v221_v54  ;;  %v216_v63 = vmax.f32 %v206_v57, 0.0 }
 0x101   :  { %v217_v62 = vmax.f32 %v208_v59, 0.0 }
 0x102   :  { %v223_v1 = vpack.c.bf16 %v216_v63, %v216_v63 }
 0x103   :  { %v224_v0 = vpack.c.bf16 %v217_v62, %v217_v62 }
 0x105   :  { %393 = vmatprep.mubr.bf16.mxu1 %v224_v0 }
 0x108   :  { %394 = vmatmul.mubr.bf16.gmra.mrb[4].mxu1 %v223_v1 }
 0x1d3   :  { %v586_v2 = vpop.f32.mrb[0].mxu1 }
 0x1d4   :  { %v587_v3 = vpop.f32.mrb[1].mxu1 }
 0x1d5   :  { %v588_v5 = vadd.f32 %v587_v3, %v586_v2  ;;  %v589_v6 = vpop.f32.mrb[2].mxu1 }
 0x1d6   :  { %v590_v7 = vpop.f32.mrb[3].mxu1 }
 0x1d7   :  { %v420_v9 = vadd.f32 %v588_v5, %v556_v4  ;;  %v591_v10 = vadd.f32 %v590_v7, %v589_v6 }
 0x1d9   :  { %v421_v11 = vadd.f32 %v591_v10, %v556_v4  ;;  %v426_v12 = vadd.f32 %v423_v8, %v420_v9 }
 0x1db   :  { %v592_v14 = vpop.f32.mrb[4].mxu1  ;;  %429 = vadd.xlane.f32.xlu0 %v426_v12  ;;  %v427_v18 = vadd.f32 %v424_v13, %v421_v11 }
 0x1dc   :  { %v593_v15 = vpop.f32.mrb[5].mxu1 }
 0x1dd   :  { %v594_v16 = vadd.f32 %v593_v15, %v592_v14  ;;  %v595_v17 = vpop.f32.mrb[6].mxu1 }
 0x1de   :  { %v596_v19 = vpop.f32.mrb[7].mxu1 }
 0x1df   :  { %v422_v21 = vadd.f32 %v594_v16, %v556_v4  ;;  %431 = vadd.xlane.f32.xlu0 %v427_v18 }
 0x1e1   :  { %v428_v22 = vadd.f32 %v425_v20, %v422_v21 }
 0x1e3   :  { %433 = vadd.xlane.f32.xlu1 %v428_v22 }
 0x268   :  { %v430_v23 = vpop.xlane.xlu0 %429 }
 0x269   :  { %v436_v24 = vmul.f32 0.0078125, %v430_v23 }
 0x26b   :  { %v439_v25 = vsub.f32 %v426_v12, %v436_v24 }
 0x26c   :  { %v432_v26 = vpop.xlane.xlu0 %431 }
 0x26d   :  { %v437_v27 = vmul.f32 0.0078125, %v432_v26  ;;  %v442_v28 = vmul.f32 %v439_v25, %v439_v25 }
 0x26f   :  { %v440_v29 = vsub.f32 %v427_v18, %v437_v27  ;;  %445 = vadd.xlane.f32.xlu1 %v442_v28 }
 0x270   :  { %v434_v30 = vpop.xlane.xlu1 %433 }
 0x271   :  { %v438_v31 = vmul.f32 0.0078125, %v434_v30  ;;  %v443_v32 = vmul.f32 %v440_v29, %v440_v29 }
 0x273   :  { %v441_v33 = vsub.f32 %v428_v22, %v438_v31  ;;  %447 = vadd.xlane.f32.xlu0 %v443_v32 }
 0x275   :  { %v444_v34 = vmul.f32 %v441_v33, %v441_v33 }
 0x277   :  { %449 = vadd.xlane.f32.xlu1 %v444_v34 }
 0x2fc   :  { %v446_v35 = vpop.xlane.xlu1 %445 }
 0x2fd   :  { %v451_v36 = vmul.f32 0.0078125, %v446_v35 }
 0x2ff   :  { %v454_v37 = vadd.f32 1e-05, %v451_v36 }
 0x300   :  { %v448_v38 = vpop.xlane.xlu0 %447 }
 0x301   :  { %644 = vrsqrt.f32 %v454_v37  ;;  %v452_v39 = vmul.f32 0.0078125, %v448_v38 }
 0x303   :  { %v455_v40 = vadd.f32 1e-05, %v452_v39 }
 0x304   :  { %v450_v41 = vpop.xlane.xlu1 %449 }
 0x305   :  { %646 = vrsqrt.f32 %v455_v40  ;;  %v453_v42 = vmul.f32 0.0078125, %v450_v41 }
 0x307   :  { %v456_v43 = vadd.f32 1e-05, %v453_v42 }
 0x309   :  { %648 = vrsqrt.f32 %v456_v43 }
 0x30b   :  { %v645_v44 = vpop.eup %644 }
 0x30c   :  { %v460_v46 = vmul.f32 %v645_v44, %v439_v25 }
 0x30e   :  { %v470_v48 = vmul.f32 %v557_v45, %v460_v46 }
 0x30f   :  { %v647_v49 = vpop.eup %646 }
 0x310   :  { %v461_v50 = vmul.f32 %v647_v49, %v440_v29  ;;  %v480_v51 = vadd.f32 %v558_v47, %v470_v48 }
 0x312   :  { %v471_v52 = vmul.f32 %v557_v45, %v461_v50  ;;  %483 = vst [vmem:[#allocation3] sm:$0xff] %v480_v51 }
 0x313   :  { %v649_v53 = vpop.eup %648 }
 0x314   :  { %v462_v54 = vmul.f32 %v649_v53, %v441_v33  ;;  %v481_v55 = vadd.f32 %v558_v47, %v471_v52 }
 0x316   :  { %v472_v56 = vmul.f32 %v557_v45, %v462_v54  ;;  %484 = vst [vmem:[#allocation3 + $0x8] sm:$0xff] %v481_v55  ;;  %v568_v57 = vpack.c.bf16 %v481_v55, %v480_v51 }
 0x318   :  { %v482_v58 = vadd.f32 %v558_v47, %v472_v56  ;;  %569 = vst [vmem:[%s878_s9] sm:$0xff] %v568_v57  }
 0x31a   :  { %485 = vst [vmem:[#allocation3 + $0x10] sm:$0xff] %v482_v58  ;;  %v564_v59 = vpack.c.bf16 %v482_v58, %v482_v58 }
 0x31b   :  { %661 = shalt.err (!%p658_p4)
}
 0x31c   :  { %s662_s26 = scalar_lea.hbm %s877_s8, 384 }
 0x31d   :  { %p663_p5 = scmp.ne.s32.totalorder %s877_s8, %s662_s26  ;;  %p666_p6 = scmp.lt.u32.totalorder %s662_s26, %s877_s8 }
 0x31f   :  { %p668_p7 = pnand %p666_p6, %p663_p5 }
 0x321   :  { %671 = shalt.err (!%p668_p7)
}
 0x322   :  { %s676_s10 = smov 128   ;;  %s677_s0 = smov 8   ;;  %501 = vst [vmem:[%s878_s9 + $0x8] sm:$0xf] %v564_v59 }
 0x323   :  { %513 = dma.vmem_to_hbm [thread:$0]  %s508_s1, 384, %s877_s8, [#allocation4], %s676_s10, %s676_s10, %s677_s0  }
 0x324   :  { %672 = dma.done.wait [#allocation4], 384  }
 0x325   :  { %673 = vsyncadd [#allocation4], 4294966912 }
 0x326   :  { %521 = vsyncpa [#allocation4], 1 }

// kernel: transformer_forward.49
= control target key start
LH: loop header
LB: loop body
LE: loop exit
PB: predicated region body
PF: predicated region fallthrough
CT: control target
= control target key end

     0   :  { %vm19_vm0 = vcmask 392192   ;;  %v233_v1 = vmov 0.0   ;;  %s305_s1 = inlined_call_operand.vmem [shape: bf16[128,48], index: 1, kind: input, shape index: {}]   ;;  %s306_s0 = inlined_call_operand.vmem [shape: bf16[24,128], index: 0, kind: input, shape index: {}]   ;;  %s307_s2 = inlined_call_operand.vmem [shape: f32[1,48], index: 2, kind: input, shape index: {}]   ;;  %s308_s3 = inlined_call_operand.vmem [shape: f32[24,48], index: 3, kind: output, shape index: {}]  }
   0x1   :  { %v223_v0 = vld [vmem:[%s305_s1] sm:$0xff]   ;;  %22 = vst.msk [vmem:[#allocation2 + $0x10] sm:$0xff] %vm19_vm0, %v233_v1  ;;  %20 = vst.msk [vmem:[#allocation2] sm:$0xff] %vm19_vm0, %v233_v1  ;;  %v224_v2 = vld [vmem:[%s305_s1 + $0x8] sm:$0xff]  }
   0x2   :  { %21 = vst.msk [vmem:[#allocation2 + $0x8] sm:$0xff] %vm19_vm0, %v233_v1  ;;  %202 = vmatprep.subr.bf16.mxu0 %v223_v0  ;;  %v225_v3 = vld [vmem:[%s305_s1 + $0x10] sm:$0xff]   ;;  %v226_v4 = vld [vmem:[%s305_s1 + $0x18] sm:$0xff]   ;;  %v231_v5 = vld [vmem:[%s306_s0] sm:$0xff]  }
   0x3   :  { %203 = vmatpush3.bf16.msra.mxu0 %v223_v0  ;;  %218 = vmatprep.mubr.bf16.mxu0 %v231_v5  ;;  %v227_v6 = vld [vmem:[%s305_s1 + $0x20] sm:$0xff]   ;;  %v228_v7 = vld [vmem:[%s305_s1 + $0x28] sm:$0xff]   ;;  %v229_v8 = vld [vmem:[%s305_s1 + $0x30] sm:$0xff]  }
   0x4   :  { %204 = vmatprep.subr.bf16.mxu0 %v224_v2  ;;  %v230_v9 = vld [vmem:[%s305_s1 + $0x38] sm:$0xff]   ;;  %v232_v10 = vld [vmem:[%s306_s0 + $0x8] ss:$0 sps:$4 sm:$0xff]   ;;  %v191_v21 = vld [vmem:[%s307_s2] ss:$0 sm:$0xff] }
   0x7   :  { %205 = vmatpush3.bf16.msra.mxu0 %v224_v2 }
   0x8   :  { %206 = vmatprep.subr.bf16.mxu0 %v225_v3  ;;  %v25_v11 = vld [vmem:[#allocation2 + $0x10] sm:$0xff]  ;;  %v23_v12 = vld [vmem:[#allocation2] sm:$0xff] }
   0x9   :  { %v24_v16 = vld [vmem:[#allocation2 + $0x8] sm:$0xff] }
   0xb   :  { %207 = vmatpush3.bf16.msra.mxu0 %v225_v3 }
   0xc   :  { %208 = vmatprep.subr.bf16.mxu0 %v226_v4 }
   0xf   :  { %209 = vmatpush3.bf16.msra.mxu0 %v226_v4 }
  0x10   :  { %210 = vmatprep.subr.bf16.mxu0 %v227_v6 }
  0x13   :  { %211 = vmatpush3.bf16.msra.mxu0 %v227_v6 }
  0x14   :  { %212 = vmatprep.subr.bf16.mxu0 %v228_v7 }
  0x17   :  { %213 = vmatpush3.bf16.msra.mxu0 %v228_v7 }
  0x18   :  { %214 = vmatprep.subr.bf16.mxu0 %v229_v8 }
  0x1b   :  { %215 = vmatpush3.bf16.msra.mxu0 %v229_v8 }
  0x1c   :  { %216 = vmatprep.subr.bf16.mxu0 %v230_v9 }
  0x1f   :  { %217 = vmatpush3.bf16.msra.mxu0 %v230_v9 }
  0x22   :  { %219 = vmatmul.mubr.bf16.vlgmr.msra.gmra.mrb[0].mxu0 %v232_v10 }
  0xf5   :  { %v220_v13 = vpop.f32.mrb[0].mxu0 }
  0xf6   :  { %v153_v14 = vadd.f32 %v220_v13, %v25_v11  ;;  %v137_v15 = vpop.f32.mrb[1].mxu0 }
  0xf7   :  { %v151_v17 = vadd.f32 %v137_v15, %v23_v12  ;;  %v221_v18 = vpop.f32.mrb[2].mxu0 }
  0xf8   :  { %157 = vst.msk [vmem:[#allocation2 + $0x10] sm:$0xff] %vm19_vm0, %v153_v14  ;;  %v140_v19 = vpop.f32.mrb[3].mxu0 }
  0xf9   :  { %155 = vst.msk [vmem:[#allocation2] sm:$0xff] %vm19_vm0, %v151_v17  ;;  %v152_v20 = vadd.f32 %v140_v19, %v24_v16 }
  0xfb   :  { %156 = vst.msk [vmem:[#allocation2 + $0x8] sm:$0xff] %vm19_vm0, %v152_v20 }
  0xff   :  { %v163_v22 = vld [vmem:[#allocation2 + $0x10] sm:$0xff] }
 0x100   :  { %v173_v23 = vadd.f32 %v191_v21, %v163_v22  ;;  %v161_v24 = vld [vmem:[#allocation2] sm:$0xff] }
 0x101   :  { %v171_v25 = vadd.f32 %v191_v21, %v161_v24 }
 0x102   :  { %176 = vst.msk [vmem:[%s308_s3 + $0x10] sm:$0xff] %vm19_vm0, %v173_v23  ;;  %v162_v26 = vld [vmem:[#allocation2 + $0x8] sm:$0xff] }
 0x103   :  { %174 = vst.msk [vmem:[%s308_s3] sm:$0xff] %vm19_vm0, %v171_v25  ;;  %v172_v27 = vadd.f32 %v191_v21, %v162_v26 }
 0x105   :  { %175 = vst.msk [vmem:[%s308_s3 + $0x8] sm:$0xff] %vm19_vm0, %v172_v27 }

</bundles_post_ra>
